<compile_context>
chip_gen: v7x
topology: tpu7x:2x2x1
jax: 0.10.0
libtpu: 0.0.40
codegen_flags: <defaults>
</compile_context>

<pallas_src>
import functools
import math

import jax
import jax.numpy as jnp
from jax.experimental import pallas as pl
from jax.experimental.pallas import tpu as pltpu

PADDING_VALUE = -1


# ----------------------------------------------------------------------------
# In-kernel helpers
# ----------------------------------------------------------------------------
def _layernorm(x, g, b, eps=1e-5):
    mu = jnp.mean(x, axis=-1, keepdims=True)
    var = jnp.mean(jnp.square(x - mu), axis=-1, keepdims=True)
    return (x - mu) * jax.lax.rsqrt(var + eps) * g + b


def _dequant_bf16(w_i8):
    # int8 -> f32 -> bf16 (int8 values are exactly representable in bf16).
    return w_i8.astype(jnp.float32).astype(jnp.bfloat16)


# ----------------------------------------------------------------------------
# Fused kernel: embedding prologue (layer 0) + 6 post-norm encoder layers.
# Grid axis 0 = layer (sequential).  The output block (constant index map) is
# the resident activation carry.
# ----------------------------------------------------------------------------
def _encoder_stack_kernel(svg_ref, cemb_ref, rffw_ref, rffb_ref, pos_ref,
                          ipw_ref, ipb_ref, opw_ref, opb_ref,
                          l1g_ref, l1b_ref,
                          f1w_ref, f1s_ref, f1b_ref,
                          f2w_ref, f2s_ref, f2b_ref,
                          l2g_ref, l2b_ref,
                          o_ref,
                          qkv_sc, attn_sc,
                          *, B, S, heads, f_chunk):
    D = o_ref.shape[1]
    dh = D // heads
    F = f1b_ref.shape[2]
    layer = pl.program_id(0)
    bf16 = jnp.bfloat16

    # ---- fused embedding prologue (first grid step only) ---------------------
    @pl.when(layer == 0)
    def _():
        svg = svg_ref[...]                                   # (B*S, 8) f32
        bs = svg.shape[0]
        cmd = svg[:, 0:1].astype(jnp.int32)                  # command id, col 0
        cmd = jnp.where(cmd == PADDING_VALUE, 6, cmd)        # -1 -> 6
        n_emb = cemb_ref.shape[0]                            # 8 (table padded 7->8)
        onehot = (jax.lax.broadcasted_iota(jnp.int32, (bs, n_emb), 1) == cmd)
        cmd_emb = jnp.dot(onehot.astype(bf16), cemb_ref[...].astype(bf16),
                          preferred_element_type=jnp.float32)
        # rff_w_pad row 0 (cmd column) and rows 5..7 are zero, so the padded
        # svg @ padded W equals coords @ W exactly.
        proj = jnp.dot(svg.astype(bf16), rffw_ref[...].astype(bf16),
                       preferred_element_type=jnp.float32) + rffb_ref[...]
        o_ref[...] = cmd_emb + jnp.cos(proj) + pos_ref[...]  # pos pre-tiled on host

    x = o_ref[...]                                           # resident (B*S, D) f32
    x_bf = x.astype(bf16)

    # ---- self attention (scale folded into q columns of in_proj) -------------
    qkv_sc[...] = (jnp.dot(x_bf, ipw_ref[0], preferred_element_type=jnp.float32)
                   + ipb_ref[0])                             # (B*S, 3D) f32

    for b in range(B):
        r = b * S
        acc_b = jnp.zeros((S, D), jnp.float32)
        for h in range(heads):
            c = h * dh
            qh = qkv_sc[pl.ds(r, S), pl.ds(c, dh)].astype(bf16)
            kh = qkv_sc[pl.ds(r, S), pl.ds(D + c, dh)].astype(bf16)
            vh = qkv_sc[pl.ds(r, S), pl.ds(2 * D + c, dh)].astype(bf16)
            s = jax.lax.dot_general(qh, kh, (((1,), (1,)), ((), ())),
                                    preferred_element_type=jnp.float32)  # (S, S)
            s = s - jnp.max(s, axis=-1, keepdims=True)
            p = jnp.exp(s)
            p = p / jnp.sum(p, axis=-1, keepdims=True)       # exact softmax
            ah = jnp.dot(p.astype(bf16), vh, preferred_element_type=jnp.float32)
            # Fold the per-head out_proj row slice in here: sublane-aligned read,
            # lane-dense (S, D) accumulation -> no masked partial stores.
            acc_b = acc_b + jnp.dot(ah.astype(bf16),
                                    opw_ref[0, pl.ds(c, dh), :],
                                    preferred_element_type=jnp.float32)
        attn_sc[pl.ds(r, S), :] = acc_b                      # lane-dense store

    attn = attn_sc[...] + opb_ref[0]
    x = _layernorm(x + attn, l1g_ref[0], l1b_ref[0])         # norm1(x + sa(x))

    # ---- feed forward: int8 weights, hidden dim tiled in f_chunk slices ------
    x_bf = x.astype(bf16)
    h2 = jnp.zeros_like(x)                                   # (B*S, D) f32 accumulator
    for fc in range(0, F, f_chunk):
        w1c = _dequant_bf16(f1w_ref[0, :, pl.ds(fc, f_chunk)])        # (D, chunk)
        h1c = jnp.dot(x_bf, w1c, preferred_element_type=jnp.float32)
        h1c = jnp.maximum(h1c * f1s_ref[0, :, pl.ds(fc, f_chunk)]
                          + f1b_ref[0, :, pl.ds(fc, f_chunk)], 0.0)
        w2c = _dequant_bf16(f2w_ref[0, pl.ds(fc, f_chunk), :])        # (chunk, D)
        h2 = h2 + jnp.dot(h1c.astype(bf16), w2c,
                          preferred_element_type=jnp.float32)
    h2 = h2 * f2s_ref[0] + f2b_ref[0]
    x = _layernorm(x + h2, l2g_ref[0], l2b_ref[0])           # norm2(x + ff(x))

    o_ref[...] = x                                           # carry / final output


def _encoder_stack(svg_flat, prep, *, B, S, heads, f_chunk):
    BS = B * S
    D = prep["cmd_emb_pad"].shape[1]
    L = prep["in_proj_w"].shape[0]
    pos = jnp.tile(prep["pos_emb"][:S], (B, 1))              # (BS, D), tiny

    prologue = [svg_flat, prep["cmd_emb_pad"], prep["rff_w_pad"],
                prep["rff_b"], pos]
    weight_names = ["in_proj_w", "in_proj_b", "out_proj_w", "out_proj_b",
                    "ln1_g", "ln1_b",
                    "lin1_wq", "lin1_s", "lin1_b",
                    "lin2_wq", "lin2_s", "lin2_b",
                    "ln2_g", "ln2_b"]
    weights = [prep[n] for n in weight_names]

    def const_spec(a):
        nd = a.ndim
        return pl.BlockSpec(a.shape, lambda l: (0,) * nd)

    def layer_spec(a):
        nd = a.ndim
        return pl.BlockSpec((1,) + a.shape[1:], lambda l: (l,) + (0,) * (nd - 1))

    grid_spec = pltpu.PrefetchScalarGridSpec(
        num_scalar_prefetch=0,
        grid=(L,),
        in_specs=[const_spec(a) for a in prologue]
                 + [layer_spec(w) for w in weights],
        out_specs=pl.BlockSpec((BS, D), lambda l: (0, 0)),   # resident carry
        scratch_shapes=[
            pltpu.VMEM((BS, 3 * D), jnp.float32),            # qkv
            pltpu.VMEM((BS, D), jnp.float32),                # attention output
        ],
    )
    return pl.pallas_call(
        functools.partial(_encoder_stack_kernel, B=B, S=S, heads=heads,
                          f_chunk=f_chunk),
        out_shape=jax.ShapeDtypeStruct((BS, D), jnp.float32),
        grid_spec=grid_spec,
        compiler_params=pltpu.CompilerParams(
            dimension_semantics=("arbitrary",)),
    )(*prologue, *weights)


# ----------------------------------------------------------------------------
# SVGEncoder / SVGPNGModel forward
# ----------------------------------------------------------------------------
@functools.partial(jax.jit, static_argnames=("heads", "f_chunk"))
def svg_encoder_forward(svg, prep, *, heads, f_chunk=128):
    B, S, C = svg.shape
    BS = B * S
    svg_flat = jnp.pad(svg.reshape(BS, C), ((0, 0), (0, 8 - C)))   # (BS, 8)
    x = _encoder_stack(svg_flat, prep, B=B, S=S, heads=heads, f_chunk=f_chunk)
    return x.reshape(B, S, -1)


def svg_png_model_forward(svg, png, params):
    zs = svg_encoder_forward(svg, params["svgencoder"], heads=params["heads"])
    # TODO(synk): PNGEncoder / PNGDecoder are not defined in the reference
    # source, so zp / reconstructed_png cannot be implemented.
    zp = None
    reconstructed_png = None
    # TODO(synk): SVGPNGModel.forward calls self.svgdecoder(zs) with one arg
    # while SVGDecoder.forward requires (z, prev_data); not implementable as
    # written in the reference.
    reconstructed_svg = None
    return reconstructed_svg, reconstructed_png, zs, zp


# ----------------------------------------------------------------------------
# Parameter init (torch-like f32) and one-time prep for the kernel
# ----------------------------------------------------------------------------
def init_svg_encoder_params(key, embed_size=256, num_layers=6, ffn=2048,
                            max_len=1024):
    D = embed_size

    def normal(k, shape, std=0.02):
        return std * jax.random.normal(k, shape, dtype=jnp.float32)

    keys = iter(jax.random.split(key, 4 + num_layers))
    params = {
        "cmd_emb": normal(next(keys), (7, D), 1.0),             # Embedding(6+1, D)
        "pos_emb": normal(next(keys), (max_len, D), 1.0),       # Embedding(max_len, D)
        "rff_W": jax.random.normal(next(keys), (4, D), dtype=jnp.float32),
        "rff_b": 2.0 * jnp.pi * jax.random.uniform(next(keys), (D,), dtype=jnp.float32),
        "layers": [],
    }
    for _ in range(num_layers):
        k1, k2, k3, k4 = jax.random.split(next(keys), 4)
        params["layers"].append({
            "in_proj_w": normal(k1, (D, 3 * D)),
            "in_proj_b": jnp.zeros((3 * D,), jnp.float32),
            "out_proj_w": normal(k2, (D, D)),
            "out_proj_b": jnp.zeros((D,), jnp.float32),
            "ln1_g": jnp.ones((D,), jnp.float32),
            "ln1_b": jnp.zeros((D,), jnp.float32),
            "lin1_w": normal(k3, (D, ffn)),
            "lin1_b": jnp.zeros((ffn,), jnp.float32),
            "lin2_w": normal(k4, (ffn, D)),
            "lin2_b": jnp.zeros((D,), jnp.float32),
            "ln2_g": jnp.ones((D,), jnp.float32),
            "ln2_b": jnp.zeros((D,), jnp.float32),
        })
    return params


def _quantize_int8(w):
    """Per-output-channel symmetric int8 quantization of a (L, In, Out) stack."""
    amax = jnp.max(jnp.abs(w), axis=1, keepdims=True)           # (L, 1, Out)
    scale = jnp.maximum(amax, 1e-12) / 127.0
    q = jnp.clip(jnp.round(w / scale), -127.0, 127.0).astype(jnp.int8)
    return q, scale.astype(jnp.float32)


def prepare_encoder_params(raw, heads):
    """Stack per-layer weights, fold the 1/sqrt(dh) scale into q, cast attention
    weights to bf16, int8-quantize the FFN weights, pad embedding/rff tables."""
    D = raw["cmd_emb"].shape[1]
    dh = D // heads
    scale = 1.0 / math.sqrt(dh)
    L = len(raw["layers"])
    F = raw["layers"][0]["lin1_w"].shape[1]

    def stack(name):
        return jnp.stack([lp[name] for lp in raw["layers"]])

    q_scale = jnp.concatenate(
        [jnp.full((D,), scale, dtype=jnp.float32),
         jnp.ones((2 * D,), dtype=jnp.float32)])
    in_proj_w = stack("in_proj_w") * q_scale[None, None, :]
    in_proj_b = stack("in_proj_b") * q_scale[None, :]

    lin1_q, lin1_s = _quantize_int8(stack("lin1_w"))            # (L, D, F) int8
    lin2_q, lin2_s = _quantize_int8(stack("lin2_w"))            # (L, F, D) int8

    return {
        "cmd_emb_pad": jnp.pad(raw["cmd_emb"], ((0, 1), (0, 0))),   # (8, D)
        "rff_w_pad": jnp.pad(raw["rff_W"], ((1, 3), (0, 0))),       # (8, D)
        "rff_b": raw["rff_b"].reshape(1, D),
        "pos_emb": raw["pos_emb"],
        "in_proj_w": in_proj_w.astype(jnp.bfloat16),
        "in_proj_b": in_proj_b.reshape(L, 1, 3 * D),
        "out_proj_w": stack("out_proj_w").astype(jnp.bfloat16),
        "out_proj_b": stack("out_proj_b").reshape(L, 1, D),
        "ln1_g": stack("ln1_g").reshape(L, 1, D),
        "ln1_b": stack("ln1_b").reshape(L, 1, D),
        "lin1_wq": lin1_q,
        "lin1_s": lin1_s,                                          # (L, 1, F)
        "lin1_b": stack("lin1_b").reshape(L, 1, F),
        "lin2_wq": lin2_q,
        "lin2_s": lin2_s,                                          # (L, 1, D)
        "lin2_b": stack("lin2_b").reshape(L, 1, D),
        "ln2_g": stack("ln2_g").reshape(L, 1, D),
        "ln2_b": stack("ln2_b").reshape(L, 1, D),
    }


# ----------------------------------------------------------------------------
# Pure-JAX mirror of the kernel math (same bf16 rounding / int8 dequant path)
# ----------------------------------------------------------------------------
def reference_forward(svg, prep, heads):
    B, S, C = svg.shape
    BS = B * S
    D = prep["cmd_emb_pad"].shape[1]
    f32 = jnp.float32

    def bf(v):
        return v.astype(jnp.bfloat16).astype(f32)

    svg_flat = jnp.pad(svg.reshape(BS, C), ((0, 0), (0, 8 - C)))
    cmd = svg_flat[:, 0].astype(jnp.int32)
    cmd = jnp.where(cmd == PADDING_VALUE, 6, cmd)
    cmd_emb = bf(jnp.take(prep["cmd_emb_pad"], cmd, axis=0))
    enc = jnp.cos(bf(svg_flat) @ bf(prep["rff_w_pad"]) + prep["rff_b"])
    x = cmd_emb + enc + jnp.tile(prep["pos_emb"][:S], (B, 1))

    def ln(v, g, b):
        mu = jnp.mean(v, -1, keepdims=True)
        var = jnp.mean(jnp.square(v - mu), -1, keepdims=True)
        return (v - mu) * jax.lax.rsqrt(var + 1e-5) * g + b

    L = prep["in_proj_w"].shape[0]
    dh = D // heads
    for l in range(L):
        qkv = bf(x) @ prep["in_proj_w"][l].astype(f32) + prep["in_proj_b"][l]
        q = bf(qkv[:, :D]).reshape(B, S, heads, dh).transpose(0, 2, 1, 3)
        k = bf(qkv[:, D:2 * D]).reshape(B, S, heads, dh).transpose(0, 2, 1, 3)
        v = bf(qkv[:, 2 * D:]).reshape(B, S, heads, dh).transpose(0, 2, 1, 3)
        s = jnp.einsum("bhqd,bhkd->bhqk", q, k)        # scale folded into q
        p = jax.nn.softmax(s, axis=-1)
        a = jnp.einsum("bhqk,bhkd->bhqd", bf(p), v)
        a = a.transpose(0, 2, 1, 3).reshape(BS, D)
        a = bf(a) @ prep["out_proj_w"][l].astype(f32) + prep["out_proj_b"][l]
        x = ln(x + a, prep["ln1_g"][l], prep["ln1_b"][l])
        w1 = prep["lin1_wq"][l].astype(f32)            # int8 values, bf16-exact
        h = jnp.maximum((bf(x) @ w1) * prep["lin1_s"][l] + prep["lin1_b"][l], 0.0)
        w2 = prep["lin2_wq"][l].astype(f32)
        h = (bf(h) @ w2) * prep["lin2_s"][l] + prep["lin2_b"][l]
        x = ln(x + h, prep["ln2_g"][l], prep["ln2_b"][l])
    return x.reshape(B, S, D)


if __name__ == "__main__":
    key = jax.random.PRNGKey(0)
    k_params, k_cmd, k_coord, k_png = jax.random.split(key, 4)

    B, S = 2, 8                      # small batch / sequence
    D = 256                          # embed_size fixed by SVGEncoder.__init__
    heads = 8

    raw = init_svg_encoder_params(k_params, embed_size=D, num_layers=6)
    prep = prepare_encoder_params(raw, heads=heads)
    params = {"svgencoder": prep, "heads": heads}

    # svg: (B, S, 5) -- column 0 is the command id in {0..5}, with PADDING_VALUE
    # (-1) rows to exercise the padding remap.
    cmds = jax.random.randint(k_cmd, (B, S, 1), 0, 6).astype(jnp.float32)
    cmds = cmds.at[:, -2:, :].set(float(PADDING_VALUE))
    coords = jax.random.uniform(k_coord, (B, S, 4), dtype=jnp.float32)
    svg = jnp.concatenate([cmds, coords], axis=-1)

    # png: NCHW, unused (PNGEncoder undefined in the reference source)
    png = jax.random.normal(k_png, (2, 4, 16, 16), dtype=jnp.float32)

    rec_svg, rec_png, zs, zp = svg_png_model_forward(svg, png, params)
    zs = jax.block_until_ready(zs)
    assert zs.shape == (B, S, D)
    assert bool(jnp.all(jnp.isfinite(zs)))

    # sanity check against a pure-JAX mirror of the kernel math
    ref = reference_forward(svg, prep, heads)
    err = float(jnp.max(jnp.abs(zs - ref)))
    assert err < 5e-2, f"mismatch vs reference: {err}"

    print("KERNEL_OK")
</pallas_src>

<mosaic_0001>
module attributes {stable_mosaic.version = 11 : i64} {
  func.func @_encoder_stack_kernel(%arg0: i32, %arg1: memref<16x8xf32, #tpu.memory_space<vmem>>, %arg2: memref<8x256xf32, #tpu.memory_space<vmem>>, %arg3: memref<8x256xf32, #tpu.memory_space<vmem>>, %arg4: memref<1x256xf32, #tpu.memory_space<vmem>>, %arg5: memref<16x256xf32, #tpu.memory_space<vmem>>, %arg6: memref<1x256x768xbf16, #tpu.memory_space<vmem>>, %arg7: memref<1x1x768xf32, #tpu.memory_space<vmem>>, %arg8: memref<1x256x256xbf16, #tpu.memory_space<vmem>>, %arg9: memref<1x1x256xf32, #tpu.memory_space<vmem>>, %arg10: memref<1x1x256xf32, #tpu.memory_space<vmem>>, %arg11: memref<1x1x256xf32, #tpu.memory_space<vmem>>, %arg12: memref<1x256x2048xi8, #tpu.memory_space<vmem>>, %arg13: memref<1x1x2048xf32, #tpu.memory_space<vmem>>, %arg14: memref<1x1x2048xf32, #tpu.memory_space<vmem>>, %arg15: memref<1x2048x256xi8, #tpu.memory_space<vmem>>, %arg16: memref<1x1x256xf32, #tpu.memory_space<vmem>>, %arg17: memref<1x1x256xf32, #tpu.memory_space<vmem>>, %arg18: memref<1x1x256xf32, #tpu.memory_space<vmem>>, %arg19: memref<1x1x256xf32, #tpu.memory_space<vmem>>, %arg20: memref<16x256xf32, #tpu.memory_space<vmem>>, %arg21: memref<16x768xf32, #tpu.memory_space<vmem>>, %arg22: memref<16x256xf32, #tpu.memory_space<vmem>>) attributes {dimension_semantics = [#tpu.dimension_semantics<arbitrary>], iteration_bounds = array<i64: 6>, scalar_prefetch = 0 : i64, scratch_operands = 2 : i64, tpu.core_type = #tpu.core_type<tc>, window_params = [{pipeline_mode = #tpu.pipeline_mode<synchronous>, transform_indices = @transform_0, window_bounds = array<i64: 16, 8>}, {pipeline_mode = #tpu.pipeline_mode<synchronous>, transform_indices = @transform_1, window_bounds = array<i64: 8, 256>}, {pipeline_mode = #tpu.pipeline_mode<synchronous>, transform_indices = @transform_2, window_bounds = array<i64: 8, 256>}, {pipeline_mode = #tpu.pipeline_mode<synchronous>, transform_indices = @transform_3, window_bounds = array<i64: 1, 256>}, {pipeline_mode = #tpu.pipeline_mode<synchronous>, transform_indices = @transform_4, window_bounds = array<i64: 16, 256>}, {transform_indices = @transform_5, window_bounds = array<i64: 1, 256, 768>}, {transform_indices = @transform_6, window_bounds = array<i64: 1, 1, 768>}, {transform_indices = @transform_7, window_bounds = array<i64: 1, 256, 256>}, {transform_indices = @transform_8, window_bounds = array<i64: 1, 1, 256>}, {transform_indices = @transform_9, window_bounds = array<i64: 1, 1, 256>}, {transform_indices = @transform_10, window_bounds = array<i64: 1, 1, 256>}, {transform_indices = @transform_11, window_bounds = array<i64: 1, 256, 2048>}, {transform_indices = @transform_12, window_bounds = array<i64: 1, 1, 2048>}, {transform_indices = @transform_13, window_bounds = array<i64: 1, 1, 2048>}, {transform_indices = @transform_14, window_bounds = array<i64: 1, 2048, 256>}, {transform_indices = @transform_15, window_bounds = array<i64: 1, 1, 256>}, {transform_indices = @transform_16, window_bounds = array<i64: 1, 1, 256>}, {transform_indices = @transform_17, window_bounds = array<i64: 1, 1, 256>}, {transform_indices = @transform_18, window_bounds = array<i64: 1, 1, 256>}, {pipeline_mode = #tpu.pipeline_mode<synchronous>, transform_indices = @transform_19, window_bounds = array<i64: 16, 256>}]} {
    %c0_i32 = arith.constant 0 : i32
    %0 = arith.cmpi eq, %arg0, %c0_i32 : i32
    %1 = arith.extui %0 : i1 to i32
    %c0_i32_0 = arith.constant 0 : i32
    %2 = arith.cmpi ne, %1, %c0_i32_0 : i32
    scf.if %2 {
      %c0_482 = arith.constant 0 : index
      %c0_483 = arith.constant 0 : index
      %807 = vector.load %arg1[%c0_482, %c0_483] : memref<16x8xf32, #tpu.memory_space<vmem>>, vector<16x8xf32>
      %808 = vector.extract_strided_slice %807 {offsets = [0, 0], sizes = [16, 1], strides = [1, 1]} : vector<16x8xf32> to vector<16x1xf32>
      %809 = arith.fptosi %808 : vector<16x1xf32> to vector<16x1xi32>
      %c-1_i32 = arith.constant -1 : i32
      %810 = vector.broadcast %c-1_i32 : i32 to vector<16x1xi32>
      %811 = arith.cmpi eq, %809, %810 : vector<16x1xi32>
      %c6_i32 = arith.constant 6 : i32
      %812 = vector.broadcast %c6_i32 : i32 to vector<16x1xi32>
      %813 = arith.select %811, %812, %809 : vector<16x1xi1>, vector<16x1xi32>
      %814 = tpu.iota {dimensions = array<i32: 1>} : vector<16x8xi32>
      %815 = vector.broadcast %813 : vector<16x1xi32> to vector<16x8xi32>
      %816 = arith.cmpi eq, %814, %815 : vector<16x8xi32>
      %817 = arith.extui %816 : vector<16x8xi1> to vector<16x8xi32>
      %818 = arith.sitofp %817 : vector<16x8xi32> to vector<16x8xf32>
      %819 = arith.truncf %818 : vector<16x8xf32> to vector<16x8xbf16>
      %c0_484 = arith.constant 0 : index
      %c0_485 = arith.constant 0 : index
      %820 = vector.load %arg2[%c0_484, %c0_485] : memref<8x256xf32, #tpu.memory_space<vmem>>, vector<8x256xf32>
      %821 = arith.truncf %820 : vector<8x256xf32> to vector<8x256xbf16>
      %cst_486 = arith.constant dense<0.000000e+00> : vector<16x256xf32>
      %822 = tpu.matmul %819, %821, %cst_486 {dimension_numbers = #tpu.dot_dimension_numbers<[1], [0], [0], [1], [0, 0, 1, 1], [], []>} : vector<16x8xbf16>, vector<8x256xbf16>, vector<16x256xf32> -> vector<16x256xf32>
      %823 = arith.truncf %807 : vector<16x8xf32> to vector<16x8xbf16>
      %c0_487 = arith.constant 0 : index
      %c0_488 = arith.constant 0 : index
      %824 = vector.load %arg3[%c0_487, %c0_488] : memref<8x256xf32, #tpu.memory_space<vmem>>, vector<8x256xf32>
      %825 = arith.truncf %824 : vector<8x256xf32> to vector<8x256xbf16>
      %cst_489 = arith.constant dense<0.000000e+00> : vector<16x256xf32>
      %826 = tpu.matmul %823, %825, %cst_489 {dimension_numbers = #tpu.dot_dimension_numbers<[1], [0], [0], [1], [0, 0, 1, 1], [], []>} : vector<16x8xbf16>, vector<8x256xbf16>, vector<16x256xf32> -> vector<16x256xf32>
      %c0_490 = arith.constant 0 : index
      %c0_491 = arith.constant 0 : index
      %827 = vector.load %arg4[%c0_490, %c0_491] : memref<1x256xf32, #tpu.memory_space<vmem>>, vector<1x256xf32>
      %828 = vector.broadcast %827 : vector<1x256xf32> to vector<16x256xf32>
      %829 = arith.addf %826, %828 : vector<16x256xf32>
      %830 = math.cos %829 : vector<16x256xf32>
      %831 = arith.addf %822, %830 : vector<16x256xf32>
      %c0_492 = arith.constant 0 : index
      %c0_493 = arith.constant 0 : index
      %832 = vector.load %arg5[%c0_492, %c0_493] : memref<16x256xf32, #tpu.memory_space<vmem>>, vector<16x256xf32>
      %833 = arith.addf %831, %832 : vector<16x256xf32>
      %c0_494 = arith.constant 0 : index
      %c0_495 = arith.constant 0 : index
      %834 = vector.load %arg20[%c0_494, %c0_495] : memref<16x256xf32, #tpu.memory_space<vmem>>, vector<16x256xf32>
      tpu.vector_store %arg20[%c0_494, %c0_495], %833 {strides = array<i32>} : memref<16x256xf32, #tpu.memory_space<vmem>>, vector<16x256xf32>,
    } else {
    }
    %c0 = arith.constant 0 : index
    %c0_1 = arith.constant 0 : index
    %3 = vector.load %arg20[%c0, %c0_1] : memref<16x256xf32, #tpu.memory_space<vmem>>, vector<16x256xf32>
    %4 = arith.truncf %3 : vector<16x256xf32> to vector<16x256xbf16>
    %c0_2 = arith.constant 0 : index
    %c0_3 = arith.constant 0 : index
    %c0_4 = arith.constant 0 : index
    %5 = vector.load %arg6[%c0_2, %c0_3, %c0_4] : memref<1x256x768xbf16, #tpu.memory_space<vmem>>, vector<1x256x768xbf16>
    %6 = vector.shape_cast %5 : vector<1x256x768xbf16> to vector<256x768xbf16>
    %cst = arith.constant dense<0.000000e+00> : vector<16x768xf32>
    %7 = tpu.matmul %4, %6, %cst {dimension_numbers = #tpu.dot_dimension_numbers<[1], [0], [0], [1], [0, 0, 1, 1], [], []>} : vector<16x256xbf16>, vector<256x768xbf16>, vector<16x768xf32> -> vector<16x768xf32>
    %c0_5 = arith.constant 0 : index
    %c0_6 = arith.constant 0 : index
    %c0_7 = arith.constant 0 : index
    %8 = vector.load %arg7[%c0_5, %c0_6, %c0_7] : memref<1x1x768xf32, #tpu.memory_space<vmem>>, vector<1x1x768xf32>
    %9 = vector.shape_cast %8 : vector<1x1x768xf32> to vector<1x768xf32>
    %10 = vector.broadcast %9 : vector<1x768xf32> to vector<16x768xf32>
    %11 = arith.addf %7, %10 : vector<16x768xf32>
    %c0_8 = arith.constant 0 : index
    %c0_9 = arith.constant 0 : index
    %12 = vector.load %arg21[%c0_8, %c0_9] : memref<16x768xf32, #tpu.memory_space<vmem>>, vector<16x768xf32>
    tpu.vector_store %arg21[%c0_8, %c0_9], %11 {strides = array<i32>} : memref<16x768xf32, #tpu.memory_space<vmem>>, vector<16x768xf32>,
    %cst_10 = arith.constant 0.000000e+00 : f32
    %13 = vector.broadcast %cst_10 : f32 to vector<8x256xf32>
    %c0_11 = arith.constant 0 : index
    %c0_12 = arith.constant 0 : index
    %14 = vector.load %arg21[%c0_11, %c0_12] : memref<16x768xf32, #tpu.memory_space<vmem>>, vector<8x32xf32>
    %15 = arith.truncf %14 : vector<8x32xf32> to vector<8x32xbf16>
    %c0_13 = arith.constant 0 : index
    %c256 = arith.constant 256 : index
    %16 = vector.load %arg21[%c0_13, %c256] : memref<16x768xf32, #tpu.memory_space<vmem>>, vector<8x32xf32>
    %17 = arith.truncf %16 : vector<8x32xf32> to vector<8x32xbf16>
    %c0_14 = arith.constant 0 : index
    %c512 = arith.constant 512 : index
    %18 = vector.load %arg21[%c0_14, %c512] : memref<16x768xf32, #tpu.memory_space<vmem>>, vector<8x32xf32>
    %19 = arith.truncf %18 : vector<8x32xf32> to vector<8x32xbf16>
    %cst_15 = arith.constant dense<0.000000e+00> : vector<8x8xf32>
    %20 = tpu.matmul %15, %17, %cst_15 {dimension_numbers = #tpu.dot_dimension_numbers<[1], [1], [0], [0], [0, 0, 1, 0], [], []>} : vector<8x32xbf16>, vector<8x32xbf16>, vector<8x8xf32> -> vector<8x8xf32>
    %cst_16 = arith.constant dense<0xFF800000> : vector<8xf32>
    %21 = vector.multi_reduction <maximumf>, %20, %cst_16 [1] : vector<8x8xf32> to vector<8xf32>
    %22 = vector.shape_cast %21 : vector<8xf32> to vector<8x1xf32>
    %23 = vector.broadcast %22 : vector<8x1xf32> to vector<8x8xf32>
    %24 = arith.subf %20, %23 : vector<8x8xf32>
    %25 = math.exp %24 : vector<8x8xf32>
    %cst_17 = arith.constant dense<0.000000e+00> : vector<8xf32>
    %26 = vector.multi_reduction <add>, %25, %cst_17 [1] : vector<8x8xf32> to vector<8xf32>
    %27 = vector.shape_cast %26 : vector<8xf32> to vector<8x1xf32>
    %28 = vector.broadcast %27 : vector<8x1xf32> to vector<8x8xf32>
    %29 = arith.divf %25, %28 : vector<8x8xf32>
    %30 = arith.truncf %29 : vector<8x8xf32> to vector<8x8xbf16>
    %cst_18 = arith.constant dense<0.000000e+00> : vector<8x32xf32>
    %31 = tpu.matmul %30, %19, %cst_18 {dimension_numbers = #tpu.dot_dimension_numbers<[1], [0], [0], [1], [0, 0, 1, 1], [], []>} : vector<8x8xbf16>, vector<8x32xbf16>, vector<8x32xf32> -> vector<8x32xf32>
    %32 = arith.truncf %31 : vector<8x32xf32> to vector<8x32xbf16>
    %c0_19 = arith.constant 0 : index
    %c0_20 = arith.constant 0 : index
    %c0_21 = arith.constant 0 : index
    %33 = vector.load %arg8[%c0_19, %c0_20, %c0_21] : memref<1x256x256xbf16, #tpu.memory_space<vmem>>, vector<1x32x256xbf16>
    %34 = vector.shape_cast %33 : vector<1x32x256xbf16> to vector<32x256xbf16>
    %cst_22 = arith.constant dense<0.000000e+00> : vector<8x256xf32>
    %35 = tpu.matmul %32, %34, %cst_22 {dimension_numbers = #tpu.dot_dimension_numbers<[1], [0], [0], [1], [0, 0, 1, 1], [], []>} : vector<8x32xbf16>, vector<32x256xbf16>, vector<8x256xf32> -> vector<8x256xf32>
    %36 = arith.addf %13, %35 : vector<8x256xf32>
    %c0_23 = arith.constant 0 : index
    %c32 = arith.constant 32 : index
    %37 = vector.load %arg21[%c0_23, %c32] : memref<16x768xf32, #tpu.memory_space<vmem>>, vector<8x32xf32>
    %38 = arith.truncf %37 : vector<8x32xf32> to vector<8x32xbf16>
    %c0_24 = arith.constant 0 : index
    %c288 = arith.constant 288 : index
    %39 = vector.load %arg21[%c0_24, %c288] : memref<16x768xf32, #tpu.memory_space<vmem>>, vector<8x32xf32>
    %40 = arith.truncf %39 : vector<8x32xf32> to vector<8x32xbf16>
    %c0_25 = arith.constant 0 : index
    %c544 = arith.constant 544 : index
    %41 = vector.load %arg21[%c0_25, %c544] : memref<16x768xf32, #tpu.memory_space<vmem>>, vector<8x32xf32>
    %42 = arith.truncf %41 : vector<8x32xf32> to vector<8x32xbf16>
    %cst_26 = arith.constant dense<0.000000e+00> : vector<8x8xf32>
    %43 = tpu.matmul %38, %40, %cst_26 {dimension_numbers = #tpu.dot_dimension_numbers<[1], [1], [0], [0], [0, 0, 1, 0], [], []>} : vector<8x32xbf16>, vector<8x32xbf16>, vector<8x8xf32> -> vector<8x8xf32>
    %cst_27 = arith.constant dense<0xFF800000> : vector<8xf32>
    %44 = vector.multi_reduction <maximumf>, %43, %cst_27 [1] : vector<8x8xf32> to vector<8xf32>
    %45 = vector.shape_cast %44 : vector<8xf32> to vector<8x1xf32>
    %46 = vector.broadcast %45 : vector<8x1xf32> to vector<8x8xf32>
    %47 = arith.subf %43, %46 : vector<8x8xf32>
    %48 = math.exp %47 : vector<8x8xf32>
    %cst_28 = arith.constant dense<0.000000e+00> : vector<8xf32>
    %49 = vector.multi_reduction <add>, %48, %cst_28 [1] : vector<8x8xf32> to vector<8xf32>
    %50 = vector.shape_cast %49 : vector<8xf32> to vector<8x1xf32>
    %51 = vector.broadcast %50 : vector<8x1xf32> to vector<8x8xf32>
    %52 = arith.divf %48, %51 : vector<8x8xf32>
    %53 = arith.truncf %52 : vector<8x8xf32> to vector<8x8xbf16>
    %cst_29 = arith.constant dense<0.000000e+00> : vector<8x32xf32>
    %54 = tpu.matmul %53, %42, %cst_29 {dimension_numbers = #tpu.dot_dimension_numbers<[1], [0], [0], [1], [0, 0, 1, 1], [], []>} : vector<8x8xbf16>, vector<8x32xbf16>, vector<8x32xf32> -> vector<8x32xf32>
    %55 = arith.truncf %54 : vector<8x32xf32> to vector<8x32xbf16>
    %c0_30 = arith.constant 0 : index
    %c32_31 = arith.constant 32 : index
    %c0_32 = arith.constant 0 : index
    %56 = vector.load %arg8[%c0_30, %c32_31, %c0_32] : memref<1x256x256xbf16, #tpu.memory_space<vmem>>, vector<1x32x256xbf16>
    %57 = vector.shape_cast %56 : vector<1x32x256xbf16> to vector<32x256xbf16>
    %cst_33 = arith.constant dense<0.000000e+00> : vector<8x256xf32>
    %58 = tpu.matmul %55, %57, %cst_33 {dimension_numbers = #tpu.dot_dimension_numbers<[1], [0], [0], [1], [0, 0, 1, 1], [], []>} : vector<8x32xbf16>, vector<32x256xbf16>, vector<8x256xf32> -> vector<8x256xf32>
    %59 = arith.addf %36, %58 : vector<8x256xf32>
    %c0_34 = arith.constant 0 : index
    %c64 = arith.constant 64 : index
    %60 = vector.load %arg21[%c0_34, %c64] : memref<16x768xf32, #tpu.memory_space<vmem>>, vector<8x32xf32>
    %61 = arith.truncf %60 : vector<8x32xf32> to vector<8x32xbf16>
    %c0_35 = arith.constant 0 : index
    %c320 = arith.constant 320 : index
    %62 = vector.load %arg21[%c0_35, %c320] : memref<16x768xf32, #tpu.memory_space<vmem>>, vector<8x32xf32>
    %63 = arith.truncf %62 : vector<8x32xf32> to vector<8x32xbf16>
    %c0_36 = arith.constant 0 : index
    %c576 = arith.constant 576 : index
    %64 = vector.load %arg21[%c0_36, %c576] : memref<16x768xf32, #tpu.memory_space<vmem>>, vector<8x32xf32>
    %65 = arith.truncf %64 : vector<8x32xf32> to vector<8x32xbf16>
    %cst_37 = arith.constant dense<0.000000e+00> : vector<8x8xf32>
    %66 = tpu.matmul %61, %63, %cst_37 {dimension_numbers = #tpu.dot_dimension_numbers<[1], [1], [0], [0], [0, 0, 1, 0], [], []>} : vector<8x32xbf16>, vector<8x32xbf16>, vector<8x8xf32> -> vector<8x8xf32>
    %cst_38 = arith.constant dense<0xFF800000> : vector<8xf32>
    %67 = vector.multi_reduction <maximumf>, %66, %cst_38 [1] : vector<8x8xf32> to vector<8xf32>
    %68 = vector.shape_cast %67 : vector<8xf32> to vector<8x1xf32>
    %69 = vector.broadcast %68 : vector<8x1xf32> to vector<8x8xf32>
    %70 = arith.subf %66, %69 : vector<8x8xf32>
    %71 = math.exp %70 : vector<8x8xf32>
    %cst_39 = arith.constant dense<0.000000e+00> : vector<8xf32>
    %72 = vector.multi_reduction <add>, %71, %cst_39 [1] : vector<8x8xf32> to vector<8xf32>
    %73 = vector.shape_cast %72 : vector<8xf32> to vector<8x1xf32>
    %74 = vector.broadcast %73 : vector<8x1xf32> to vector<8x8xf32>
    %75 = arith.divf %71, %74 : vector<8x8xf32>
    %76 = arith.truncf %75 : vector<8x8xf32> to vector<8x8xbf16>
    %cst_40 = arith.constant dense<0.000000e+00> : vector<8x32xf32>
    %77 = tpu.matmul %76, %65, %cst_40 {dimension_numbers = #tpu.dot_dimension_numbers<[1], [0], [0], [1], [0, 0, 1, 1], [], []>} : vector<8x8xbf16>, vector<8x32xbf16>, vector<8x32xf32> -> vector<8x32xf32>
    %78 = arith.truncf %77 : vector<8x32xf32> to vector<8x32xbf16>
    %c0_41 = arith.constant 0 : index
    %c64_42 = arith.constant 64 : index
    %c0_43 = arith.constant 0 : index
    %79 = vector.load %arg8[%c0_41, %c64_42, %c0_43] : memref<1x256x256xbf16, #tpu.memory_space<vmem>>, vector<1x32x256xbf16>
    %80 = vector.shape_cast %79 : vector<1x32x256xbf16> to vector<32x256xbf16>
    %cst_44 = arith.constant dense<0.000000e+00> : vector<8x256xf32>
    %81 = tpu.matmul %78, %80, %cst_44 {dimension_numbers = #tpu.dot_dimension_numbers<[1], [0], [0], [1], [0, 0, 1, 1], [], []>} : vector<8x32xbf16>, vector<32x256xbf16>, vector<8x256xf32> -> vector<8x256xf32>
    %82 = arith.addf %59, %81 : vector<8x256xf32>
    %c0_45 = arith.constant 0 : index
    %c96 = arith.constant 96 : index
    %83 = vector.load %arg21[%c0_45, %c96] : memref<16x768xf32, #tpu.memory_space<vmem>>, vector<8x32xf32>
    %84 = arith.truncf %83 : vector<8x32xf32> to vector<8x32xbf16>
    %c0_46 = arith.constant 0 : index
    %c352 = arith.constant 352 : index
    %85 = vector.load %arg21[%c0_46, %c352] : memref<16x768xf32, #tpu.memory_space<vmem>>, vector<8x32xf32>
    %86 = arith.truncf %85 : vector<8x32xf32> to vector<8x32xbf16>
    %c0_47 = arith.constant 0 : index
    %c608 = arith.constant 608 : index
    %87 = vector.load %arg21[%c0_47, %c608] : memref<16x768xf32, #tpu.memory_space<vmem>>, vector<8x32xf32>
    %88 = arith.truncf %87 : vector<8x32xf32> to vector<8x32xbf16>
    %cst_48 = arith.constant dense<0.000000e+00> : vector<8x8xf32>
    %89 = tpu.matmul %84, %86, %cst_48 {dimension_numbers = #tpu.dot_dimension_numbers<[1], [1], [0], [0], [0, 0, 1, 0], [], []>} : vector<8x32xbf16>, vector<8x32xbf16>, vector<8x8xf32> -> vector<8x8xf32>
    %cst_49 = arith.constant dense<0xFF800000> : vector<8xf32>
    %90 = vector.multi_reduction <maximumf>, %89, %cst_49 [1] : vector<8x8xf32> to vector<8xf32>
    %91 = vector.shape_cast %90 : vector<8xf32> to vector<8x1xf32>
    %92 = vector.broadcast %91 : vector<8x1xf32> to vector<8x8xf32>
    %93 = arith.subf %89, %92 : vector<8x8xf32>
    %94 = math.exp %93 : vector<8x8xf32>
    %cst_50 = arith.constant dense<0.000000e+00> : vector<8xf32>
    %95 = vector.multi_reduction <add>, %94, %cst_50 [1] : vector<8x8xf32> to vector<8xf32>
    %96 = vector.shape_cast %95 : vector<8xf32> to vector<8x1xf32>
    %97 = vector.broadcast %96 : vector<8x1xf32> to vector<8x8xf32>
    %98 = arith.divf %94, %97 : vector<8x8xf32>
    %99 = arith.truncf %98 : vector<8x8xf32> to vector<8x8xbf16>
    %cst_51 = arith.constant dense<0.000000e+00> : vector<8x32xf32>
    %100 = tpu.matmul %99, %88, %cst_51 {dimension_numbers = #tpu.dot_dimension_numbers<[1], [0], [0], [1], [0, 0, 1, 1], [], []>} : vector<8x8xbf16>, vector<8x32xbf16>, vector<8x32xf32> -> vector<8x32xf32>
    %101 = arith.truncf %100 : vector<8x32xf32> to vector<8x32xbf16>
    %c0_52 = arith.constant 0 : index
    %c96_53 = arith.constant 96 : index
    %c0_54 = arith.constant 0 : index
    %102 = vector.load %arg8[%c0_52, %c96_53, %c0_54] : memref<1x256x256xbf16, #tpu.memory_space<vmem>>, vector<1x32x256xbf16>
    %103 = vector.shape_cast %102 : vector<1x32x256xbf16> to vector<32x256xbf16>
    %cst_55 = arith.constant dense<0.000000e+00> : vector<8x256xf32>
    %104 = tpu.matmul %101, %103, %cst_55 {dimension_numbers = #tpu.dot_dimension_numbers<[1], [0], [0], [1], [0, 0, 1, 1], [], []>} : vector<8x32xbf16>, vector<32x256xbf16>, vector<8x256xf32> -> vector<8x256xf32>
    %105 = arith.addf %82, %104 : vector<8x256xf32>
    %c0_56 = arith.constant 0 : index
    %c128 = arith.constant 128 : index
    %106 = vector.load %arg21[%c0_56, %c128] : memref<16x768xf32, #tpu.memory_space<vmem>>, vector<8x32xf32>
    %107 = arith.truncf %106 : vector<8x32xf32> to vector<8x32xbf16>
    %c0_57 = arith.constant 0 : index
    %c384 = arith.constant 384 : index
    %108 = vector.load %arg21[%c0_57, %c384] : memref<16x768xf32, #tpu.memory_space<vmem>>, vector<8x32xf32>
    %109 = arith.truncf %108 : vector<8x32xf32> to vector<8x32xbf16>
    %c0_58 = arith.constant 0 : index
    %c640 = arith.constant 640 : index
    %110 = vector.load %arg21[%c0_58, %c640] : memref<16x768xf32, #tpu.memory_space<vmem>>, vector<8x32xf32>
    %111 = arith.truncf %110 : vector<8x32xf32> to vector<8x32xbf16>
    %cst_59 = arith.constant dense<0.000000e+00> : vector<8x8xf32>
    %112 = tpu.matmul %107, %109, %cst_59 {dimension_numbers = #tpu.dot_dimension_numbers<[1], [1], [0], [0], [0, 0, 1, 0], [], []>} : vector<8x32xbf16>, vector<8x32xbf16>, vector<8x8xf32> -> vector<8x8xf32>
    %cst_60 = arith.constant dense<0xFF800000> : vector<8xf32>
    %113 = vector.multi_reduction <maximumf>, %112, %cst_60 [1] : vector<8x8xf32> to vector<8xf32>
    %114 = vector.shape_cast %113 : vector<8xf32> to vector<8x1xf32>
    %115 = vector.broadcast %114 : vector<8x1xf32> to vector<8x8xf32>
    %116 = arith.subf %112, %115 : vector<8x8xf32>
    %117 = math.exp %116 : vector<8x8xf32>
    %cst_61 = arith.constant dense<0.000000e+00> : vector<8xf32>
    %118 = vector.multi_reduction <add>, %117, %cst_61 [1] : vector<8x8xf32> to vector<8xf32>
    %119 = vector.shape_cast %118 : vector<8xf32> to vector<8x1xf32>
    %120 = vector.broadcast %119 : vector<8x1xf32> to vector<8x8xf32>
    %121 = arith.divf %117, %120 : vector<8x8xf32>
    %122 = arith.truncf %121 : vector<8x8xf32> to vector<8x8xbf16>
    %cst_62 = arith.constant dense<0.000000e+00> : vector<8x32xf32>
    %123 = tpu.matmul %122, %111, %cst_62 {dimension_numbers = #tpu.dot_dimension_numbers<[1], [0], [0], [1], [0, 0, 1, 1], [], []>} : vector<8x8xbf16>, vector<8x32xbf16>, vector<8x32xf32> -> vector<8x32xf32>
    %124 = arith.truncf %123 : vector<8x32xf32> to vector<8x32xbf16>
    %c0_63 = arith.constant 0 : index
    %c128_64 = arith.constant 128 : index
    %c0_65 = arith.constant 0 : index
    %125 = vector.load %arg8[%c0_63, %c128_64, %c0_65] : memref<1x256x256xbf16, #tpu.memory_space<vmem>>, vector<1x32x256xbf16>
    %126 = vector.shape_cast %125 : vector<1x32x256xbf16> to vector<32x256xbf16>
    %cst_66 = arith.constant dense<0.000000e+00> : vector<8x256xf32>
    %127 = tpu.matmul %124, %126, %cst_66 {dimension_numbers = #tpu.dot_dimension_numbers<[1], [0], [0], [1], [0, 0, 1, 1], [], []>} : vector<8x32xbf16>, vector<32x256xbf16>, vector<8x256xf32> -> vector<8x256xf32>
    %128 = arith.addf %105, %127 : vector<8x256xf32>
    %c0_67 = arith.constant 0 : index
    %c160 = arith.constant 160 : index
    %129 = vector.load %arg21[%c0_67, %c160] : memref<16x768xf32, #tpu.memory_space<vmem>>, vector<8x32xf32>
    %130 = arith.truncf %129 : vector<8x32xf32> to vector<8x32xbf16>
    %c0_68 = arith.constant 0 : index
    %c416 = arith.constant 416 : index
    %131 = vector.load %arg21[%c0_68, %c416] : memref<16x768xf32, #tpu.memory_space<vmem>>, vector<8x32xf32>
    %132 = arith.truncf %131 : vector<8x32xf32> to vector<8x32xbf16>
    %c0_69 = arith.constant 0 : index
    %c672 = arith.constant 672 : index
    %133 = vector.load %arg21[%c0_69, %c672] : memref<16x768xf32, #tpu.memory_space<vmem>>, vector<8x32xf32>
    %134 = arith.truncf %133 : vector<8x32xf32> to vector<8x32xbf16>
    %cst_70 = arith.constant dense<0.000000e+00> : vector<8x8xf32>
    %135 = tpu.matmul %130, %132, %cst_70 {dimension_numbers = #tpu.dot_dimension_numbers<[1], [1], [0], [0], [0, 0, 1, 0], [], []>} : vector<8x32xbf16>, vector<8x32xbf16>, vector<8x8xf32> -> vector<8x8xf32>
    %cst_71 = arith.constant dense<0xFF800000> : vector<8xf32>
    %136 = vector.multi_reduction <maximumf>, %135, %cst_71 [1] : vector<8x8xf32> to vector<8xf32>
    %137 = vector.shape_cast %136 : vector<8xf32> to vector<8x1xf32>
    %138 = vector.broadcast %137 : vector<8x1xf32> to vector<8x8xf32>
    %139 = arith.subf %135, %138 : vector<8x8xf32>
    %140 = math.exp %139 : vector<8x8xf32>
    %cst_72 = arith.constant dense<0.000000e+00> : vector<8xf32>
    %141 = vector.multi_reduction <add>, %140, %cst_72 [1] : vector<8x8xf32> to vector<8xf32>
    %142 = vector.shape_cast %141 : vector<8xf32> to vector<8x1xf32>
    %143 = vector.broadcast %142 : vector<8x1xf32> to vector<8x8xf32>
    %144 = arith.divf %140, %143 : vector<8x8xf32>
    %145 = arith.truncf %144 : vector<8x8xf32> to vector<8x8xbf16>
    %cst_73 = arith.constant dense<0.000000e+00> : vector<8x32xf32>
    %146 = tpu.matmul %145, %134, %cst_73 {dimension_numbers = #tpu.dot_dimension_numbers<[1], [0], [0], [1], [0, 0, 1, 1], [], []>} : vector<8x8xbf16>, vector<8x32xbf16>, vector<8x32xf32> -> vector<8x32xf32>
    %147 = arith.truncf %146 : vector<8x32xf32> to vector<8x32xbf16>
    %c0_74 = arith.constant 0 : index
    %c160_75 = arith.constant 160 : index
    %c0_76 = arith.constant 0 : index
    %148 = vector.load %arg8[%c0_74, %c160_75, %c0_76] : memref<1x256x256xbf16, #tpu.memory_space<vmem>>, vector<1x32x256xbf16>
    %149 = vector.shape_cast %148 : vector<1x32x256xbf16> to vector<32x256xbf16>
    %cst_77 = arith.constant dense<0.000000e+00> : vector<8x256xf32>
    %150 = tpu.matmul %147, %149, %cst_77 {dimension_numbers = #tpu.dot_dimension_numbers<[1], [0], [0], [1], [0, 0, 1, 1], [], []>} : vector<8x32xbf16>, vector<32x256xbf16>, vector<8x256xf32> -> vector<8x256xf32>
    %151 = arith.addf %128, %150 : vector<8x256xf32>
    %c0_78 = arith.constant 0 : index
    %c192 = arith.constant 192 : index
    %152 = vector.load %arg21[%c0_78, %c192] : memref<16x768xf32, #tpu.memory_space<vmem>>, vector<8x32xf32>
    %153 = arith.truncf %152 : vector<8x32xf32> to vector<8x32xbf16>
    %c0_79 = arith.constant 0 : index
    %c448 = arith.constant 448 : index
    %154 = vector.load %arg21[%c0_79, %c448] : memref<16x768xf32, #tpu.memory_space<vmem>>, vector<8x32xf32>
    %155 = arith.truncf %154 : vector<8x32xf32> to vector<8x32xbf16>
    %c0_80 = arith.constant 0 : index
    %c704 = arith.constant 704 : index
    %156 = vector.load %arg21[%c0_80, %c704] : memref<16x768xf32, #tpu.memory_space<vmem>>, vector<8x32xf32>
    %157 = arith.truncf %156 : vector<8x32xf32> to vector<8x32xbf16>
    %cst_81 = arith.constant dense<0.000000e+00> : vector<8x8xf32>
    %158 = tpu.matmul %153, %155, %cst_81 {dimension_numbers = #tpu.dot_dimension_numbers<[1], [1], [0], [0], [0, 0, 1, 0], [], []>} : vector<8x32xbf16>, vector<8x32xbf16>, vector<8x8xf32> -> vector<8x8xf32>
    %cst_82 = arith.constant dense<0xFF800000> : vector<8xf32>
    %159 = vector.multi_reduction <maximumf>, %158, %cst_82 [1] : vector<8x8xf32> to vector<8xf32>
    %160 = vector.shape_cast %159 : vector<8xf32> to vector<8x1xf32>
    %161 = vector.broadcast %160 : vector<8x1xf32> to vector<8x8xf32>
    %162 = arith.subf %158, %161 : vector<8x8xf32>
    %163 = math.exp %162 : vector<8x8xf32>
    %cst_83 = arith.constant dense<0.000000e+00> : vector<8xf32>
    %164 = vector.multi_reduction <add>, %163, %cst_83 [1] : vector<8x8xf32> to vector<8xf32>
    %165 = vector.shape_cast %164 : vector<8xf32> to vector<8x1xf32>
    %166 = vector.broadcast %165 : vector<8x1xf32> to vector<8x8xf32>
    %167 = arith.divf %163, %166 : vector<8x8xf32>
    %168 = arith.truncf %167 : vector<8x8xf32> to vector<8x8xbf16>
    %cst_84 = arith.constant dense<0.000000e+00> : vector<8x32xf32>
    %169 = tpu.matmul %168, %157, %cst_84 {dimension_numbers = #tpu.dot_dimension_numbers<[1], [0], [0], [1], [0, 0, 1, 1], [], []>} : vector<8x8xbf16>, vector<8x32xbf16>, vector<8x32xf32> -> vector<8x32xf32>
    %170 = arith.truncf %169 : vector<8x32xf32> to vector<8x32xbf16>
    %c0_85 = arith.constant 0 : index
    %c192_86 = arith.constant 192 : index
    %c0_87 = arith.constant 0 : index
    %171 = vector.load %arg8[%c0_85, %c192_86, %c0_87] : memref<1x256x256xbf16, #tpu.memory_space<vmem>>, vector<1x32x256xbf16>
    %172 = vector.shape_cast %171 : vector<1x32x256xbf16> to vector<32x256xbf16>
    %cst_88 = arith.constant dense<0.000000e+00> : vector<8x256xf32>
    %173 = tpu.matmul %170, %172, %cst_88 {dimension_numbers = #tpu.dot_dimension_numbers<[1], [0], [0], [1], [0, 0, 1, 1], [], []>} : vector<8x32xbf16>, vector<32x256xbf16>, vector<8x256xf32> -> vector<8x256xf32>
    %174 = arith.addf %151, %173 : vector<8x256xf32>
    %c0_89 = arith.constant 0 : index
    %c224 = arith.constant 224 : index
    %175 = vector.load %arg21[%c0_89, %c224] : memref<16x768xf32, #tpu.memory_space<vmem>>, vector<8x32xf32>
    %176 = arith.truncf %175 : vector<8x32xf32> to vector<8x32xbf16>
    %c0_90 = arith.constant 0 : index
    %c480 = arith.constant 480 : index
    %177 = vector.load %arg21[%c0_90, %c480] : memref<16x768xf32, #tpu.memory_space<vmem>>, vector<8x32xf32>
    %178 = arith.truncf %177 : vector<8x32xf32> to vector<8x32xbf16>
    %c0_91 = arith.constant 0 : index
    %c736 = arith.constant 736 : index
    %179 = vector.load %arg21[%c0_91, %c736] : memref<16x768xf32, #tpu.memory_space<vmem>>, vector<8x32xf32>
    %180 = arith.truncf %179 : vector<8x32xf32> to vector<8x32xbf16>
    %cst_92 = arith.constant dense<0.000000e+00> : vector<8x8xf32>
    %181 = tpu.matmul %176, %178, %cst_92 {dimension_numbers = #tpu.dot_dimension_numbers<[1], [1], [0], [0], [0, 0, 1, 0], [], []>} : vector<8x32xbf16>, vector<8x32xbf16>, vector<8x8xf32> -> vector<8x8xf32>
    %cst_93 = arith.constant dense<0xFF800000> : vector<8xf32>
    %182 = vector.multi_reduction <maximumf>, %181, %cst_93 [1] : vector<8x8xf32> to vector<8xf32>
    %183 = vector.shape_cast %182 : vector<8xf32> to vector<8x1xf32>
    %184 = vector.broadcast %183 : vector<8x1xf32> to vector<8x8xf32>
    %185 = arith.subf %181, %184 : vector<8x8xf32>
    %186 = math.exp %185 : vector<8x8xf32>
    %cst_94 = arith.constant dense<0.000000e+00> : vector<8xf32>
    %187 = vector.multi_reduction <add>, %186, %cst_94 [1] : vector<8x8xf32> to vector<8xf32>
    %188 = vector.shape_cast %187 : vector<8xf32> to vector<8x1xf32>
    %189 = vector.broadcast %188 : vector<8x1xf32> to vector<8x8xf32>
    %190 = arith.divf %186, %189 : vector<8x8xf32>
    %191 = arith.truncf %190 : vector<8x8xf32> to vector<8x8xbf16>
    %cst_95 = arith.constant dense<0.000000e+00> : vector<8x32xf32>
    %192 = tpu.matmul %191, %180, %cst_95 {dimension_numbers = #tpu.dot_dimension_numbers<[1], [0], [0], [1], [0, 0, 1, 1], [], []>} : vector<8x8xbf16>, vector<8x32xbf16>, vector<8x32xf32> -> vector<8x32xf32>
    %193 = arith.truncf %192 : vector<8x32xf32> to vector<8x32xbf16>
    %c0_96 = arith.constant 0 : index
    %c224_97 = arith.constant 224 : index
    %c0_98 = arith.constant 0 : index
    %194 = vector.load %arg8[%c0_96, %c224_97, %c0_98] : memref<1x256x256xbf16, #tpu.memory_space<vmem>>, vector<1x32x256xbf16>
    %195 = vector.shape_cast %194 : vector<1x32x256xbf16> to vector<32x256xbf16>
    %cst_99 = arith.constant dense<0.000000e+00> : vector<8x256xf32>
    %196 = tpu.matmul %193, %195, %cst_99 {dimension_numbers = #tpu.dot_dimension_numbers<[1], [0], [0], [1], [0, 0, 1, 1], [], []>} : vector<8x32xbf16>, vector<32x256xbf16>, vector<8x256xf32> -> vector<8x256xf32>
    %197 = arith.addf %174, %196 : vector<8x256xf32>
    %c0_100 = arith.constant 0 : index
    %c0_101 = arith.constant 0 : index
    %198 = vector.load %arg22[%c0_100, %c0_101] : memref<16x256xf32, #tpu.memory_space<vmem>>, vector<8x256xf32>
    tpu.vector_store %arg22[%c0_100, %c0_101], %197 {strides = array<i32>} : memref<16x256xf32, #tpu.memory_space<vmem>>, vector<8x256xf32>,
    %cst_102 = arith.constant 0.000000e+00 : f32
    %199 = vector.broadcast %cst_102 : f32 to vector<8x256xf32>
    %c8 = arith.constant 8 : index
    %c0_103 = arith.constant 0 : index
    %200 = vector.load %arg21[%c8, %c0_103] : memref<16x768xf32, #tpu.memory_space<vmem>>, vector<8x32xf32>
    %201 = arith.truncf %200 : vector<8x32xf32> to vector<8x32xbf16>
    %c8_104 = arith.constant 8 : index
    %c256_105 = arith.constant 256 : index
    %202 = vector.load %arg21[%c8_104, %c256_105] : memref<16x768xf32, #tpu.memory_space<vmem>>, vector<8x32xf32>
    %203 = arith.truncf %202 : vector<8x32xf32> to vector<8x32xbf16>
    %c8_106 = arith.constant 8 : index
    %c512_107 = arith.constant 512 : index
    %204 = vector.load %arg21[%c8_106, %c512_107] : memref<16x768xf32, #tpu.memory_space<vmem>>, vector<8x32xf32>
    %205 = arith.truncf %204 : vector<8x32xf32> to vector<8x32xbf16>
    %cst_108 = arith.constant dense<0.000000e+00> : vector<8x8xf32>
    %206 = tpu.matmul %201, %203, %cst_108 {dimension_numbers = #tpu.dot_dimension_numbers<[1], [1], [0], [0], [0, 0, 1, 0], [], []>} : vector<8x32xbf16>, vector<8x32xbf16>, vector<8x8xf32> -> vector<8x8xf32>
    %cst_109 = arith.constant dense<0xFF800000> : vector<8xf32>
    %207 = vector.multi_reduction <maximumf>, %206, %cst_109 [1] : vector<8x8xf32> to vector<8xf32>
    %208 = vector.shape_cast %207 : vector<8xf32> to vector<8x1xf32>
    %209 = vector.broadcast %208 : vector<8x1xf32> to vector<8x8xf32>
    %210 = arith.subf %206, %209 : vector<8x8xf32>
    %211 = math.exp %210 : vector<8x8xf32>
    %cst_110 = arith.constant dense<0.000000e+00> : vector<8xf32>
    %212 = vector.multi_reduction <add>, %211, %cst_110 [1] : vector<8x8xf32> to vector<8xf32>
    %213 = vector.shape_cast %212 : vector<8xf32> to vector<8x1xf32>
    %214 = vector.broadcast %213 : vector<8x1xf32> to vector<8x8xf32>
    %215 = arith.divf %211, %214 : vector<8x8xf32>
    %216 = arith.truncf %215 : vector<8x8xf32> to vector<8x8xbf16>
    %cst_111 = arith.constant dense<0.000000e+00> : vector<8x32xf32>
    %217 = tpu.matmul %216, %205, %cst_111 {dimension_numbers = #tpu.dot_dimension_numbers<[1], [0], [0], [1], [0, 0, 1, 1], [], []>} : vector<8x8xbf16>, vector<8x32xbf16>, vector<8x32xf32> -> vector<8x32xf32>
    %218 = arith.truncf %217 : vector<8x32xf32> to vector<8x32xbf16>
    %c0_112 = arith.constant 0 : index
    %c0_113 = arith.constant 0 : index
    %c0_114 = arith.constant 0 : index
    %219 = vector.load %arg8[%c0_112, %c0_113, %c0_114] : memref<1x256x256xbf16, #tpu.memory_space<vmem>>, vector<1x32x256xbf16>
    %220 = vector.shape_cast %219 : vector<1x32x256xbf16> to vector<32x256xbf16>
    %cst_115 = arith.constant dense<0.000000e+00> : vector<8x256xf32>
    %221 = tpu.matmul %218, %220, %cst_115 {dimension_numbers = #tpu.dot_dimension_numbers<[1], [0], [0], [1], [0, 0, 1, 1], [], []>} : vector<8x32xbf16>, vector<32x256xbf16>, vector<8x256xf32> -> vector<8x256xf32>
    %222 = arith.addf %199, %221 : vector<8x256xf32>
    %c8_116 = arith.constant 8 : index
    %c32_117 = arith.constant 32 : index
    %223 = vector.load %arg21[%c8_116, %c32_117] : memref<16x768xf32, #tpu.memory_space<vmem>>, vector<8x32xf32>
    %224 = arith.truncf %223 : vector<8x32xf32> to vector<8x32xbf16>
    %c8_118 = arith.constant 8 : index
    %c288_119 = arith.constant 288 : index
    %225 = vector.load %arg21[%c8_118, %c288_119] : memref<16x768xf32, #tpu.memory_space<vmem>>, vector<8x32xf32>
    %226 = arith.truncf %225 : vector<8x32xf32> to vector<8x32xbf16>
    %c8_120 = arith.constant 8 : index
    %c544_121 = arith.constant 544 : index
    %227 = vector.load %arg21[%c8_120, %c544_121] : memref<16x768xf32, #tpu.memory_space<vmem>>, vector<8x32xf32>
    %228 = arith.truncf %227 : vector<8x32xf32> to vector<8x32xbf16>
    %cst_122 = arith.constant dense<0.000000e+00> : vector<8x8xf32>
    %229 = tpu.matmul %224, %226, %cst_122 {dimension_numbers = #tpu.dot_dimension_numbers<[1], [1], [0], [0], [0, 0, 1, 0], [], []>} : vector<8x32xbf16>, vector<8x32xbf16>, vector<8x8xf32> -> vector<8x8xf32>
    %cst_123 = arith.constant dense<0xFF800000> : vector<8xf32>
    %230 = vector.multi_reduction <maximumf>, %229, %cst_123 [1] : vector<8x8xf32> to vector<8xf32>
    %231 = vector.shape_cast %230 : vector<8xf32> to vector<8x1xf32>
    %232 = vector.broadcast %231 : vector<8x1xf32> to vector<8x8xf32>
    %233 = arith.subf %229, %232 : vector<8x8xf32>
    %234 = math.exp %233 : vector<8x8xf32>
    %cst_124 = arith.constant dense<0.000000e+00> : vector<8xf32>
    %235 = vector.multi_reduction <add>, %234, %cst_124 [1] : vector<8x8xf32> to vector<8xf32>
    %236 = vector.shape_cast %235 : vector<8xf32> to vector<8x1xf32>
    %237 = vector.broadcast %236 : vector<8x1xf32> to vector<8x8xf32>
    %238 = arith.divf %234, %237 : vector<8x8xf32>
    %239 = arith.truncf %238 : vector<8x8xf32> to vector<8x8xbf16>
    %cst_125 = arith.constant dense<0.000000e+00> : vector<8x32xf32>
    %240 = tpu.matmul %239, %228, %cst_125 {dimension_numbers = #tpu.dot_dimension_numbers<[1], [0], [0], [1], [0, 0, 1, 1], [], []>} : vector<8x8xbf16>, vector<8x32xbf16>, vector<8x32xf32> -> vector<8x32xf32>
    %241 = arith.truncf %240 : vector<8x32xf32> to vector<8x32xbf16>
    %c0_126 = arith.constant 0 : index
    %c32_127 = arith.constant 32 : index
    %c0_128 = arith.constant 0 : index
    %242 = vector.load %arg8[%c0_126, %c32_127, %c0_128] : memref<1x256x256xbf16, #tpu.memory_space<vmem>>, vector<1x32x256xbf16>
    %243 = vector.shape_cast %242 : vector<1x32x256xbf16> to vector<32x256xbf16>
    %cst_129 = arith.constant dense<0.000000e+00> : vector<8x256xf32>
    %244 = tpu.matmul %241, %243, %cst_129 {dimension_numbers = #tpu.dot_dimension_numbers<[1], [0], [0], [1], [0, 0, 1, 1], [], []>} : vector<8x32xbf16>, vector<32x256xbf16>, vector<8x256xf32> -> vector<8x256xf32>
    %245 = arith.addf %222, %244 : vector<8x256xf32>
    %c8_130 = arith.constant 8 : index
    %c64_131 = arith.constant 64 : index
    %246 = vector.load %arg21[%c8_130, %c64_131] : memref<16x768xf32, #tpu.memory_space<vmem>>, vector<8x32xf32>
    %247 = arith.truncf %246 : vector<8x32xf32> to vector<8x32xbf16>
    %c8_132 = arith.constant 8 : index
    %c320_133 = arith.constant 320 : index
    %248 = vector.load %arg21[%c8_132, %c320_133] : memref<16x768xf32, #tpu.memory_space<vmem>>, vector<8x32xf32>
    %249 = arith.truncf %248 : vector<8x32xf32> to vector<8x32xbf16>
    %c8_134 = arith.constant 8 : index
    %c576_135 = arith.constant 576 : index
    %250 = vector.load %arg21[%c8_134, %c576_135] : memref<16x768xf32, #tpu.memory_space<vmem>>, vector<8x32xf32>
    %251 = arith.truncf %250 : vector<8x32xf32> to vector<8x32xbf16>
    %cst_136 = arith.constant dense<0.000000e+00> : vector<8x8xf32>
    %252 = tpu.matmul %247, %249, %cst_136 {dimension_numbers = #tpu.dot_dimension_numbers<[1], [1], [0], [0], [0, 0, 1, 0], [], []>} : vector<8x32xbf16>, vector<8x32xbf16>, vector<8x8xf32> -> vector<8x8xf32>
    %cst_137 = arith.constant dense<0xFF800000> : vector<8xf32>
    %253 = vector.multi_reduction <maximumf>, %252, %cst_137 [1] : vector<8x8xf32> to vector<8xf32>
    %254 = vector.shape_cast %253 : vector<8xf32> to vector<8x1xf32>
    %255 = vector.broadcast %254 : vector<8x1xf32> to vector<8x8xf32>
    %256 = arith.subf %252, %255 : vector<8x8xf32>
    %257 = math.exp %256 : vector<8x8xf32>
    %cst_138 = arith.constant dense<0.000000e+00> : vector<8xf32>
    %258 = vector.multi_reduction <add>, %257, %cst_138 [1] : vector<8x8xf32> to vector<8xf32>
    %259 = vector.shape_cast %258 : vector<8xf32> to vector<8x1xf32>
    %260 = vector.broadcast %259 : vector<8x1xf32> to vector<8x8xf32>
    %261 = arith.divf %257, %260 : vector<8x8xf32>
    %262 = arith.truncf %261 : vector<8x8xf32> to vector<8x8xbf16>
    %cst_139 = arith.constant dense<0.000000e+00> : vector<8x32xf32>
    %263 = tpu.matmul %262, %251, %cst_139 {dimension_numbers = #tpu.dot_dimension_numbers<[1], [0], [0], [1], [0, 0, 1, 1], [], []>} : vector<8x8xbf16>, vector<8x32xbf16>, vector<8x32xf32> -> vector<8x32xf32>
    %264 = arith.truncf %263 : vector<8x32xf32> to vector<8x32xbf16>
    %c0_140 = arith.constant 0 : index
    %c64_141 = arith.constant 64 : index
    %c0_142 = arith.constant 0 : index
    %265 = vector.load %arg8[%c0_140, %c64_141, %c0_142] : memref<1x256x256xbf16, #tpu.memory_space<vmem>>, vector<1x32x256xbf16>
    %266 = vector.shape_cast %265 : vector<1x32x256xbf16> to vector<32x256xbf16>
    %cst_143 = arith.constant dense<0.000000e+00> : vector<8x256xf32>
    %267 = tpu.matmul %264, %266, %cst_143 {dimension_numbers = #tpu.dot_dimension_numbers<[1], [0], [0], [1], [0, 0, 1, 1], [], []>} : vector<8x32xbf16>, vector<32x256xbf16>, vector<8x256xf32> -> vector<8x256xf32>
    %268 = arith.addf %245, %267 : vector<8x256xf32>
    %c8_144 = arith.constant 8 : index
    %c96_145 = arith.constant 96 : index
    %269 = vector.load %arg21[%c8_144, %c96_145] : memref<16x768xf32, #tpu.memory_space<vmem>>, vector<8x32xf32>
    %270 = arith.truncf %269 : vector<8x32xf32> to vector<8x32xbf16>
    %c8_146 = arith.constant 8 : index
    %c352_147 = arith.constant 352 : index
    %271 = vector.load %arg21[%c8_146, %c352_147] : memref<16x768xf32, #tpu.memory_space<vmem>>, vector<8x32xf32>
    %272 = arith.truncf %271 : vector<8x32xf32> to vector<8x32xbf16>
    %c8_148 = arith.constant 8 : index
    %c608_149 = arith.constant 608 : index
    %273 = vector.load %arg21[%c8_148, %c608_149] : memref<16x768xf32, #tpu.memory_space<vmem>>, vector<8x32xf32>
    %274 = arith.truncf %273 : vector<8x32xf32> to vector<8x32xbf16>
    %cst_150 = arith.constant dense<0.000000e+00> : vector<8x8xf32>
    %275 = tpu.matmul %270, %272, %cst_150 {dimension_numbers = #tpu.dot_dimension_numbers<[1], [1], [0], [0], [0, 0, 1, 0], [], []>} : vector<8x32xbf16>, vector<8x32xbf16>, vector<8x8xf32> -> vector<8x8xf32>
    %cst_151 = arith.constant dense<0xFF800000> : vector<8xf32>
    %276 = vector.multi_reduction <maximumf>, %275, %cst_151 [1] : vector<8x8xf32> to vector<8xf32>
    %277 = vector.shape_cast %276 : vector<8xf32> to vector<8x1xf32>
    %278 = vector.broadcast %277 : vector<8x1xf32> to vector<8x8xf32>
    %279 = arith.subf %275, %278 : vector<8x8xf32>
    %280 = math.exp %279 : vector<8x8xf32>
    %cst_152 = arith.constant dense<0.000000e+00> : vector<8xf32>
    %281 = vector.multi_reduction <add>, %280, %cst_152 [1] : vector<8x8xf32> to vector<8xf32>
    %282 = vector.shape_cast %281 : vector<8xf32> to vector<8x1xf32>
    %283 = vector.broadcast %282 : vector<8x1xf32> to vector<8x8xf32>
    %284 = arith.divf %280, %283 : vector<8x8xf32>
    %285 = arith.truncf %284 : vector<8x8xf32> to vector<8x8xbf16>
    %cst_153 = arith.constant dense<0.000000e+00> : vector<8x32xf32>
    %286 = tpu.matmul %285, %274, %cst_153 {dimension_numbers = #tpu.dot_dimension_numbers<[1], [0], [0], [1], [0, 0, 1, 1], [], []>} : vector<8x8xbf16>, vector<8x32xbf16>, vector<8x32xf32> -> vector<8x32xf32>
    %287 = arith.truncf %286 : vector<8x32xf32> to vector<8x32xbf16>
    %c0_154 = arith.constant 0 : index
    %c96_155 = arith.constant 96 : index
    %c0_156 = arith.constant 0 : index
    %288 = vector.load %arg8[%c0_154, %c96_155, %c0_156] : memref<1x256x256xbf16, #tpu.memory_space<vmem>>, vector<1x32x256xbf16>
    %289 = vector.shape_cast %288 : vector<1x32x256xbf16> to vector<32x256xbf16>
    %cst_157 = arith.constant dense<0.000000e+00> : vector<8x256xf32>
    %290 = tpu.matmul %287, %289, %cst_157 {dimension_numbers = #tpu.dot_dimension_numbers<[1], [0], [0], [1], [0, 0, 1, 1], [], []>} : vector<8x32xbf16>, vector<32x256xbf16>, vector<8x256xf32> -> vector<8x256xf32>
    %291 = arith.addf %268, %290 : vector<8x256xf32>
    %c8_158 = arith.constant 8 : index
    %c128_159 = arith.constant 128 : index
    %292 = vector.load %arg21[%c8_158, %c128_159] : memref<16x768xf32, #tpu.memory_space<vmem>>, vector<8x32xf32>
    %293 = arith.truncf %292 : vector<8x32xf32> to vector<8x32xbf16>
    %c8_160 = arith.constant 8 : index
    %c384_161 = arith.constant 384 : index
    %294 = vector.load %arg21[%c8_160, %c384_161] : memref<16x768xf32, #tpu.memory_space<vmem>>, vector<8x32xf32>
    %295 = arith.truncf %294 : vector<8x32xf32> to vector<8x32xbf16>
    %c8_162 = arith.constant 8 : index
    %c640_163 = arith.constant 640 : index
    %296 = vector.load %arg21[%c8_162, %c640_163] : memref<16x768xf32, #tpu.memory_space<vmem>>, vector<8x32xf32>
    %297 = arith.truncf %296 : vector<8x32xf32> to vector<8x32xbf16>
    %cst_164 = arith.constant dense<0.000000e+00> : vector<8x8xf32>
    %298 = tpu.matmul %293, %295, %cst_164 {dimension_numbers = #tpu.dot_dimension_numbers<[1], [1], [0], [0], [0, 0, 1, 0], [], []>} : vector<8x32xbf16>, vector<8x32xbf16>, vector<8x8xf32> -> vector<8x8xf32>
    %cst_165 = arith.constant dense<0xFF800000> : vector<8xf32>
    %299 = vector.multi_reduction <maximumf>, %298, %cst_165 [1] : vector<8x8xf32> to vector<8xf32>
    %300 = vector.shape_cast %299 : vector<8xf32> to vector<8x1xf32>
    %301 = vector.broadcast %300 : vector<8x1xf32> to vector<8x8xf32>
    %302 = arith.subf %298, %301 : vector<8x8xf32>
    %303 = math.exp %302 : vector<8x8xf32>
    %cst_166 = arith.constant dense<0.000000e+00> : vector<8xf32>
    %304 = vector.multi_reduction <add>, %303, %cst_166 [1] : vector<8x8xf32> to vector<8xf32>
    %305 = vector.shape_cast %304 : vector<8xf32> to vector<8x1xf32>
    %306 = vector.broadcast %305 : vector<8x1xf32> to vector<8x8xf32>
    %307 = arith.divf %303, %306 : vector<8x8xf32>
    %308 = arith.truncf %307 : vector<8x8xf32> to vector<8x8xbf16>
    %cst_167 = arith.constant dense<0.000000e+00> : vector<8x32xf32>
    %309 = tpu.matmul %308, %297, %cst_167 {dimension_numbers = #tpu.dot_dimension_numbers<[1], [0], [0], [1], [0, 0, 1, 1], [], []>} : vector<8x8xbf16>, vector<8x32xbf16>, vector<8x32xf32> -> vector<8x32xf32>
    %310 = arith.truncf %309 : vector<8x32xf32> to vector<8x32xbf16>
    %c0_168 = arith.constant 0 : index
    %c128_169 = arith.constant 128 : index
    %c0_170 = arith.constant 0 : index
    %311 = vector.load %arg8[%c0_168, %c128_169, %c0_170] : memref<1x256x256xbf16, #tpu.memory_space<vmem>>, vector<1x32x256xbf16>
    %312 = vector.shape_cast %311 : vector<1x32x256xbf16> to vector<32x256xbf16>
    %cst_171 = arith.constant dense<0.000000e+00> : vector<8x256xf32>
    %313 = tpu.matmul %310, %312, %cst_171 {dimension_numbers = #tpu.dot_dimension_numbers<[1], [0], [0], [1], [0, 0, 1, 1], [], []>} : vector<8x32xbf16>, vector<32x256xbf16>, vector<8x256xf32> -> vector<8x256xf32>
    %314 = arith.addf %291, %313 : vector<8x256xf32>
    %c8_172 = arith.constant 8 : index
    %c160_173 = arith.constant 160 : index
    %315 = vector.load %arg21[%c8_172, %c160_173] : memref<16x768xf32, #tpu.memory_space<vmem>>, vector<8x32xf32>
    %316 = arith.truncf %315 : vector<8x32xf32> to vector<8x32xbf16>
    %c8_174 = arith.constant 8 : index
    %c416_175 = arith.constant 416 : index
    %317 = vector.load %arg21[%c8_174, %c416_175] : memref<16x768xf32, #tpu.memory_space<vmem>>, vector<8x32xf32>
    %318 = arith.truncf %317 : vector<8x32xf32> to vector<8x32xbf16>
    %c8_176 = arith.constant 8 : index
    %c672_177 = arith.constant 672 : index
    %319 = vector.load %arg21[%c8_176, %c672_177] : memref<16x768xf32, #tpu.memory_space<vmem>>, vector<8x32xf32>
    %320 = arith.truncf %319 : vector<8x32xf32> to vector<8x32xbf16>
    %cst_178 = arith.constant dense<0.000000e+00> : vector<8x8xf32>
    %321 = tpu.matmul %316, %318, %cst_178 {dimension_numbers = #tpu.dot_dimension_numbers<[1], [1], [0], [0], [0, 0, 1, 0], [], []>} : vector<8x32xbf16>, vector<8x32xbf16>, vector<8x8xf32> -> vector<8x8xf32>
    %cst_179 = arith.constant dense<0xFF800000> : vector<8xf32>
    %322 = vector.multi_reduction <maximumf>, %321, %cst_179 [1] : vector<8x8xf32> to vector<8xf32>
    %323 = vector.shape_cast %322 : vector<8xf32> to vector<8x1xf32>
    %324 = vector.broadcast %323 : vector<8x1xf32> to vector<8x8xf32>
    %325 = arith.subf %321, %324 : vector<8x8xf32>
    %326 = math.exp %325 : vector<8x8xf32>
    %cst_180 = arith.constant dense<0.000000e+00> : vector<8xf32>
    %327 = vector.multi_reduction <add>, %326, %cst_180 [1] : vector<8x8xf32> to vector<8xf32>
    %328 = vector.shape_cast %327 : vector<8xf32> to vector<8x1xf32>
    %329 = vector.broadcast %328 : vector<8x1xf32> to vector<8x8xf32>
    %330 = arith.divf %326, %329 : vector<8x8xf32>
    %331 = arith.truncf %330 : vector<8x8xf32> to vector<8x8xbf16>
    %cst_181 = arith.constant dense<0.000000e+00> : vector<8x32xf32>
    %332 = tpu.matmul %331, %320, %cst_181 {dimension_numbers = #tpu.dot_dimension_numbers<[1], [0], [0], [1], [0, 0, 1, 1], [], []>} : vector<8x8xbf16>, vector<8x32xbf16>, vector<8x32xf32> -> vector<8x32xf32>
    %333 = arith.truncf %332 : vector<8x32xf32> to vector<8x32xbf16>
    %c0_182 = arith.constant 0 : index
    %c160_183 = arith.constant 160 : index
    %c0_184 = arith.constant 0 : index
    %334 = vector.load %arg8[%c0_182, %c160_183, %c0_184] : memref<1x256x256xbf16, #tpu.memory_space<vmem>>, vector<1x32x256xbf16>
    %335 = vector.shape_cast %334 : vector<1x32x256xbf16> to vector<32x256xbf16>
    %cst_185 = arith.constant dense<0.000000e+00> : vector<8x256xf32>
    %336 = tpu.matmul %333, %335, %cst_185 {dimension_numbers = #tpu.dot_dimension_numbers<[1], [0], [0], [1], [0, 0, 1, 1], [], []>} : vector<8x32xbf16>, vector<32x256xbf16>, vector<8x256xf32> -> vector<8x256xf32>
    %337 = arith.addf %314, %336 : vector<8x256xf32>
    %c8_186 = arith.constant 8 : index
    %c192_187 = arith.constant 192 : index
    %338 = vector.load %arg21[%c8_186, %c192_187] : memref<16x768xf32, #tpu.memory_space<vmem>>, vector<8x32xf32>
    %339 = arith.truncf %338 : vector<8x32xf32> to vector<8x32xbf16>
    %c8_188 = arith.constant 8 : index
    %c448_189 = arith.constant 448 : index
    %340 = vector.load %arg21[%c8_188, %c448_189] : memref<16x768xf32, #tpu.memory_space<vmem>>, vector<8x32xf32>
    %341 = arith.truncf %340 : vector<8x32xf32> to vector<8x32xbf16>
    %c8_190 = arith.constant 8 : index
    %c704_191 = arith.constant 704 : index
    %342 = vector.load %arg21[%c8_190, %c704_191] : memref<16x768xf32, #tpu.memory_space<vmem>>, vector<8x32xf32>
    %343 = arith.truncf %342 : vector<8x32xf32> to vector<8x32xbf16>
    %cst_192 = arith.constant dense<0.000000e+00> : vector<8x8xf32>
    %344 = tpu.matmul %339, %341, %cst_192 {dimension_numbers = #tpu.dot_dimension_numbers<[1], [1], [0], [0], [0, 0, 1, 0], [], []>} : vector<8x32xbf16>, vector<8x32xbf16>, vector<8x8xf32> -> vector<8x8xf32>
    %cst_193 = arith.constant dense<0xFF800000> : vector<8xf32>
    %345 = vector.multi_reduction <maximumf>, %344, %cst_193 [1] : vector<8x8xf32> to vector<8xf32>
    %346 = vector.shape_cast %345 : vector<8xf32> to vector<8x1xf32>
    %347 = vector.broadcast %346 : vector<8x1xf32> to vector<8x8xf32>
    %348 = arith.subf %344, %347 : vector<8x8xf32>
    %349 = math.exp %348 : vector<8x8xf32>
    %cst_194 = arith.constant dense<0.000000e+00> : vector<8xf32>
    %350 = vector.multi_reduction <add>, %349, %cst_194 [1] : vector<8x8xf32> to vector<8xf32>
    %351 = vector.shape_cast %350 : vector<8xf32> to vector<8x1xf32>
    %352 = vector.broadcast %351 : vector<8x1xf32> to vector<8x8xf32>
    %353 = arith.divf %349, %352 : vector<8x8xf32>
    %354 = arith.truncf %353 : vector<8x8xf32> to vector<8x8xbf16>
    %cst_195 = arith.constant dense<0.000000e+00> : vector<8x32xf32>
    %355 = tpu.matmul %354, %343, %cst_195 {dimension_numbers = #tpu.dot_dimension_numbers<[1], [0], [0], [1], [0, 0, 1, 1], [], []>} : vector<8x8xbf16>, vector<8x32xbf16>, vector<8x32xf32> -> vector<8x32xf32>
    %356 = arith.truncf %355 : vector<8x32xf32> to vector<8x32xbf16>
    %c0_196 = arith.constant 0 : index
    %c192_197 = arith.constant 192 : index
    %c0_198 = arith.constant 0 : index
    %357 = vector.load %arg8[%c0_196, %c192_197, %c0_198] : memref<1x256x256xbf16, #tpu.memory_space<vmem>>, vector<1x32x256xbf16>
    %358 = vector.shape_cast %357 : vector<1x32x256xbf16> to vector<32x256xbf16>
    %cst_199 = arith.constant dense<0.000000e+00> : vector<8x256xf32>
    %359 = tpu.matmul %356, %358, %cst_199 {dimension_numbers = #tpu.dot_dimension_numbers<[1], [0], [0], [1], [0, 0, 1, 1], [], []>} : vector<8x32xbf16>, vector<32x256xbf16>, vector<8x256xf32> -> vector<8x256xf32>
    %360 = arith.addf %337, %359 : vector<8x256xf32>
    %c8_200 = arith.constant 8 : index
    %c224_201 = arith.constant 224 : index
    %361 = vector.load %arg21[%c8_200, %c224_201] : memref<16x768xf32, #tpu.memory_space<vmem>>, vector<8x32xf32>
    %362 = arith.truncf %361 : vector<8x32xf32> to vector<8x32xbf16>
    %c8_202 = arith.constant 8 : index
    %c480_203 = arith.constant 480 : index
    %363 = vector.load %arg21[%c8_202, %c480_203] : memref<16x768xf32, #tpu.memory_space<vmem>>, vector<8x32xf32>
    %364 = arith.truncf %363 : vector<8x32xf32> to vector<8x32xbf16>
    %c8_204 = arith.constant 8 : index
    %c736_205 = arith.constant 736 : index
    %365 = vector.load %arg21[%c8_204, %c736_205] : memref<16x768xf32, #tpu.memory_space<vmem>>, vector<8x32xf32>
    %366 = arith.truncf %365 : vector<8x32xf32> to vector<8x32xbf16>
    %cst_206 = arith.constant dense<0.000000e+00> : vector<8x8xf32>
    %367 = tpu.matmul %362, %364, %cst_206 {dimension_numbers = #tpu.dot_dimension_numbers<[1], [1], [0], [0], [0, 0, 1, 0], [], []>} : vector<8x32xbf16>, vector<8x32xbf16>, vector<8x8xf32> -> vector<8x8xf32>
    %cst_207 = arith.constant dense<0xFF800000> : vector<8xf32>
    %368 = vector.multi_reduction <maximumf>, %367, %cst_207 [1] : vector<8x8xf32> to vector<8xf32>
    %369 = vector.shape_cast %368 : vector<8xf32> to vector<8x1xf32>
    %370 = vector.broadcast %369 : vector<8x1xf32> to vector<8x8xf32>
    %371 = arith.subf %367, %370 : vector<8x8xf32>
    %372 = math.exp %371 : vector<8x8xf32>
    %cst_208 = arith.constant dense<0.000000e+00> : vector<8xf32>
    %373 = vector.multi_reduction <add>, %372, %cst_208 [1] : vector<8x8xf32> to vector<8xf32>
    %374 = vector.shape_cast %373 : vector<8xf32> to vector<8x1xf32>
    %375 = vector.broadcast %374 : vector<8x1xf32> to vector<8x8xf32>
    %376 = arith.divf %372, %375 : vector<8x8xf32>
    %377 = arith.truncf %376 : vector<8x8xf32> to vector<8x8xbf16>
    %cst_209 = arith.constant dense<0.000000e+00> : vector<8x32xf32>
    %378 = tpu.matmul %377, %366, %cst_209 {dimension_numbers = #tpu.dot_dimension_numbers<[1], [0], [0], [1], [0, 0, 1, 1], [], []>} : vector<8x8xbf16>, vector<8x32xbf16>, vector<8x32xf32> -> vector<8x32xf32>
    %379 = arith.truncf %378 : vector<8x32xf32> to vector<8x32xbf16>
    %c0_210 = arith.constant 0 : index
    %c224_211 = arith.constant 224 : index
    %c0_212 = arith.constant 0 : index
    %380 = vector.load %arg8[%c0_210, %c224_211, %c0_212] : memref<1x256x256xbf16, #tpu.memory_space<vmem>>, vector<1x32x256xbf16>
    %381 = vector.shape_cast %380 : vector<1x32x256xbf16> to vector<32x256xbf16>
    %cst_213 = arith.constant dense<0.000000e+00> : vector<8x256xf32>
    %382 = tpu.matmul %379, %381, %cst_213 {dimension_numbers = #tpu.dot_dimension_numbers<[1], [0], [0], [1], [0, 0, 1, 1], [], []>} : vector<8x32xbf16>, vector<32x256xbf16>, vector<8x256xf32> -> vector<8x256xf32>
    %383 = arith.addf %360, %382 : vector<8x256xf32>
    %c8_214 = arith.constant 8 : index
    %c0_215 = arith.constant 0 : index
    %384 = vector.load %arg22[%c8_214, %c0_215] : memref<16x256xf32, #tpu.memory_space<vmem>>, vector<8x256xf32>
    tpu.vector_store %arg22[%c8_214, %c0_215], %383 {strides = array<i32>} : memref<16x256xf32, #tpu.memory_space<vmem>>, vector<8x256xf32>,
    %c0_216 = arith.constant 0 : index
    %c0_217 = arith.constant 0 : index
    %385 = vector.load %arg22[%c0_216, %c0_217] : memref<16x256xf32, #tpu.memory_space<vmem>>, vector<16x256xf32>
    %c0_218 = arith.constant 0 : index
    %c0_219 = arith.constant 0 : index
    %c0_220 = arith.constant 0 : index
    %386 = vector.load %arg9[%c0_218, %c0_219, %c0_220] : memref<1x1x256xf32, #tpu.memory_space<vmem>>, vector<1x1x256xf32>
    %387 = vector.shape_cast %386 : vector<1x1x256xf32> to vector<1x256xf32>
    %388 = vector.broadcast %387 : vector<1x256xf32> to vector<16x256xf32>
    %389 = arith.addf %385, %388 : vector<16x256xf32>
    %390 = arith.addf %3, %389 : vector<16x256xf32>
    %c0_221 = arith.constant 0 : index
    %c0_222 = arith.constant 0 : index
    %c0_223 = arith.constant 0 : index
    %391 = vector.load %arg10[%c0_221, %c0_222, %c0_223] : memref<1x1x256xf32, #tpu.memory_space<vmem>>, vector<1x1x256xf32>
    %392 = vector.shape_cast %391 : vector<1x1x256xf32> to vector<1x256xf32>
    %c0_224 = arith.constant 0 : index
    %c0_225 = arith.constant 0 : index
    %c0_226 = arith.constant 0 : index
    %393 = vector.load %arg11[%c0_224, %c0_225, %c0_226] : memref<1x1x256xf32, #tpu.memory_space<vmem>>, vector<1x1x256xf32>
    %394 = vector.shape_cast %393 : vector<1x1x256xf32> to vector<1x256xf32>
    %cst_227 = arith.constant dense<0.000000e+00> : vector<16xf32>
    %395 = vector.multi_reduction <add>, %390, %cst_227 [1] : vector<16x256xf32> to vector<16xf32>
    %396 = vector.shape_cast %395 : vector<16xf32> to vector<16x1xf32>
    %cst_228 = arith.constant 2.560000e+02 : f32
    %397 = vector.broadcast %cst_228 : f32 to vector<16x1xf32>
    %398 = arith.divf %396, %397 : vector<16x1xf32>
    %399 = vector.broadcast %398 : vector<16x1xf32> to vector<16x256xf32>
    %400 = arith.subf %390, %399 : vector<16x256xf32>
    %401 = arith.mulf %400, %400 : vector<16x256xf32>
    %cst_229 = arith.constant dense<0.000000e+00> : vector<16xf32>
    %402 = vector.multi_reduction <add>, %401, %cst_229 [1] : vector<16x256xf32> to vector<16xf32>
    %403 = vector.shape_cast %402 : vector<16xf32> to vector<16x1xf32>
    %cst_230 = arith.constant 2.560000e+02 : f32
    %404 = vector.broadcast %cst_230 : f32 to vector<16x1xf32>
    %405 = arith.divf %403, %404 : vector<16x1xf32>
    %406 = vector.broadcast %398 : vector<16x1xf32> to vector<16x256xf32>
    %407 = arith.subf %390, %406 : vector<16x256xf32>
    %cst_231 = arith.constant 9.99999974E-6 : f32
    %408 = vector.broadcast %cst_231 : f32 to vector<16x1xf32>
    %409 = arith.addf %405, %408 : vector<16x1xf32>
    %410 = math.rsqrt %409 : vector<16x1xf32>
    %411 = vector.broadcast %410 : vector<16x1xf32> to vector<16x256xf32>
    %412 = arith.mulf %407, %411 : vector<16x256xf32>
    %413 = vector.broadcast %392 : vector<1x256xf32> to vector<16x256xf32>
    %414 = arith.mulf %412, %413 : vector<16x256xf32>
    %415 = vector.broadcast %394 : vector<1x256xf32> to vector<16x256xf32>
    %416 = arith.addf %414, %415 : vector<16x256xf32>
    %417 = arith.truncf %416 : vector<16x256xf32> to vector<16x256xbf16>
    %cst_232 = arith.constant 0.000000e+00 : f32
    %418 = vector.broadcast %cst_232 : f32 to vector<16x256xf32>
    %c0_233 = arith.constant 0 : index
    %c0_234 = arith.constant 0 : index
    %c0_235 = arith.constant 0 : index
    %419 = vector.load %arg12[%c0_233, %c0_234, %c0_235] : memref<1x256x2048xi8, #tpu.memory_space<vmem>>, vector<1x256x128xi8>
    %420 = vector.shape_cast %419 : vector<1x256x128xi8> to vector<256x128xi8>
    %421 = arith.sitofp %420 : vector<256x128xi8> to vector<256x128xf32>
    %422 = arith.truncf %421 : vector<256x128xf32> to vector<256x128xbf16>
    %cst_236 = arith.constant dense<0.000000e+00> : vector<16x128xf32>
    %423 = tpu.matmul %417, %422, %cst_236 {dimension_numbers = #tpu.dot_dimension_numbers<[1], [0], [0], [1], [0, 0, 1, 1], [], []>} : vector<16x256xbf16>, vector<256x128xbf16>, vector<16x128xf32> -> vector<16x128xf32>
    %c0_237 = arith.constant 0 : index
    %c0_238 = arith.constant 0 : index
    %c0_239 = arith.constant 0 : index
    %424 = vector.load %arg13[%c0_237, %c0_238, %c0_239] : memref<1x1x2048xf32, #tpu.memory_space<vmem>>, vector<1x1x128xf32>
    %425 = vector.shape_cast %424 : vector<1x1x128xf32> to vector<1x128xf32>
    %426 = vector.broadcast %425 : vector<1x128xf32> to vector<16x128xf32>
    %427 = arith.mulf %423, %426 : vector<16x128xf32>
    %c0_240 = arith.constant 0 : index
    %c0_241 = arith.constant 0 : index
    %c0_242 = arith.constant 0 : index
    %428 = vector.load %arg14[%c0_240, %c0_241, %c0_242] : memref<1x1x2048xf32, #tpu.memory_space<vmem>>, vector<1x1x128xf32>
    %429 = vector.shape_cast %428 : vector<1x1x128xf32> to vector<1x128xf32>
    %430 = vector.broadcast %429 : vector<1x128xf32> to vector<16x128xf32>
    %431 = arith.addf %427, %430 : vector<16x128xf32>
    %cst_243 = arith.constant 0.000000e+00 : f32
    %432 = vector.broadcast %cst_243 : f32 to vector<16x128xf32>
    %433 = arith.maximumf %431, %432 : vector<16x128xf32>
    %c0_244 = arith.constant 0 : index
    %c0_245 = arith.constant 0 : index
    %c0_246 = arith.constant 0 : index
    %434 = vector.load %arg15[%c0_244, %c0_245, %c0_246] : memref<1x2048x256xi8, #tpu.memory_space<vmem>>, vector<1x128x256xi8>
    %435 = vector.shape_cast %434 : vector<1x128x256xi8> to vector<128x256xi8>
    %436 = arith.sitofp %435 : vector<128x256xi8> to vector<128x256xf32>
    %437 = arith.truncf %436 : vector<128x256xf32> to vector<128x256xbf16>
    %438 = arith.truncf %433 : vector<16x128xf32> to vector<16x128xbf16>
    %cst_247 = arith.constant dense<0.000000e+00> : vector<16x256xf32>
    %439 = tpu.matmul %438, %437, %cst_247 {dimension_numbers = #tpu.dot_dimension_numbers<[1], [0], [0], [1], [0, 0, 1, 1], [], []>} : vector<16x128xbf16>, vector<128x256xbf16>, vector<16x256xf32> -> vector<16x256xf32>
    %440 = arith.addf %418, %439 : vector<16x256xf32>
    %c0_248 = arith.constant 0 : index
    %c0_249 = arith.constant 0 : index
    %c128_250 = arith.constant 128 : index
    %441 = vector.load %arg12[%c0_248, %c0_249, %c128_250] : memref<1x256x2048xi8, #tpu.memory_space<vmem>>, vector<1x256x128xi8>
    %442 = vector.shape_cast %441 : vector<1x256x128xi8> to vector<256x128xi8>
    %443 = arith.sitofp %442 : vector<256x128xi8> to vector<256x128xf32>
    %444 = arith.truncf %443 : vector<256x128xf32> to vector<256x128xbf16>
    %cst_251 = arith.constant dense<0.000000e+00> : vector<16x128xf32>
    %445 = tpu.matmul %417, %444, %cst_251 {dimension_numbers = #tpu.dot_dimension_numbers<[1], [0], [0], [1], [0, 0, 1, 1], [], []>} : vector<16x256xbf16>, vector<256x128xbf16>, vector<16x128xf32> -> vector<16x128xf32>
    %c0_252 = arith.constant 0 : index
    %c0_253 = arith.constant 0 : index
    %c128_254 = arith.constant 128 : index
    %446 = vector.load %arg13[%c0_252, %c0_253, %c128_254] : memref<1x1x2048xf32, #tpu.memory_space<vmem>>, vector<1x1x128xf32>
    %447 = vector.shape_cast %446 : vector<1x1x128xf32> to vector<1x128xf32>
    %448 = vector.broadcast %447 : vector<1x128xf32> to vector<16x128xf32>
    %449 = arith.mulf %445, %448 : vector<16x128xf32>
    %c0_255 = arith.constant 0 : index
    %c0_256 = arith.constant 0 : index
    %c128_257 = arith.constant 128 : index
    %450 = vector.load %arg14[%c0_255, %c0_256, %c128_257] : memref<1x1x2048xf32, #tpu.memory_space<vmem>>, vector<1x1x128xf32>
    %451 = vector.shape_cast %450 : vector<1x1x128xf32> to vector<1x128xf32>
    %452 = vector.broadcast %451 : vector<1x128xf32> to vector<16x128xf32>
    %453 = arith.addf %449, %452 : vector<16x128xf32>
    %cst_258 = arith.constant 0.000000e+00 : f32
    %454 = vector.broadcast %cst_258 : f32 to vector<16x128xf32>
    %455 = arith.maximumf %453, %454 : vector<16x128xf32>
    %c0_259 = arith.constant 0 : index
    %c128_260 = arith.constant 128 : index
    %c0_261 = arith.constant 0 : index
    %456 = vector.load %arg15[%c0_259, %c128_260, %c0_261] : memref<1x2048x256xi8, #tpu.memory_space<vmem>>, vector<1x128x256xi8>
    %457 = vector.shape_cast %456 : vector<1x128x256xi8> to vector<128x256xi8>
    %458 = arith.sitofp %457 : vector<128x256xi8> to vector<128x256xf32>
    %459 = arith.truncf %458 : vector<128x256xf32> to vector<128x256xbf16>
    %460 = arith.truncf %455 : vector<16x128xf32> to vector<16x128xbf16>
    %cst_262 = arith.constant dense<0.000000e+00> : vector<16x256xf32>
    %461 = tpu.matmul %460, %459, %cst_262 {dimension_numbers = #tpu.dot_dimension_numbers<[1], [0], [0], [1], [0, 0, 1, 1], [], []>} : vector<16x128xbf16>, vector<128x256xbf16>, vector<16x256xf32> -> vector<16x256xf32>
    %462 = arith.addf %440, %461 : vector<16x256xf32>
    %c0_263 = arith.constant 0 : index
    %c0_264 = arith.constant 0 : index
    %c256_265 = arith.constant 256 : index
    %463 = vector.load %arg12[%c0_263, %c0_264, %c256_265] : memref<1x256x2048xi8, #tpu.memory_space<vmem>>, vector<1x256x128xi8>
    %464 = vector.shape_cast %463 : vector<1x256x128xi8> to vector<256x128xi8>
    %465 = arith.sitofp %464 : vector<256x128xi8> to vector<256x128xf32>
    %466 = arith.truncf %465 : vector<256x128xf32> to vector<256x128xbf16>
    %cst_266 = arith.constant dense<0.000000e+00> : vector<16x128xf32>
    %467 = tpu.matmul %417, %466, %cst_266 {dimension_numbers = #tpu.dot_dimension_numbers<[1], [0], [0], [1], [0, 0, 1, 1], [], []>} : vector<16x256xbf16>, vector<256x128xbf16>, vector<16x128xf32> -> vector<16x128xf32>
    %c0_267 = arith.constant 0 : index
    %c0_268 = arith.constant 0 : index
    %c256_269 = arith.constant 256 : index
    %468 = vector.load %arg13[%c0_267, %c0_268, %c256_269] : memref<1x1x2048xf32, #tpu.memory_space<vmem>>, vector<1x1x128xf32>
    %469 = vector.shape_cast %468 : vector<1x1x128xf32> to vector<1x128xf32>
    %470 = vector.broadcast %469 : vector<1x128xf32> to vector<16x128xf32>
    %471 = arith.mulf %467, %470 : vector<16x128xf32>
    %c0_270 = arith.constant 0 : index
    %c0_271 = arith.constant 0 : index
    %c256_272 = arith.constant 256 : index
    %472 = vector.load %arg14[%c0_270, %c0_271, %c256_272] : memref<1x1x2048xf32, #tpu.memory_space<vmem>>, vector<1x1x128xf32>
    %473 = vector.shape_cast %472 : vector<1x1x128xf32> to vector<1x128xf32>
    %474 = vector.broadcast %473 : vector<1x128xf32> to vector<16x128xf32>
    %475 = arith.addf %471, %474 : vector<16x128xf32>
    %cst_273 = arith.constant 0.000000e+00 : f32
    %476 = vector.broadcast %cst_273 : f32 to vector<16x128xf32>
    %477 = arith.maximumf %475, %476 : vector<16x128xf32>
    %c0_274 = arith.constant 0 : index
    %c256_275 = arith.constant 256 : index
    %c0_276 = arith.constant 0 : index
    %478 = vector.load %arg15[%c0_274, %c256_275, %c0_276] : memref<1x2048x256xi8, #tpu.memory_space<vmem>>, vector<1x128x256xi8>
    %479 = vector.shape_cast %478 : vector<1x128x256xi8> to vector<128x256xi8>
    %480 = arith.sitofp %479 : vector<128x256xi8> to vector<128x256xf32>
    %481 = arith.truncf %480 : vector<128x256xf32> to vector<128x256xbf16>
    %482 = arith.truncf %477 : vector<16x128xf32> to vector<16x128xbf16>
    %cst_277 = arith.constant dense<0.000000e+00> : vector<16x256xf32>
    %483 = tpu.matmul %482, %481, %cst_277 {dimension_numbers = #tpu.dot_dimension_numbers<[1], [0], [0], [1], [0, 0, 1, 1], [], []>} : vector<16x128xbf16>, vector<128x256xbf16>, vector<16x256xf32> -> vector<16x256xf32>
    %484 = arith.addf %462, %483 : vector<16x256xf32>
    %c0_278 = arith.constant 0 : index
    %c0_279 = arith.constant 0 : index
    %c384_280 = arith.constant 384 : index
    %485 = vector.load %arg12[%c0_278, %c0_279, %c384_280] : memref<1x256x2048xi8, #tpu.memory_space<vmem>>, vector<1x256x128xi8>
    %486 = vector.shape_cast %485 : vector<1x256x128xi8> to vector<256x128xi8>
    %487 = arith.sitofp %486 : vector<256x128xi8> to vector<256x128xf32>
    %488 = arith.truncf %487 : vector<256x128xf32> to vector<256x128xbf16>
    %cst_281 = arith.constant dense<0.000000e+00> : vector<16x128xf32>
    %489 = tpu.matmul %417, %488, %cst_281 {dimension_numbers = #tpu.dot_dimension_numbers<[1], [0], [0], [1], [0, 0, 1, 1], [], []>} : vector<16x256xbf16>, vector<256x128xbf16>, vector<16x128xf32> -> vector<16x128xf32>
    %c0_282 = arith.constant 0 : index
    %c0_283 = arith.constant 0 : index
    %c384_284 = arith.constant 384 : index
    %490 = vector.load %arg13[%c0_282, %c0_283, %c384_284] : memref<1x1x2048xf32, #tpu.memory_space<vmem>>, vector<1x1x128xf32>
    %491 = vector.shape_cast %490 : vector<1x1x128xf32> to vector<1x128xf32>
    %492 = vector.broadcast %491 : vector<1x128xf32> to vector<16x128xf32>
    %493 = arith.mulf %489, %492 : vector<16x128xf32>
    %c0_285 = arith.constant 0 : index
    %c0_286 = arith.constant 0 : index
    %c384_287 = arith.constant 384 : index
    %494 = vector.load %arg14[%c0_285, %c0_286, %c384_287] : memref<1x1x2048xf32, #tpu.memory_space<vmem>>, vector<1x1x128xf32>
    %495 = vector.shape_cast %494 : vector<1x1x128xf32> to vector<1x128xf32>
    %496 = vector.broadcast %495 : vector<1x128xf32> to vector<16x128xf32>
    %497 = arith.addf %493, %496 : vector<16x128xf32>
    %cst_288 = arith.constant 0.000000e+00 : f32
    %498 = vector.broadcast %cst_288 : f32 to vector<16x128xf32>
    %499 = arith.maximumf %497, %498 : vector<16x128xf32>
    %c0_289 = arith.constant 0 : index
    %c384_290 = arith.constant 384 : index
    %c0_291 = arith.constant 0 : index
    %500 = vector.load %arg15[%c0_289, %c384_290, %c0_291] : memref<1x2048x256xi8, #tpu.memory_space<vmem>>, vector<1x128x256xi8>
    %501 = vector.shape_cast %500 : vector<1x128x256xi8> to vector<128x256xi8>
    %502 = arith.sitofp %501 : vector<128x256xi8> to vector<128x256xf32>
    %503 = arith.truncf %502 : vector<128x256xf32> to vector<128x256xbf16>
    %504 = arith.truncf %499 : vector<16x128xf32> to vector<16x128xbf16>
    %cst_292 = arith.constant dense<0.000000e+00> : vector<16x256xf32>
    %505 = tpu.matmul %504, %503, %cst_292 {dimension_numbers = #tpu.dot_dimension_numbers<[1], [0], [0], [1], [0, 0, 1, 1], [], []>} : vector<16x128xbf16>, vector<128x256xbf16>, vector<16x256xf32> -> vector<16x256xf32>
    %506 = arith.addf %484, %505 : vector<16x256xf32>
    %c0_293 = arith.constant 0 : index
    %c0_294 = arith.constant 0 : index
    %c512_295 = arith.constant 512 : index
    %507 = vector.load %arg12[%c0_293, %c0_294, %c512_295] : memref<1x256x2048xi8, #tpu.memory_space<vmem>>, vector<1x256x128xi8>
    %508 = vector.shape_cast %507 : vector<1x256x128xi8> to vector<256x128xi8>
    %509 = arith.sitofp %508 : vector<256x128xi8> to vector<256x128xf32>
    %510 = arith.truncf %509 : vector<256x128xf32> to vector<256x128xbf16>
    %cst_296 = arith.constant dense<0.000000e+00> : vector<16x128xf32>
    %511 = tpu.matmul %417, %510, %cst_296 {dimension_numbers = #tpu.dot_dimension_numbers<[1], [0], [0], [1], [0, 0, 1, 1], [], []>} : vector<16x256xbf16>, vector<256x128xbf16>, vector<16x128xf32> -> vector<16x128xf32>
    %c0_297 = arith.constant 0 : index
    %c0_298 = arith.constant 0 : index
    %c512_299 = arith.constant 512 : index
    %512 = vector.load %arg13[%c0_297, %c0_298, %c512_299] : memref<1x1x2048xf32, #tpu.memory_space<vmem>>, vector<1x1x128xf32>
    %513 = vector.shape_cast %512 : vector<1x1x128xf32> to vector<1x128xf32>
    %514 = vector.broadcast %513 : vector<1x128xf32> to vector<16x128xf32>
    %515 = arith.mulf %511, %514 : vector<16x128xf32>
    %c0_300 = arith.constant 0 : index
    %c0_301 = arith.constant 0 : index
    %c512_302 = arith.constant 512 : index
    %516 = vector.load %arg14[%c0_300, %c0_301, %c512_302] : memref<1x1x2048xf32, #tpu.memory_space<vmem>>, vector<1x1x128xf32>
    %517 = vector.shape_cast %516 : vector<1x1x128xf32> to vector<1x128xf32>
    %518 = vector.broadcast %517 : vector<1x128xf32> to vector<16x128xf32>
    %519 = arith.addf %515, %518 : vector<16x128xf32>
    %cst_303 = arith.constant 0.000000e+00 : f32
    %520 = vector.broadcast %cst_303 : f32 to vector<16x128xf32>
    %521 = arith.maximumf %519, %520 : vector<16x128xf32>
    %c0_304 = arith.constant 0 : index
    %c512_305 = arith.constant 512 : index
    %c0_306 = arith.constant 0 : index
    %522 = vector.load %arg15[%c0_304, %c512_305, %c0_306] : memref<1x2048x256xi8, #tpu.memory_space<vmem>>, vector<1x128x256xi8>
    %523 = vector.shape_cast %522 : vector<1x128x256xi8> to vector<128x256xi8>
    %524 = arith.sitofp %523 : vector<128x256xi8> to vector<128x256xf32>
    %525 = arith.truncf %524 : vector<128x256xf32> to vector<128x256xbf16>
    %526 = arith.truncf %521 : vector<16x128xf32> to vector<16x128xbf16>
    %cst_307 = arith.constant dense<0.000000e+00> : vector<16x256xf32>
    %527 = tpu.matmul %526, %525, %cst_307 {dimension_numbers = #tpu.dot_dimension_numbers<[1], [0], [0], [1], [0, 0, 1, 1], [], []>} : vector<16x128xbf16>, vector<128x256xbf16>, vector<16x256xf32> -> vector<16x256xf32>
    %528 = arith.addf %506, %527 : vector<16x256xf32>
    %c0_308 = arith.constant 0 : index
    %c0_309 = arith.constant 0 : index
    %c640_310 = arith.constant 640 : index
    %529 = vector.load %arg12[%c0_308, %c0_309, %c640_310] : memref<1x256x2048xi8, #tpu.memory_space<vmem>>, vector<1x256x128xi8>
    %530 = vector.shape_cast %529 : vector<1x256x128xi8> to vector<256x128xi8>
    %531 = arith.sitofp %530 : vector<256x128xi8> to vector<256x128xf32>
    %532 = arith.truncf %531 : vector<256x128xf32> to vector<256x128xbf16>
    %cst_311 = arith.constant dense<0.000000e+00> : vector<16x128xf32>
    %533 = tpu.matmul %417, %532, %cst_311 {dimension_numbers = #tpu.dot_dimension_numbers<[1], [0], [0], [1], [0, 0, 1, 1], [], []>} : vector<16x256xbf16>, vector<256x128xbf16>, vector<16x128xf32> -> vector<16x128xf32>
    %c0_312 = arith.constant 0 : index
    %c0_313 = arith.constant 0 : index
    %c640_314 = arith.constant 640 : index
    %534 = vector.load %arg13[%c0_312, %c0_313, %c640_314] : memref<1x1x2048xf32, #tpu.memory_space<vmem>>, vector<1x1x128xf32>
    %535 = vector.shape_cast %534 : vector<1x1x128xf32> to vector<1x128xf32>
    %536 = vector.broadcast %535 : vector<1x128xf32> to vector<16x128xf32>
    %537 = arith.mulf %533, %536 : vector<16x128xf32>
    %c0_315 = arith.constant 0 : index
    %c0_316 = arith.constant 0 : index
    %c640_317 = arith.constant 640 : index
    %538 = vector.load %arg14[%c0_315, %c0_316, %c640_317] : memref<1x1x2048xf32, #tpu.memory_space<vmem>>, vector<1x1x128xf32>
    %539 = vector.shape_cast %538 : vector<1x1x128xf32> to vector<1x128xf32>
    %540 = vector.broadcast %539 : vector<1x128xf32> to vector<16x128xf32>
    %541 = arith.addf %537, %540 : vector<16x128xf32>
    %cst_318 = arith.constant 0.000000e+00 : f32
    %542 = vector.broadcast %cst_318 : f32 to vector<16x128xf32>
    %543 = arith.maximumf %541, %542 : vector<16x128xf32>
    %c0_319 = arith.constant 0 : index
    %c640_320 = arith.constant 640 : index
    %c0_321 = arith.constant 0 : index
    %544 = vector.load %arg15[%c0_319, %c640_320, %c0_321] : memref<1x2048x256xi8, #tpu.memory_space<vmem>>, vector<1x128x256xi8>
    %545 = vector.shape_cast %544 : vector<1x128x256xi8> to vector<128x256xi8>
    %546 = arith.sitofp %545 : vector<128x256xi8> to vector<128x256xf32>
    %547 = arith.truncf %546 : vector<128x256xf32> to vector<128x256xbf16>
    %548 = arith.truncf %543 : vector<16x128xf32> to vector<16x128xbf16>
    %cst_322 = arith.constant dense<0.000000e+00> : vector<16x256xf32>
    %549 = tpu.matmul %548, %547, %cst_322 {dimension_numbers = #tpu.dot_dimension_numbers<[1], [0], [0], [1], [0, 0, 1, 1], [], []>} : vector<16x128xbf16>, vector<128x256xbf16>, vector<16x256xf32> -> vector<16x256xf32>
    %550 = arith.addf %528, %549 : vector<16x256xf32>
    %c0_323 = arith.constant 0 : index
    %c0_324 = arith.constant 0 : index
    %c768 = arith.constant 768 : index
    %551 = vector.load %arg12[%c0_323, %c0_324, %c768] : memref<1x256x2048xi8, #tpu.memory_space<vmem>>, vector<1x256x128xi8>
    %552 = vector.shape_cast %551 : vector<1x256x128xi8> to vector<256x128xi8>
    %553 = arith.sitofp %552 : vector<256x128xi8> to vector<256x128xf32>
    %554 = arith.truncf %553 : vector<256x128xf32> to vector<256x128xbf16>
    %cst_325 = arith.constant dense<0.000000e+00> : vector<16x128xf32>
    %555 = tpu.matmul %417, %554, %cst_325 {dimension_numbers = #tpu.dot_dimension_numbers<[1], [0], [0], [1], [0, 0, 1, 1], [], []>} : vector<16x256xbf16>, vector<256x128xbf16>, vector<16x128xf32> -> vector<16x128xf32>
    %c0_326 = arith.constant 0 : index
    %c0_327 = arith.constant 0 : index
    %c768_328 = arith.constant 768 : index
    %556 = vector.load %arg13[%c0_326, %c0_327, %c768_328] : memref<1x1x2048xf32, #tpu.memory_space<vmem>>, vector<1x1x128xf32>
    %557 = vector.shape_cast %556 : vector<1x1x128xf32> to vector<1x128xf32>
    %558 = vector.broadcast %557 : vector<1x128xf32> to vector<16x128xf32>
    %559 = arith.mulf %555, %558 : vector<16x128xf32>
    %c0_329 = arith.constant 0 : index
    %c0_330 = arith.constant 0 : index
    %c768_331 = arith.constant 768 : index
    %560 = vector.load %arg14[%c0_329, %c0_330, %c768_331] : memref<1x1x2048xf32, #tpu.memory_space<vmem>>, vector<1x1x128xf32>
    %561 = vector.shape_cast %560 : vector<1x1x128xf32> to vector<1x128xf32>
    %562 = vector.broadcast %561 : vector<1x128xf32> to vector<16x128xf32>
    %563 = arith.addf %559, %562 : vector<16x128xf32>
    %cst_332 = arith.constant 0.000000e+00 : f32
    %564 = vector.broadcast %cst_332 : f32 to vector<16x128xf32>
    %565 = arith.maximumf %563, %564 : vector<16x128xf32>
    %c0_333 = arith.constant 0 : index
    %c768_334 = arith.constant 768 : index
    %c0_335 = arith.constant 0 : index
    %566 = vector.load %arg15[%c0_333, %c768_334, %c0_335] : memref<1x2048x256xi8, #tpu.memory_space<vmem>>, vector<1x128x256xi8>
    %567 = vector.shape_cast %566 : vector<1x128x256xi8> to vector<128x256xi8>
    %568 = arith.sitofp %567 : vector<128x256xi8> to vector<128x256xf32>
    %569 = arith.truncf %568 : vector<128x256xf32> to vector<128x256xbf16>
    %570 = arith.truncf %565 : vector<16x128xf32> to vector<16x128xbf16>
    %cst_336 = arith.constant dense<0.000000e+00> : vector<16x256xf32>
    %571 = tpu.matmul %570, %569, %cst_336 {dimension_numbers = #tpu.dot_dimension_numbers<[1], [0], [0], [1], [0, 0, 1, 1], [], []>} : vector<16x128xbf16>, vector<128x256xbf16>, vector<16x256xf32> -> vector<16x256xf32>
    %572 = arith.addf %550, %571 : vector<16x256xf32>
    %c0_337 = arith.constant 0 : index
    %c0_338 = arith.constant 0 : index
    %c896 = arith.constant 896 : index
    %573 = vector.load %arg12[%c0_337, %c0_338, %c896] : memref<1x256x2048xi8, #tpu.memory_space<vmem>>, vector<1x256x128xi8>
    %574 = vector.shape_cast %573 : vector<1x256x128xi8> to vector<256x128xi8>
    %575 = arith.sitofp %574 : vector<256x128xi8> to vector<256x128xf32>
    %576 = arith.truncf %575 : vector<256x128xf32> to vector<256x128xbf16>
    %cst_339 = arith.constant dense<0.000000e+00> : vector<16x128xf32>
    %577 = tpu.matmul %417, %576, %cst_339 {dimension_numbers = #tpu.dot_dimension_numbers<[1], [0], [0], [1], [0, 0, 1, 1], [], []>} : vector<16x256xbf16>, vector<256x128xbf16>, vector<16x128xf32> -> vector<16x128xf32>
    %c0_340 = arith.constant 0 : index
    %c0_341 = arith.constant 0 : index
    %c896_342 = arith.constant 896 : index
    %578 = vector.load %arg13[%c0_340, %c0_341, %c896_342] : memref<1x1x2048xf32, #tpu.memory_space<vmem>>, vector<1x1x128xf32>
    %579 = vector.shape_cast %578 : vector<1x1x128xf32> to vector<1x128xf32>
    %580 = vector.broadcast %579 : vector<1x128xf32> to vector<16x128xf32>
    %581 = arith.mulf %577, %580 : vector<16x128xf32>
    %c0_343 = arith.constant 0 : index
    %c0_344 = arith.constant 0 : index
    %c896_345 = arith.constant 896 : index
    %582 = vector.load %arg14[%c0_343, %c0_344, %c896_345] : memref<1x1x2048xf32, #tpu.memory_space<vmem>>, vector<1x1x128xf32>
    %583 = vector.shape_cast %582 : vector<1x1x128xf32> to vector<1x128xf32>
    %584 = vector.broadcast %583 : vector<1x128xf32> to vector<16x128xf32>
    %585 = arith.addf %581, %584 : vector<16x128xf32>
    %cst_346 = arith.constant 0.000000e+00 : f32
    %586 = vector.broadcast %cst_346 : f32 to vector<16x128xf32>
    %587 = arith.maximumf %585, %586 : vector<16x128xf32>
    %c0_347 = arith.constant 0 : index
    %c896_348 = arith.constant 896 : index
    %c0_349 = arith.constant 0 : index
    %588 = vector.load %arg15[%c0_347, %c896_348, %c0_349] : memref<1x2048x256xi8, #tpu.memory_space<vmem>>, vector<1x128x256xi8>
    %589 = vector.shape_cast %588 : vector<1x128x256xi8> to vector<128x256xi8>
    %590 = arith.sitofp %589 : vector<128x256xi8> to vector<128x256xf32>
    %591 = arith.truncf %590 : vector<128x256xf32> to vector<128x256xbf16>
    %592 = arith.truncf %587 : vector<16x128xf32> to vector<16x128xbf16>
    %cst_350 = arith.constant dense<0.000000e+00> : vector<16x256xf32>
    %593 = tpu.matmul %592, %591, %cst_350 {dimension_numbers = #tpu.dot_dimension_numbers<[1], [0], [0], [1], [0, 0, 1, 1], [], []>} : vector<16x128xbf16>, vector<128x256xbf16>, vector<16x256xf32> -> vector<16x256xf32>
    %594 = arith.addf %572, %593 : vector<16x256xf32>
    %c0_351 = arith.constant 0 : index
    %c0_352 = arith.constant 0 : index
    %c1024 = arith.constant 1024 : index
    %595 = vector.load %arg12[%c0_351, %c0_352, %c1024] : memref<1x256x2048xi8, #tpu.memory_space<vmem>>, vector<1x256x128xi8>
    %596 = vector.shape_cast %595 : vector<1x256x128xi8> to vector<256x128xi8>
    %597 = arith.sitofp %596 : vector<256x128xi8> to vector<256x128xf32>
    %598 = arith.truncf %597 : vector<256x128xf32> to vector<256x128xbf16>
    %cst_353 = arith.constant dense<0.000000e+00> : vector<16x128xf32>
    %599 = tpu.matmul %417, %598, %cst_353 {dimension_numbers = #tpu.dot_dimension_numbers<[1], [0], [0], [1], [0, 0, 1, 1], [], []>} : vector<16x256xbf16>, vector<256x128xbf16>, vector<16x128xf32> -> vector<16x128xf32>
    %c0_354 = arith.constant 0 : index
    %c0_355 = arith.constant 0 : index
    %c1024_356 = arith.constant 1024 : index
    %600 = vector.load %arg13[%c0_354, %c0_355, %c1024_356] : memref<1x1x2048xf32, #tpu.memory_space<vmem>>, vector<1x1x128xf32>
    %601 = vector.shape_cast %600 : vector<1x1x128xf32> to vector<1x128xf32>
    %602 = vector.broadcast %601 : vector<1x128xf32> to vector<16x128xf32>
    %603 = arith.mulf %599, %602 : vector<16x128xf32>
    %c0_357 = arith.constant 0 : index
    %c0_358 = arith.constant 0 : index
    %c1024_359 = arith.constant 1024 : index
    %604 = vector.load %arg14[%c0_357, %c0_358, %c1024_359] : memref<1x1x2048xf32, #tpu.memory_space<vmem>>, vector<1x1x128xf32>
    %605 = vector.shape_cast %604 : vector<1x1x128xf32> to vector<1x128xf32>
    %606 = vector.broadcast %605 : vector<1x128xf32> to vector<16x128xf32>
    %607 = arith.addf %603, %606 : vector<16x128xf32>
    %cst_360 = arith.constant 0.000000e+00 : f32
    %608 = vector.broadcast %cst_360 : f32 to vector<16x128xf32>
    %609 = arith.maximumf %607, %608 : vector<16x128xf32>
    %c0_361 = arith.constant 0 : index
    %c1024_362 = arith.constant 1024 : index
    %c0_363 = arith.constant 0 : index
    %610 = vector.load %arg15[%c0_361, %c1024_362, %c0_363] : memref<1x2048x256xi8, #tpu.memory_space<vmem>>, vector<1x128x256xi8>
    %611 = vector.shape_cast %610 : vector<1x128x256xi8> to vector<128x256xi8>
    %612 = arith.sitofp %611 : vector<128x256xi8> to vector<128x256xf32>
    %613 = arith.truncf %612 : vector<128x256xf32> to vector<128x256xbf16>
    %614 = arith.truncf %609 : vector<16x128xf32> to vector<16x128xbf16>
    %cst_364 = arith.constant dense<0.000000e+00> : vector<16x256xf32>
    %615 = tpu.matmul %614, %613, %cst_364 {dimension_numbers = #tpu.dot_dimension_numbers<[1], [0], [0], [1], [0, 0, 1, 1], [], []>} : vector<16x128xbf16>, vector<128x256xbf16>, vector<16x256xf32> -> vector<16x256xf32>
    %616 = arith.addf %594, %615 : vector<16x256xf32>
    %c0_365 = arith.constant 0 : index
    %c0_366 = arith.constant 0 : index
    %c1152 = arith.constant 1152 : index
    %617 = vector.load %arg12[%c0_365, %c0_366, %c1152] : memref<1x256x2048xi8, #tpu.memory_space<vmem>>, vector<1x256x128xi8>
    %618 = vector.shape_cast %617 : vector<1x256x128xi8> to vector<256x128xi8>
    %619 = arith.sitofp %618 : vector<256x128xi8> to vector<256x128xf32>
    %620 = arith.truncf %619 : vector<256x128xf32> to vector<256x128xbf16>
    %cst_367 = arith.constant dense<0.000000e+00> : vector<16x128xf32>
    %621 = tpu.matmul %417, %620, %cst_367 {dimension_numbers = #tpu.dot_dimension_numbers<[1], [0], [0], [1], [0, 0, 1, 1], [], []>} : vector<16x256xbf16>, vector<256x128xbf16>, vector<16x128xf32> -> vector<16x128xf32>
    %c0_368 = arith.constant 0 : index
    %c0_369 = arith.constant 0 : index
    %c1152_370 = arith.constant 1152 : index
    %622 = vector.load %arg13[%c0_368, %c0_369, %c1152_370] : memref<1x1x2048xf32, #tpu.memory_space<vmem>>, vector<1x1x128xf32>
    %623 = vector.shape_cast %622 : vector<1x1x128xf32> to vector<1x128xf32>
    %624 = vector.broadcast %623 : vector<1x128xf32> to vector<16x128xf32>
    %625 = arith.mulf %621, %624 : vector<16x128xf32>
    %c0_371 = arith.constant 0 : index
    %c0_372 = arith.constant 0 : index
    %c1152_373 = arith.constant 1152 : index
    %626 = vector.load %arg14[%c0_371, %c0_372, %c1152_373] : memref<1x1x2048xf32, #tpu.memory_space<vmem>>, vector<1x1x128xf32>
    %627 = vector.shape_cast %626 : vector<1x1x128xf32> to vector<1x128xf32>
    %628 = vector.broadcast %627 : vector<1x128xf32> to vector<16x128xf32>
    %629 = arith.addf %625, %628 : vector<16x128xf32>
    %cst_374 = arith.constant 0.000000e+00 : f32
    %630 = vector.broadcast %cst_374 : f32 to vector<16x128xf32>
    %631 = arith.maximumf %629, %630 : vector<16x128xf32>
    %c0_375 = arith.constant 0 : index
    %c1152_376 = arith.constant 1152 : index
    %c0_377 = arith.constant 0 : index
    %632 = vector.load %arg15[%c0_375, %c1152_376, %c0_377] : memref<1x2048x256xi8, #tpu.memory_space<vmem>>, vector<1x128x256xi8>
    %633 = vector.shape_cast %632 : vector<1x128x256xi8> to vector<128x256xi8>
    %634 = arith.sitofp %633 : vector<128x256xi8> to vector<128x256xf32>
    %635 = arith.truncf %634 : vector<128x256xf32> to vector<128x256xbf16>
    %636 = arith.truncf %631 : vector<16x128xf32> to vector<16x128xbf16>
    %cst_378 = arith.constant dense<0.000000e+00> : vector<16x256xf32>
    %637 = tpu.matmul %636, %635, %cst_378 {dimension_numbers = #tpu.dot_dimension_numbers<[1], [0], [0], [1], [0, 0, 1, 1], [], []>} : vector<16x128xbf16>, vector<128x256xbf16>, vector<16x256xf32> -> vector<16x256xf32>
    %638 = arith.addf %616, %637 : vector<16x256xf32>
    %c0_379 = arith.constant 0 : index
    %c0_380 = arith.constant 0 : index
    %c1280 = arith.constant 1280 : index
    %639 = vector.load %arg12[%c0_379, %c0_380, %c1280] : memref<1x256x2048xi8, #tpu.memory_space<vmem>>, vector<1x256x128xi8>
    %640 = vector.shape_cast %639 : vector<1x256x128xi8> to vector<256x128xi8>
    %641 = arith.sitofp %640 : vector<256x128xi8> to vector<256x128xf32>
    %642 = arith.truncf %641 : vector<256x128xf32> to vector<256x128xbf16>
    %cst_381 = arith.constant dense<0.000000e+00> : vector<16x128xf32>
    %643 = tpu.matmul %417, %642, %cst_381 {dimension_numbers = #tpu.dot_dimension_numbers<[1], [0], [0], [1], [0, 0, 1, 1], [], []>} : vector<16x256xbf16>, vector<256x128xbf16>, vector<16x128xf32> -> vector<16x128xf32>
    %c0_382 = arith.constant 0 : index
    %c0_383 = arith.constant 0 : index
    %c1280_384 = arith.constant 1280 : index
    %644 = vector.load %arg13[%c0_382, %c0_383, %c1280_384] : memref<1x1x2048xf32, #tpu.memory_space<vmem>>, vector<1x1x128xf32>
    %645 = vector.shape_cast %644 : vector<1x1x128xf32> to vector<1x128xf32>
    %646 = vector.broadcast %645 : vector<1x128xf32> to vector<16x128xf32>
    %647 = arith.mulf %643, %646 : vector<16x128xf32>
    %c0_385 = arith.constant 0 : index
    %c0_386 = arith.constant 0 : index
    %c1280_387 = arith.constant 1280 : index
    %648 = vector.load %arg14[%c0_385, %c0_386, %c1280_387] : memref<1x1x2048xf32, #tpu.memory_space<vmem>>, vector<1x1x128xf32>
    %649 = vector.shape_cast %648 : vector<1x1x128xf32> to vector<1x128xf32>
    %650 = vector.broadcast %649 : vector<1x128xf32> to vector<16x128xf32>
    %651 = arith.addf %647, %650 : vector<16x128xf32>
    %cst_388 = arith.constant 0.000000e+00 : f32
    %652 = vector.broadcast %cst_388 : f32 to vector<16x128xf32>
    %653 = arith.maximumf %651, %652 : vector<16x128xf32>
    %c0_389 = arith.constant 0 : index
    %c1280_390 = arith.constant 1280 : index
    %c0_391 = arith.constant 0 : index
    %654 = vector.load %arg15[%c0_389, %c1280_390, %c0_391] : memref<1x2048x256xi8, #tpu.memory_space<vmem>>, vector<1x128x256xi8>
    %655 = vector.shape_cast %654 : vector<1x128x256xi8> to vector<128x256xi8>
    %656 = arith.sitofp %655 : vector<128x256xi8> to vector<128x256xf32>
    %657 = arith.truncf %656 : vector<128x256xf32> to vector<128x256xbf16>
    %658 = arith.truncf %653 : vector<16x128xf32> to vector<16x128xbf16>
    %cst_392 = arith.constant dense<0.000000e+00> : vector<16x256xf32>
    %659 = tpu.matmul %658, %657, %cst_392 {dimension_numbers = #tpu.dot_dimension_numbers<[1], [0], [0], [1], [0, 0, 1, 1], [], []>} : vector<16x128xbf16>, vector<128x256xbf16>, vector<16x256xf32> -> vector<16x256xf32>
    %660 = arith.addf %638, %659 : vector<16x256xf32>
    %c0_393 = arith.constant 0 : index
    %c0_394 = arith.constant 0 : index
    %c1408 = arith.constant 1408 : index
    %661 = vector.load %arg12[%c0_393, %c0_394, %c1408] : memref<1x256x2048xi8, #tpu.memory_space<vmem>>, vector<1x256x128xi8>
    %662 = vector.shape_cast %661 : vector<1x256x128xi8> to vector<256x128xi8>
    %663 = arith.sitofp %662 : vector<256x128xi8> to vector<256x128xf32>
    %664 = arith.truncf %663 : vector<256x128xf32> to vector<256x128xbf16>
    %cst_395 = arith.constant dense<0.000000e+00> : vector<16x128xf32>
    %665 = tpu.matmul %417, %664, %cst_395 {dimension_numbers = #tpu.dot_dimension_numbers<[1], [0], [0], [1], [0, 0, 1, 1], [], []>} : vector<16x256xbf16>, vector<256x128xbf16>, vector<16x128xf32> -> vector<16x128xf32>
    %c0_396 = arith.constant 0 : index
    %c0_397 = arith.constant 0 : index
    %c1408_398 = arith.constant 1408 : index
    %666 = vector.load %arg13[%c0_396, %c0_397, %c1408_398] : memref<1x1x2048xf32, #tpu.memory_space<vmem>>, vector<1x1x128xf32>
    %667 = vector.shape_cast %666 : vector<1x1x128xf32> to vector<1x128xf32>
    %668 = vector.broadcast %667 : vector<1x128xf32> to vector<16x128xf32>
    %669 = arith.mulf %665, %668 : vector<16x128xf32>
    %c0_399 = arith.constant 0 : index
    %c0_400 = arith.constant 0 : index
    %c1408_401 = arith.constant 1408 : index
    %670 = vector.load %arg14[%c0_399, %c0_400, %c1408_401] : memref<1x1x2048xf32, #tpu.memory_space<vmem>>, vector<1x1x128xf32>
    %671 = vector.shape_cast %670 : vector<1x1x128xf32> to vector<1x128xf32>
    %672 = vector.broadcast %671 : vector<1x128xf32> to vector<16x128xf32>
    %673 = arith.addf %669, %672 : vector<16x128xf32>
    %cst_402 = arith.constant 0.000000e+00 : f32
    %674 = vector.broadcast %cst_402 : f32 to vector<16x128xf32>
    %675 = arith.maximumf %673, %674 : vector<16x128xf32>
    %c0_403 = arith.constant 0 : index
    %c1408_404 = arith.constant 1408 : index
    %c0_405 = arith.constant 0 : index
    %676 = vector.load %arg15[%c0_403, %c1408_404, %c0_405] : memref<1x2048x256xi8, #tpu.memory_space<vmem>>, vector<1x128x256xi8>
    %677 = vector.shape_cast %676 : vector<1x128x256xi8> to vector<128x256xi8>
    %678 = arith.sitofp %677 : vector<128x256xi8> to vector<128x256xf32>
    %679 = arith.truncf %678 : vector<128x256xf32> to vector<128x256xbf16>
    %680 = arith.truncf %675 : vector<16x128xf32> to vector<16x128xbf16>
    %cst_406 = arith.constant dense<0.000000e+00> : vector<16x256xf32>
    %681 = tpu.matmul %680, %679, %cst_406 {dimension_numbers = #tpu.dot_dimension_numbers<[1], [0], [0], [1], [0, 0, 1, 1], [], []>} : vector<16x128xbf16>, vector<128x256xbf16>, vector<16x256xf32> -> vector<16x256xf32>
    %682 = arith.addf %660, %681 : vector<16x256xf32>
    %c0_407 = arith.constant 0 : index
    %c0_408 = arith.constant 0 : index
    %c1536 = arith.constant 1536 : index
    %683 = vector.load %arg12[%c0_407, %c0_408, %c1536] : memref<1x256x2048xi8, #tpu.memory_space<vmem>>, vector<1x256x128xi8>
    %684 = vector.shape_cast %683 : vector<1x256x128xi8> to vector<256x128xi8>
    %685 = arith.sitofp %684 : vector<256x128xi8> to vector<256x128xf32>
    %686 = arith.truncf %685 : vector<256x128xf32> to vector<256x128xbf16>
    %cst_409 = arith.constant dense<0.000000e+00> : vector<16x128xf32>
    %687 = tpu.matmul %417, %686, %cst_409 {dimension_numbers = #tpu.dot_dimension_numbers<[1], [0], [0], [1], [0, 0, 1, 1], [], []>} : vector<16x256xbf16>, vector<256x128xbf16>, vector<16x128xf32> -> vector<16x128xf32>
    %c0_410 = arith.constant 0 : index
    %c0_411 = arith.constant 0 : index
    %c1536_412 = arith.constant 1536 : index
    %688 = vector.load %arg13[%c0_410, %c0_411, %c1536_412] : memref<1x1x2048xf32, #tpu.memory_space<vmem>>, vector<1x1x128xf32>
    %689 = vector.shape_cast %688 : vector<1x1x128xf32> to vector<1x128xf32>
    %690 = vector.broadcast %689 : vector<1x128xf32> to vector<16x128xf32>
    %691 = arith.mulf %687, %690 : vector<16x128xf32>
    %c0_413 = arith.constant 0 : index
    %c0_414 = arith.constant 0 : index
    %c1536_415 = arith.constant 1536 : index
    %692 = vector.load %arg14[%c0_413, %c0_414, %c1536_415] : memref<1x1x2048xf32, #tpu.memory_space<vmem>>, vector<1x1x128xf32>
    %693 = vector.shape_cast %692 : vector<1x1x128xf32> to vector<1x128xf32>
    %694 = vector.broadcast %693 : vector<1x128xf32> to vector<16x128xf32>
    %695 = arith.addf %691, %694 : vector<16x128xf32>
    %cst_416 = arith.constant 0.000000e+00 : f32
    %696 = vector.broadcast %cst_416 : f32 to vector<16x128xf32>
    %697 = arith.maximumf %695, %696 : vector<16x128xf32>
    %c0_417 = arith.constant 0 : index
    %c1536_418 = arith.constant 1536 : index
    %c0_419 = arith.constant 0 : index
    %698 = vector.load %arg15[%c0_417, %c1536_418, %c0_419] : memref<1x2048x256xi8, #tpu.memory_space<vmem>>, vector<1x128x256xi8>
    %699 = vector.shape_cast %698 : vector<1x128x256xi8> to vector<128x256xi8>
    %700 = arith.sitofp %699 : vector<128x256xi8> to vector<128x256xf32>
    %701 = arith.truncf %700 : vector<128x256xf32> to vector<128x256xbf16>
    %702 = arith.truncf %697 : vector<16x128xf32> to vector<16x128xbf16>
    %cst_420 = arith.constant dense<0.000000e+00> : vector<16x256xf32>
    %703 = tpu.matmul %702, %701, %cst_420 {dimension_numbers = #tpu.dot_dimension_numbers<[1], [0], [0], [1], [0, 0, 1, 1], [], []>} : vector<16x128xbf16>, vector<128x256xbf16>, vector<16x256xf32> -> vector<16x256xf32>
    %704 = arith.addf %682, %703 : vector<16x256xf32>
    %c0_421 = arith.constant 0 : index
    %c0_422 = arith.constant 0 : index
    %c1664 = arith.constant 1664 : index
    %705 = vector.load %arg12[%c0_421, %c0_422, %c1664] : memref<1x256x2048xi8, #tpu.memory_space<vmem>>, vector<1x256x128xi8>
    %706 = vector.shape_cast %705 : vector<1x256x128xi8> to vector<256x128xi8>
    %707 = arith.sitofp %706 : vector<256x128xi8> to vector<256x128xf32>
    %708 = arith.truncf %707 : vector<256x128xf32> to vector<256x128xbf16>
    %cst_423 = arith.constant dense<0.000000e+00> : vector<16x128xf32>
    %709 = tpu.matmul %417, %708, %cst_423 {dimension_numbers = #tpu.dot_dimension_numbers<[1], [0], [0], [1], [0, 0, 1, 1], [], []>} : vector<16x256xbf16>, vector<256x128xbf16>, vector<16x128xf32> -> vector<16x128xf32>
    %c0_424 = arith.constant 0 : index
    %c0_425 = arith.constant 0 : index
    %c1664_426 = arith.constant 1664 : index
    %710 = vector.load %arg13[%c0_424, %c0_425, %c1664_426] : memref<1x1x2048xf32, #tpu.memory_space<vmem>>, vector<1x1x128xf32>
    %711 = vector.shape_cast %710 : vector<1x1x128xf32> to vector<1x128xf32>
    %712 = vector.broadcast %711 : vector<1x128xf32> to vector<16x128xf32>
    %713 = arith.mulf %709, %712 : vector<16x128xf32>
    %c0_427 = arith.constant 0 : index
    %c0_428 = arith.constant 0 : index
    %c1664_429 = arith.constant 1664 : index
    %714 = vector.load %arg14[%c0_427, %c0_428, %c1664_429] : memref<1x1x2048xf32, #tpu.memory_space<vmem>>, vector<1x1x128xf32>
    %715 = vector.shape_cast %714 : vector<1x1x128xf32> to vector<1x128xf32>
    %716 = vector.broadcast %715 : vector<1x128xf32> to vector<16x128xf32>
    %717 = arith.addf %713, %716 : vector<16x128xf32>
    %cst_430 = arith.constant 0.000000e+00 : f32
    %718 = vector.broadcast %cst_430 : f32 to vector<16x128xf32>
    %719 = arith.maximumf %717, %718 : vector<16x128xf32>
    %c0_431 = arith.constant 0 : index
    %c1664_432 = arith.constant 1664 : index
    %c0_433 = arith.constant 0 : index
    %720 = vector.load %arg15[%c0_431, %c1664_432, %c0_433] : memref<1x2048x256xi8, #tpu.memory_space<vmem>>, vector<1x128x256xi8>
    %721 = vector.shape_cast %720 : vector<1x128x256xi8> to vector<128x256xi8>
    %722 = arith.sitofp %721 : vector<128x256xi8> to vector<128x256xf32>
    %723 = arith.truncf %722 : vector<128x256xf32> to vector<128x256xbf16>
    %724 = arith.truncf %719 : vector<16x128xf32> to vector<16x128xbf16>
    %cst_434 = arith.constant dense<0.000000e+00> : vector<16x256xf32>
    %725 = tpu.matmul %724, %723, %cst_434 {dimension_numbers = #tpu.dot_dimension_numbers<[1], [0], [0], [1], [0, 0, 1, 1], [], []>} : vector<16x128xbf16>, vector<128x256xbf16>, vector<16x256xf32> -> vector<16x256xf32>
    %726 = arith.addf %704, %725 : vector<16x256xf32>
    %c0_435 = arith.constant 0 : index
    %c0_436 = arith.constant 0 : index
    %c1792 = arith.constant 1792 : index
    %727 = vector.load %arg12[%c0_435, %c0_436, %c1792] : memref<1x256x2048xi8, #tpu.memory_space<vmem>>, vector<1x256x128xi8>
    %728 = vector.shape_cast %727 : vector<1x256x128xi8> to vector<256x128xi8>
    %729 = arith.sitofp %728 : vector<256x128xi8> to vector<256x128xf32>
    %730 = arith.truncf %729 : vector<256x128xf32> to vector<256x128xbf16>
    %cst_437 = arith.constant dense<0.000000e+00> : vector<16x128xf32>
    %731 = tpu.matmul %417, %730, %cst_437 {dimension_numbers = #tpu.dot_dimension_numbers<[1], [0], [0], [1], [0, 0, 1, 1], [], []>} : vector<16x256xbf16>, vector<256x128xbf16>, vector<16x128xf32> -> vector<16x128xf32>
    %c0_438 = arith.constant 0 : index
    %c0_439 = arith.constant 0 : index
    %c1792_440 = arith.constant 1792 : index
    %732 = vector.load %arg13[%c0_438, %c0_439, %c1792_440] : memref<1x1x2048xf32, #tpu.memory_space<vmem>>, vector<1x1x128xf32>
    %733 = vector.shape_cast %732 : vector<1x1x128xf32> to vector<1x128xf32>
    %734 = vector.broadcast %733 : vector<1x128xf32> to vector<16x128xf32>
    %735 = arith.mulf %731, %734 : vector<16x128xf32>
    %c0_441 = arith.constant 0 : index
    %c0_442 = arith.constant 0 : index
    %c1792_443 = arith.constant 1792 : index
    %736 = vector.load %arg14[%c0_441, %c0_442, %c1792_443] : memref<1x1x2048xf32, #tpu.memory_space<vmem>>, vector<1x1x128xf32>
    %737 = vector.shape_cast %736 : vector<1x1x128xf32> to vector<1x128xf32>
    %738 = vector.broadcast %737 : vector<1x128xf32> to vector<16x128xf32>
    %739 = arith.addf %735, %738 : vector<16x128xf32>
    %cst_444 = arith.constant 0.000000e+00 : f32
    %740 = vector.broadcast %cst_444 : f32 to vector<16x128xf32>
    %741 = arith.maximumf %739, %740 : vector<16x128xf32>
    %c0_445 = arith.constant 0 : index
    %c1792_446 = arith.constant 1792 : index
    %c0_447 = arith.constant 0 : index
    %742 = vector.load %arg15[%c0_445, %c1792_446, %c0_447] : memref<1x2048x256xi8, #tpu.memory_space<vmem>>, vector<1x128x256xi8>
    %743 = vector.shape_cast %742 : vector<1x128x256xi8> to vector<128x256xi8>
    %744 = arith.sitofp %743 : vector<128x256xi8> to vector<128x256xf32>
    %745 = arith.truncf %744 : vector<128x256xf32> to vector<128x256xbf16>
    %746 = arith.truncf %741 : vector<16x128xf32> to vector<16x128xbf16>
    %cst_448 = arith.constant dense<0.000000e+00> : vector<16x256xf32>
    %747 = tpu.matmul %746, %745, %cst_448 {dimension_numbers = #tpu.dot_dimension_numbers<[1], [0], [0], [1], [0, 0, 1, 1], [], []>} : vector<16x128xbf16>, vector<128x256xbf16>, vector<16x256xf32> -> vector<16x256xf32>
    %748 = arith.addf %726, %747 : vector<16x256xf32>
    %c0_449 = arith.constant 0 : index
    %c0_450 = arith.constant 0 : index
    %c1920 = arith.constant 1920 : index
    %749 = vector.load %arg12[%c0_449, %c0_450, %c1920] : memref<1x256x2048xi8, #tpu.memory_space<vmem>>, vector<1x256x128xi8>
    %750 = vector.shape_cast %749 : vector<1x256x128xi8> to vector<256x128xi8>
    %751 = arith.sitofp %750 : vector<256x128xi8> to vector<256x128xf32>
    %752 = arith.truncf %751 : vector<256x128xf32> to vector<256x128xbf16>
    %cst_451 = arith.constant dense<0.000000e+00> : vector<16x128xf32>
    %753 = tpu.matmul %417, %752, %cst_451 {dimension_numbers = #tpu.dot_dimension_numbers<[1], [0], [0], [1], [0, 0, 1, 1], [], []>} : vector<16x256xbf16>, vector<256x128xbf16>, vector<16x128xf32> -> vector<16x128xf32>
    %c0_452 = arith.constant 0 : index
    %c0_453 = arith.constant 0 : index
    %c1920_454 = arith.constant 1920 : index
    %754 = vector.load %arg13[%c0_452, %c0_453, %c1920_454] : memref<1x1x2048xf32, #tpu.memory_space<vmem>>, vector<1x1x128xf32>
    %755 = vector.shape_cast %754 : vector<1x1x128xf32> to vector<1x128xf32>
    %756 = vector.broadcast %755 : vector<1x128xf32> to vector<16x128xf32>
    %757 = arith.mulf %753, %756 : vector<16x128xf32>
    %c0_455 = arith.constant 0 : index
    %c0_456 = arith.constant 0 : index
    %c1920_457 = arith.constant 1920 : index
    %758 = vector.load %arg14[%c0_455, %c0_456, %c1920_457] : memref<1x1x2048xf32, #tpu.memory_space<vmem>>, vector<1x1x128xf32>
    %759 = vector.shape_cast %758 : vector<1x1x128xf32> to vector<1x128xf32>
    %760 = vector.broadcast %759 : vector<1x128xf32> to vector<16x128xf32>
    %761 = arith.addf %757, %760 : vector<16x128xf32>
    %cst_458 = arith.constant 0.000000e+00 : f32
    %762 = vector.broadcast %cst_458 : f32 to vector<16x128xf32>
    %763 = arith.maximumf %761, %762 : vector<16x128xf32>
    %c0_459 = arith.constant 0 : index
    %c1920_460 = arith.constant 1920 : index
    %c0_461 = arith.constant 0 : index
    %764 = vector.load %arg15[%c0_459, %c1920_460, %c0_461] : memref<1x2048x256xi8, #tpu.memory_space<vmem>>, vector<1x128x256xi8>
    %765 = vector.shape_cast %764 : vector<1x128x256xi8> to vector<128x256xi8>
    %766 = arith.sitofp %765 : vector<128x256xi8> to vector<128x256xf32>
    %767 = arith.truncf %766 : vector<128x256xf32> to vector<128x256xbf16>
    %768 = arith.truncf %763 : vector<16x128xf32> to vector<16x128xbf16>
    %cst_462 = arith.constant dense<0.000000e+00> : vector<16x256xf32>
    %769 = tpu.matmul %768, %767, %cst_462 {dimension_numbers = #tpu.dot_dimension_numbers<[1], [0], [0], [1], [0, 0, 1, 1], [], []>} : vector<16x128xbf16>, vector<128x256xbf16>, vector<16x256xf32> -> vector<16x256xf32>
    %770 = arith.addf %748, %769 : vector<16x256xf32>
    %c0_463 = arith.constant 0 : index
    %c0_464 = arith.constant 0 : index
    %c0_465 = arith.constant 0 : index
    %771 = vector.load %arg16[%c0_463, %c0_464, %c0_465] : memref<1x1x256xf32, #tpu.memory_space<vmem>>, vector<1x1x256xf32>
    %772 = vector.shape_cast %771 : vector<1x1x256xf32> to vector<1x256xf32>
    %773 = vector.broadcast %772 : vector<1x256xf32> to vector<16x256xf32>
    %774 = arith.mulf %770, %773 : vector<16x256xf32>
    %c0_466 = arith.constant 0 : index
    %c0_467 = arith.constant 0 : index
    %c0_468 = arith.constant 0 : index
    %775 = vector.load %arg17[%c0_466, %c0_467, %c0_468] : memref<1x1x256xf32, #tpu.memory_space<vmem>>, vector<1x1x256xf32>
    %776 = vector.shape_cast %775 : vector<1x1x256xf32> to vector<1x256xf32>
    %777 = vector.broadcast %776 : vector<1x256xf32> to vector<16x256xf32>
    %778 = arith.addf %774, %777 : vector<16x256xf32>
    %779 = arith.addf %416, %778 : vector<16x256xf32>
    %c0_469 = arith.constant 0 : index
    %c0_470 = arith.constant 0 : index
    %c0_471 = arith.constant 0 : index
    %780 = vector.load %arg18[%c0_469, %c0_470, %c0_471] : memref<1x1x256xf32, #tpu.memory_space<vmem>>, vector<1x1x256xf32>
    %781 = vector.shape_cast %780 : vector<1x1x256xf32> to vector<1x256xf32>
    %c0_472 = arith.constant 0 : index
    %c0_473 = arith.constant 0 : index
    %c0_474 = arith.constant 0 : index
    %782 = vector.load %arg19[%c0_472, %c0_473, %c0_474] : memref<1x1x256xf32, #tpu.memory_space<vmem>>, vector<1x1x256xf32>
    %783 = vector.shape_cast %782 : vector<1x1x256xf32> to vector<1x256xf32>
    %cst_475 = arith.constant dense<0.000000e+00> : vector<16xf32>
    %784 = vector.multi_reduction <add>, %779, %cst_475 [1] : vector<16x256xf32> to vector<16xf32>
    %785 = vector.shape_cast %784 : vector<16xf32> to vector<16x1xf32>
    %cst_476 = arith.constant 2.560000e+02 : f32
    %786 = vector.broadcast %cst_476 : f32 to vector<16x1xf32>
    %787 = arith.divf %785, %786 : vector<16x1xf32>
    %788 = vector.broadcast %787 : vector<16x1xf32> to vector<16x256xf32>
    %789 = arith.subf %779, %788 : vector<16x256xf32>
    %790 = arith.mulf %789, %789 : vector<16x256xf32>
    %cst_477 = arith.constant dense<0.000000e+00> : vector<16xf32>
    %791 = vector.multi_reduction <add>, %790, %cst_477 [1] : vector<16x256xf32> to vector<16xf32>
    %792 = vector.shape_cast %791 : vector<16xf32> to vector<16x1xf32>
    %cst_478 = arith.constant 2.560000e+02 : f32
    %793 = vector.broadcast %cst_478 : f32 to vector<16x1xf32>
    %794 = arith.divf %792, %793 : vector<16x1xf32>
    %795 = vector.broadcast %787 : vector<16x1xf32> to vector<16x256xf32>
    %796 = arith.subf %779, %795 : vector<16x256xf32>
    %cst_479 = arith.constant 9.99999974E-6 : f32
    %797 = vector.broadcast %cst_479 : f32 to vector<16x1xf32>
    %798 = arith.addf %794, %797 : vector<16x1xf32>
    %799 = math.rsqrt %798 : vector<16x1xf32>
    %800 = vector.broadcast %799 : vector<16x1xf32> to vector<16x256xf32>
    %801 = arith.mulf %796, %800 : vector<16x256xf32>
    %802 = vector.broadcast %781 : vector<1x256xf32> to vector<16x256xf32>
    %803 = arith.mulf %801, %802 : vector<16x256xf32>
    %804 = vector.broadcast %783 : vector<1x256xf32> to vector<16x256xf32>
    %805 = arith.addf %803, %804 : vector<16x256xf32>
    %c0_480 = arith.constant 0 : index
    %c0_481 = arith.constant 0 : index
    %806 = vector.load %arg20[%c0_480, %c0_481] : memref<16x256xf32, #tpu.memory_space<vmem>>, vector<16x256xf32>
    tpu.vector_store %arg20[%c0_480, %c0_481], %805 {strides = array<i32>} : memref<16x256xf32, #tpu.memory_space<vmem>>, vector<16x256xf32>,
    return
  }
  func.func @transform_0(%arg0: i32) -> (i32, i32) {
    %c0_i32 = arith.constant 0 : i32
    %c0_i32_0 = arith.constant 0 : i32
    %c0_i32_1 = arith.constant 0 : i32
    return %c0_i32, %c0_i32_0 : i32, i32
  }
  func.func @transform_1(%arg0: i32) -> (i32, i32) {
    %c0_i32 = arith.constant 0 : i32
    %c0_i32_0 = arith.constant 0 : i32
    %c0_i32_1 = arith.constant 0 : i32
    return %c0_i32, %c0_i32_0 : i32, i32
  }
  func.func @transform_2(%arg0: i32) -> (i32, i32) {
    %c0_i32 = arith.constant 0 : i32
    %c0_i32_0 = arith.constant 0 : i32
    %c0_i32_1 = arith.constant 0 : i32
    return %c0_i32, %c0_i32_0 : i32, i32
  }
  func.func @transform_3(%arg0: i32) -> (i32, i32) {
    %c0_i32 = arith.constant 0 : i32
    %c0_i32_0 = arith.constant 0 : i32
    %c0_i32_1 = arith.constant 0 : i32
    return %c0_i32, %c0_i32_0 : i32, i32
  }
  func.func @transform_4(%arg0: i32) -> (i32, i32) {
    %c0_i32 = arith.constant 0 : i32
    %c0_i32_0 = arith.constant 0 : i32
    %c0_i32_1 = arith.constant 0 : i32
    return %c0_i32, %c0_i32_0 : i32, i32
  }
  func.func @transform_5(%arg0: i32) -> (i32, i32, i32) {
    %c0_i32 = arith.constant 0 : i32
    %c0_i32_0 = arith.constant 0 : i32
    %c0_i32_1 = arith.constant 0 : i32
    return %arg0, %c0_i32, %c0_i32_0 : i32, i32, i32
  }
  func.func @transform_6(%arg0: i32) -> (i32, i32, i32) {
    %c0_i32 = arith.constant 0 : i32
    %c0_i32_0 = arith.constant 0 : i32
    %c0_i32_1 = arith.constant 0 : i32
    return %arg0, %c0_i32, %c0_i32_0 : i32, i32, i32
  }
  func.func @transform_7(%arg0: i32) -> (i32, i32, i32) {
    %c0_i32 = arith.constant 0 : i32
    %c0_i32_0 = arith.constant 0 : i32
    %c0_i32_1 = arith.constant 0 : i32
    return %arg0, %c0_i32, %c0_i32_0 : i32, i32, i32
  }
  func.func @transform_8(%arg0: i32) -> (i32, i32, i32) {
    %c0_i32 = arith.constant 0 : i32
    %c0_i32_0 = arith.constant 0 : i32
    %c0_i32_1 = arith.constant 0 : i32
    return %arg0, %c0_i32, %c0_i32_0 : i32, i32, i32
  }
  func.func @transform_9(%arg0: i32) -> (i32, i32, i32) {
    %c0_i32 = arith.constant 0 : i32
    %c0_i32_0 = arith.constant 0 : i32
    %c0_i32_1 = arith.constant 0 : i32
    return %arg0, %c0_i32, %c0_i32_0 : i32, i32, i32
  }
  func.func @transform_10(%arg0: i32) -> (i32, i32, i32) {
    %c0_i32 = arith.constant 0 : i32
    %c0_i32_0 = arith.constant 0 : i32
    %c0_i32_1 = arith.constant 0 : i32
    return %arg0, %c0_i32, %c0_i32_0 : i32, i32, i32
  }
  func.func @transform_11(%arg0: i32) -> (i32, i32, i32) {
    %c0_i32 = arith.constant 0 : i32
    %c0_i32_0 = arith.constant 0 : i32
    %c0_i32_1 = arith.constant 0 : i32
    return %arg0, %c0_i32, %c0_i32_0 : i32, i32, i32
  }
  func.func @transform_12(%arg0: i32) -> (i32, i32, i32) {
    %c0_i32 = arith.constant 0 : i32
    %c0_i32_0 = arith.constant 0 : i32
    %c0_i32_1 = arith.constant 0 : i32
    return %arg0, %c0_i32, %c0_i32_0 : i32, i32, i32
  }
  func.func @transform_13(%arg0: i32) -> (i32, i32, i32) {
    %c0_i32 = arith.constant 0 : i32
    %c0_i32_0 = arith.constant 0 : i32
    %c0_i32_1 = arith.constant 0 : i32
    return %arg0, %c0_i32, %c0_i32_0 : i32, i32, i32
  }
  func.func @transform_14(%arg0: i32) -> (i32, i32, i32) {
    %c0_i32 = arith.constant 0 : i32
    %c0_i32_0 = arith.constant 0 : i32
    %c0_i32_1 = arith.constant 0 : i32
    return %arg0, %c0_i32, %c0_i32_0 : i32, i32, i32
  }
  func.func @transform_15(%arg0: i32) -> (i32, i32, i32) {
    %c0_i32 = arith.constant 0 : i32
    %c0_i32_0 = arith.constant 0 : i32
    %c0_i32_1 = arith.constant 0 : i32
    return %arg0, %c0_i32, %c0_i32_0 : i32, i32, i32
  }
  func.func @transform_16(%arg0: i32) -> (i32, i32, i32) {
    %c0_i32 = arith.constant 0 : i32
    %c0_i32_0 = arith.constant 0 : i32
    %c0_i32_1 = arith.constant 0 : i32
    return %arg0, %c0_i32, %c0_i32_0 : i32, i32, i32
  }
  func.func @transform_17(%arg0: i32) -> (i32, i32, i32) {
    %c0_i32 = arith.constant 0 : i32
    %c0_i32_0 = arith.constant 0 : i32
    %c0_i32_1 = arith.constant 0 : i32
    return %arg0, %c0_i32, %c0_i32_0 : i32, i32, i32
  }
  func.func @transform_18(%arg0: i32) -> (i32, i32, i32) {
    %c0_i32 = arith.constant 0 : i32
    %c0_i32_0 = arith.constant 0 : i32
    %c0_i32_1 = arith.constant 0 : i32
    return %arg0, %c0_i32, %c0_i32_0 : i32, i32, i32
  }
  func.func @transform_19(%arg0: i32) -> (i32, i32) {
    %c0_i32 = arith.constant 0 : i32
    %c0_i32_0 = arith.constant 0 : i32
    %c0_i32_1 = arith.constant 0 : i32
    return %c0_i32, %c0_i32_0 : i32, i32
  }
}

</mosaic_0001>

<bundles_post_ra>
// kernel: svg_encoder_forward.1
= control target key start
LH: loop header
LB: loop body
LE: loop exit
PB: predicated region body
PF: predicated region fallthrough
CT: control target
= control target key end

     0   :  { %s12768_s0 = inlined_call_operand.vmem [shape: f32[16,8], index: 0, kind: input, shape index: {}]   ;;  %s12769_s1 = inlined_call_operand.hbm [shape: f32[8,256], index: 1, kind: input, shape index: {}]   ;;  %s12770_s2 = inlined_call_operand.hbm [shape: f32[8,256], index: 2, kind: input, shape index: {}]   ;;  %s12771_s3 = inlined_call_operand.hbm [shape: f32[1,256], index: 3, kind: input, shape index: {}]   ;;  %s12772_s4 = inlined_call_operand.vmem [shape: f32[16,256], index: 4, kind: input, shape index: {}]   ;;  %s12773_s5 = inlined_call_operand.hbm [shape: bf16[6,256,768], index: 5, kind: input, shape index: {}]   ;;  %s12774_s6 = inlined_call_operand.hbm [shape: f32[6,1,768], index: 6, kind: input, shape index: {}]   ;;  %s12775_s7 = inlined_call_operand.hbm [shape: bf16[6,256,256], index: 7, kind: input, shape index: {}]   ;;  %s12776_s8 = inlined_call_operand.hbm [shape: f32[6,1,256], index: 8, kind: input, shape index: {}]   ;;  %s12777_s9 = inlined_call_operand.hbm [shape: f32[6,1,256], index: 9, kind: input, shape index: {}]   ;;  %s12778_s10 = inlined_call_operand.hbm [shape: f32[6,1,256], index: 10, kind: input, shape index: {}]   ;;  %s12779_s11 = inlined_call_operand.hbm [shape: s8[6,256,2048], index: 11, kind: input, shape index: {}]   ;;  %s12780_s12 = inlined_call_operand.hbm [shape: f32[6,1,2048], index: 12, kind: input, shape index: {}]   ;;  %s12781_s13 = inlined_call_operand.hbm [shape: f32[6,1,2048], index: 13, kind: input, shape index: {}]   ;;  %s12782_s14 = inlined_call_operand.hbm [shape: s8[6,2048,256], index: 14, kind: input, shape index: {}]   ;;  %s12783_s15 = inlined_call_operand.hbm [shape: f32[6,1,256], index: 15, kind: input, shape index: {}]   ;;  %s12784_s16 = inlined_call_operand.hbm [shape: f32[6,1,256], index: 16, kind: input, shape index: {}]   ;;  %s12785_s17 = inlined_call_operand.hbm [shape: f32[6,1,256], index: 17, kind: input, shape index: {}]   ;;  %s12786_s18 = inlined_call_operand.hbm [shape: f32[6,1,256], index: 18, kind: input, shape index: {}]   ;;  %s12787_s19 = inlined_call_operand.hbm [shape: f32[16,256], index: 19, kind: output, shape index: {}]  }
   0x1   :  { %12822 = sst [smem:[#allocation49_spill]] %s12768_s0 }
   0x2   :  { %12823 = sst [smem:[#allocation50_spill]] %s12769_s1 }
   0x3   :  { %12824 = sst [smem:[#allocation51_spill]] %s12770_s2 }
   0x4   :  { %12825 = sst [smem:[#allocation52_spill]] %s12771_s3 }
   0x5   :  { %12826 = sst [smem:[#allocation53_spill]] %s12772_s4 }
   0x6   :  { %12827 = sst [smem:[#allocation54_spill]] %s12773_s5 }
   0x7   :  { %12828 = sst [smem:[#allocation55_spill]] %s12775_s7 }
   0x8   :  { %12829 = sst [smem:[#allocation56_spill]] %s12777_s9 }
   0x9   :  { %12830 = sst [smem:[#allocation57_spill]] %s12779_s11 }
   0xa   :  { %12831 = sst [smem:[#allocation58_spill]] %s12784_s16 }
   0xb   :  { %12832 = sst [smem:[#allocation59_spill]] %s12786_s18 }
   0xc   :  { %12833 = sst [smem:[#allocation60_spill]] %s12787_s19 }
   0xd   :  { %24 = vsyncpa [#allocation5], 0 }
   0xe   :  { %25 = vsyncpa [#allocation8], 0 }
   0xf   :  { %26 = vsyncpa [#allocation11], 0 }
  0x10   :  { %28 = vsyncpa [#allocation11 + $0x1], 0 }
  0x11   :  { %29 = vsyncpa [#allocation14], 0 }
  0x12   :  { %31 = vsyncpa [#allocation14 + $0x1], 0 }
  0x13   :  { %32 = vsyncpa [#allocation17], 0 }
  0x14   :  { %34 = vsyncpa [#allocation17 + $0x1], 0 }
  0x15   :  { %35 = vsyncpa [#allocation20], 0 }
  0x16   :  { %37 = vsyncpa [#allocation20 + $0x1], 0 }
  0x17   :  { %38 = vsyncpa [#allocation23], 0 }
  0x18   :  { %40 = vsyncpa [#allocation23 + $0x1], 0 }
  0x19   :  { %41 = vsyncpa [#allocation26], 0 }
  0x1a   :  { %43 = vsyncpa [#allocation26 + $0x1], 0 }
  0x1b   :  { %44 = vsyncpa [#allocation29], 0 }
  0x1c   :  { %46 = vsyncpa [#allocation29 + $0x1], 0 }
  0x1d   :  { %47 = vsyncpa [#allocation6], 0  ;;  %s10588_s0 = smov 0   ;;  %s10590_s30 = smov 0  }
  0x1e   :  { %s10592_s20 = smov 0   ;;  %s10594_s21 = smov 0  }
  0x1f LB: > { %12834 = sst [smem:[#allocation42_spill]] %s10437_s30  ;;  %s10607_s1 = sadd.s32 4294967295, %s10445_s21   ;;  %s10445_s21 = sphi %s10594_s21, %s12891_s21   ;;  %s10441_s20 = sphi %s10592_s20, %s12894_s20   ;;  %s10437_s30 = sphi %s10590_s30, %s12893_s30   ;;  %s10433_s0 = sphi %s10588_s0, %s12892_s0  }
  0x20   : > { %12835 = sst [smem:[#allocation43_spill]] %s10441_s20  ;;  %s10610_s22 = sadd.s32 1, %s10445_s21  }
  0x21   : > { %12836 = sst [smem:[#allocation44_spill]] %s10607_s1  ;;  %s162_s2 = ssub.s32 %s10445_s21, %s10610_s22 }
  0x22   : > { %12837 = sst [smem:[#allocation45_spill]] %s10610_s22  ;;  %s165_s23 = sadd.s32 1, %s10441_s20 }
  0x23   : > { %p163_p0 = scmp.eq.s32.totalorder %s162_s2, 0  ;;  %p172_p1 = scmp.ne.s32.totalorder %s10441_s20, %s10437_s30 }
  0x24   : > { %p173_p2 = scmp.eq.s32.totalorder %s10445_s21, 0  ;;  %p178_p3 = scmp.ne.s32.totalorder %s10437_s30, %s10433_s0 }
  0x25   : > { %s10620_s24 = scalar_select %p163_p0, %s10441_s20, %s165_s23  }
  0x26   : > { %p10622_p4 = por %p173_p2, %p172_p1  ;;  %p12802_p5 = scmp.eq.s32.totalorder %s10607_s1, 0 }
  0x27   : > { %12838 = sst [smem:[#allocation46_spill]] %s10620_s24  ;;  %p8435_p6 = scmp.ge.s32.totalorder %s10445_s21, 1 }
  0x28   : > { %s12839_s25 = scalar_select %p10622_p4, 1, 0 }
  0x29   : > { %p548_p7 = scmp.lt.s32.totalorder %s10445_s21, 7  ;;  %p10631_p8 = por %p12802_p5, %p178_p3 }
  0x2a   : > { %s10447_s27 = smov [#allocation7]   ;;  %s10448_s29 = smov [#allocation4]  }
  0x2b   : > { %s12840_s3 = scalar_select %p10631_p8, 1, 0 }
  0x2c   : > { %p10636_p10 = pnand %p8435_p6, %p548_p7  ;;  %s575_s28 = sshll.u32 %s10447_s27, 4  ;;  %s576_s28 = int_to_ptr.vmem [resolvable:$true] %s575_s28 }
  0x2d   : > { %12841 = sst [smem:[#allocation47_spill]] %s12840_s3  ;;  %s564_s0 = sshll.u32 %s10448_s29, 4  ;;  %s10648_s0 = int_to_ptr.vmem [resolvable:$true] %s564_s0 }
  0x2e   : > { %s12842_s26 = scalar_select %p10636_p10, 1, 0 }
  0x2f   : > { %p9511_p11 = pneg %p10636_p10  ;;  %s10449_s23 = smov [#allocation9]  }
  0x30   : > { %12843 = sst [smem:[#allocation48_spill]] %s12842_s26  ;;  %s586_s24 = sshll.u32 %s10449_s23, 4  ;;  %s10650_s24 = int_to_ptr.vmem [resolvable:$true] %s586_s24 }
  0x31   : > { %p10644_p12 = pnand %p9511_p11, %p12802_p5  ;;  %s12845_s27 = sld [smem:[#allocation51_spill]] }
  0x33   : > { %p10660_p0 = pneg %p10644_p12 }
  0x37   : > { %s9873_s4 = scalar_lea.hbm %s12845_s27, 256 }
  0x38   : > { %p9874_p13 = scmp.ne.s32.totalorder %s12845_s27, %s9873_s4  ;;  %p9880_p3 = scmp.lt.u32.totalorder %s9873_s4, %s12845_s27 }
  0x3a   : > { %p9876_p1 = pnand %p10660_p0, %p9874_p13 }
  0x3c   : > { %p9877_p2 = pneg %p9876_p1 }
  0x3e   : > { %p9882_p6 = pnand %p9880_p3, %p9877_p2 }
  0x40   : > { %9885 = shalt.err (!%p9882_p6)
}
  0x41   : > { %s9886_s19 = scalar_lea.vmem %s576_s28, 256  ;;  %p9894_p5 = scmp.lt.s32.totalorder %s576_s28, %s576_s28 }
  0x42   : > { %p9887_p7 = scmp.ne.s32.totalorder %s576_s28, %s9886_s19  ;;  %p9895_p8 = scmp.lt.s32.totalorder %s9886_s19, %s9886_s19 }
  0x44   : > { %p9889_p11 = pnand %p9887_p7, %p10660_p0  ;;  %p9896_p10 = por %p9895_p8, %p9894_p5 }
  0x46   : > { %p9890_p9 = pneg %p9889_p11 }
  0x48   : > { %p9897_p4 = pnand %p9896_p10, %p9890_p9 }
  0x4a   : > { %9900 = shalt.err (!%p9897_p4)
}
  0x4b   : > { %9517 = dma.hbm_to_vmem [thread:$0]  (!%p10644_p12), %s12845_s27, 256, %s576_s28, [#allocation8]  }
  0x4c   : > { %s12847_s3 = sld [smem:[#allocation50_spill]] }
  0x52   : > { %s9901_s23 = scalar_lea.hbm %s12847_s3, 256 }
  0x53   : > { %p9902_p13 = scmp.ne.s32.totalorder %s12847_s3, %s9901_s23  ;;  %p9908_p4 = scmp.lt.u32.totalorder %s9901_s23, %s12847_s3 }
  0x55   : > { %p9904_p1 = pnand %p9902_p13, %p10660_p0 }
  0x57   : > { %p9905_p5 = pneg %p9904_p1 }
  0x59   : > { %p9910_p8 = pnand %p9908_p4, %p9905_p5 }
  0x5b   : > { %9913 = shalt.err (!%p9910_p8)
}
  0x5c   : > { %s9914_s28 = scalar_lea.vmem %s10648_s0, 256  ;;  %p9922_p3 = scmp.lt.s32.totalorder %s10648_s0, %s10648_s0 }
  0x5d   : > { %p9915_p9 = scmp.ne.s32.totalorder %s10648_s0, %s9914_s28  ;;  %p9923_p6 = scmp.lt.s32.totalorder %s9914_s28, %s9914_s28 }
  0x5f   : > { %p9917_p10 = pnand %p9915_p9, %p10660_p0  ;;  %p9924_p7 = por %p9923_p6, %p9922_p3 }
  0x61   : > { %p9918_p2 = pneg %p9917_p10 }
  0x63   : > { %p9925_p11 = pnand %p9924_p7, %p9918_p2 }
  0x65   : > { %9928 = shalt.err (!%p9925_p11)
}
  0x66   : > { %9514 = dma.hbm_to_vmem [thread:$0]  (!%p10644_p12), %s12847_s3, 256, %s10648_s0, [#allocation5]  }
  0x67   : > { %s12848_s22 = sld [smem:[#allocation52_spill]] }
  0x6d   : > { %s9929_s4 = scalar_lea.hbm %s12848_s22, 32 }
  0x6e   : > { %p9930_p13 = scmp.ne.s32.totalorder %s12848_s22, %s9929_s4  ;;  %p9936_p4 = scmp.lt.u32.totalorder %s9929_s4, %s12848_s22 }
  0x70   : > { %p9932_p1 = pnand %p9930_p13, %p10660_p0 }
  0x72   : > { %p9933_p5 = pneg %p9932_p1 }
  0x74   : > { %p9938_p8 = pnand %p9936_p4, %p9933_p5 }
  0x76   : > { %9941 = shalt.err (!%p9938_p8)
}
  0x77   : > { %s9942_s0 = scalar_lea.vmem %s10650_s24, 32  ;;  %p9950_p3 = scmp.lt.s32.totalorder %s10650_s24, %s10650_s24 }
  0x78   : > { %p9943_p9 = scmp.ne.s32.totalorder %s10650_s24, %s9942_s0  ;;  %p9951_p6 = scmp.lt.s32.totalorder %s9942_s0, %s9942_s0 }
  0x7a   : > { %p9945_p10 = pnand %p9943_p9, %p10660_p0  ;;  %p9952_p7 = por %p9951_p6, %p9950_p3 }
  0x7c   : > { %p9946_p2 = pneg %p9945_p10 }
  0x7e   : > { %p9953_p11 = pnand %p9952_p7, %p9946_p2 }
  0x80   : > { %9956 = shalt.err (!%p9953_p11)
}
  0x81   : > { %9520 = dma.hbm_to_vmem [thread:$0]  (!%p10644_p12), %s12848_s22, 32, %s10650_s24, [#allocation8]  }
  0x82   : > { %p8439_p13 = scmp.ge.s32.totalorder %s10445_s21, 6 }
  0x83   : > { %s10724_s29 = sand.u32 (!%p8439_p13), 1, %s10445_s21   ;;  %s10727_s26 = sand.u32 (!%p8439_p13), 1, %s10441_s20  }
  0x84   : > { %596 = sbr.rel (%p8439_p13) target bundleno = 495 (0x1ef), region = 36  ;;  %s12849_s5 = sld [smem:[#allocation54_spill]] (!%p8439_p13) }
  0x85   : > { %s9441_s30 = smul.u32 (!%p8439_p13), 768, %s10727_s26  ;;  %s12812_s28 = scalar_lea.sflag (!%p8439_p13), [#allocation11], %s10724_s29 }
  0x86   : > { %s9442_s2 = smul.u32 (!%p8439_p13), 12288, %s10445_s21  ;;  %p12850_p0 = scmp.ne.s32.totalorder (!%p8439_p13), %s12839_s25, 0 }
  0x87   : > { %s604_s24 = scalar_lea.vmem (!%p8439_p13), [#allocation10], %s9441_s30 }
  0x88   : > { %s611_s19 = sshll.u32 (!%p8439_p13), %s604_s24, 4  ;;  %s10736_s19 = int_to_ptr.vmem [resolvable:$true] %s611_s19 }
  0x8a   : > { %s10734_s23 = scalar_lea.hbm (!%p8439_p13), %s12849_s5, %s9442_s2  ;;  %s9961_s4 = scalar_lea.hbm (!%p8439_p13), %s12849_s5, 73728 }
  0x8b   : > { %s9957_s0 = scalar_lea.hbm %s10734_s23, 12288  ;;  %p9962_p4 = scmp.lt.u32.totalorder %s10734_s23, %s12849_s5 }
  0x8c   : > { %p9958_p12 = scmp.ne.s32.totalorder %s10734_s23, %s9957_s0  ;;  %p9963_p8 = scmp.lt.u32.totalorder %s9961_s4, %s9957_s0 }
  0x8d   : > { %p9965_p10 = scmp.lt.u32.totalorder %s9957_s0, %s10734_s23 }
  0x8e   : > { %p9959_p1 = pnand %p9958_p12, %p12850_p0  ;;  %p9964_p9 = por %p9963_p8, %p9962_p4 }
  0x90   : > { %p9960_p5 = pneg %p9959_p1  ;;  %p9966_p2 = por %p9965_p10, %p9964_p9 }
  0x92   : > { %p9967_p3 = pnand %p9966_p2, %p9960_p5 }
  0x94   : > { %9970 = shalt.err (!%p9967_p3)
}
  0x95   : > { %s9971_s30 = scalar_lea.vmem %s10736_s19, 12288  ;;  %s10450_s24 = smov [#allocation10]  }
  0x96   : > { %p9972_p6 = scmp.ne.s32.totalorder %s10736_s19, %s9971_s30  ;;  %s9975_s16 = sshll.u32 %s10450_s24, 4  ;;  %s9976_s16 = int_to_ptr.vmem [resolvable:$false] %s9975_s16 }
  0x97   : > { %s9977_s18 = scalar_lea.vmem %s9976_s16, 24576  ;;  %p9978_p13 = scmp.lt.s32.totalorder %s10736_s19, %s9976_s16 }
  0x98   : > { %p9973_p7 = pnand %p9972_p6, %p12850_p0  ;;  %p9979_p12 = scmp.lt.s32.totalorder %s9977_s18, %s9971_s30 }
  0x9a   : > { %p9974_p11 = pneg %p9973_p7  ;;  %p9980_p1 = por %p9979_p12, %p9978_p13 }
  0x9c   : > { %p9981_p4 = pnand %p9980_p1, %p9974_p11 }
  0x9e   : > { %9984 = shalt.err (!%p9981_p4)
}
  0x9f   : > { %s10451_s0 = smov 384   ;;  %s10452_s4 = smov 24  }
  0xa0   : > { %9473 = dma.hbm_to_vmem [thread:$0]  (%p12850_p0), %s10734_s23, 12288, %s10736_s19, %s12812_s28, %s10451_s0, %s10451_s0, %s10452_s4  }
  0xa1   : > { %s8442_s2 = sshll.u32 %s10727_s26, 8  ;;  %s8761_s1 = sshll.u32 %s10445_s21, 12 }
  0xa2   : > { %s12851_s7 = sld [smem:[#allocation55_spill]]  ;;  %s644_s18 = scalar_lea.vmem [#allocation13], %s8442_s2 }
  0xa3   : > { %s651_s3 = sshll.u32 %s644_s18, 4  ;;  %s12811_s5 = scalar_lea.sflag [#allocation14], %s10724_s29  ;;  %s10769_s3 = int_to_ptr.vmem [resolvable:$true] %s651_s3 }
  0xa8   : > { %s10767_s16 = scalar_lea.hbm %s12851_s7, %s8761_s1  ;;  %s9989_s0 = scalar_lea.hbm %s12851_s7, 24576 }
  0xa9   : > { %s9985_s22 = scalar_lea.hbm %s10767_s16, 4096  ;;  %p9990_p10 = scmp.lt.u32.totalorder %s10767_s16, %s12851_s7 }
  0xaa   : > { %p9986_p5 = scmp.ne.s32.totalorder %s10767_s16, %s9985_s22  ;;  %p9991_p2 = scmp.lt.u32.totalorder %s9989_s0, %s9985_s22 }
  0xab   : > { %p9993_p6 = scmp.lt.u32.totalorder %s9985_s22, %s10767_s16 }
  0xac   : > { %p9987_p8 = pnand %p9986_p5, %p12850_p0  ;;  %p9992_p3 = por %p9991_p2, %p9990_p10 }
  0xae   : > { %p9988_p9 = pneg %p9987_p8  ;;  %p9994_p7 = por %p9993_p6, %p9992_p3 }
  0xb0   : > { %p9995_p11 = pnand %p9994_p7, %p9988_p9 }
  0xb2   : > { %9998 = shalt.err (!%p9995_p11)
}
  0xb3   : > { %s9999_s2 = scalar_lea.vmem %s10769_s3, 4096  ;;  %s10453_s24 = smov [#allocation13]  }
  0xb4   : > { %p10000_p13 = scmp.ne.s32.totalorder %s10769_s3, %s9999_s2  ;;  %s10003_s30 = sshll.u32 %s10453_s24, 4  ;;  %s10004_s30 = int_to_ptr.vmem [resolvable:$false] %s10003_s30 }
  0xb5   : > { %s10005_s18 = scalar_lea.vmem %s10004_s30, 8192  ;;  %p10006_p4 = scmp.lt.s32.totalorder %s10769_s3, %s10004_s30 }
  0xb6   : > { %p10001_p12 = pnand %p10000_p13, %p12850_p0  ;;  %p10007_p5 = scmp.lt.s32.totalorder %s10005_s18, %s9999_s2 }
  0xb8   : > { %p10002_p1 = pneg %p10001_p12  ;;  %p10008_p8 = por %p10007_p5, %p10006_p4 }
  0xba   : > { %p10009_p10 = pnand %p10008_p8, %p10002_p1 }
  0xbc   : > { %10012 = shalt.err (!%p10009_p10)
}
  0xbd   : > { %s12813_s22 = smov 128   ;;  %s10455_s23 = smov 8  }
  0xbe   : > { %9475 = dma.hbm_to_vmem [thread:$0]  (%p12850_p0), %s10767_s16, 4096, %s10769_s3, %s12811_s5, %s12813_s22, %s12813_s22, %s10455_s23  }
  0xbf   : > { %s10798_s19 = sshll.u32 %s10727_s26, 1  ;;  %s10801_s0 = sshll.u32 %s10445_s21, 5 }
  0xc0   : > { %s12852_s9 = sld [smem:[#allocation56_spill]]  ;;  %s684_s24 = scalar_lea.vmem [#allocation16], %s10798_s19 }
  0xc1   : > { %s692_s30 = sshll.u32 %s684_s24, 4  ;;  %s12814_s18 = scalar_lea.sflag [#allocation17], %s10724_s29  ;;  %s693_s30 = int_to_ptr.vmem [resolvable:$true] %s692_s30 }
  0xc6   : > { %s10807_s2 = scalar_lea.hbm %s12852_s9, %s10801_s0  ;;  %s10017_s5 = scalar_lea.hbm %s12852_s9, 192 }
  0xc7   : > { %s10013_s3 = scalar_lea.hbm %s10807_s2, 32  ;;  %p10018_p6 = scmp.lt.u32.totalorder %s10807_s2, %s12852_s9 }
  0xc8   : > { %p10014_p9 = scmp.ne.s32.totalorder %s10807_s2, %s10013_s3  ;;  %p10019_p7 = scmp.lt.u32.totalorder %s10017_s5, %s10013_s3 }
  0xc9   : > { %p10021_p13 = scmp.lt.u32.totalorder %s10013_s3, %s10807_s2 }
  0xca   : > { %p10015_p2 = pnand %p10014_p9, %p12850_p0  ;;  %p10020_p11 = por %p10019_p7, %p10018_p6 }
  0xcc   : > { %p10016_p3 = pneg %p10015_p2  ;;  %p10022_p12 = por %p10021_p13, %p10020_p11 }
  0xce   : > { %p10023_p1 = pnand %p10022_p12, %p10016_p3 }
  0xd0   : > { %10026 = shalt.err (!%p10023_p1)
}
  0xd1   : > { %s10027_s24 = scalar_lea.vmem %s693_s30, 32  ;;  %s10456_s28 = smov [#allocation16]  }
  0xd2   : > { %p10028_p4 = scmp.ne.s32.totalorder %s693_s30, %s10027_s24  ;;  %s10031_s22 = sshll.u32 %s10456_s28, 4  ;;  %s10032_s22 = int_to_ptr.vmem [resolvable:$false] %s10031_s22 }
  0xd3   : > { %s10033_s16 = scalar_lea.vmem %s10032_s22, 64  ;;  %p10034_p10 = scmp.lt.s32.totalorder %s693_s30, %s10032_s22 }
  0xd4   : > { %p10029_p5 = pnand %p10028_p4, %p12850_p0  ;;  %p10035_p9 = scmp.lt.s32.totalorder %s10033_s16, %s10027_s24 }
  0xd6   : > { %p10030_p8 = pneg %p10029_p5  ;;  %p10036_p2 = por %p10035_p9, %p10034_p10 }
  0xd8   : > { %p10037_p6 = pnand %p10036_p2, %p10030_p8 }
  0xda   : > { %10040 = shalt.err (!%p10037_p6)
}
  0xdb   : > { %9477 = dma.hbm_to_vmem [thread:$0]  (%p12850_p0), %s10807_s2, 32, %s693_s30, %s12814_s18  }
  0xdc   : > { %s8454_s5 = sshll.u32 %s10727_s26, 10  ;;  %s8765_s28 = sshll.u32 %s10445_s21, 14 }
  0xdd   : > { %s12853_s11 = sld [smem:[#allocation57_spill]]  ;;  %s722_s4 = scalar_lea.vmem [#allocation19], %s8454_s5 }
  0xde   : > { %s729_s1 = sshll.u32 %s722_s4, 4  ;;  %s12817_s24 = scalar_lea.sflag [#allocation20], %s10724_s29  ;;  %s10841_s1 = int_to_ptr.vmem [resolvable:$true] %s729_s1 }
  0xe3   : > { %s10837_s23 = scalar_lea.hbm %s12853_s11, %s8765_s28  ;;  %s10045_s22 = scalar_lea.hbm %s12853_s11, 98304 }
  0xe4   : > { %s10041_s16 = scalar_lea.hbm %s10837_s23, 16384  ;;  %p10046_p13 = scmp.lt.u32.totalorder %s10837_s23, %s12853_s11 }
  0xe5   : > { %p10042_p3 = scmp.ne.s32.totalorder %s10837_s23, %s10041_s16  ;;  %p10047_p12 = scmp.lt.u32.totalorder %s10045_s22, %s10041_s16 }
  0xe6   : > { %p10049_p4 = scmp.lt.u32.totalorder %s10041_s16, %s10837_s23 }
  0xe7   : > { %p10043_p7 = pnand %p10042_p3, %p12850_p0  ;;  %p10048_p1 = por %p10047_p12, %p10046_p13 }
  0xe9   : > { %p10044_p11 = pneg %p10043_p7  ;;  %p10050_p5 = por %p10049_p4, %p10048_p1 }
  0xeb   : > { %p10051_p8 = pnand %p10050_p5, %p10044_p11 }
  0xed   : > { %10054 = shalt.err (!%p10051_p8)
}
  0xee   : > { %s10055_s4 = scalar_lea.vmem %s10841_s1, 16384  ;;  %s10457_s2 = smov [#allocation19]  }
  0xef   : > { %p10056_p10 = scmp.ne.s32.totalorder %s10841_s1, %s10055_s4  ;;  %s10059_s30 = sshll.u32 %s10457_s2, 4  ;;  %s10060_s30 = int_to_ptr.vmem [resolvable:$false] %s10059_s30 }
  0xf0   : > { %s10061_s18 = scalar_lea.vmem %s10060_s30, 32768  ;;  %p10062_p6 = scmp.lt.s32.totalorder %s10841_s1, %s10060_s30 }
  0xf1   : > { %p10057_p9 = pnand %p10056_p10, %p12850_p0  ;;  %p10063_p3 = scmp.lt.s32.totalorder %s10061_s18, %s10055_s4 }
  0xf3   : > { %p10058_p2 = pneg %p10057_p9  ;;  %p10064_p7 = por %p10063_p3, %p10062_p6 }
  0xf5   : > { %p10065_p13 = pnand %p10064_p7, %p10058_p2 }
  0xf7   : > { %10068 = shalt.err (!%p10065_p13)
}
  0xf8   : > { %s10458_s16 = smov 2048   ;;  %s12854_s22 = smov 128  }
  0xf9   : > { %9479 = dma.hbm_to_vmem [thread:$0]  (%p12850_p0), %s10837_s23, 16384, %s10841_s1, %s12817_s24, %s10458_s16, %s10458_s16, %s12854_s22  }
  0xfa   : > { %s10873_s2 = scalar_lea.hbm %s12782_s14, %s8765_s28  ;;  %s10877_s30 = scalar_lea.vmem [#allocation24], %s8454_s5 }
  0xfb   : > { %s12820_s7 = sshll.u32 %s10727_s26, 4  ;;  %s12821_s9 = sshll.u32 %s10445_s21, 8 }
  0xfc   : > { %s10887_s20 = scalar_lea.hbm %s12781_s13, %s12821_s9  ;;  %s762_s28 = scalar_lea.vmem [#allocation22], %s12820_s7 }
  0xfd   : > { %s770_s23 = sshll.u32 %s762_s28, 4  ;;  %s12818_s5 = scalar_lea.sflag [#allocation23], %s10724_s29  ;;  %s771_s23 = int_to_ptr.vmem [resolvable:$true] %s770_s23 }
  0xfe   : > { %s10069_s1 = scalar_lea.hbm %s10887_s20, 256  ;;  %s10073_s11 = scalar_lea.hbm %s12781_s13, 1536 }
  0xff   : > { %p10070_p11 = scmp.ne.s32.totalorder %s10887_s20, %s10069_s1  ;;  %p10074_p4 = scmp.lt.u32.totalorder %s10887_s20, %s12781_s13 }
 0x100   : > { %p10075_p5 = scmp.lt.u32.totalorder %s10073_s11, %s10069_s1  ;;  %p10077_p10 = scmp.lt.u32.totalorder %s10069_s1, %s10887_s20 }
 0x101   : > { %p10071_p12 = pnand %p10070_p11, %p12850_p0 }
 0x102   : > { %p10076_p8 = por %p10075_p5, %p10074_p4 }
 0x103   : > { %p10072_p1 = pneg %p10071_p12 }
 0x104   : > { %p10078_p9 = por %p10077_p10, %p10076_p8 }
 0x106   : > { %p10079_p2 = pnand %p10078_p9, %p10072_p1 }
 0x108   : > { %10082 = shalt.err (!%p10079_p2)
}
 0x109   : > { %s10083_s4 = scalar_lea.vmem %s771_s23, 256  ;;  %s10459_s28 = smov [#allocation22]  }
 0x10a   : > { %p10084_p6 = scmp.ne.s32.totalorder %s771_s23, %s10083_s4  ;;  %s10087_s24 = sshll.u32 %s10459_s28, 4  ;;  %s10088_s24 = int_to_ptr.vmem [resolvable:$false] %s10087_s24 }
 0x10b   : > { %s10089_s16 = scalar_lea.vmem %s10088_s24, 512  ;;  %p10090_p13 = scmp.lt.s32.totalorder %s771_s23, %s10088_s24 }
 0x10c   : > { %p10085_p3 = pnand %p10084_p6, %p12850_p0  ;;  %p10091_p11 = scmp.lt.s32.totalorder %s10089_s16, %s10083_s4 }
 0x10e   : > { %p10086_p7 = pneg %p10085_p3  ;;  %p10092_p12 = por %p10091_p11, %p10090_p13 }
 0x110   : > { %p10093_p4 = pnand %p10092_p12, %p10086_p7 }
 0x112   : > { %10096 = shalt.err (!%p10093_p4)
}
 0x113   : > { %9481 = dma.hbm_to_vmem [thread:$0]  (%p12850_p0), %s10887_s20, 256, %s771_s23, %s12818_s5  }
 0x114   : > { %s10915_s11 = scalar_lea.hbm %s12783_s15, %s10801_s0  ;;  %s802_s24 = scalar_lea.vmem [#allocation25], %s10798_s19 }
 0x115   : > { %s810_s27 = sshll.u32 %s802_s24, 4  ;;  %s12819_s3 = scalar_lea.sflag [#allocation26], %s10724_s29  ;;  %s811_s27 = int_to_ptr.vmem [resolvable:$true] %s810_s27 }
 0x116   : > { %s10097_s4 = scalar_lea.hbm %s10915_s11, 32  ;;  %s10101_s23 = scalar_lea.hbm %s12783_s15, 192 }
 0x117   : > { %p10098_p1 = scmp.ne.s32.totalorder %s10915_s11, %s10097_s4  ;;  %p10102_p10 = scmp.lt.u32.totalorder %s10915_s11, %s12783_s15 }
 0x118   : > { %p10103_p9 = scmp.lt.u32.totalorder %s10101_s23, %s10097_s4  ;;  %p10105_p6 = scmp.lt.u32.totalorder %s10097_s4, %s10915_s11 }
 0x119   : > { %p10099_p5 = pnand %p10098_p1, %p12850_p0 }
 0x11a   : > { %p10104_p2 = por %p10103_p9, %p10102_p10 }
 0x11b   : > { %p10100_p8 = pneg %p10099_p5 }
 0x11c   : > { %p10106_p3 = por %p10105_p6, %p10104_p2 }
 0x11e   : > { %p10107_p7 = pnand %p10106_p3, %p10100_p8 }
 0x120   : > { %10110 = shalt.err (!%p10107_p7)
}
 0x121   : > { %s10111_s22 = scalar_lea.vmem %s811_s27, 32  ;;  %s10460_s24 = smov [#allocation25]  }
 0x122   : > { %p10112_p13 = scmp.ne.s32.totalorder %s811_s27, %s10111_s22  ;;  %s10115_s5 = sshll.u32 %s10460_s24, 4  ;;  %s10116_s5 = int_to_ptr.vmem [resolvable:$false] %s10115_s5 }
 0x123   : > { %s10117_s28 = scalar_lea.vmem %s10116_s5, 64  ;;  %p10118_p4 = scmp.lt.s32.totalorder %s811_s27, %s10116_s5 }
 0x124   : > { %p10113_p11 = pnand %p10112_p13, %p12850_p0  ;;  %p10119_p1 = scmp.lt.s32.totalorder %s10117_s28, %s10111_s22 }
 0x126   : > { %p10114_p12 = pneg %p10113_p11  ;;  %p10120_p5 = por %p10119_p1, %p10118_p4 }
 0x128   : > { %p10121_p9 = pnand %p10120_p5, %p10114_p12 }
 0x12a   : > { %10124 = shalt.err (!%p10121_p9)
}
 0x12b   : > { %9483 = dma.hbm_to_vmem [thread:$0]  (%p12850_p0), %s10915_s11, 32, %s811_s27, %s12819_s3  }
 0x12c   : > { %s10942_s23 = scalar_lea.hbm %s12785_s17, %s10801_s0  ;;  %s840_s5 = scalar_lea.vmem [#allocation28], %s10798_s19 }
 0x12d   : > { %s848_s16 = sshll.u32 %s840_s5, 4  ;;  %s9443_s1 = smul.u32 6, %s10727_s26  ;;  %s10945_s16 = int_to_ptr.vmem [resolvable:$true] %s848_s16 }
 0x12e   : > { %s837_s22 = scalar_lea.sflag [#allocation29], %s10724_s29  ;;  %s10125_s24 = scalar_lea.hbm %s10942_s23, 32 }
 0x12f   : > { %p10126_p8 = scmp.ne.s32.totalorder %s10942_s23, %s10125_s24  ;;  %s10129_s28 = scalar_lea.hbm %s12785_s17, 192 }
 0x130   : > { %p10130_p6 = scmp.lt.u32.totalorder %s10942_s23, %s12785_s17  ;;  %p10131_p3 = scmp.lt.u32.totalorder %s10129_s28, %s10125_s24 }
 0x131   : > { %p10127_p10 = pnand %p10126_p8, %p12850_p0  ;;  %p10133_p13 = scmp.lt.u32.totalorder %s10125_s24, %s10942_s23 }
 0x132   : > { %p10132_p7 = por %p10131_p3, %p10130_p6 }
 0x133   : > { %p10128_p2 = pneg %p10127_p10 }
 0x134   : > { %p10134_p11 = por %p10133_p13, %p10132_p7 }
 0x136   : > { %p10135_p12 = pnand %p10134_p11, %p10128_p2 }
 0x138   : > { %10138 = shalt.err (!%p10135_p12)
}
 0x139   : > { %s10139_s5 = scalar_lea.vmem %s10945_s16, 32  ;;  %s10461_s11 = smov [#allocation28]  }
 0x13a   : > { %p10140_p4 = scmp.ne.s32.totalorder %s10945_s16, %s10139_s5  ;;  %s10143_s27 = sshll.u32 %s10461_s11, 4  ;;  %s10144_s27 = int_to_ptr.vmem [resolvable:$false] %s10143_s27 }
 0x13b   : > { %s10145_s4 = scalar_lea.vmem %s10144_s27, 64  ;;  %p10146_p9 = scmp.lt.s32.totalorder %s10945_s16, %s10144_s27 }
 0x13c   : > { %p10141_p1 = pnand %p10140_p4, %p12850_p0  ;;  %p10147_p8 = scmp.lt.s32.totalorder %s10145_s4, %s10139_s5 }
 0x13e   : > { %p10142_p5 = pneg %p10141_p1  ;;  %p10148_p10 = por %p10147_p8, %p10146_p9 }
 0x140   : > { %p10149_p6 = pnand %p10148_p10, %p10142_p5 }
 0x142   : > { %10152 = shalt.err (!%p10149_p6)
}
 0x143   : > { %9485 = dma.hbm_to_vmem [thread:$0]  (%p12850_p0), %s10942_s23, 32, %s10945_s16, %s837_s22  }
 0x144   : > { %s9444_s24 = smul.u32 96, %s10445_s21  ;;  %s625_s28 = scalar_lea.vmem [#allocation12], %s9443_s1 }
 0x145   : > { %s633_s20 = sshll.u32 %s625_s28, 4  ;;  %s10157_s7 = scalar_lea.hbm %s12774_s6, 576  ;;  %s634_s20 = int_to_ptr.vmem [resolvable:$true] %s633_s20 }
 0x146   : > { %s631_s5 = scalar_lea.hbm %s12774_s6, %s9444_s24 }
 0x147   : > { %s10153_s4 = scalar_lea.hbm %s631_s5, 96  ;;  %p10158_p13 = scmp.lt.u32.totalorder %s631_s5, %s12774_s6 }
 0x148   : > { %p10154_p2 = scmp.ne.s32.totalorder %s631_s5, %s10153_s4  ;;  %p10159_p11 = scmp.lt.u32.totalorder %s10157_s7, %s10153_s4 }
 0x149   : > { %p10161_p4 = scmp.lt.u32.totalorder %s10153_s4, %s631_s5 }
 0x14a   : > { %p10155_p3 = pnand %p10154_p2, %p12850_p0  ;;  %p10160_p12 = por %p10159_p11, %p10158_p13 }
 0x14c   : > { %p10156_p7 = pneg %p10155_p3  ;;  %p10162_p1 = por %p10161_p4, %p10160_p12 }
 0x14e   : > { %p10163_p5 = pnand %p10162_p1, %p10156_p7 }
 0x150   : > { %10166 = shalt.err (!%p10163_p5)
}
 0x151   : > { %s10167_s16 = scalar_lea.vmem %s634_s20, 96  ;;  %s10462_s1 = smov [#allocation12]  }
 0x152   : > { %p10168_p9 = scmp.ne.s32.totalorder %s634_s20, %s10167_s16  ;;  %s10171_s24 = sshll.u32 %s10462_s1, 4  ;;  %s10172_s24 = int_to_ptr.vmem [resolvable:$false] %s10171_s24 }
 0x153   : > { %s10173_s18 = scalar_lea.vmem %s10172_s24, 192  ;;  %p10174_p6 = scmp.lt.s32.totalorder %s634_s20, %s10172_s24 }
 0x154   : > { %p10169_p8 = pnand %p10168_p9, %p12850_p0  ;;  %p10175_p2 = scmp.lt.s32.totalorder %s10173_s18, %s10167_s16 }
 0x156   : > { %p10170_p10 = pneg %p10169_p8  ;;  %p10176_p3 = por %p10175_p2, %p10174_p6 }
 0x158   : > { %p10177_p11 = pnand %p10176_p3, %p10170_p10 }
 0x15a   : > { %10180 = shalt.err (!%p10177_p11)
}
 0x15b   : > { %s12855_s7 = scalar_lea.sflag [#allocation11], %s10724_s29  ;;  %s10996_s28 = scalar_lea.hbm %s12776_s8, %s10801_s0 }
 0x15c   : > { %9474 = dma.hbm_to_vmem [thread:$0]  (%p12850_p0), %s631_s5, 96, %s634_s20, %s12855_s7  }
 0x15d   : > { %s665_s11 = scalar_lea.vmem [#allocation15], %s10798_s19  ;;  %s10181_s4 = scalar_lea.hbm %s10996_s28, 32 }
 0x15e   : > { %s673_s27 = sshll.u32 %s665_s11, 4  ;;  %p10182_p7 = scmp.ne.s32.totalorder %s10996_s28, %s10181_s4  ;;  %s674_s27 = int_to_ptr.vmem [resolvable:$true] %s673_s27 }
 0x15f   : > { %s10185_s20 = scalar_lea.hbm %s12776_s8, 192  ;;  %p10186_p4 = scmp.lt.u32.totalorder %s10996_s28, %s12776_s8 }
 0x160   : > { %p10183_p13 = pnand %p10182_p7, %p12850_p0  ;;  %p10187_p1 = scmp.lt.u32.totalorder %s10185_s20, %s10181_s4 }
 0x161   : > { %p10189_p9 = scmp.lt.u32.totalorder %s10181_s4, %s10996_s28 }
 0x162   : > { %p10184_p12 = pneg %p10183_p13  ;;  %p10188_p5 = por %p10187_p1, %p10186_p4 }
 0x164   : > { %p10190_p8 = por %p10189_p9, %p10188_p5 }
 0x166   : > { %p10191_p10 = pnand %p10190_p8, %p10184_p12 }
 0x168   : > { %10194 = shalt.err (!%p10191_p10)
}
 0x169   : > { %s10195_s24 = scalar_lea.vmem %s674_s27, 32  ;;  %s10463_s18 = smov [#allocation15]  }
 0x16a   : > { %p10196_p6 = scmp.ne.s32.totalorder %s674_s27, %s10195_s24  ;;  %s10199_s7 = sshll.u32 %s10463_s18, 4  ;;  %s10200_s7 = int_to_ptr.vmem [resolvable:$false] %s10199_s7 }
 0x16b   : > { %s10201_s9 = scalar_lea.vmem %s10200_s7, 64  ;;  %p10202_p11 = scmp.lt.s32.totalorder %s674_s27, %s10200_s7 }
 0x16c   : > { %p10197_p2 = pnand %p10196_p6, %p12850_p0  ;;  %p10203_p7 = scmp.lt.s32.totalorder %s10201_s9, %s10195_s24 }
 0x16e   : > { %p10198_p3 = pneg %p10197_p2  ;;  %p10204_p13 = por %p10203_p7, %p10202_p11 }
 0x170   : > { %p10205_p1 = pnand %p10204_p13, %p10198_p3 }
 0x172   : > { %10208 = shalt.err (!%p10205_p1)
}
 0x173   : > { %s12856_s3 = scalar_lea.sflag [#allocation14], %s10724_s29  ;;  %s11022_s23 = scalar_lea.hbm %s12778_s10, %s10801_s0 }
 0x174   : > { %9476 = dma.hbm_to_vmem [thread:$0]  (%p12850_p0), %s10996_s28, 32, %s674_s27, %s12856_s3  }
 0x175   : > { %s703_s16 = scalar_lea.vmem [#allocation18], %s10798_s19  ;;  %s10209_s5 = scalar_lea.hbm %s11022_s23, 32 }
 0x176   : > { %s711_s20 = sshll.u32 %s703_s16, 4  ;;  %p10210_p12 = scmp.ne.s32.totalorder %s11022_s23, %s10209_s5  ;;  %s712_s20 = int_to_ptr.vmem [resolvable:$true] %s711_s20 }
 0x177   : > { %s10213_s28 = scalar_lea.hbm %s12778_s10, 192  ;;  %p10214_p9 = scmp.lt.u32.totalorder %s11022_s23, %s12778_s10 }
 0x178   : > { %p10211_p4 = pnand %p10210_p12, %p12850_p0  ;;  %p10215_p8 = scmp.lt.u32.totalorder %s10213_s28, %s10209_s5 }
 0x179   : > { %p10217_p6 = scmp.lt.u32.totalorder %s10209_s5, %s11022_s23 }
 0x17a   : > { %p10212_p5 = pneg %p10211_p4  ;;  %p10216_p10 = por %p10215_p8, %p10214_p9 }
 0x17c   : > { %p10218_p2 = por %p10217_p6, %p10216_p10 }
 0x17e   : > { %p10219_p3 = pnand %p10218_p2, %p10212_p5 }
 0x180   : > { %10222 = shalt.err (!%p10219_p3)
}
 0x181   : > { %s10223_s7 = scalar_lea.vmem %s712_s20, 32  ;;  %s10464_s9 = smov [#allocation18]  }
 0x182   : > { %p10224_p11 = scmp.ne.s32.totalorder %s712_s20, %s10223_s7  ;;  %s10227_s3 = sshll.u32 %s10464_s9, 4  ;;  %s10228_s3 = int_to_ptr.vmem [resolvable:$false] %s10227_s3 }
 0x183   : > { %s10229_s11 = scalar_lea.vmem %s10228_s3, 64  ;;  %p10230_p1 = scmp.lt.s32.totalorder %s712_s20, %s10228_s3 }
 0x184   : > { %p10225_p7 = pnand %p10224_p11, %p12850_p0  ;;  %p10231_p12 = scmp.lt.s32.totalorder %s10229_s11, %s10223_s7 }
 0x186   : > { %p10226_p13 = pneg %p10225_p7  ;;  %p10232_p4 = por %p10231_p12, %p10230_p1 }
 0x188   : > { %p10233_p8 = pnand %p10232_p4, %p10226_p13 }
 0x18a   : > { %10236 = shalt.err (!%p10233_p8)
}
 0x18b   : > { %s12857_s4 = scalar_lea.sflag [#allocation17], %s10724_s29  ;;  %s12858_s16 = sshll.u32 %s10445_s21, 8 }
 0x18c   : > { %9478 = dma.hbm_to_vmem [thread:$0]  (%p12850_p0), %s11022_s23, 32, %s712_s20, %s12857_s4  }
 0x18d   : > { %s11049_s24 = scalar_lea.hbm %s12780_s12, %s12858_s16  ;;  %s12859_s28 = sshll.u32 %s10727_s26, 4 }
 0x18e   : > { %s743_s27 = scalar_lea.vmem [#allocation21], %s12859_s28  ;;  %s12860_s7 = sshll.u32 %s10877_s30, 4  ;;  %s11055_s7 = int_to_ptr.vmem [resolvable:$true] %s12860_s7 }
 0x18f   : > { %s751_s18 = sshll.u32 %s743_s27, 4  ;;  %s10237_s9 = scalar_lea.hbm %s11049_s24, 256  ;;  %s752_s18 = int_to_ptr.vmem [resolvable:$true] %s751_s18 }
 0x190   : > { %p10238_p5 = scmp.ne.s32.totalorder %s11049_s24, %s10237_s9  ;;  %s10241_s20 = scalar_lea.hbm %s12780_s12, 1536 }
 0x191   : > { %p10242_p6 = scmp.lt.u32.totalorder %s11049_s24, %s12780_s12  ;;  %p10243_p2 = scmp.lt.u32.totalorder %s10241_s20, %s10237_s9 }
 0x192   : > { %p10239_p9 = pnand %p10238_p5, %p12850_p0  ;;  %p10245_p11 = scmp.lt.u32.totalorder %s10237_s9, %s11049_s24 }
 0x193   : > { %p10244_p3 = por %p10243_p2, %p10242_p6 }
 0x194   : > { %p10240_p10 = pneg %p10239_p9 }
 0x195   : > { %p10246_p7 = por %p10245_p11, %p10244_p3 }
 0x197   : > { %p10247_p13 = pnand %p10246_p7, %p10240_p10 }
 0x199   : > { %10250 = shalt.err (!%p10247_p13)
}
 0x19a   : > { %s10251_s30 = scalar_lea.vmem %s752_s18, 256  ;;  %s10465_s11 = smov [#allocation21]  }
 0x19b   : > { %p10252_p1 = scmp.ne.s32.totalorder %s752_s18, %s10251_s30  ;;  %s10255_s4 = sshll.u32 %s10465_s11, 4  ;;  %s10256_s4 = int_to_ptr.vmem [resolvable:$false] %s10255_s4 }
 0x19c   : > { %s10257_s16 = scalar_lea.vmem %s10256_s4, 512  ;;  %p10258_p8 = scmp.lt.s32.totalorder %s752_s18, %s10256_s4 }
 0x19d   : > { %p10253_p12 = pnand %p10252_p1, %p12850_p0  ;;  %p10259_p5 = scmp.lt.s32.totalorder %s10257_s16, %s10251_s30 }
 0x19f   : > { %p10254_p4 = pneg %p10253_p12  ;;  %p10260_p9 = por %p10259_p5, %p10258_p8 }
 0x1a1   : > { %p10261_p2 = pnand %p10260_p9, %p10254_p4 }
 0x1a3   : > { %10264 = shalt.err (!%p10261_p2)
}
 0x1a4   : > { %s12861_s5 = scalar_lea.sflag [#allocation20], %s10724_s29  ;;  %s10265_s1 = scalar_lea.hbm %s10873_s2, 16384 }
 0x1a5   : > { %9480 = dma.hbm_to_vmem [thread:$0]  (%p12850_p0), %s11049_s24, 256, %s752_s18, %s12861_s5  }
 0x1a6   : > { %p10266_p10 = scmp.ne.s32.totalorder %s10873_s2, %s10265_s1  ;;  %s10269_s9 = scalar_lea.hbm %s12782_s14, 98304 }
 0x1a7   : > { %p10270_p11 = scmp.lt.u32.totalorder %s10873_s2, %s12782_s14  ;;  %p10271_p7 = scmp.lt.u32.totalorder %s10269_s9, %s10265_s1 }
 0x1a8   : > { %p10267_p6 = pnand %p10266_p10, %p12850_p0  ;;  %p10273_p1 = scmp.lt.u32.totalorder %s10265_s1, %s10873_s2 }
 0x1a9   : > { %p10272_p13 = por %p10271_p7, %p10270_p11 }
 0x1aa   : > { %p10268_p3 = pneg %p10267_p6 }
 0x1ab   : > { %p10274_p12 = por %p10273_p1, %p10272_p13 }
 0x1ad   : > { %p10275_p4 = pnand %p10274_p12, %p10268_p3 }
 0x1af   : > { %10278 = shalt.err (!%p10275_p4)
}
 0x1b0   : > { %s10279_s24 = scalar_lea.vmem %s11055_s7, 16384  ;;  %s10466_s18 = smov [#allocation24]  }
 0x1b1   : > { %p10280_p8 = scmp.ne.s32.totalorder %s11055_s7, %s10279_s24  ;;  %s10283_s20 = sshll.u32 %s10466_s18, 4  ;;  %s10284_s20 = int_to_ptr.vmem [resolvable:$false] %s10283_s20 }
 0x1b2   : > { %s10285_s26 = scalar_lea.vmem %s10284_s20, 32768  ;;  %p10286_p2 = scmp.lt.s32.totalorder %s11055_s7, %s10284_s20 }
 0x1b3   : > { %p10281_p5 = pnand %p10280_p8, %p12850_p0  ;;  %p10287_p10 = scmp.lt.s32.totalorder %s10285_s26, %s10279_s24 }
 0x1b5   : > { %p10282_p9 = pneg %p10281_p5  ;;  %p10288_p6 = por %p10287_p10, %p10286_p2 }
 0x1b7   : > { %p10289_p11 = pnand %p10288_p6, %p10282_p9 }
 0x1b9   : > { %10292 = shalt.err (!%p10289_p11)
}
 0x1ba   : > { %s10467_s3 = smov 256   ;;  %s10468_s30 = smov 16  }
 0x1bb   : > { %s12862_s11 = scalar_lea.sflag [#allocation23], %s10724_s29  ;;  %s12863_s5 = sld [smem:[#allocation58_spill]] }
 0x1bc   : > { %9482 = dma.hbm_to_vmem [thread:$0]  (%p12850_p0), %s10873_s2, 16384, %s11055_s7, %s12862_s11, %s10467_s3, %s10467_s3, %s10468_s30  }
 0x1bd   : > { %s821_s28 = scalar_lea.vmem [#allocation27], %s10798_s19  ;;  %s12864_s23 = sld [smem:[#allocation59_spill]] }
 0x1be   : > { %s829_s27 = sshll.u32 %s821_s28, 4  ;;  %s830_s27 = int_to_ptr.vmem [resolvable:$true] %s829_s27 }
 0x1c1   : > { %s11103_s1 = scalar_lea.hbm %s12863_s5, %s10801_s0  ;;  %s10297_s20 = scalar_lea.hbm %s12863_s5, 192 }
 0x1c2   : > { %s10293_s18 = scalar_lea.hbm %s11103_s1, 32  ;;  %p10298_p1 = scmp.lt.u32.totalorder %s11103_s1, %s12863_s5 }
 0x1c3   : > { %s11110_s24 = scalar_lea.hbm %s12864_s23, %s10801_s0  ;;  %p10294_p3 = scmp.ne.s32.totalorder %s11103_s1, %s10293_s18 }
 0x1c4   : > { %p10299_p12 = scmp.lt.u32.totalorder %s10297_s20, %s10293_s18  ;;  %p10301_p8 = scmp.lt.u32.totalorder %s10293_s18, %s11103_s1 }
 0x1c5   : > { %p10295_p7 = pnand %p10294_p3, %p12850_p0 }
 0x1c6   : > { %p10300_p4 = por %p10299_p12, %p10298_p1 }
 0x1c7   : > { %p10296_p13 = pneg %p10295_p7 }
 0x1c8   : > { %p10302_p5 = por %p10301_p8, %p10300_p4 }
 0x1ca   : > { %p10303_p9 = pnand %p10302_p5, %p10296_p13 }
 0x1cc   : > { %10306 = shalt.err (!%p10303_p9)
}
 0x1cd   : > { %s10307_s0 = scalar_lea.vmem %s830_s27, 32  ;;  %s10469_s30 = smov [#allocation27]  }
 0x1ce   : > { %p10308_p2 = scmp.ne.s32.totalorder %s830_s27, %s10307_s0  ;;  %s10311_s11 = sshll.u32 %s10469_s30, 4  ;;  %s10312_s11 = int_to_ptr.vmem [resolvable:$false] %s10311_s11 }
 0x1cf   : > { %s10313_s4 = scalar_lea.vmem %s10312_s11, 64  ;;  %p10314_p11 = scmp.lt.s32.totalorder %s830_s27, %s10312_s11 }
 0x1d0   : > { %p10309_p10 = pnand %p10308_p2, %p12850_p0  ;;  %p10315_p3 = scmp.lt.s32.totalorder %s10313_s4, %s10307_s0 }
 0x1d2   : > { %p10310_p6 = pneg %p10309_p10  ;;  %p10316_p7 = por %p10315_p3, %p10314_p11 }
 0x1d4   : > { %p10317_p1 = pnand %p10316_p7, %p10310_p6 }
 0x1d6   : > { %10320 = shalt.err (!%p10317_p1)
}
 0x1d7   : > { %s12865_s16 = scalar_lea.sflag [#allocation26], %s10724_s29  ;;  %s859_s28 = scalar_lea.vmem [#allocation30], %s10798_s19 }
 0x1d8   : > { %9484 = dma.hbm_to_vmem [thread:$0]  (%p12850_p0), %s11103_s1, 32, %s830_s27, %s12865_s16  }
 0x1d9   : > { %s867_s9 = sshll.u32 %s859_s28, 4  ;;  %s10321_s21 = scalar_lea.hbm %s11110_s24, 32  ;;  %s868_s9 = int_to_ptr.vmem [resolvable:$true] %s867_s9 }
 0x1da   : > { %p10322_p13 = scmp.ne.s32.totalorder %s11110_s24, %s10321_s21  ;;  %s10325_s7 = scalar_lea.hbm %s12864_s23, 192 }
 0x1db   : > { %p10326_p8 = scmp.lt.u32.totalorder %s11110_s24, %s12864_s23  ;;  %p10327_p5 = scmp.lt.u32.totalorder %s10325_s7, %s10321_s21 }
 0x1dc   : > { %p10323_p12 = pnand %p10322_p13, %p12850_p0  ;;  %p10329_p2 = scmp.lt.u32.totalorder %s10321_s21, %s11110_s24 }
 0x1dd   : > { %p10328_p9 = por %p10327_p5, %p10326_p8 }
 0x1de   : > { %p10324_p4 = pneg %p10323_p12 }
 0x1df   : > { %p10330_p10 = por %p10329_p2, %p10328_p9 }
 0x1e1   : > { %p10331_p6 = pnand %p10330_p10, %p10324_p4 }
 0x1e3   : > { %10334 = shalt.err (!%p10331_p6)
}
 0x1e4   : > { %s10335_s19 = scalar_lea.vmem %s868_s9, 32  ;;  %s10470_s1 = smov [#allocation30]  }
 0x1e5   : > { %p10336_p11 = scmp.ne.s32.totalorder %s868_s9, %s10335_s19  ;;  %s10339_s27 = sshll.u32 %s10470_s1, 4  ;;  %s10340_s27 = int_to_ptr.vmem [resolvable:$false] %s10339_s27 }
 0x1e6   : > { %s10341_s3 = scalar_lea.vmem %s10340_s27, 64  ;;  %p10342_p1 = scmp.lt.s32.totalorder %s868_s9, %s10340_s27 }
 0x1e7   : > { %p10337_p3 = pnand %p10336_p11, %p12850_p0  ;;  %p10343_p13 = scmp.lt.s32.totalorder %s10341_s3, %s10335_s19 }
 0x1e9   : > { %p10338_p7 = pneg %p10337_p3  ;;  %p10344_p12 = por %p10343_p13, %p10342_p1 }
 0x1eb   : > { %p10345_p5 = pnand %p10344_p12, %p10338_p7 }
 0x1ed   : > { %10348 = shalt.err (!%p10345_p5)
}
 0x1ee   : > { %9486 = dma.hbm_to_vmem [thread:$0]  (%p12850_p0), %s11110_s24, 32, %s868_s9, %s837_s22  }
 0x1ef PF: > { %s12866_s0 = sld [smem:[#allocation48_spill]] }
 0x1f5   : > { %p12867_p4 = scmp.ne.s32.totalorder %s12866_s0, 0 }
 0x1f6   : > { %s12868_s30 = sld [smem:[#allocation44_spill]] (!%p12867_p4) }
 0x1f7   : > { %876 = sbr.rel (%p12867_p4) target bundleno = 11731 (0x2dd3), region = 96 }
 0x1fc   : > { %p12869_p8 = scmp.eq.s32.totalorder (!%p12867_p4), %s12868_s30, 0 }
 0x1fe   : > { %10392 = dma.done.wait (%p12869_p8), [#allocation5], 256   ;;  %p12870_p9 = pmov %p12869_p8 }
 0x1ff   : > { %p12871_p2 = pmov %p12869_p8 }
 0x200   : > { %10394 = vsyncadd (%p12870_p9), [#allocation5], 4294967040 }
 0x201   : > { %10396 = dma.done.wait (%p12871_p2), [#allocation8], 288   ;;  %p12872_p10 = pmov %p12871_p2 }
 0x202   : > { %s12873_s25 = sld [smem:[#allocation42_spill]]  ;;  %s12874_s29 = sld [smem:[#allocation47_spill]] }
 0x203   : > { %10398 = vsyncadd (%p12872_p10), [#allocation8], 4294967008  ;;  %s11162_s22 = sand.u32 1, %s12868_s30  }
 0x204   : > { %s891_s4 = scalar_lea.sflag [#allocation11], %s11162_s22 }
 0x208   : > { %s11165_s24 = sand.u32 1, %s12873_s25   ;;  %p12875_p0 = scmp.ne.s32.totalorder %s12874_s29, 0 }
 0x209   : > { %s9445_s11 = smul.u32 768, %s11165_s24 }
 0x20b   : > { %s11169_s16 = scalar_lea.vmem [#allocation10], %s9445_s11 }
 0x20c   : > { %10400 = dma.done.wait (%p12875_p0), %s891_s4, 12384  }
 0x20d   : > { %10402 = vsyncadd (%p12875_p0), %s891_s4, 4294954912  ;;  %s9446_s28 = smul.u32 6, %s11165_s24  ;;  %s8482_s9 = sshll.u32 %s11165_s24, 8 }
 0x20e   : > { %s909_s18 = scalar_lea.sflag [#allocation14], %s11162_s22  ;;  %s11180_s2 = scalar_lea.vmem [#allocation13], %s8482_s9 }
 0x20f   : > { %s11177_s21 = scalar_lea.vmem [#allocation12], %s9446_s28 }
 0x210   : > { %10404 = dma.done.wait (%p12875_p0), %s909_s18, 4128  }
 0x211   : > { %10406 = vsyncadd (%p12875_p0), %s909_s18, 4294963168  ;;  %s11187_s7 = sshll.u32 %s11165_s24, 1  ;;  %s927_s26 = scalar_lea.sflag [#allocation17], %s11162_s22 }
 0x212   : > { %s921_s20 = scalar_lea.vmem [#allocation15], %s11187_s7  ;;  %s930_s19 = scalar_lea.vmem [#allocation16], %s11187_s7 }
 0x213   : > { %10408 = dma.done.wait (%p12875_p0), %s927_s26, 64  }
 0x214   : > { %10410 = vsyncadd (%p12875_p0), %s927_s26, 4294967232  ;;  %s8486_s1 = sshll.u32 %s11165_s24, 10  ;;  %s939_s27 = scalar_lea.vmem [#allocation18], %s11187_s7 }
 0x215   : > { %s945_s3 = scalar_lea.sflag [#allocation20], %s11162_s22  ;;  %s11199_s0 = scalar_lea.vmem [#allocation19], %s8486_s1 }
 0x216   : > { %10412 = dma.done.wait (%p12875_p0), %s945_s3, 16640  }
 0x217   : > { %10414 = vsyncadd (%p12875_p0), %s945_s3, 4294950656  ;;  %s8487_s25 = sshll.u32 %s11165_s24, 4  ;;  %s963_s4 = scalar_lea.sflag [#allocation23], %s11162_s22 }
 0x218   : > { %s11206_s11 = scalar_lea.vmem [#allocation21], %s8487_s25  ;;  %s11209_s28 = scalar_lea.vmem [#allocation22], %s8487_s25 }
 0x219   : > { %10416 = dma.done.wait (%p12875_p0), %s963_s4, 16640  }
 0x21a   : > { %10418 = vsyncadd (%p12875_p0), %s963_s4, 4294950656  ;;  %s11215_s9 = scalar_lea.vmem [#allocation24], %s8486_s1  ;;  %s981_s18 = scalar_lea.sflag [#allocation26], %s11162_s22 }
 0x21b   : > { %10420 = dma.done.wait (%p12875_p0), %s981_s18, 64  }
 0x21c   : > { %10422 = vsyncadd (%p12875_p0), %s981_s18, 4294967232  ;;  %s993_s24 = scalar_lea.vmem [#allocation27], %s11187_s7  ;;  %s999_s3 = scalar_lea.sflag [#allocation29], %s11162_s22 }
 0x21d   : > { %s1002_s25 = scalar_lea.vmem [#allocation28], %s11187_s7 }
 0x21e   : > { %10424 = dma.done.wait (%p12875_p0), %s999_s3, 64  }
 0x21f   : > { %10426 = vsyncadd (%p12875_p0), %s999_s3, 4294967232  ;;  %p12876_p6 = scmp.ne.s32.totalorder %s12868_s30, 0 }
 0x220   : > { %v1160_v0 = vld [vmem:[#allocation7 + $0x8] sm:$0xff] (!%p12876_p6)  ;;  %vm1179_vm0 = vcmask (!%p12876_p6), 1043456   ;;  %v1159_v1 = vld [vmem:[#allocation7] sm:$0xff] (!%p12876_p6)  ;;  %s12877_s26 = sld [smem:[#allocation49_spill]] (!%p12876_p6)  ;;  %v10471_v5 = vmov (!%p12876_p6), 0   ;;  %vm1175_vm1 = vcmask (!%p12876_p6), 64512   ;;  %v1139_v20 = vlaneseq (!%p12876_p6) }
 0x221   : > { %1130 = sbr.rel (%p12876_p6) target bundleno = 913 (0x391), region = 168  ;;  %v1162_v3 = vpack.c.bf16 (!%p12876_p6), %v1160_v0, %v1160_v0  ;;  %v1161_v4 = vpack.c.bf16 (!%p12876_p6), %v1159_v1, %v1159_v1  ;;  %9588 = vset.pattern.permute.xlu0 (!%p12876_p6), %v10471_v5  ;;  %1218 = vmatprep.mubr.bf16.mxu0 (!%p12876_p6), %v10471_v5  ;;  %v1155_v15 = vld [vmem:[#allocation4 + $0x8] sm:$0xff] (!%p12876_p6)  ;;  %v1154_v16 = vld [vmem:[#allocation4] sm:$0xff] (!%p12876_p6)  ;;  %v10472_v24 = vmov (!%p12876_p6), 0.0   ;;  %s12886_s4 = sld [smem:[#allocation53_spill]] (!%p12876_p6) }
 0x222   : > { %1682 = vmatprep.mubr.bf16.mxu1 (!%p12876_p6), %v10471_v5  ;;  %v1157_v17 = vpack.c.bf16 (!%p12876_p6), %v1155_v15, %v1155_v15  ;;  %v1156_v18 = vpack.c.bf16 (!%p12876_p6), %v1154_v16, %v1154_v16  ;;  %v1140_v21 = vand.u32 (!%p12876_p6), 127, %v1139_v20  ;;  %v1166_v28 = vshrl.u32 (!%p12876_p6), %v1139_v20, 7  ;;  %v1163_v30 = vld [vmem:[#allocation9] sm:$0x3] (!%p12876_p6) }
 0x223   : > { %8497 = vmatprep.subr.msk.bf16.mxu0 (!%p12876_p6), %vm1179_vm0, %v1162_v3  ;;  %v1181_v9 = vsel (!%p12876_p6), %vm1179_vm0, %v1161_v4, 0 }
 0x224   : > { %1187 = vmatpush1.bf16.msra.mxu0 (!%p12876_p6), %v1181_v9  ;;  %8515 = vmatprep.subr.msk.bf16.mxu1 (!%p12876_p6), %vm1179_vm0, %v1157_v17  ;;  %v1645_v19 = vsel (!%p12876_p6), %vm1179_vm0, %v1156_v18, 0  ;;  %v1167_v29 = vsub.s32 (!%p12876_p6), 0, %v1166_v28  ;;  %v1171_v31 = vsub.s32 (!%p12876_p6), 1, %v1166_v28 }
 0x225   : > { %1651 = vmatpush1.bf16.msra.mxu1 (!%p12876_p6), %v1645_v19 }
 0x226   : > { %v1131_v2 = vld [vmem:[%s12877_s26] sm:$0xff] (!%p12876_p6)  ;;  %v1132_v6 = vld [vmem:[%s12877_s26 + $0x8] sm:$0xff] (!%p12876_p6)  ;;  %v1168_v32 = vrot.slane (!%p12876_p6), %v1163_v30, %v1167_v29  ;;  %v1172_v33 = vrot.slane (!%p12876_p6), %v1163_v30, %v1171_v31  ;;  %v10476_v29 = vmov (!%p12876_p6), 683565275   ;;  %v10477_v31 = vmov (!%p12876_p6), 2475754826  }
 0x227   : > { %v9447_v7 = vtrunc.f32 (!%p12876_p6), %v1131_v2  ;;  %v9449_v8 = vtrunc.f32 (!%p12876_p6), %v1132_v6  ;;  %v1158_v10 = vpack.c.bf16 (!%p12876_p6), %v1132_v6, %v1131_v2 }
 0x229   : > { %v9448_v11 = vcvt.f32.s32 %v9447_v7  ;;  %v9450_v12 = vcvt.f32.s32 %v9449_v8  ;;  %8498 = vmatmul.mubr.msk.bf16.vlgmr.msra.gmra.mrb[0].mxu0 %vm1175_vm1, %v1158_v10  ;;  %v10473_v8 = vmov 920167782   ;;  %v10474_v10 = vmov 1326507024  }
 0x22b   : > { %vm1135_vm2 = vcmp.eq.s32.totalorder %v9448_v11, 4294967295  ;;  %vm1136_vm3 = vcmp.eq.s32.totalorder %v9450_v12, 4294967295 }
 0x22c   : > { %v1137_v13 = vsel %vm1135_vm2, 6, %v9448_v11  ;;  %v1138_v14 = vsel %vm1136_vm3, 6, %v9450_v12 }
 0x22d   : > { %1142 = vperm.xlu0 %9588, %v1137_v13   ;;  %v10475_v13 = vmov 2102212464  }
 0x231   : > { %1145 = vperm.xlu0 %9588, %v1138_v14  }
 0x2ac   : > { %v1143_v22 = vpop.permute.xlu0 %1142 }
 0x2ad   : > { %vm1147_vm4 = vcmp.eq.s32.totalorder %v1140_v21, %v1143_v22 }
 0x2ae   : > { %v8495_v25 = vsel %vm1147_vm4, 1.0, %v10472_v24 }
 0x2b0   : > { %v1146_v23 = vpop.permute.xlu0 %1145 }
 0x2b1   : > { %vm1148_vm5 = vcmp.eq.s32.totalorder %v1140_v21, %v1146_v23 }
 0x2b2   : > { %v8496_v26 = vsel %vm1148_vm5, 1.0, %v10472_v24 }
 0x2b3   : > { %v1153_v27 = vpack.c.bf16 %v8496_v26, %v8495_v25 }
 0x2b5   : > { %8516 = vmatmul.mubr.msk.bf16.vlgmr.msra.gmra.mrb[0].mxu1 %vm1175_vm1, %v1153_v27 }
 0x2fc   : > { %v1220_v34 = vpop.f32.mrb[0].mxu0 }
 0x2fd   : > { %v11245_v35 = vadd.f32 %v1220_v34, %v1168_v32  ;;  %v1222_v36 = vpop.f32.mrb[1].mxu0 }
 0x2fe   : > { %v11247_v37 = vadd.f32 %v1222_v36, %v1172_v33  ;;  %v1224_v38 = vpop.f32.mrb[2].mxu0 }
 0x2ff   : > { %v1232_v39 = vand.u32 2139095040, %v11245_v35  ;;  %v11250_v40 = vadd.f32 %v1224_v38, %v1168_v32  ;;  %v1226_v41 = vpop.f32.mrb[3].mxu0  ;;  %v1229_v50 = vand.u32 2147483647, %v11245_v35 }
 0x300   : > { %v1335_v42 = vand.u32 2139095040, %v11247_v37  ;;  %v11253_v43 = vadd.f32 %v1226_v41, %v1172_v33  ;;  %v1332_v53 = vand.u32 2147483647, %v11247_v37 }
 0x301   : > { %v1233_v44 = vshrl.u32 %v1232_v39, 23  ;;  %v1438_v45 = vand.u32 2139095040, %v11250_v40  ;;  %v1236_v58 = vand.u32 8388607, %v1229_v50  ;;  %v1435_v6 = vand.u32 2147483647, %v11250_v40 }
 0x302   : > { %v1336_v46 = vshrl.u32 %v1335_v42, 23  ;;  %v1541_v55 = vand.u32 2139095040, %v11253_v43  ;;  %v1339_v61 = vand.u32 8388607, %v1332_v53 }
 0x303   : > { %v8499_v47 = vadd.s32 4294967169, %v1233_v44  ;;  %v1439_v48 = vshrl.u32 %v1438_v45, 23  ;;  %v1237_v3 = vor.u32 8388608, %v1236_v58  ;;  %v11301_v27 = vand.u32 8388607, %v1435_v6 }
 0x304   : > { %v8503_v49 = vadd.s32 4294967169, %v1336_v46  ;;  %v1542_v0 = vshrl.u32 %v1541_v55, 23  ;;  %v1340_v5 = vor.u32 8388608, %v1339_v61  ;;  %v10478_v46 = vmov 2131351028  }
 0x305   : > { %v1239_v51 = vadd.s32 1, %v8499_v47  ;;  %v8507_v52 = vadd.s32 4294967169, %v1439_v48  ;;  %v11286_v20 = vshll.u32 %v1237_v3, 8 }
 0x306   : > { %v1342_v54 = vadd.s32 1, %v8503_v49  ;;  %v8511_v12 = vadd.s32 4294967169, %v1542_v0  ;;  %v11294_v24 = vshll.u32 %v1340_v5, 8 }
 0x307   : > { %vm1240_vm6 = vcmp.gt.s32.totalorder %v1239_v51, 0  ;;  %v1445_v56 = vadd.s32 1, %v8507_v52 }
 0x308   : > { %v1241_v57 = vsel %vm1240_vm6, %v1239_v51, 0  ;;  %vm1343_vm7 = vcmp.gt.s32.totalorder %v1342_v54, 0  ;;  %v11297_v26 = vadd.s32 1, %v8511_v12 }
 0x309   : > { %v1243_v59 = vand.u32 31, %v1241_v57  ;;  %v1344_v60 = vsel %vm1343_vm7, %v1342_v54, 0  ;;  %vm1446_vm8 = vcmp.gt.s32.totalorder %v1445_v56, 0  ;;  %v11271_v7 = vshrl.u32 %v1241_v57, 5 }
 0x30a   : > { %v11263_v62 = vand.u32 31, %v1344_v60  ;;  %v1447_v63 = vsel %vm1446_vm8, %v1445_v56, 0  ;;  %v11277_v16 = vshrl.u32 %v1344_v60, 5  ;;  %vm1549_vm15 = vcmp.gt.s32.totalorder %v11297_v26, 0 }
 0x30b   : > { %v1244_v1 = vsub.s32 32, %v1243_v59  ;;  %v11268_v4 = vand.u32 31, %v1447_v63  ;;  %v1258_v9 = vshll.u32 %v10473_v8, %v1243_v59  ;;  %v1255_v14 = vshll.u32 %v10475_v13, %v1243_v59 }
 0x30c   : > { %v11266_v2 = vsub.s32 32, %v11263_v62  ;;  %v1358_v17 = vshll.u32 %v10475_v13, %v11263_v62  ;;  %v1361_v21 = vshll.u32 %v10473_v8, %v11263_v62  ;;  %v11292_v23 = vshrl.u32 %v1447_v63, 5 }
 0x30d   : > { %v1259_v11 = vshrl.u32 %v10474_v10, %v1244_v1  ;;  %v1256_v15 = vshrl.u32 %v10473_v8, %v1244_v1  ;;  %v11284_v19 = vsub.s32 32, %v11268_v4  ;;  %vm1264_vm9 = vcmp.lt.s32.totalorder %v11271_v7, 4 }
 0x30e   : > { %v1359_v18 = vshrl.u32 %v10473_v8, %v11266_v2  ;;  %v1362_v22 = vshrl.u32 %v10474_v10, %v11266_v2  ;;  %vm1367_vm10 = vcmp.lt.s32.totalorder %v11277_v16, 4  ;;  %v1246_v30 = vshll.u32 %v10476_v29, %v1243_v59 }
 0x30f   : > { %v1260_v25 = vor.u32 %v1259_v11, %v1258_v9  ;;  %v1257_v28 = vor.u32 %v1256_v15, %v1255_v14  ;;  %v1247_v32 = vshrl.u32 %v10477_v31, %v1244_v1  ;;  %v1461_v34 = vshll.u32 %v10475_v13, %v11268_v4 }
 0x310   : > { %v1360_v33 = vor.u32 %v1359_v18, %v1358_v17  ;;  %v1462_v36 = vshrl.u32 %v10473_v8, %v11284_v19  ;;  %v1245_v38 = vshrl.u32 %v10476_v29, %v1244_v1  ;;  %v1363_v39 = vor.u32 %v1362_v22, %v1361_v21 }
 0x311   : > { %v11313_v41 = vshll.u32 %v10473_v8, %v11268_v4  ;;  %vm1470_vm11 = vcmp.lt.s32.totalorder %v11292_v23, 4  ;;  %v1249_v42 = vshll.u32 %v10477_v31, %v1243_v59  ;;  %v1274_v44 = vsel %vm1264_vm9, %v1260_v25, 1326507024 }
 0x312   : > { %v1248_v45 = vor.u32 %v1247_v32, %v1246_v30  ;;  %v1250_v47 = vshrl.u32 %v10478_v46, %v1244_v1  ;;  %v1252_v48 = vshll.u32 %v10478_v46, %v1243_v59  ;;  %v1270_v49 = vsel %vm1264_vm9, %v1257_v28, 920167782 }
 0x313   : > { %v1253_v51 = vshrl.u32 %v10475_v13, %v1244_v1  ;;  %vm1261_vm12 = vcmp.lt.s32.totalorder %v11271_v7, 1  ;;  %vm1263_vm13 = vcmp.lt.s32.totalorder %v11271_v7, 3  ;;  %v1373_v52 = vsel %vm1367_vm10, %v1360_v33, 920167782 }
 0x314   : > { %v11328_v54 = vor.u32 %v1462_v36, %v1461_v34  ;;  %v11332_v55 = vshrl.u32 %v10474_v10, %v11284_v19  ;;  %v1251_v56 = vor.u32 %v1250_v47, %v1249_v42  ;;  %vm1262_vm14 = vcmp.lt.s32.totalorder %v11271_v7, 2 }
 0x315   : > { %v1254_v57 = vor.u32 %v1253_v51, %v1252_v48  ;;  %v1275_v58 = vsel %vm1263_vm13, %v1257_v28, %v1274_v44  ;;  %v1349_v59 = vshll.u32 %v10476_v29, %v11263_v62  ;;  %v1265_v60 = vsel %vm1261_vm12, %v1245_v38, %v1248_v45 }
 0x316   : > { %v1269_v61 = vsel %vm1261_vm12, %v1248_v45, %v1251_v56  ;;  %v1348_v63 = vshrl.u32 %v10476_v29, %v11266_v2  ;;  %v1350_v0 = vshrl.u32 %v10477_v31, %v11266_v2  ;;  %v1352_v9 = vshll.u32 %v10477_v31, %v11263_v62 }
 0x317   : > { %v1266_v1 = vsel %vm1264_vm9, %v1254_v57, 2102212464  ;;  %v1271_v3 = vsel %vm1263_vm13, %v1254_v57, %v1270_v49  ;;  %v1273_v5 = vsel %vm1261_vm12, %v1251_v56, %v1254_v57  ;;  %v1353_v22 = vshrl.u32 %v10478_v46, %v11266_v2 }
 0x318   : > { %v1267_v11 = vsel %vm1263_vm13, %v1251_v56, %v1266_v1  ;;  %v1272_v12 = vsel %vm1262_vm14, %v1269_v61, %v1271_v3  ;;  %v1276_v14 = vsel %vm1262_vm14, %v1273_v5, %v1275_v58  ;;  %v1351_v15 = vor.u32 %v1350_v0, %v1349_v59 }
 0x319   : > { %v1268_v17 = vsel %vm1262_vm14, %v1265_v60, %v1267_v11  ;;  %v11358_v18 = vmul.u32.u64.low %v11286_v20, %v1276_v14  ;;  %v11359_v21 = vmul.u32.u64.high %v11286_v20, %v1276_v14, %v11358_v18  ;;  %v1377_v25 = vsel %vm1367_vm10, %v1363_v39, 1326507024 }
 0x31a   : > { %v11366_v28 = vmul.u32.u64.low %v11286_v20, %v1272_v12  ;;  %v11367_v30 = vmul.u32.u64.high %v11286_v20, %v1272_v12, %v11366_v28  ;;  %v1355_v7 = vshll.u32 %v10478_v46, %v11263_v62  ;;  %v1466_v32 = vor.u32 %v11332_v55, %v11313_v41 }
 0x31b   : > { %v1354_v34 = vor.u32 %v1353_v22, %v1352_v9  ;;  %v1356_v36 = vshrl.u32 %v10475_v13, %v11266_v2  ;;  %vm1364_vm0 = vcmp.lt.s32.totalorder %v11277_v16, 1  ;;  %v1476_v38 = vsel %vm1470_vm11, %v11328_v54, 920167782 }
 0x31c   : > { %v1284_v39 = vmul.u32 %v11286_v20, %v1268_v17  ;;  %vm1365_vm1 = vcmp.lt.s32.totalorder %v11277_v16, 2  ;;  %vm1366_vm2 = vcmp.lt.s32.totalorder %v11277_v16, 3  ;;  %vm1286_vm3 = vc.u32 %v11359_v21, %v11366_v28 }
 0x31d   : > { %v1357_v62 = vor.u32 %v1356_v36, %v1355_v7  ;;  %v1368_v41 = vsel %vm1364_vm0, %v1348_v63, %v1351_v15  ;;  %v1372_v2 = vsel %vm1364_vm0, %v1351_v15, %v1354_v34  ;;  %v1287_v42 = vadd.s32 1, %v11367_v30 }
 0x31e   : > { %v1378_v44 = vsel %vm1366_vm2, %v1360_v33, %v1377_v25  ;;  %v1452_v20 = vshll.u32 %v10476_v29, %v11268_v4  ;;  %v1453_v45 = vshrl.u32 %v10477_v31, %v11284_v19  ;;  %v1443_v51 = vor.u32 8388608, %v11301_v27 }
 0x31f   : > { %v1369_v47 = vsel %vm1367_vm10, %v1357_v62, 2102212464  ;;  %v1374_v48 = vsel %vm1366_vm2, %v1357_v62, %v1373_v52  ;;  %v1376_v49 = vsel %vm1364_vm0, %v1354_v34, %v1357_v62  ;;  %v1288_v55 = vsel %vm1286_vm3, %v1287_v42, %v11367_v30 }
 0x320   : > { %v1370_v56 = vsel %vm1366_vm2, %v1354_v34, %v1369_v47  ;;  %v1375_v33 = vsel %vm1365_vm1, %v1372_v2, %v1374_v48  ;;  %v1379_v57 = vsel %vm1365_vm1, %v1376_v49, %v1378_v44  ;;  %v1289_v58 = vadd.s32 %v1288_v55, %v1284_v39 }
 0x321   : > { %v11406_v59 = vmul.u32.u64.low %v11294_v24, %v1379_v57  ;;  %v11407_v60 = vmul.u32.u64.high %v11294_v24, %v1379_v57, %v11406_v59  ;;  %v1455_v52 = vshll.u32 %v10477_v31, %v11268_v4  ;;  %v1371_v27 = vsel %vm1365_vm1, %v1368_v41, %v1370_v56 }
 0x322   : > { %v11414_v61 = vmul.u32.u64.low %v11294_v24, %v1375_v33  ;;  %v11415_v63 = vmul.u32.u64.high %v11294_v24, %v1375_v33, %v11414_v61  ;;  %v1454_v0 = vor.u32 %v1453_v45, %v1452_v20  ;;  %v1290_v1 = vadd.s32 536870912, %v1289_v58 }
 0x323   : > { %v1456_v3 = vshrl.u32 %v10478_v46, %v11284_v19  ;;  %v1458_v5 = vshll.u32 %v10478_v46, %v11268_v4  ;;  %v1459_v9 = vshrl.u32 %v10475_v13, %v11284_v19  ;;  %v1480_v16 = vsel %vm1470_vm11, %v1466_v32, 1326507024 }
 0x324   : > { %v1451_v11 = vshrl.u32 %v10476_v29, %v11284_v19  ;;  %vm1467_vm4 = vcmp.lt.s32.totalorder %v11292_v23, 1  ;;  %vm1469_vm5 = vcmp.lt.s32.totalorder %v11292_v23, 3  ;;  %v11430_v12 = vshrl.u32 %v1290_v1, 30 }
 0x325   : > { %v1387_v14 = vmul.u32 %v11294_v24, %v1371_v27  ;;  %vm1389_vm6 = vc.u32 %v11407_v60, %v11414_v61  ;;  %v1457_v4 = vor.u32 %v1456_v3, %v1455_v52  ;;  %v1550_v15 = vsel %vm1549_vm15, %v11297_v26, 0 }
 0x326   : > { %v1390_v17 = vadd.s32 1, %v11415_v63  ;;  %v1460_v18 = vor.u32 %v1459_v9, %v1458_v5  ;;  %vm1468_vm7 = vcmp.lt.s32.totalorder %v11292_v23, 2  ;;  %v1292_v19 = vshll.u32 %v11430_v12, 30 }
 0x327   : > { %v1475_v22 = vsel %vm1467_vm4, %v1454_v0, %v1457_v4  ;;  %v1481_v24 = vsel %vm1469_vm5, %v11328_v54, %v1480_v16  ;;  %v1483_v25 = vshll.u32 %v1443_v51, 8  ;;  %v1471_v36 = vsel %vm1467_vm4, %v1451_v11, %v1454_v0 }
 0x328   : > { %v1391_v30 = vsel %vm1389_vm6, %v1390_v17, %v11415_v63  ;;  %v1472_v26 = vsel %vm1470_vm11, %v1460_v18, 2102212464  ;;  %v1477_v7 = vsel %vm1469_vm5, %v1460_v18, %v1476_v38  ;;  %v1479_v32 = vsel %vm1467_vm4, %v1457_v4, %v1460_v18 }
 0x329   : > { %v1392_v34 = vadd.s32 %v1391_v30, %v1387_v14  ;;  %v11455_v39 = vsub.s32 %v1289_v58, %v1292_v19  ;;  %v1473_v54 = vsel %vm1469_vm5, %v1457_v4, %v1472_v26  ;;  %v1478_v62 = vsel %vm1468_vm7, %v1475_v22, %v1477_v7 }
 0x32a   : > { %v1482_v41 = vsel %vm1468_vm7, %v1479_v32, %v1481_v24  ;;  %v1552_v2 = vand.u32 31, %v1550_v15  ;;  %v11466_v20 = vmul.u32.u64.low %v1483_v25, %v1478_v62  ;;  %v11467_v45 = vmul.u32.u64.high %v1483_v25, %v1478_v62, %v11466_v20 }
 0x32b   : > { %v1393_v38 = vadd.s32 536870912, %v1392_v34  ;;  %v11463_v42 = vmul.u32.u64.low %v1483_v25, %v1482_v41  ;;  %v11464_v44 = vmul.u32.u64.high %v1483_v25, %v1482_v41, %v11463_v42  ;;  %v1474_v47 = vsel %vm1468_vm7, %v1471_v36, %v1473_v54 }
 0x32c   : > { %v1295_v48 = vsub.s32 0, %v11455_v39  ;;  %v1553_v51 = vsub.s32 32, %v1552_v2  ;;  %v1490_v56 = vmul.u32 %v1483_v25, %v1474_v47  ;;  %v1493_v33 = vadd.s32 1, %v11467_v45 }
 0x32d   : > { %v11473_v49 = vshrl.u32 %v1393_v38, 30  ;;  %vm1492_vm8 = vc.u32 %v11464_v44, %v11466_v20  ;;  %v1567_v59 = vshll.u32 %v10473_v8, %v1552_v2  ;;  %v1551_v0 = vshrl.u32 %v1550_v15, 5 }
 0x32e   : > { %v8500_v57 = vmin.u32 %v1295_v48, %v11455_v39  ;;  %v1494_v23 = vsel %vm1492_vm8, %v1493_v33, %v11467_v45  ;;  %v1568_v52 = vshrl.u32 %v10474_v10, %v1553_v51  ;;  %v1564_v1 = vshll.u32 %v10475_v13, %v1552_v2 }
 0x32f   : > { %v1395_v55 = vshll.u32 %v11473_v49, 30  ;;  %v1495_v63 = vadd.s32 %v1494_v23, %v1490_v56  ;;  %v1565_v3 = vshrl.u32 %v10473_v8, %v1553_v51  ;;  %v1538_v16 = vand.u32 2147483647, %v11253_v43 }
 0x330   : > { %v1297_v5 = vclz %v8500_v57  ;;  %v1558_v11 = vshll.u32 %v10477_v31, %v1552_v2  ;;  %v1559_v4 = vshrl.u32 %v10478_v46, %v1553_v51  ;;  %v1561_v10 = vshll.u32 %v10478_v46, %v1552_v2 }
 0x331   : > { %v11480_v58 = vsub.s32 %v1392_v34, %v1395_v55  ;;  %v1496_v14 = vadd.s32 536870912, %v1495_v63  ;;  %v1562_v17 = vshrl.u32 %v10475_v13, %v1553_v51  ;;  %v1569_v18 = vor.u32 %v1568_v52, %v1567_v59 }
 0x332   : > { %v1555_v19 = vshll.u32 %v10476_v29, %v1552_v2  ;;  %v1556_v8 = vshrl.u32 %v10477_v31, %v1553_v51  ;;  %v1566_v22 = vor.u32 %v1565_v3, %v1564_v1  ;;  %vm1573_vm9 = vcmp.lt.s32.totalorder %v1551_v0, 4 }
 0x333   : > { %v1398_v27 = vsub.s32 0, %v11480_v58  ;;  %v11496_v24 = vshrl.u32 %v1496_v14, 30  ;;  %v8501_v25 = vadd.s32 4294967294, %v1297_v5  ;;  %v1545_v30 = vand.u32 8388607, %v1538_v16 }
 0x334   : > { %v1560_v46 = vor.u32 %v1559_v4, %v1558_v11  ;;  %v1563_v32 = vor.u32 %v1562_v17, %v1561_v10  ;;  %v1583_v13 = vsel %vm1573_vm9, %v1569_v18, 1326507024  ;;  %v1557_v34 = vor.u32 %v1556_v8, %v1555_v19 }
 0x335   : > { %v8504_v9 = vmin.u32 %v1398_v27, %v11480_v58  ;;  %v1498_v7 = vshll.u32 %v11496_v24, 30  ;;  %vm1570_vm10 = vcmp.lt.s32.totalorder %v1551_v0, 1  ;;  %vm1572_vm11 = vcmp.lt.s32.totalorder %v1551_v0, 3 }
 0x336   : > { %v1579_v31 = vsel %vm1573_vm9, %v1566_v22, 920167782  ;;  %vm8502_vm12 = vcmp.lt.s32.totalorder %v8501_v25, 0  ;;  %v1546_v54 = vor.u32 8388608, %v1545_v30  ;;  %v1554_v62 = vshrl.u32 %v10476_v29, %v1553_v51 }
 0x337   : > { %v1400_v15 = vclz %v8504_v9  ;;  %v11503_v36 = vsub.s32 %v1495_v63, %v1498_v7  ;;  %vm1571_vm13 = vcmp.lt.s32.totalorder %v1551_v0, 2  ;;  %v1582_v2 = vsel %vm1570_vm10, %v1560_v46, %v1563_v32 }
 0x338   : > { %v1584_v38 = vsel %vm1572_vm11, %v1566_v22, %v1583_v13  ;;  %v1575_v42 = vsel %vm1573_vm9, %v1563_v32, 2102212464  ;;  %v1578_v45 = vsel %vm1570_vm10, %v1557_v34, %v1560_v46  ;;  %v1580_v47 = vsel %vm1572_vm11, %v1563_v32, %v1579_v31 }
 0x339   : > { %v8505_v26 = vadd.s32 4294967294, %v1400_v15  ;;  %v1501_v41 = vsub.s32 0, %v11503_v36  ;;  %v1300_v48 = vsel %vm8502_vm12, 0, %v8501_v25  ;;  %v1574_v29 = vsel %vm1570_vm10, %v1554_v62, %v1557_v34 }
 0x33a   : > { %v1585_v51 = vsel %vm1571_vm13, %v1582_v2, %v1584_v38  ;;  %v1576_v57 = vsel %vm1572_vm11, %v1560_v46, %v1575_v42  ;;  %v1581_v23 = vsel %vm1571_vm13, %v1578_v45, %v1580_v47  ;;  %v1586_v59 = vshll.u32 %v1546_v54, 8 }
 0x33b   : > { %vm8506_vm14 = vcmp.lt.s32.totalorder %v8505_v26, 0  ;;  %v8508_v55 = vmin.u32 %v1501_v41, %v11503_v36  ;;  %v1305_v52 = vsub.s32 4294967266, %v1300_v48  ;;  %v1577_v5 = vsel %vm1571_vm13, %v1574_v29, %v1576_v57 }
 0x33c   : > { %v1403_v56 = vsel %vm8506_vm14, 0, %v8505_v26  ;;  %v11517_v63 = vmul.u32.u64.low %v1586_v59, %v1585_v51  ;;  %v11518_v1 = vmul.u32.u64.high %v1586_v59, %v1585_v51, %v11517_v63  ;;  %v1285_v14 = vadd.s32 %v11366_v28, %v11359_v21 }
 0x33d   : > { %v1503_v33 = vclz %v8508_v55  ;;  %v1408_v3 = vsub.s32 4294967266, %v1403_v56  ;;  %v11521_v9 = vmul.u32.u64.low %v1586_v59, %v1581_v23  ;;  %v11522_v11 = vmul.u32.u64.high %v1586_v59, %v1581_v23, %v11521_v9 }
 0x33e   : > { %v1301_v4 = vsub.s32 32, %v1300_v48  ;;  %v1306_v10 = vadd.s32 127, %v1305_v52  ;;  %v1388_v18 = vadd.s32 %v11414_v61, %v11407_v60  ;;  %v1593_v19 = vmul.u32 %v1586_v59, %v1577_v5 }
 0x33f   : > { %v8509_v27 = vadd.s32 4294967294, %v1503_v33  ;;  %v1404_v8 = vsub.s32 32, %v1403_v56  ;;  %v1409_v22 = vadd.s32 127, %v1408_v3  ;;  %vm1595_vm0 = vc.u32 %v11518_v1, %v11521_v9 }
 0x340   : > { %v1596_v0 = vadd.s32 1, %v11522_v11  ;;  %v1302_v25 = vshll.u32 %v11455_v39, %v1300_v48  ;;  %v1303_v30 = vshrl.u32 %v1285_v14, %v1301_v4  ;;  %v1491_v21 = vadd.s32 %v11466_v20, %v11464_v44 }
 0x341   : > { %vm8510_vm15 = vcmp.lt.s32.totalorder %v8509_v27, 0  ;;  %v1307_v28 = vshll.u32 %v1306_v10, 23  ;;  %v1405_v61 = vshll.u32 %v11480_v58, %v1403_v56  ;;  %v1406_v32 = vshrl.u32 %v1388_v18, %v1404_v8 }
 0x342   : > { %v1506_v17 = vsel %vm8510_vm15, 0, %v8509_v27  ;;  %v1597_v46 = vsel %vm1595_vm0, %v1596_v0, %v11522_v11  ;;  %v1410_v13 = vshll.u32 %v1409_v22, 23  ;;  %v1304_v34 = vor.u32 %v1303_v30, %v1302_v25  ;;  %v1693_v22 = vld [vmem:[%s12886_s4] sm:$0xff] }
 0x343   : > { %v1511_v15 = vsub.s32 4294967266, %v1506_v17  ;;  %v1507_v26 = vsub.s32 32, %v1506_v17  ;;  %v1598_v60 = vadd.s32 %v1597_v46, %v1593_v19  ;;  %v1308_v54 = vor.u32 4788187, %v1307_v28 }
 0x344   : > { %v1508_v62 = vshll.u32 %v11503_v36, %v1506_v17  ;;  %v1407_v44 = vor.u32 %v1406_v32, %v1405_v61  ;;  %v1411_v20 = vor.u32 4788187, %v1410_v13  ;;  %v1311_v45 = vcvt.s32.f32 %v1304_v34 }
 0x345   : > { %v1512_v7 = vadd.s32 127, %v1511_v15  ;;  %v1599_v31 = vadd.s32 536870912, %v1598_v60  ;;  %v1509_v39 = vshrl.u32 %v1491_v21, %v1507_v26  ;;  %v1309_v42 = vand.u32 2147483647, %v1308_v54  ;;  %v1694_v21 = vld [vmem:[%s12886_s4 + $0x8] sm:$0xff] }
 0x346   : > { %v1412_v55 = vand.u32 2147483647, %v1411_v20  ;;  %v1414_v56 = vcvt.s32.f32 %v1407_v44  ;;  %vm1231_vm1 = vcmp.lt.s32.totalorder %v11245_v35, 0  ;;  %v1594_v5 = vadd.s32 %v11521_v9, %v11518_v1 }
 0x347   : > { %v1513_v41 = vshll.u32 %v1512_v7, 23  ;;  %v11536_v2 = vshrl.u32 %v1599_v31, 30  ;;  %v1510_v47 = vor.u32 %v1509_v39, %v1508_v62  ;;  %v1312_v51 = vmul.f32 %v1311_v45, %v1309_v42 }
 0x348   : > { %v1415_v23 = vmul.f32 %v1414_v56, %v1412_v55  ;;  %vm1334_vm3 = vcmp.lt.s32.totalorder %v11247_v37, 0  ;;  %vm11546_vm4 = vcmp.le.f32.partialorder %v1229_v50, 0.7853982  ;;  %vm1437_vm5 = vcmp.lt.s32.totalorder %v11250_v40, 0 }
 0x349   : > { %v1601_v38 = vshll.u32 %v11536_v2, 30  ;;  %v1514_v48 = vor.u32 4788187, %v1513_v41  ;;  %v1517_v57 = vcvt.s32.f32 %v1510_v47  ;;  %v1313_v52 = vxor.u32 2147483648, %v1312_v51 }
 0x34a   : > { %v1416_v3 = vxor.u32 2147483648, %v1415_v23  ;;  %vm11558_vm6 = vcmp.le.f32.partialorder %v1332_v53, 0.7853982  ;;  %vm11569_vm7 = vcmp.le.f32.partialorder %v1435_v6, 0.7853982  ;;  %v1315_v46 = vsub.s32 4, %v11430_v12 }
 0x34b   : > { %v1602_v58 = vsub.s32 %v1598_v60, %v1601_v38  ;;  %v1515_v33 = vand.u32 2147483647, %v1514_v48  ;;  %v1314_v11 = vsel %vm1231_vm1, %v1313_v52, %v1312_v51  ;;  %v1418_v6 = vsub.s32 4, %v11473_v49 }
 0x34c   : > { %v1417_v1 = vsel %vm1334_vm3, %v1416_v3, %v1415_v23  ;;  %v1317_v9 = vsel %vm11546_vm4, %v11245_v35, %v1314_v11  ;;  %v1521_v61 = vsub.s32 4, %v11496_v24  ;;  %vm1540_vm8 = vcmp.lt.s32.totalorder %v11253_v43, 0 }
 0x34d   : > { %v1604_v29 = vsub.s32 0, %v1602_v58  ;;  %v1518_v27 = vmul.f32 %v1517_v57, %v1515_v33  ;;  %v1420_v0 = vsel %vm11558_vm6, %v11247_v37, %v1417_v1  ;;  %9589 = vcosq.f32 %v1317_v9 }
 0x34e   : > { %9591 = vsinq.f32 %v1317_v9  ;;  %v1316_v13 = vsel %vm1231_vm1, %v1315_v46, %v11430_v12  ;;  %vm11585_vm9 = vcmp.le.f32.partialorder %v1538_v16, 0.7853982  ;;  %v1624_v54 = vsub.s32 4, %v11536_v2 }
 0x34f   : > { %v8512_v36 = vmin.u32 %v1604_v29, %v1602_v58  ;;  %v1519_v14 = vxor.u32 2147483648, %v1518_v27  ;;  %9593 = vcosq.f32 %v1420_v0  ;;  %v1419_v39 = vsel %vm1334_vm3, %v1418_v6, %v11473_v49  ;;  %v1696_v6 = vld [vmem:[%s12886_s4 + $0x18] sm:$0xff] }
 0x350   : > { %9595 = vsinq.f32 %v1420_v0  ;;  %v1522_v16 = vsel %vm1437_vm5, %v1521_v61, %v11496_v24  ;;  %v1318_v20 = vsel %vm11546_vm4, 0, %v1316_v13  ;;  %v1421_v42 = vsel %vm11558_vm6, 0, %v1419_v39 }
 0x351   : > { %v1606_v59 = vclz %v8512_v36  ;;  %v1520_v50 = vsel %vm1437_vm5, %v1519_v14, %v1518_v27  ;;  %v1625_v49 = vsel %vm1540_vm8, %v1624_v54, %v11536_v2  ;;  %v1524_v47 = vsel %vm11569_vm7, 0, %v1522_v16 }
 0x352   : > { %v1523_v53 = vsel %vm11569_vm7, %v11250_v40, %v1520_v50  ;;  %v1322_v24 = vand.u32 3, %v1318_v20  ;;  %v1425_v56 = vand.u32 3, %v1421_v42  ;;  %v1627_v29 = vsel %vm11585_vm9, 0, %v1625_v49 }
 0x353   : > { %v8513_v63 = vadd.s32 4294967294, %v1606_v59  ;;  %9597 = vcosq.f32 %v1523_v53  ;;  %v1528_v57 = vand.u32 3, %v1524_v47  ;;  %v1631_v2 = vand.u32 3, %v1627_v29 }
 0x354   : > { %9599 = vsinq.f32 %v1523_v53  ;;  %vm1324_vm10 = vcmp.eq.s32.totalorder %v1322_v24, 0  ;;  %vm1327_vm11 = vcmp.eq.s32.totalorder %v1322_v24, 2  ;;  %vm1427_vm12 = vcmp.eq.s32.totalorder %v1425_v56, 0 }
 0x355   : > { %vm8514_vm2 = vcmp.lt.s32.totalorder %v8513_v63, 0  ;;  %vm1430_vm13 = vcmp.eq.s32.totalorder %v1425_v56, 2  ;;  %vm1530_vm14 = vcmp.eq.s32.totalorder %v1528_v57, 0  ;;  %vm1533_vm15 = vcmp.eq.s32.totalorder %v1528_v57, 2 }
 0x356   : > { %v1609_v4 = vsel %vm8514_vm2, 0, %v8513_v63  ;;  %vm1323_vm0 = vcmp.lt.s32.totalorder %v1322_v24, 2  ;;  %vm1426_vm1 = vcmp.lt.s32.totalorder %v1425_v56, 2  ;;  %vm1636_vm2 = vcmp.eq.s32.totalorder %v1631_v2, 2 }
 0x357   : > { %v1610_v10 = vsub.s32 32, %v1609_v4  ;;  %v1611_v17 = vshll.u32 %v1602_v58, %v1609_v4  ;;  %v1614_v18 = vsub.s32 4294967266, %v1609_v4  ;;  %v9590_v62 = vpop.eup %9589  ;;  %vm1529_vm3 = vcmp.lt.s32.totalorder %v1528_v57, 2 }
 0x358   : > { %v9592_v41 = vpop.eup %9591  ;;  %v1328_v55 = vxor.u32 2147483648, %v9590_v62  ;;  %vm1633_vm4 = vcmp.eq.s32.totalorder %v1631_v2, 0  ;;  %vm1321_vm5 = vweird.f32 %v11245_v35  ;;  %vm1632_vm6 = vcmp.lt.s32.totalorder %v1631_v2, 2 }
 0x359   : > { %v1612_v19 = vshrl.u32 %v1594_v5, %v1610_v10  ;;  %v1615_v8 = vadd.s32 127, %v1614_v18  ;;  %v9594_v44 = vpop.eup %9593  ;;  %v1325_v58 = vxor.u32 2147483648, %v9592_v41  ;;  %vm1424_vm7 = vweird.f32 %v11247_v37 }
 0x35a   : > { %v9596_v38 = vpop.eup %9595  ;;  %v1431_v33 = vxor.u32 2147483648, %v9594_v44  ;;  %v1329_v52 = vsel %vm1327_vm11, %v1328_v55, %v9592_v41 }
 0x35b   : > { %v1613_v25 = vor.u32 %v1612_v19, %v1611_v17  ;;  %v1616_v30 = vshll.u32 %v1615_v8, 23  ;;  %v1428_v51 = vxor.u32 2147483648, %v9596_v38  ;;  %v1326_v59 = vsel %vm1324_vm10, %v9590_v62, %v1325_v58 }
 0x35c   : > { %v1432_v3 = vsel %vm1430_vm13, %v1431_v33, %v9596_v38  ;;  %v1330_v10 = vsel %vm1323_vm0, %v1326_v59, %v1329_v52 }
 0x35d   : > { %v1617_v28 = vor.u32 4788187, %v1616_v30  ;;  %v1620_v26 = vcvt.s32.f32 %v1613_v25  ;;  %v9598_v45 = vpop.eup %9597  ;;  %v1429_v63 = vsel %vm1427_vm12, %v9594_v44, %v1428_v51  ;;  %v1331_v19 = vsel %vm1321_vm5, nan, %v1330_v10 }
 0x35e   : > { %v9600_v48 = vpop.eup %9599  ;;  %v1534_v23 = vxor.u32 2147483648, %v9598_v45  ;;  %v1433_v18 = vsel %vm1426_vm1, %v1429_v63, %v1432_v3 }
 0x35f   : > { %v1618_v7 = vand.u32 2147483647, %v1617_v28  ;;  %v1531_v36 = vxor.u32 2147483648, %v9600_v48  ;;  %v1434_v25 = vsel %vm1424_vm7, nan, %v1433_v18 }
 0x360   : > { %v1535_v14 = vsel %vm1533_vm15, %v1534_v23, %v9600_v48 }
 0x361   : > { %v1621_v60 = vmul.f32 %v1620_v26, %v1618_v7  ;;  %v1532_v11 = vsel %vm1530_vm14, %v9598_v45, %v1531_v36  ;;  %v1695_v26 = vld [vmem:[%s12886_s4 + $0x10] sm:$0xff] }
 0x362   : > { %v1536_v1 = vsel %vm1529_vm3, %v1532_v11, %v1535_v14 }
 0x363   : > { %v1622_v32 = vxor.u32 2147483648, %v1621_v60 }
 0x365   : > { %v1623_v31 = vsel %vm1540_vm8, %v1622_v32, %v1621_v60  ;;  %vm1527_vm8 = vweird.f32 %v11250_v40 }
 0x366   : > { %v1626_v12 = vsel %vm11585_vm9, %v11253_v43, %v1623_v31  ;;  %v1537_v53 = vsel %vm1527_vm8, nan, %v1536_v1  ;;  %vm1630_vm9 = vweird.f32 %v11253_v43 }
 0x367   : > { %9601 = vcosq.f32 %v1626_v12 }
 0x368   : > { %9603 = vsinq.f32 %v1626_v12 }
 0x371   : > { %v9602_v27 = vpop.eup %9601 }
 0x372   : > { %v9604_v5 = vpop.eup %9603  ;;  %v1637_v4 = vxor.u32 2147483648, %v9602_v27 }
 0x373   : > { %v1634_v17 = vxor.u32 2147483648, %v9604_v5 }
 0x374   : > { %v1638_v15 = vsel %vm1636_vm2, %v1637_v4, %v9604_v5 }
 0x375   : > { %v1635_v9 = vsel %vm1633_vm4, %v9602_v27, %v1634_v17 }
 0x376   : > { %v1639_v50 = vsel %vm1632_vm6, %v1635_v9, %v1638_v15 }
 0x377   : > { %v1640_v46 = vsel %vm1630_vm9, nan, %v1639_v50 }
 0x388   : > { %v1684_v8 = vpop.f32.mrb[0].mxu1 }
 0x389   : > { %v1685_v0 = vadd.f32 %v1684_v8, %v1331_v19  ;;  %v1686_v30 = vpop.f32.mrb[1].mxu1 }
 0x38a   : > { %v1687_v35 = vadd.f32 %v1686_v30, %v1434_v25  ;;  %v1688_v28 = vpop.f32.mrb[2].mxu1 }
 0x38b   : > { %v1697_v37 = vadd.f32 %v1693_v22, %v1685_v0  ;;  %v1689_v7 = vadd.f32 %v1688_v28, %v1537_v53  ;;  %v1690_v60 = vpop.f32.mrb[3].mxu1 }
 0x38c   : > { %v1698_v61 = vadd.f32 %v1694_v21, %v1687_v35  ;;  %v1691_v32 = vadd.f32 %v1690_v60, %v1640_v46 }
 0x38d   : > { %1701 = vst [vmem:[#allocation31] sm:$0xff] %v1697_v37  ;;  %v1699_v40 = vadd.f32 %v1695_v26, %v1689_v7 }
 0x38e   : > { %1702 = vst [vmem:[#allocation31 + $0x8] sm:$0xff] %v1698_v61  ;;  %v1700_v13 = vadd.f32 %v1696_v6, %v1691_v32 }
 0x38f   : > { %1703 = vst [vmem:[#allocation31 + $0x10] sm:$0xff] %v1699_v40 }
 0x390   : > { %1704 = vst [vmem:[#allocation31 + $0x18] sm:$0xff] %v1700_v13 }
 0x391 PF: > { %v9605_v43 = vld [vmem:[%s11169_s16 + $0xc] ss:$24 sps:$4 sm:$0xff]   ;;  %v9607_v34 = vld [vmem:[%s11169_s16 + $0x8] ss:$24 sps:$4 sm:$0xff]   ;;  %v9608_v31 = vld [vmem:[%s11169_s16 + $0x3c] ss:$24 sps:$4 sm:$0xff]  }
 0x392   : > { %2362 = vmatprep.subr.bf16.mxu1 %v9605_v43  ;;  %v9610_v54 = vld [vmem:[%s11169_s16 + $0x4] ss:$24 sps:$4 sm:$0xff]   ;;  %v9612_v62 = vld [vmem:[%s11169_s16 + $0x38] ss:$24 sps:$4 sm:$0xff]   ;;  %v9616_v41 = vld [vmem:[%s11169_s16 + $0x34] ss:$24 sps:$4 sm:$0xff]  }
 0x393   : > { %2363 = vmatpush1.bf16.msra.mxu1 %v9607_v34  ;;  %v9613_v39 = vld [vmem:[%s11169_s16] ss:$24 sps:$4 sm:$0xff]   ;;  %v9614_v12 = vld [vmem:[%s11169_s16 + $0x6c] ss:$24 sps:$4 sm:$0xff]   ;;  %2319 = vmatprep.subr.bf16.mxu0 %v9610_v54  ;;  %v9619_v16 = vld [vmem:[%s11169_s16 + $0x30] ss:$24 sps:$4 sm:$0xff]  }
 0x394   : > { %2364 = vmatprep.subr.bf16.mxu1 %v9608_v31  ;;  %2320 = vmatpush1.bf16.msra.mxu0 %v9613_v39  ;;  %v9618_v44 = vld [vmem:[%s11169_s16 + $0x68] ss:$24 sps:$4 sm:$0xff]   ;;  %v9620_v20 = vld [vmem:[%s11169_s16 + $0x9c] ss:$24 sps:$4 sm:$0xff]   ;;  %v9624_v49 = vld [vmem:[%s11169_s16 + $0x98] ss:$24 sps:$4 sm:$0xff]  }
 0x395   : > { %2321 = vmatprep.subr.bf16.mxu0 %v9616_v41  ;;  %v9622_v38 = vld [vmem:[%s11169_s16 + $0x64] ss:$24 sps:$4 sm:$0xff]   ;;  %v9625_v42 = vld [vmem:[%s11169_s16 + $0x60] ss:$24 sps:$4 sm:$0xff]   ;;  %v9628_v45 = vld [vmem:[%s11169_s16 + $0x94] ss:$24 sps:$4 sm:$0xff]   ;;  %v1809_v41 = vlaneseq }
 0x396   : > { %v9626_v47 = vld [vmem:[%s11169_s16 + $0xcc] ss:$24 sps:$4 sm:$0xff]   ;;  %v9630_v48 = vld [vmem:[%s11169_s16 + $0xc8] ss:$24 sps:$4 sm:$0xff]   ;;  %v9632_v55 = vld [vmem:[%s11169_s16 + $0xfc] ss:$24 sps:$4 sm:$0xff]  }
 0x397   : > { %2365 = vmatpush1.bf16.msra.mxu1 %v9612_v62  ;;  %v9631_v24 = vld [vmem:[%s11169_s16 + $0x90] ss:$24 sps:$4 sm:$0xff]   ;;  %v9634_v58 = vld [vmem:[%s11169_s16 + $0xc4] ss:$24 sps:$4 sm:$0xff]   ;;  %v9637_v56 = vld [vmem:[%s11169_s16 + $0xc0] ss:$24 sps:$4 sm:$0xff]  }
 0x398   : > { %2366 = vmatprep.subr.bf16.mxu1 %v9614_v12  ;;  %2322 = vmatpush1.bf16.msra.mxu0 %v9619_v16  ;;  %v9636_v29 = vld [vmem:[%s11169_s16 + $0xf8] ss:$24 sps:$4 sm:$0xff]   ;;  %v9640_v51 = vld [vmem:[%s11169_s16 + $0xf4] ss:$24 sps:$4 sm:$0xff]   ;;  %v9642_v57 = vld [vmem:[%s11169_s16 + $0x128] ss:$24 sps:$4 sm:$0xff]  }
 0x399   : > { %2323 = vmatprep.subr.bf16.mxu0 %v9622_v38  ;;  %v9638_v33 = vld [vmem:[%s11169_s16 + $0x12c] ss:$24 sps:$4 sm:$0xff]   ;;  %v9643_v36 = vld [vmem:[%s11169_s16 + $0xf0] ss:$24 sps:$4 sm:$0xff]   ;;  %v9644_v2 = vld [vmem:[%s11169_s16 + $0x15c] ss:$24 sps:$4 sm:$0xff]  }
 0x39a   : > { %v9646_v23 = vld [vmem:[%s11169_s16 + $0x124] ss:$24 sps:$4 sm:$0xff]   ;;  %v9649_v59 = vld [vmem:[%s11169_s16 + $0x120] ss:$24 sps:$4 sm:$0xff]   ;;  %v9652_v27 = vld [vmem:[%s11169_s16 + $0x154] ss:$24 sps:$4 sm:$0xff]  }
 0x39b   : > { %2367 = vmatpush1.bf16.msra.mxu1 %v9618_v44  ;;  %v9648_v52 = vld [vmem:[%s11169_s16 + $0x158] ss:$24 sps:$4 sm:$0xff]   ;;  %v9650_v63 = vld [vmem:[%s11169_s16 + $0x18c] ss:$24 sps:$4 sm:$0xff]   ;;  %v9654_v3 = vld [vmem:[%s11169_s16 + $0x188] ss:$24 sps:$4 sm:$0xff]  }
 0x39c   : > { %2368 = vmatprep.subr.bf16.mxu1 %v9620_v20  ;;  %2324 = vmatpush1.bf16.msra.mxu0 %v9625_v42  ;;  %v9655_v5 = vld [vmem:[%s11169_s16 + $0x150] ss:$24 sps:$4 sm:$0xff]   ;;  %v9658_v11 = vld [vmem:[%s11169_s16 + $0x184] ss:$24 sps:$4 sm:$0xff]   ;;  %v9661_v4 = vld [vmem:[%s11169_s16 + $0x180] ss:$24 sps:$4 sm:$0xff]  }
 0x39d   : > { %2325 = vmatprep.subr.bf16.mxu0 %v9628_v45  ;;  %v9656_v14 = vld [vmem:[%s11169_s16 + $0x1bc] ss:$24 sps:$4 sm:$0xff]   ;;  %v9660_v10 = vld [vmem:[%s11169_s16 + $0x1b8] ss:$24 sps:$4 sm:$0xff]   ;;  %v9662_v18 = vld [vmem:[%s11169_s16 + $0x1ec] ss:$24 sps:$4 sm:$0xff]  }
 0x39e   : > { %v9664_v17 = vld [vmem:[%s11169_s16 + $0x1b4] ss:$24 sps:$4 sm:$0xff]   ;;  %v9666_v15 = vld [vmem:[%s11169_s16 + $0x1e8] ss:$24 sps:$4 sm:$0xff]   ;;  %v9670_v9 = vld [vmem:[%s11169_s16 + $0x1e4] ss:$24 sps:$4 sm:$0xff]  }
 0x39f   : > { %2369 = vmatpush1.bf16.msra.mxu1 %v9624_v49  ;;  %v9667_v1 = vld [vmem:[%s11169_s16 + $0x1b0] ss:$24 sps:$4 sm:$0xff]   ;;  %v9668_v19 = vld [vmem:[%s11169_s16 + $0x21c] ss:$24 sps:$4 sm:$0xff]   ;;  %v1708_v22 = vld [vmem:[#allocation31 + $0x18] sm:$0xff]  ;;  %v10479_v12 = vmov 0.0  }
 0x3a0   : > { %2370 = vmatprep.subr.bf16.mxu1 %v9626_v47  ;;  %2326 = vmatpush1.bf16.msra.mxu0 %v9631_v24  ;;  %v1706_v8 = vld [vmem:[#allocation31 + $0x8] sm:$0xff]  ;;  %v9673_v0 = vld [vmem:[%s11169_s16 + $0x1e0] ss:$24 sps:$4 sm:$0xff]   ;;  %v9674_v30 = vld [vmem:[%s11169_s16 + $0x24c] ss:$24 sps:$4 sm:$0xff]   ;;  %vm10480_vm10 = vmmov 0  }
 0x3a1   : > { %2327 = vmatprep.subr.bf16.mxu0 %v9634_v58  ;;  %v9672_v50 = vld [vmem:[%s11169_s16 + $0x218] ss:$24 sps:$4 sm:$0xff]   ;;  %v1710_v25 = vpack.c.bf16 %v1708_v22, %v1706_v8  ;;  %v9676_v21 = vld [vmem:[%s11169_s16 + $0x214] ss:$24 sps:$4 sm:$0xff]   ;;  %v9678_v53 = vld [vmem:[%s11169_s16 + $0x248] ss:$24 sps:$4 sm:$0xff]  }
 0x3a2   : > { %v9679_v35 = vld [vmem:[%s11169_s16 + $0x210] ss:$24 sps:$4 sm:$0xff]   ;;  %v9682_v28 = vld [vmem:[%s11169_s16 + $0x244] ss:$24 sps:$4 sm:$0xff]   ;;  %v9685_v37 = vld [vmem:[%s11169_s16 + $0x240] ss:$24 sps:$4 sm:$0xff]  }
 0x3a3   : > { %2371 = vmatpush1.bf16.msra.mxu1 %v9630_v48  ;;  %2394 = vmatprep.mubr.bf16.mxu1 %v1710_v25  ;;  %v9680_v26 = vld [vmem:[%s11169_s16 + $0x27c] ss:$24 sps:$4 sm:$0xff]   ;;  %v9684_v7 = vld [vmem:[%s11169_s16 + $0x278] ss:$24 sps:$4 sm:$0xff]   ;;  %v9686_v60 = vld [vmem:[%s11169_s16 + $0x2ac] ss:$24 sps:$4 sm:$0xff]  }
 0x3a4   : > { %2372 = vmatprep.subr.bf16.mxu1 %v9632_v55  ;;  %2328 = vmatpush1.bf16.msra.mxu0 %v9637_v56  ;;  %v9688_v46 = vld [vmem:[%s11169_s16 + $0x274] ss:$24 sps:$4 sm:$0xff]   ;;  %v9691_v6 = vld [vmem:[%s11169_s16 + $0x270] ss:$24 sps:$4 sm:$0xff]   ;;  %v9694_v32 = vld [vmem:[%s11169_s16 + $0x2a4] ss:$24 sps:$4 sm:$0xff]  }
 0x3a5   : > { %2329 = vmatprep.subr.bf16.mxu0 %v9640_v51  ;;  %2351 = vmatprep.mubr.bf16.mxu0 %v1710_v25  ;;  %v9690_v61 = vld [vmem:[%s11169_s16 + $0x2a8] ss:$24 sps:$4 sm:$0xff]   ;;  %v9692_v40 = vld [vmem:[%s11169_s16 + $0x2dc] ss:$24 sps:$4 sm:$0xff]   ;;  %v9696_v43 = vld [vmem:[%s11169_s16 + $0x2d8] ss:$24 sps:$4 sm:$0xff]  }
 0x3a6   : > { %v9697_v13 = vld [vmem:[%s11169_s16 + $0x2a0] ss:$24 sps:$4 sm:$0xff]   ;;  %v1705_v34 = vld [vmem:[#allocation31] sm:$0xff]  ;;  %v11699_v16 = vshrl.u32 %v1809_v41, 7  ;;  %vm2466_vm11 = vcmask 261120   ;;  %vm2513_vm12 = vcmask 64512  }
 0x3a7   : > { %2373 = vmatpush1.bf16.msra.mxu1 %v9636_v29  ;;  %v1707_v31 = vld [vmem:[#allocation31 + $0x10] sm:$0xff]  ;;  %v9698_v54 = vld [vmem:[%s11169_s16 + $0x2d4] ss:$24 sps:$4 sm:$0xff]   ;;  %v9700_v62 = vld [vmem:[%s11169_s16 + $0x2d0] ss:$24 sps:$4 sm:$0xff]   ;;  %vm2529_vm13 = vcmask 1043456  }
 0x3a8   : > { %2374 = vmatprep.subr.bf16.mxu1 %v9638_v33  ;;  %2330 = vmatpush1.bf16.msra.mxu0 %v9643_v36  ;;  %v11692_v39 = vpack.c.bf16 %v1707_v31, %v1705_v34  ;;  %v1819_v44 = vsub.s32 2, %v11699_v16  ;;  %v11703_v20 = vld [vmem:[%s11177_s21] sm:$0x3f]  ;;  %v11706_v38 = vsub.s32 0, %v11699_v16  ;;  %v1823_v49 = vsub.s32 3, %v11699_v16  ;;  %s10481_s21 = smov 96  }
 0x3a9   : > { %2331 = vmatprep.subr.bf16.mxu0 %v9646_v23  ;;  %v11711_v45 = vsub.s32 1, %v11699_v16  ;;  %v9713_v8 = vld [vmem:[%s11169_s16 + $0xd0] ss:$24 sps:$4 sm:$0xff]   ;;  %v9718_v22 = vld [vmem:[%s11169_s16 + $0x104] ss:$24 sps:$4 sm:$0xff]   ;;  %s10484_s1 = smov 32  }
 0x3aa   : > { %v1820_v42 = vrot.slane %v11703_v20, %v1819_v44  ;;  %v1812_v48 = vrot.slane %v11703_v20, %v11706_v38  ;;  %v11718_v55 = vrot.slane %v11703_v20, %v1823_v49  ;;  %v9748_v34 = vld [vmem:[%s11169_s16 + $0x2e4] ss:$24 sps:$4 sm:$0xff]   ;;  %v9746_v31 = vld [vmem:[%s11169_s16 + $0x2e0] ss:$24 sps:$4 sm:$0xff]  }
 0x3ab   : > { %2375 = vmatpush1.bf16.msra.mxu1 %v9642_v57  ;;  %v11726_v36 = vrot.slane %v11703_v20, %v11711_v45 }
 0x3ac   : > { %2376 = vmatprep.subr.bf16.mxu1 %v9644_v2  ;;  %2332 = vmatpush1.bf16.msra.mxu0 %v9649_v59 }
 0x3ad   : > { %2333 = vmatprep.subr.bf16.mxu0 %v9652_v27 }
 0x3af   : > { %2377 = vmatpush1.bf16.msra.mxu1 %v9648_v52 }
 0x3b0   : > { %2378 = vmatprep.subr.bf16.mxu1 %v9650_v63  ;;  %2334 = vmatpush1.bf16.msra.mxu0 %v9655_v5 }
 0x3b1   : > { %2335 = vmatprep.subr.bf16.mxu0 %v9658_v11 }
 0x3b3   : > { %2379 = vmatpush1.bf16.msra.mxu1 %v9654_v3 }
 0x3b4   : > { %2380 = vmatprep.subr.bf16.mxu1 %v9656_v14  ;;  %2336 = vmatpush1.bf16.msra.mxu0 %v9661_v4  ;;  %v9701_v14 = vld [vmem:[%s11169_s16 + $0x10] ss:$24 sps:$4 sm:$0xff]   ;;  %v9703_v4 = vld [vmem:[%s11169_s16 + $0x14] ss:$24 sps:$4 sm:$0xff]  }
 0x3b5   : > { %2337 = vmatprep.subr.bf16.mxu0 %v9664_v17  ;;  %v9704_v17 = vld [vmem:[%s11169_s16 + $0x40] ss:$24 sps:$4 sm:$0xff]  }
 0x3b7   : > { %2381 = vmatpush1.bf16.msra.mxu1 %v9660_v10  ;;  %v9706_v10 = vld [vmem:[%s11169_s16 + $0x44] ss:$24 sps:$4 sm:$0xff]  }
 0x3b8   : > { %2382 = vmatprep.subr.bf16.mxu1 %v9662_v18  ;;  %2338 = vmatpush1.bf16.msra.mxu0 %v9667_v1  ;;  %v9709_v18 = vld [vmem:[%s11169_s16 + $0x74] ss:$24 sps:$4 sm:$0xff]   ;;  %v9712_v1 = vld [vmem:[%s11169_s16 + $0xa4] ss:$24 sps:$4 sm:$0xff]  }
 0x3b9   : > { %2339 = vmatprep.subr.bf16.mxu0 %v9670_v9  ;;  %v9710_v9 = vld [vmem:[%s11169_s16 + $0xa0] ss:$24 sps:$4 sm:$0xff]  }
 0x3bb   : > { %2383 = vmatpush1.bf16.msra.mxu1 %v9666_v15  ;;  %v9707_v15 = vld [vmem:[%s11169_s16 + $0x70] ss:$24 sps:$4 sm:$0xff]  }
 0x3bc   : > { %2384 = vmatprep.subr.bf16.mxu1 %v9668_v19  ;;  %2340 = vmatpush1.bf16.msra.mxu0 %v9673_v0  ;;  %v9715_v19 = vld [vmem:[%s11169_s16 + $0xd4] ss:$24 sps:$4 sm:$0xff]  }
 0x3bd   : > { %2341 = vmatprep.subr.bf16.mxu0 %v9676_v21  ;;  %v9721_v0 = vld [vmem:[%s11169_s16 + $0x134] ss:$24 sps:$4 sm:$0xff]   ;;  %v9722_v21 = vld [vmem:[%s11169_s16 + $0x160] ss:$24 sps:$4 sm:$0xff]  }
 0x3bf   : > { %2385 = vmatpush1.bf16.msra.mxu1 %v9672_v50  ;;  %v9716_v50 = vld [vmem:[%s11169_s16 + $0x100] ss:$24 sps:$4 sm:$0xff]  }
 0x3c0   : > { %2386 = vmatprep.subr.bf16.mxu1 %v9674_v30  ;;  %2342 = vmatpush1.bf16.msra.mxu0 %v9679_v35  ;;  %v9724_v30 = vld [vmem:[%s11169_s16 + $0x164] ss:$24 sps:$4 sm:$0xff]   ;;  %v9727_v35 = vld [vmem:[%s11169_s16 + $0x194] ss:$24 sps:$4 sm:$0xff]  }
 0x3c1   : > { %2343 = vmatprep.subr.bf16.mxu0 %v9682_v28  ;;  %v9730_v28 = vld [vmem:[%s11169_s16 + $0x1c4] ss:$24 sps:$4 sm:$0xff]  }
 0x3c3   : > { %2387 = vmatpush1.bf16.msra.mxu1 %v9678_v53  ;;  %v9725_v53 = vld [vmem:[%s11169_s16 + $0x190] ss:$24 sps:$4 sm:$0xff]  }
 0x3c4   : > { %2388 = vmatprep.subr.bf16.mxu1 %v9680_v26  ;;  %2344 = vmatpush1.bf16.msra.mxu0 %v9685_v37  ;;  %v9728_v26 = vld [vmem:[%s11169_s16 + $0x1c0] ss:$24 sps:$4 sm:$0xff]   ;;  %v9733_v37 = vld [vmem:[%s11169_s16 + $0x1f4] ss:$24 sps:$4 sm:$0xff]  }
 0x3c5   : > { %2345 = vmatprep.subr.bf16.mxu0 %v9688_v46  ;;  %v9736_v46 = vld [vmem:[%s11169_s16 + $0x224] ss:$24 sps:$4 sm:$0xff]  }
 0x3c7   : > { %2389 = vmatpush1.bf16.msra.mxu1 %v9684_v7  ;;  %v9731_v7 = vld [vmem:[%s11169_s16 + $0x1f0] ss:$24 sps:$4 sm:$0xff]  }
 0x3c8   : > { %2390 = vmatprep.subr.bf16.mxu1 %v9686_v60  ;;  %2346 = vmatpush1.bf16.msra.mxu0 %v9691_v6  ;;  %v9734_v60 = vld [vmem:[%s11169_s16 + $0x220] ss:$24 sps:$4 sm:$0xff]   ;;  %v9739_v6 = vld [vmem:[%s11169_s16 + $0x254] ss:$24 sps:$4 sm:$0xff]  }
 0x3c9   : > { %2347 = vmatprep.subr.bf16.mxu0 %v9694_v32  ;;  %v9742_v32 = vld [vmem:[%s11169_s16 + $0x284] ss:$24 sps:$4 sm:$0xff]  }
 0x3cb   : > { %2391 = vmatpush1.bf16.msra.mxu1 %v9690_v61  ;;  %v9737_v61 = vld [vmem:[%s11169_s16 + $0x250] ss:$24 sps:$4 sm:$0xff]  }
 0x3cc   : > { %2392 = vmatprep.subr.bf16.mxu1 %v9692_v40  ;;  %2348 = vmatpush1.bf16.msra.mxu0 %v9697_v13  ;;  %v9740_v40 = vld [vmem:[%s11169_s16 + $0x280] ss:$24 sps:$4 sm:$0xff]   ;;  %v9745_v13 = vld [vmem:[%s11169_s16 + $0x2b4] ss:$24 sps:$4 sm:$0xff]  }
 0x3cd   : > { %2349 = vmatprep.subr.bf16.mxu0 %v9698_v54 }
 0x3cf   : > { %2393 = vmatpush1.bf16.msra.mxu1 %v9696_v43  ;;  %v9743_v43 = vld [vmem:[%s11169_s16 + $0x2b0] ss:$24 sps:$4 sm:$0xff]  }
 0x3d0   : > { %2350 = vmatpush1.bf16.msra.mxu0 %v9700_v62  ;;  %9189 = vmatprep.subr.bf16.mxu1 %v10479_v12 }
 0x3d1   : > { %2405 = vmatprep.subr.bf16.mxu0 %v9703_v4 }
 0x3d2   : > { %2395 = vmatmul.mubr.bf16.vlgmr.msra.gmra.mrb[0].mxu1 %v11692_v39 }
 0x3d3   : > { %2352 = vmatmul.mubr.bf16.vlgmr.msra.gmra.mrb[0].mxu0 %v11692_v39  ;;  %9191 = vmatprep.mubr.msk.bf16.mxu1 %vm10480_vm10, %v10479_v12 }
 0x3d4   : > { %2437 = vmatprep.mubr.bf16.mxu0 %v1710_v25  ;;  %2406 = vmatpush1.bf16.msra.mxu0 %v9701_v14  ;;  %v9719_v25 = vld [vmem:[%s11169_s16 + $0x130] ss:$24 sps:$4 sm:$0xff]   ;;  %s10482_s16 = smov 64  }
 0x3d5   : > { %2407 = vmatprep.subr.bf16.mxu0 %v9706_v10 }
 0x3d8   : > { %2408 = vmatpush1.bf16.msra.mxu0 %v9704_v17 }
 0x3d9   : > { %2409 = vmatprep.subr.bf16.mxu0 %v9709_v18 }
 0x3dc   : > { %2410 = vmatpush1.bf16.msra.mxu0 %v9707_v15 }
 0x3dd   : > { %2411 = vmatprep.subr.bf16.mxu0 %v9712_v1 }
 0x3e0   : > { %2412 = vmatpush1.bf16.msra.mxu0 %v9710_v9 }
 0x3e1   : > { %2413 = vmatprep.subr.bf16.mxu0 %v9715_v19 }
 0x3e4   : > { %2414 = vmatpush1.bf16.msra.mxu0 %v9713_v8 }
 0x3e5   : > { %2415 = vmatprep.subr.bf16.mxu0 %v9718_v22 }
 0x3e8   : > { %2416 = vmatpush1.bf16.msra.mxu0 %v9716_v50 }
 0x3e9   : > { %2417 = vmatprep.subr.bf16.mxu0 %v9721_v0 }
 0x3ec   : > { %2418 = vmatpush1.bf16.msra.mxu0 %v9719_v25 }
 0x3ed   : > { %2419 = vmatprep.subr.bf16.mxu0 %v9724_v30 }
 0x3f0   : > { %2420 = vmatpush1.bf16.msra.mxu0 %v9722_v21 }
 0x3f1   : > { %2421 = vmatprep.subr.bf16.mxu0 %v9727_v35 }
 0x3f4   : > { %2422 = vmatpush1.bf16.msra.mxu0 %v9725_v53 }
 0x3f5   : > { %2423 = vmatprep.subr.bf16.mxu0 %v9730_v28 }
 0x3f8   : > { %2424 = vmatpush1.bf16.msra.mxu0 %v9728_v26 }
 0x3f9   : > { %2425 = vmatprep.subr.bf16.mxu0 %v9733_v37 }
 0x3fc   : > { %2426 = vmatpush1.bf16.msra.mxu0 %v9731_v7 }
 0x3fd   : > { %2427 = vmatprep.subr.bf16.mxu0 %v9736_v46 }
 0x400   : > { %2428 = vmatpush1.bf16.msra.mxu0 %v9734_v60 }
 0x401   : > { %2429 = vmatprep.subr.bf16.mxu0 %v9739_v6 }
 0x404   : > { %2430 = vmatpush1.bf16.msra.mxu0 %v9737_v61 }
 0x405   : > { %2431 = vmatprep.subr.bf16.mxu0 %v9742_v32 }
 0x408   : > { %2432 = vmatpush1.bf16.msra.mxu0 %v9740_v40  ;;  %v11824_v40 = vld [vmem:[%s11180_s2 + $0x24] ss:$8 sps:$4 sm:$0xff]  }
 0x409   : > { %2433 = vmatprep.subr.bf16.mxu0 %v9745_v13 }
 0x40c   : > { %2434 = vmatpush1.bf16.msra.mxu0 %v9743_v43 }
 0x40d   : > { %2435 = vmatprep.subr.bf16.mxu0 %v9748_v34 }
 0x410   : > { %2436 = vmatpush1.bf16.msra.mxu0 %v9746_v31  ;;  %v11828_v31 = vld [vmem:[%s11180_s2 + $0x20] ss:$8 sps:$4 sm:$0xff]  }
 0x413   : > { %2438 = vmatmul.mubr.bf16.vlgmr.msra.gmra.mrb[4].mxu0 %v11692_v39  ;;  %v1827_v39 = vsub.s32 4, %v11699_v16 }
 0x4a5   : > { %v2396_v47 = vpop.f32.mrb[0].mxu1 }
 0x4a6   : > { %v2397_v24 = vadd.f32 %v2396_v47, %v1820_v42  ;;  %v11715_v58 = vpop.f32.mrb[1].mxu1  ;;  %v2353_v57 = vpop.f32.mrb[0].mxu0 }
 0x4a7   : > { %v2400_v56 = vpop.f32.mrb[2].mxu1  ;;  %v2354_v2 = vadd.f32 %v2353_v57, %v1812_v48  ;;  %v11731_v59 = vpop.f32.mrb[1].mxu0 }
 0x4a8   : > { %v11720_v29 = vpack.c.bf16 %v2397_v24, %v2397_v24  ;;  %v11722_v51 = vadd.f32 %v2400_v56, %v1820_v42  ;;  %v2402_v33 = vpop.f32.mrb[3].mxu1  ;;  %v2357_v27 = vpop.f32.mrb[2].mxu0 }
 0x4a9   : > { %v11729_v23 = vadd.f32 %v2402_v33, %v11718_v55  ;;  %v11737_v63 = vpack.c.bf16 %v2354_v2, %v2354_v2  ;;  %v11739_v3 = vadd.f32 %v2357_v27, %v1812_v48  ;;  %v2359_v5 = vpop.f32.mrb[3].mxu0  ;;  %v1828_v2 = vrot.slane %v11703_v20, %v1827_v39 }
 0x4aa   : > { %2582 = vrot.lane.b32.xlu1 %v11720_v29, %s10481_s21  ;;  %v2471_v52 = vsel %vm2466_vm11, %v11720_v29, 0  ;;  %v11742_v11 = vadd.f32 %v2359_v5, %v11726_v36 }
 0x4ab   : > { %9190 = vmatpush3.bf16.xpose.msra.mxu1 %v2471_v52  ;;  %v1831_v52 = vsub.s32 5, %v11699_v16 }
 0x4ac   : > { %9195 = vmatprep.subr.bf16.mxu1 %v10479_v12 }
 0x4ad   : > { %v11792_v5 = vrot.slane %v11703_v20, %v1831_v52 }
 0x4ae   : > { %2579 = vrot.lane.b32.xlu1 %v11737_v63, %s10481_s21 }
 0x4b2   : > { %9192 = vmatmul.mubr.msk.bf16.vlgmr.msra.gmra.mrb[4].mxu1 %vm2466_vm11, %v11737_v63 }
 0x4b3   : > { %9197 = vmatprep.mubr.msk.bf16.mxu1 %vm10480_vm10, %v10479_v12 }
 0x4e6   : > { %v2439_v24 = vpop.f32.mrb[4].mxu0 }
 0x4e7   : > { %v11785_v56 = vpop.f32.mrb[5].mxu0  ;;  %v2440_v27 = vadd.f32 %v2439_v24, %v1828_v2 }
 0x4e8   : > { %v2443_v14 = vpop.f32.mrb[6].mxu0 }
 0x4e9   : > { %v11794_v4 = vpack.c.bf16 %v2440_v27, %v2440_v27  ;;  %v2445_v10 = vpop.f32.mrb[7].mxu0  ;;  %v11796_v17 = vadd.f32 %v2443_v14, %v1828_v2  ;;  %v11855_v2 = vld [vmem:[%s11180_s2 + $0x10] ss:$8 sps:$4 sm:$0xff]  }
 0x4ea   : > { %v11799_v18 = vadd.f32 %v2445_v10, %v11792_v5 }
 0x4eb   : > { %v2531_v15 = vsel %vm2529_vm13, %v11794_v4, 0 }
 0x4ec   : > { %9196 = vmatpush3.bf16.msra.mxu1 %v2531_v15 }
 0x4ed   : > { %9201 = vmatprep.subr.bf16.mxu1 %v10479_v12 }
 0x51c   : > { %v2583_v9 = vpop.permute.xlu1 %2582 }
 0x51d   : > { %v2588_v8 = vsel %vm2466_vm11, %v2583_v9, 0 }
 0x520   : > { %v2580_v22 = vpop.permute.xlu1 %2579 }
 0x585   : > { %v2507_v54 = vpop.f32.mrb[4].mxu1 }
 0x586   : > { %v9193_v62 = vpop.f32.mrb[5].mxu1  ;;  %v2514_v41 = vsel %vm2513_vm12, %v2507_v54, -inf }
 0x587   : > { %2515 = vmax.xlane.f32.xlu0 %v2514_v41  ;;  %v2510_v44 = vpop.f32.mrb[6].mxu1  ;;  %v11831_v62 = vld [vmem:[%s11180_s2 + $0x34] ss:$8 sps:$4 sm:$0xff]   ;;  %v11836_v41 = vld [vmem:[%s11180_s2 + $0x30] ss:$8 sps:$4 sm:$0xff]  }
 0x588   : > { %v9194_v42 = vpop.f32.mrb[7].mxu1  ;;  %v11841_v44 = vld [vmem:[%s11180_s2 + $0x4] ss:$8 sps:$4 sm:$0xff]  }
 0x589   : > { %v10483_v42 = vmov 0  }
 0x58a   : > { %2994 = vmatprep.mubr.bf16.mxu0 %v10483_v42 }
 0x614   : > { %v2516_v49 = vpop.xlane.xlu0 %2515 }
 0x615   : > { %v2517_v47 = vsub.f32 %v2507_v54, %v2516_v49 }
 0x617   : > { %v2518_v48 = vmul.f32 1.442695, %v2517_v47  ;;  %v11847_v47 = vld [vmem:[%s11180_s2] ss:$8 sps:$4 sm:$0xff]  }
 0x619   : > { %9797 = vpow2.f32 %v2518_v48 }
 0x623   : > { %v9798_v33 = vpop.eup %9797 }
 0x624   : > { %v2520_v57 = vsel %vm2513_vm12, %v9798_v33, 0.0 }
 0x625   : > { %2521 = vadd.xlane.f32.xlu0 %v2520_v57 }
 0x6b2   : > { %v2522_v16 = vpop.xlane.xlu0 %2521 }
 0x6b3   : > { %9799 = vrcp.f32 %v2522_v16 }
 0x6bd   : > { %v9800_v20 = vpop.eup %9799 }
 0x6be   : > { %v2524_v1 = vmul.f32 %v9800_v20, %v9798_v33  ;;  %v11850_v33 = vld [vmem:[%s11180_s2 + $0x14] ss:$8 sps:$4 sm:$0xff]  }
 0x6c0   : > { %v2525_v19 = vpack.c.bf16 %v2524_v1, %v2524_v1 }
 0x6c2   : > { %9198 = vmatmul.mubr.msk.bf16.vlgmr.msra.gmra.mrb[8].mxu1 %vm2513_vm12, %v2525_v19 }
 0x6c3   : > { %9202 = vmatpush3.bf16.xpose.msra.mxu1 %v2588_v8  ;;  %9203 = vmatprep.mubr.msk.bf16.mxu1 %vm10480_vm10, %v10479_v12 }
 0x6c4   : > { %9207 = vmatprep.subr.bf16.mxu1 %v10479_v12 }
 0x6ca   : > { %9204 = vmatmul.mubr.msk.bf16.vlgmr.msra.gmra.mrb[12].mxu1 %vm2466_vm11, %v2580_v22 }
 0x6cb   : > { %9209 = vmatprep.mubr.msk.bf16.mxu1 %vm10480_vm10, %v10479_v12 }
 0x795   : > { %v2567_v50 = vpop.f32.mrb[8].mxu1 }
 0x796   : > { %v9199_v0 = vpop.f32.mrb[9].mxu1  ;;  %v2573_v52 = vpack.c.bf16 %v2567_v50, %v2567_v50 }
 0x797   : > { %v2570_v25 = vpop.f32.mrb[10].mxu1 }
 0x798   : > { %v9200_v30 = vpop.f32.mrb[11].mxu1 }
 0x79d   : > { %v2624_v21 = vpop.f32.mrb[12].mxu1 }
 0x79e   : > { %v9205_v35 = vpop.f32.mrb[13].mxu1  ;;  %v2630_v53 = vsel %vm2513_vm12, %v2624_v21, -inf }
 0x79f   : > { %2631 = vmax.xlane.f32.xlu0 %v2630_v53  ;;  %v2627_v28 = vpop.f32.mrb[14].mxu1 }
 0x7a0   : > { %v9206_v26 = vpop.f32.mrb[15].mxu1 }
 0x7b5   : > { %2643 = vrot.lane.b32.xlu0 %v11794_v4, %s10481_s21 }
 0x7b9   : > { %2826 = vrot.lane.b32.xlu0 %v11720_v29, %s10482_s16 }
 0x7bd   : > { %2824 = vrot.lane.b32.xlu0 %v11737_v63, %s10482_s16 }
 0x82c   : > { %v2632_v37 = vpop.xlane.xlu0 %2631 }
 0x82d   : > { %v2633_v7 = vsub.f32 %v2624_v21, %v2632_v37 }
 0x82f   : > { %v2634_v46 = vmul.f32 1.442695, %v2633_v7 }
 0x830   : > { %v2644_v60 = vpop.permute.xlu0 %2643 }
 0x831   : > { %9801 = vpow2.f32 %v2634_v46  ;;  %v2649_v6 = vsel %vm2529_vm13, %v2644_v60, 0 }
 0x832   : > { %9208 = vmatpush3.bf16.msra.mxu1 %v2649_v6 }
 0x833   : > { %2719 = vmatprep.subr.bf16.mxu1 %v11824_v40 }
 0x834   : > { %v2827_v27 = vpop.permute.xlu0 %2826 }
 0x835   : > { %v2832_v14 = vsel %vm2466_vm11, %v2827_v27, 0 }
 0x838   : > { %v2825_v15 = vpop.permute.xlu0 %2824 }
 0x83b   : > { %v9802_v61 = vpop.eup %9801 }
 0x83c   : > { %v2636_v32 = vsel %vm2513_vm12, %v9802_v61, 0.0 }
 0x83d   : > { %2637 = vadd.xlane.f32.xlu1 %v2636_v32  ;;  %v11885_v32 = vld [vmem:[%s11180_s2 + $0x44] ss:$8 sps:$4 sm:$0xff]  }
 0x83e   : > { %2962 = vmatprep.subr.bf16.mxu0 %v11885_v32 }
 0x84e   : > { %2886 = vrot.lane.b32.xlu1 %v11794_v4, %s10482_s16 }
 0x8ca   : > { %v2638_v13 = vpop.xlane.xlu1 %2637 }
 0x8cb   : > { %9803 = vrcp.f32 %v2638_v13  ;;  %v11888_v13 = vld [vmem:[%s11180_s2 + $0x54] ss:$8 sps:$4 sm:$0xff]  }
 0x8ce   : > { %v2887_v10 = vpop.permute.xlu1 %2886 }
 0x8cf   : > { %v2892_v16 = vsel %vm2529_vm13, %v2887_v10, 0 }
 0x8d5   : > { %v9804_v43 = vpop.eup %9803 }
 0x8d6   : > { %v2640_v34 = vmul.f32 %v9804_v43, %v9802_v61  ;;  %v11882_v61 = vld [vmem:[%s11180_s2 + $0x40] ss:$8 sps:$4 sm:$0xff]   ;;  %v11893_v43 = vld [vmem:[%s11180_s2 + $0x50] ss:$8 sps:$4 sm:$0xff]  }
 0x8d7   : > { %2963 = vmatpush1.bf16.msra.mxu0 %v11882_v61 }
 0x8d8   : > { %v2641_v54 = vpack.c.bf16 %v2640_v34, %v2640_v34  ;;  %2964 = vmatprep.subr.bf16.mxu0 %v11888_v13 }
 0x8da   : > { %9210 = vmatmul.mubr.msk.bf16.vlgmr.msra.gmra.mrb[16].mxu1 %vm2513_vm12, %v2641_v54 }
 0x8db   : > { %2720 = vmatpush1.bf16.msra.mxu1 %v11828_v31  ;;  %2751 = vmatprep.mubr.bf16.mxu1 %v10483_v42 }
 0x8dc   : > { %2721 = vmatprep.subr.bf16.mxu1 %v11831_v62  ;;  %2965 = vmatpush1.bf16.msra.mxu0 %v11893_v43 }
 0x8dd   : > { %9231 = vmatprep.subr.bf16.mxu0 %v10479_v12 }
 0x8df   : > { %2722 = vmatpush1.bf16.msra.mxu1 %v11836_v41 }
 0x8e0   : > { %2783 = vmatprep.subr.bf16.mxu1 %v11841_v44 }
 0x9ad   : > { %v2685_v49 = vpop.f32.mrb[16].mxu1 }
 0x9ae   : > { %v2691_v48 = vpack.c.bf16 %v2685_v49, %v2685_v49  ;;  %v9211_v24 = vpop.f32.mrb[17].mxu1 }
 0x9af   : > { %v2688_v57 = vpop.f32.mrb[18].mxu1 }
 0x9b0   : > { %v9212_v39 = vpop.f32.mrb[19].mxu1  ;;  %8621 = vmatmul.mubr.msk.bf16.vlgmr.msra.gmra.mrb[20].mxu1 %vm2466_vm11, %v2691_v48 }
 0x9b1   : > { %2784 = vmatpush1.bf16.msra.mxu1 %v11847_v47  ;;  %2815 = vmatprep.mubr.bf16.mxu1 %v10483_v42 }
 0x9b2   : > { %2785 = vmatprep.subr.bf16.mxu1 %v11850_v33 }
 0x9b5   : > { %2786 = vmatpush1.bf16.msra.mxu1 %v11855_v2 }
 0x9b6   : > { %9213 = vmatprep.subr.bf16.mxu1 %v10479_v12 }
 0x9b8   : > { %8626 = vmatmul.mubr.msk.bf16.vlgmr.msra.gmra.mrb[24].mxu1 %vm2466_vm11, %v2573_v52 }
 0x9b9   : > { %9215 = vmatprep.mubr.msk.bf16.mxu1 %vm10480_vm10, %v10479_v12 }
 0x9be   : > { %9214 = vmatpush3.bf16.xpose.msra.mxu1 %v2832_v14 }
 0x9bf   : > { %9219 = vmatprep.subr.bf16.mxu1 %v10479_v12 }
 0x9c5   : > { %9216 = vmatmul.mubr.msk.bf16.vlgmr.msra.gmra.mrb[28].mxu1 %vm2466_vm11, %v2825_v15 }
 0x9c6   : > { %9220 = vmatpush3.bf16.msra.mxu1 %v2892_v16  ;;  %9221 = vmatprep.mubr.msk.bf16.mxu1 %vm10480_vm10, %v10479_v12 }
 0x9c7   : > { %9225 = vmatprep.subr.bf16.mxu1 %v10479_v12 }
 0xa83   : > { %v2753_v20 = vpop.f32.mrb[20].mxu1 }
 0xa84   : > { %v2755_v1 = vpop.f32.mrb[21].mxu1 }
 0xa85   : > { %v2757_v9 = vpop.f32.mrb[22].mxu1 }
 0xa86   : > { %v2758_v19 = vpop.f32.mrb[23].mxu1 }
 0xa8b   : > { %v2817_v8 = vpop.f32.mrb[24].mxu1 }
 0xa8c   : > { %v11871_v22 = vadd.f32 %v2817_v8, %v2753_v20  ;;  %v2819_v50 = vpop.f32.mrb[25].mxu1 }
 0xa8d   : > { %v11873_v0 = vadd.f32 %v2819_v50, %v2755_v1  ;;  %v2821_v25 = vpop.f32.mrb[26].mxu1 }
 0xa8e   : > { %v2822_v30 = vpop.f32.mrb[27].mxu1 }
 0xa98   : > { %v2868_v21 = vpop.f32.mrb[28].mxu1 }
 0xa99   : > { %v9217_v35 = vpop.f32.mrb[29].mxu1  ;;  %v2874_v53 = vsel %vm2513_vm12, %v2868_v21, -inf }
 0xa9a   : > { %2875 = vmax.xlane.f32.xlu0 %v2874_v53  ;;  %v2871_v28 = vpop.f32.mrb[30].mxu1  ;;  %v11914_v35 = vld [vmem:[%s11180_s2 + $0x60] ss:$8 sps:$4 sm:$0xff]   ;;  %v11917_v53 = vld [vmem:[%s11180_s2 + $0x64] ss:$8 sps:$4 sm:$0xff]  }
 0xa9b   : > { %v9218_v26 = vpop.f32.mrb[31].mxu1  ;;  %v11925_v28 = vld [vmem:[%s11180_s2 + $0x70] ss:$8 sps:$4 sm:$0xff]  }
 0xb27   : > { %v2876_v37 = vpop.xlane.xlu0 %2875 }
 0xb28   : > { %v2877_v7 = vsub.f32 %v2868_v21, %v2876_v37 }
 0xb2a   : > { %v2878_v46 = vmul.f32 1.442695, %v2877_v7 }
 0xb2c   : > { %9805 = vpow2.f32 %v2878_v46 }
 0xb36   : > { %v9806_v60 = vpop.eup %9805 }
 0xb37   : > { %v2880_v6 = vsel %vm2513_vm12, %v9806_v60, 0.0 }
 0xb38   : > { %2881 = vadd.xlane.f32.xlu1 %v2880_v6 }
 0xb49   : > { %3007 = vrot.lane.b32.xlu1 %v11720_v29, %s10484_s1 }
 0xb4d   : > { %3005 = vrot.lane.b32.xlu1 %v11737_v63, %s10484_s1 }
 0xbc5   : > { %v2882_v29 = vpop.xlane.xlu1 %2881 }
 0xbc6   : > { %9807 = vrcp.f32 %v2882_v29 }
 0xbc9   : > { %v3008_v54 = vpop.permute.xlu1 %3007 }
 0xbca   : > { %v3013_v48 = vsel %vm2466_vm11, %v3008_v54, 0 }
 0xbcd   : > { %v3006_v24 = vpop.permute.xlu1 %3005 }
 0xbd0   : > { %v9808_v63 = vpop.eup %9807 }
 0xbd1   : > { %v2884_v34 = vmul.f32 %v9808_v63, %v9806_v60  ;;  %v2399_v63 = vadd.f32 %v11715_v58, %v11718_v55  ;;  %v2442_v58 = vadd.f32 %v11785_v56, %v11792_v5 }
 0xbd3   : > { %v2885_v49 = vpack.c.bf16 %v2884_v34, %v2884_v34  ;;  %v11934_v54 = vpack.c.bf16 %v2399_v63, %v2399_v63  ;;  %v11950_v55 = vpack.c.bf16 %v2442_v58, %v2442_v58 }
 0xbd5   : > { %9222 = vmatmul.mubr.msk.bf16.vlgmr.msra.gmra.mrb[32].mxu1 %vm2513_vm12, %v2885_v49 }
 0xbd6   : > { %9226 = vmatpush3.bf16.xpose.msra.mxu1 %v3013_v48  ;;  %9227 = vmatprep.mubr.msk.bf16.mxu1 %vm10480_vm10, %v10479_v12 }
 0xbd7   : > { %3143 = vmatprep.subr.bf16.mxu1 %v11917_v53 }
 0xbdd   : > { %9228 = vmatmul.mubr.msk.bf16.vlgmr.msra.gmra.mrb[36].mxu1 %vm2466_vm11, %v3006_v24 }
 0xbde   : > { %3175 = vmatprep.mubr.bf16.mxu1 %v10483_v42  ;;  %3144 = vmatpush1.bf16.msra.mxu1 %v11914_v35 }
 0xca8   : > { %v2928_v57 = vpop.f32.mrb[32].mxu1 }
 0xca9   : > { %v2934_v39 = vpack.c.bf16 %v2928_v57, %v2928_v57  ;;  %v9223_v52 = vpop.f32.mrb[33].mxu1 }
 0xcaa   : > { %v2931_v27 = vpop.f32.mrb[34].mxu1 }
 0xcab   : > { %v9224_v14 = vpop.f32.mrb[35].mxu1  ;;  %8633 = vmatmul.mubr.msk.bf16.vlgmr.msra.gmra.mrb[8].mxu0 %vm2466_vm11, %v2934_v39 }
 0xcac   : > { %9233 = vmatprep.mubr.msk.bf16.mxu0 %vm10480_vm10, %v10479_v12 }
 0xcb0   : > { %v3049_v10 = vpop.f32.mrb[36].mxu1 }
 0xcb1   : > { %v9229_v15 = vpop.f32.mrb[37].mxu1  ;;  %v3055_v16 = vsel %vm2513_vm12, %v3049_v10, -inf }
 0xcb2   : > { %3056 = vmax.xlane.f32.xlu0 %v3055_v16  ;;  %v3052_v20 = vpop.f32.mrb[38].mxu1 }
 0xcb3   : > { %v9230_v1 = vpop.f32.mrb[39].mxu1 }
 0xcc8   : > { %3067 = vrot.lane.b32.xlu0 %v11794_v4, %s10484_s1  ;;  %v11920_v4 = vld [vmem:[%s11180_s2 + $0x74] ss:$8 sps:$4 sm:$0xff]  }
 0xcc9   : > { %3145 = vmatprep.subr.bf16.mxu1 %v11920_v4 }
 0xcca   : > { %3146 = vmatpush1.bf16.msra.mxu1 %v11925_v28 }
 0xccb   : > { %9243 = vmatprep.subr.bf16.mxu1 %v10479_v12 }
 0xd3f   : > { %v3057_v9 = vpop.xlane.xlu0 %3056 }
 0xd40   : > { %v3058_v19 = vsub.f32 %v3049_v10, %v3057_v9 }
 0xd42   : > { %v3059_v8 = vmul.f32 1.442695, %v3058_v19 }
 0xd43   : > { %v3068_v50 = vpop.permute.xlu0 %3067 }
 0xd44   : > { %9809 = vpow2.f32 %v3059_v8  ;;  %v3073_v25 = vsel %vm2529_vm13, %v3068_v50, 0  ;;  %v11965_v8 = vld [vmem:[%s11180_s2 + $0x80] ss:$8 sps:$4 sm:$0xff]   ;;  %v11968_v50 = vld [vmem:[%s11180_s2 + $0x84] ss:$8 sps:$4 sm:$0xff]  }
 0xd45   : > { %9232 = vmatpush3.bf16.msra.mxu0 %v3073_v25  ;;  %v11971_v25 = vld [vmem:[%s11180_s2 + $0x94] ss:$8 sps:$4 sm:$0xff]  }
 0xd46   : > { %9237 = vmatprep.subr.bf16.mxu0 %v10479_v12 }
 0xd4e   : > { %v9810_v30 = vpop.eup %9809 }
 0xd4f   : > { %v3061_v21 = vsel %vm2513_vm12, %v9810_v30, 0.0 }
 0xd50   : > { %3062 = vadd.xlane.f32.xlu1 %v3061_v21 }
 0xd7e   : > { %v2996_v26 = vpop.f32.mrb[8].mxu0 }
 0xd7f   : > { %v3003_v37 = vadd.f32 %v2996_v26, %v11871_v22  ;;  %v2998_v7 = vpop.f32.mrb[9].mxu0  ;;  %v3196_v22 = vsel %vm2466_vm11, %v11934_v54, 0 }
 0xd80   : > { %v3004_v46 = vadd.f32 %v2998_v7, %v11873_v0  ;;  %v3000_v60 = vpop.f32.mrb[10].mxu0  ;;  %v2356_v0 = vadd.f32 %v11731_v59, %v11726_v36  ;;  %v3254_v36 = vsel %vm2529_vm13, %v11950_v55, 0 }
 0xd81   : > { %v3001_v6 = vpop.f32.mrb[11].mxu0 }
 0xd82   : > { %v11943_v24 = vpack.c.bf16 %v2356_v0, %v2356_v0 }
 0xddd   : > { %v3063_v29 = vpop.xlane.xlu1 %3062 }
 0xdde   : > { %9811 = vrcp.f32 %v3063_v29 }
 0xde8   : > { %v9812_v34 = vpop.eup %9811 }
 0xde9   : > { %v3065_v49 = vmul.f32 %v9812_v34, %v9810_v30  ;;  %v11976_v30 = vld [vmem:[%s11180_s2 + $0x90] ss:$8 sps:$4 sm:$0xff]  }
 0xdeb   : > { %v3066_v48 = vpack.c.bf16 %v3065_v49, %v3065_v49 }
 0xded   : > { %9234 = vmatmul.mubr.msk.bf16.vlgmr.msra.gmra.mrb[12].mxu0 %vm2513_vm12, %v3066_v48 }
 0xdee   : > { %9238 = vmatpush3.bf16.xpose.msra.mxu0 %v3196_v22  ;;  %9239 = vmatprep.mubr.msk.bf16.mxu0 %vm10480_vm10, %v10479_v12 }
 0xdef   : > { %3324 = vmatprep.subr.bf16.mxu0 %v11968_v50 }
 0xdf5   : > { %9240 = vmatmul.mubr.msk.bf16.vlgmr.msra.gmra.mrb[16].mxu0 %vm2466_vm11, %v11943_v24 }
 0xdf6   : > { %3356 = vmatprep.mubr.bf16.mxu0 %v10483_v42  ;;  %3325 = vmatpush1.bf16.msra.mxu0 %v11965_v8 }
 0xdf7   : > { %3326 = vmatprep.subr.bf16.mxu0 %v11971_v25 }
 0xdfa   : > { %3327 = vmatpush1.bf16.msra.mxu0 %v11976_v30 }
 0xdfb   : > { %9255 = vmatprep.subr.bf16.mxu0 %v10479_v12 }
 0xec0   : > { %v3109_v57 = vpop.f32.mrb[12].mxu0 }
 0xec1   : > { %v3115_v39 = vpack.c.bf16 %v3109_v57, %v3109_v57  ;;  %v9235_v52 = vpop.f32.mrb[13].mxu0 }
 0xec2   : > { %v3112_v27 = vpop.f32.mrb[14].mxu0 }
 0xec3   : > { %v9236_v14 = vpop.f32.mrb[15].mxu0  ;;  %8640 = vmatmul.mubr.msk.bf16.vlgmr.msra.gmra.mrb[40].mxu1 %vm2466_vm11, %v3115_v39 }
 0xec4   : > { %9244 = vmatpush3.bf16.msra.mxu1 %v3254_v36  ;;  %9245 = vmatprep.mubr.msk.bf16.mxu1 %vm10480_vm10, %v10479_v12 }
 0xec5   : > { %9249 = vmatprep.subr.bf16.mxu1 %v10479_v12 }
 0xec8   : > { %v3232_v59 = vpop.f32.mrb[16].mxu0 }
 0xec9   : > { %v9241_v56 = vpop.f32.mrb[17].mxu0  ;;  %v3238_v5 = vsel %vm2513_vm12, %v3232_v59, -inf }
 0xeca   : > { %3239 = vmax.xlane.f32.xlu0 %v3238_v5  ;;  %v3235_v10 = vpop.f32.mrb[18].mxu0 }
 0xecb   : > { %v9242_v15 = vpop.f32.mrb[19].mxu0 }
 0xee0   : > { %3368 = vrot.lane.b32.xlu0 %v11943_v24, %s10481_s21 }
 0xf57   : > { %v3240_v16 = vpop.xlane.xlu0 %3239 }
 0xf58   : > { %v3241_v20 = vsub.f32 %v3232_v59, %v3240_v16 }
 0xf5a   : > { %v3242_v1 = vmul.f32 1.442695, %v3241_v20 }
 0xf5b   : > { %v3369_v58 = vpop.permute.xlu0 %3368 }
 0xf5c   : > { %9813 = vpow2.f32 %v3242_v1 }
 0xf66   : > { %v9814_v9 = vpop.eup %9813 }
 0xf67   : > { %v3244_v19 = vsel %vm2513_vm12, %v9814_v9, 0.0 }
 0xf68   : > { %3245 = vadd.xlane.f32.xlu1 %v3244_v19  ;;  %v12001_v19 = vld [vmem:[%s11180_s2 + $0xa0] ss:$8 sps:$4 sm:$0xff]  }
 0xf79   : > { %3371 = vrot.lane.b32.xlu1 %v11934_v54, %s10481_s21 }
 0xf96   : > { %v3177_v21 = vpop.f32.mrb[40].mxu1 }
 0xf97   : > { %v3184_v26 = vadd.f32 %v3177_v21, %v3003_v37  ;;  %v3179_v7 = vpop.f32.mrb[41].mxu1  ;;  %v12004_v21 = vld [vmem:[%s11180_s2 + $0xa4] ss:$8 sps:$4 sm:$0xff]  }
 0xf98   : > { %v3185_v60 = vadd.f32 %v3179_v7, %v3004_v46  ;;  %v3181_v6 = vpop.f32.mrb[42].mxu1  ;;  %v12007_v7 = vld [vmem:[%s11180_s2 + $0xb4] ss:$8 sps:$4 sm:$0xff]  }
 0xf99   : > { %v3182_v29 = vpop.f32.mrb[43].mxu1  ;;  %v12012_v6 = vld [vmem:[%s11180_s2 + $0xb0] ss:$8 sps:$4 sm:$0xff]  }
 0xff5   : > { %v3246_v63 = vpop.xlane.xlu1 %3245 }
 0xff6   : > { %9815 = vrcp.f32 %v3246_v63 }
 0xff9   : > { %v3372_v48 = vpop.permute.xlu1 %3371 }
 0xffa   : > { %v3377_v0 = vsel %vm2466_vm11, %v3372_v48, 0 }
0x1000   : > { %v9816_v34 = vpop.eup %9815 }
0x1001   : > { %v3248_v49 = vmul.f32 %v9816_v34, %v9814_v9 }
0x1003   : > { %v3249_v22 = vpack.c.bf16 %v3248_v49, %v3248_v49 }
0x1005   : > { %9246 = vmatmul.mubr.msk.bf16.vlgmr.msra.gmra.mrb[44].mxu1 %vm2513_vm12, %v3249_v22 }
0x1006   : > { %9250 = vmatpush3.bf16.xpose.msra.mxu1 %v3377_v0  ;;  %9251 = vmatprep.mubr.msk.bf16.mxu1 %vm10480_vm10, %v10479_v12 }
0x1007   : > { %3508 = vmatprep.subr.bf16.mxu1 %v12004_v21 }
0x100d   : > { %9252 = vmatmul.mubr.msk.bf16.vlgmr.msra.gmra.mrb[48].mxu1 %vm2466_vm11, %v3369_v58 }
0x100e   : > { %3540 = vmatprep.mubr.bf16.mxu1 %v10483_v42  ;;  %3509 = vmatpush1.bf16.msra.mxu1 %v12001_v19 }
0x100f   : > { %3510 = vmatprep.subr.bf16.mxu1 %v12007_v7 }
0x1012   : > { %3511 = vmatpush1.bf16.msra.mxu1 %v12012_v6 }
0x1013   : > { %9267 = vmatprep.subr.bf16.mxu1 %v10479_v12 }
0x10d8   : > { %v3290_v37 = vpop.f32.mrb[44].mxu1 }
0x10d9   : > { %v3296_v46 = vpack.c.bf16 %v3290_v37, %v3290_v37  ;;  %v9247_v57 = vpop.f32.mrb[45].mxu1 }
0x10da   : > { %v3293_v39 = vpop.f32.mrb[46].mxu1 }
0x10db   : > { %v9248_v52 = vpop.f32.mrb[47].mxu1  ;;  %8647 = vmatmul.mubr.msk.bf16.vlgmr.msra.gmra.mrb[20].mxu0 %vm2466_vm11, %v3296_v46 }
0x10dc   : > { %9257 = vmatprep.mubr.msk.bf16.mxu0 %vm10480_vm10, %v10479_v12 }
0x10e0   : > { %v3413_v27 = vpop.f32.mrb[48].mxu1 }
0x10e1   : > { %v9253_v14 = vpop.f32.mrb[49].mxu1  ;;  %v3419_v36 = vsel %vm2513_vm12, %v3413_v27, -inf }
0x10e2   : > { %3420 = vmax.xlane.f32.xlu1 %v3419_v36  ;;  %v3416_v59 = vpop.f32.mrb[50].mxu1 }
0x10e3   : > { %v9254_v56 = vpop.f32.mrb[51].mxu1 }
0x10f3   : > { %3432 = vrot.lane.b32.xlu1 %v11950_v55, %s10481_s21 }
0x10f7   : > { %3551 = vrot.lane.b32.xlu1 %v11943_v24, %s10482_s16 }
0x116f   : > { %v3421_v5 = vpop.xlane.xlu1 %3420 }
0x1170   : > { %v3422_v10 = vsub.f32 %v3413_v27, %v3421_v5 }
0x1172   : > { %v3423_v15 = vmul.f32 1.442695, %v3422_v10 }
0x1173   : > { %v3433_v16 = vpop.permute.xlu1 %3432 }
0x1174   : > { %9817 = vpow2.f32 %v3423_v15  ;;  %v3438_v20 = vsel %vm2529_vm13, %v3433_v16, 0 }
0x1175   : > { %9256 = vmatpush3.bf16.msra.mxu0 %v3438_v20 }
0x1176   : > { %9261 = vmatprep.subr.bf16.mxu0 %v10479_v12 }
0x1177   : > { %v3552_v52 = vpop.permute.xlu1 %3551 }
0x117e   : > { %v9818_v1 = vpop.eup %9817 }
0x117f   : > { %v3425_v9 = vsel %vm2513_vm12, %v9818_v1, 0.0 }
0x1180   : > { %3426 = vadd.xlane.f32.xlu0 %v3425_v9 }
0x1196   : > { %3553 = vrot.lane.b32.xlu0 %v11934_v54, %s10482_s16 }
0x11ae   : > { %v3358_v29 = vpop.f32.mrb[20].mxu0 }
0x11af   : > { %v3365_v63 = vadd.f32 %v3358_v29, %v3184_v26  ;;  %v3360_v34 = vpop.f32.mrb[21].mxu0 }
0x11b0   : > { %v3366_v49 = vadd.f32 %v3360_v34, %v3185_v60  ;;  %v3362_v48 = vpop.f32.mrb[22].mxu0 }
0x11b1   : > { %v3363_v22 = vpop.f32.mrb[23].mxu0 }
0x11b2   : > { %v12037_v22 = vld [vmem:[%s11180_s2 + $0xc0] ss:$8 sps:$4 sm:$0xff]  }
0x120d   : > { %v3427_v0 = vpop.xlane.xlu0 %3426 }
0x120e   : > { %9819 = vrcp.f32 %v3427_v0  ;;  %v12043_v0 = vld [vmem:[%s11180_s2 + $0xd4] ss:$8 sps:$4 sm:$0xff]  }
0x1211   : > { %v3554_v46 = vpop.permute.xlu0 %3553 }
0x1212   : > { %v3559_v39 = vsel %vm2466_vm11, %v3554_v46, 0 }
0x1218   : > { %v9820_v58 = vpop.eup %9819 }
0x1219   : > { %v3429_v37 = vmul.f32 %v9820_v58, %v9818_v1  ;;  %v12048_v58 = vld [vmem:[%s11180_s2 + $0xd0] ss:$8 sps:$4 sm:$0xff]  }
0x121b   : > { %v3430_v57 = vpack.c.bf16 %v3429_v37, %v3429_v37 }
0x121d   : > { %9258 = vmatmul.mubr.msk.bf16.vlgmr.msra.gmra.mrb[24].mxu0 %vm2513_vm12, %v3430_v57 }
0x121e   : > { %9262 = vmatpush3.bf16.xpose.msra.mxu0 %v3559_v39  ;;  %9263 = vmatprep.mubr.msk.bf16.mxu0 %vm10480_vm10, %v10479_v12 }
0x1225   : > { %9264 = vmatmul.mubr.msk.bf16.vlgmr.msra.gmra.mrb[28].mxu0 %vm2466_vm11, %v3552_v52 }
0x1226   : > { %3721 = vmatprep.mubr.bf16.mxu0 %v10483_v42 }
0x12f0   : > { %v3474_v26 = vpop.f32.mrb[24].mxu0 }
0x12f1   : > { %v3480_v60 = vpack.c.bf16 %v3474_v26, %v3474_v26  ;;  %v9259_v27 = vpop.f32.mrb[25].mxu0 }
0x12f2   : > { %v3477_v14 = vpop.f32.mrb[26].mxu0 }
0x12f3   : > { %v9260_v36 = vpop.f32.mrb[27].mxu0  ;;  %8654 = vmatmul.mubr.msk.bf16.vlgmr.msra.gmra.mrb[52].mxu1 %vm2466_vm11, %v3480_v60 }
0x12f4   : > { %9269 = vmatprep.mubr.msk.bf16.mxu1 %vm10480_vm10, %v10479_v12 }
0x12f8   : > { %v3595_v59 = vpop.f32.mrb[28].mxu0 }
0x12f9   : > { %v9265_v56 = vpop.f32.mrb[29].mxu0  ;;  %v3601_v5 = vsel %vm2513_vm12, %v3595_v59, -inf }
0x12fa   : > { %3602 = vmax.xlane.f32.xlu1 %v3601_v5  ;;  %v3598_v10 = vpop.f32.mrb[30].mxu0 }
0x12fb   : > { %v9266_v15 = vpop.f32.mrb[31].mxu0 }
0x130b   : > { %3613 = vrot.lane.b32.xlu1 %v11950_v55, %s10482_s16 }
0x130f   : > { %3732 = vrot.lane.b32.xlu1 %v11943_v24, %s10484_s1  ;;  %v12040_v24 = vld [vmem:[%s11180_s2 + $0xc4] ss:$8 sps:$4 sm:$0xff]  }
0x1310   : > { %3689 = vmatprep.subr.bf16.mxu0 %v12040_v24 }
0x1311   : > { %3690 = vmatpush1.bf16.msra.mxu0 %v12037_v22 }
0x1312   : > { %3691 = vmatprep.subr.bf16.mxu0 %v12043_v0 }
0x1315   : > { %3692 = vmatpush1.bf16.msra.mxu0 %v12048_v58 }
0x1316   : > { %9279 = vmatprep.subr.bf16.mxu0 %v10479_v12 }
0x1387   : > { %v3603_v16 = vpop.xlane.xlu1 %3602 }
0x1388   : > { %v3604_v20 = vsub.f32 %v3595_v59, %v3603_v16 }
0x138a   : > { %v3605_v1 = vmul.f32 1.442695, %v3604_v20 }
0x138b   : > { %v3614_v9 = vpop.permute.xlu1 %3613 }
0x138c   : > { %9821 = vpow2.f32 %v3605_v1  ;;  %v3619_v29 = vsel %vm2529_vm13, %v3614_v9, 0 }
0x138d   : > { %9268 = vmatpush3.bf16.msra.mxu1 %v3619_v29 }
0x138e   : > { %9273 = vmatprep.subr.bf16.mxu1 %v10479_v12 }
0x138f   : > { %v3733_v56 = vpop.permute.xlu1 %3732 }
0x1396   : > { %v9822_v34 = vpop.eup %9821 }
0x1397   : > { %v3607_v48 = vsel %vm2513_vm12, %v9822_v34, 0.0 }
0x1398   : > { %3608 = vadd.xlane.f32.xlu0 %v3607_v48 }
0x13ae   : > { %3734 = vrot.lane.b32.xlu0 %v11934_v54, %s10484_s1 }
0x13c6   : > { %v3542_v37 = vpop.f32.mrb[52].mxu1 }
0x13c7   : > { %v3549_v54 = vadd.f32 %v3542_v37, %v3365_v63  ;;  %v3544_v46 = vpop.f32.mrb[53].mxu1 }
0x13c8   : > { %v3550_v57 = vadd.f32 %v3544_v46, %v3366_v49  ;;  %v3546_v39 = vpop.f32.mrb[54].mxu1 }
0x13c9   : > { %v3547_v52 = vpop.f32.mrb[55].mxu1 }
0x1425   : > { %v3609_v26 = vpop.xlane.xlu0 %3608 }
0x1426   : > { %9823 = vrcp.f32 %v3609_v26  ;;  %v12076_v26 = vpack.c.bf16 %v11722_v51, %v11722_v51  ;;  %v12096_v51 = vld [vmem:[%s11180_s2 + $0xf0] ss:$8 sps:$4 sm:$0xff]  }
0x1429   : > { %v3735_v14 = vpop.permute.xlu0 %3734 }
0x142a   : > { %v3740_v59 = vsel %vm2466_vm11, %v3735_v14, 0 }
0x1430   : > { %v9824_v60 = vpop.eup %9823 }
0x1431   : > { %v3611_v27 = vmul.f32 %v9824_v60, %v9822_v34  ;;  %v12067_v34 = vpack.c.bf16 %v11739_v3, %v11739_v3  ;;  %v12081_v60 = vld [vmem:[%s11180_s2 + $0xe0] ss:$8 sps:$4 sm:$0xff]  }
0x1433   : > { %v3612_v36 = vpack.c.bf16 %v3611_v27, %v3611_v27  ;;  %v12084_v27 = vld [vmem:[%s11180_s2 + $0xe4] ss:$8 sps:$4 sm:$0xff]  }
0x1435   : > { %9270 = vmatmul.mubr.msk.bf16.vlgmr.msra.gmra.mrb[56].mxu1 %vm2513_vm12, %v3612_v36  ;;  %v12087_v36 = vld [vmem:[%s11180_s2 + $0xf4] ss:$8 sps:$4 sm:$0xff]   ;;  %s12887_s2 = scalar_lea.vmem [#allocation25], %s11187_s7 }
0x1436   : > { %9274 = vmatpush3.bf16.xpose.msra.mxu1 %v3740_v59  ;;  %9275 = vmatprep.mubr.msk.bf16.mxu1 %vm10480_vm10, %v10479_v12 }
0x1437   : > { %3870 = vmatprep.subr.bf16.mxu1 %v12084_v27 }
0x143d   : > { %9276 = vmatmul.mubr.msk.bf16.vlgmr.msra.gmra.mrb[60].mxu1 %vm2466_vm11, %v3733_v56 }
0x143e   : > { %3902 = vmatprep.mubr.bf16.mxu1 %v10483_v42  ;;  %3871 = vmatpush1.bf16.msra.mxu1 %v12081_v60 }
0x143f   : > { %3872 = vmatprep.subr.bf16.mxu1 %v12087_v36 }
0x1442   : > { %3873 = vmatpush1.bf16.msra.mxu1 %v12096_v51 }
0x1443   : > { %9291 = vmatprep.subr.bf16.mxu1 %v10479_v12 }
0x1508   : > { %v3655_v63 = vpop.f32.mrb[56].mxu1 }
0x1509   : > { %v3661_v49 = vpack.c.bf16 %v3655_v63, %v3655_v63  ;;  %v9271_v5 = vpop.f32.mrb[57].mxu1 }
0x150a   : > { %v3658_v10 = vpop.f32.mrb[58].mxu1 }
0x150b   : > { %v9272_v15 = vpop.f32.mrb[59].mxu1  ;;  %8661 = vmatmul.mubr.msk.bf16.vlgmr.msra.gmra.mrb[32].mxu0 %vm2466_vm11, %v3661_v49 }
0x150c   : > { %9281 = vmatprep.mubr.msk.bf16.mxu0 %vm10480_vm10, %v10479_v12 }
0x1510   : > { %v3776_v16 = vpop.f32.mrb[60].mxu1 }
0x1511   : > { %v9277_v20 = vpop.f32.mrb[61].mxu1  ;;  %v3782_v1 = vsel %vm2513_vm12, %v3776_v16, -inf }
0x1512   : > { %3783 = vmax.xlane.f32.xlu1 %v3782_v1  ;;  %v3779_v9 = vpop.f32.mrb[62].mxu1 }
0x1513   : > { %v9278_v29 = vpop.f32.mrb[63].mxu1 }
0x1514   : > { %v12121_v29 = vpack.c.bf16 %v11796_v17, %v11796_v17 }
0x1523   : > { %3794 = vrot.lane.b32.xlu1 %v11950_v55, %s10484_s1 }
0x1527   : > { %4031 = vrot.lane.b32.xlu1 %v12067_v34, %s10481_s21 }
0x159f   : > { %v3784_v48 = vpop.xlane.xlu1 %3783 }
0x15a0   : > { %v3785_v37 = vsub.f32 %v3776_v16, %v3784_v48 }
0x15a2   : > { %v3786_v46 = vmul.f32 1.442695, %v3785_v37 }
0x15a3   : > { %v3795_v39 = vpop.permute.xlu1 %3794 }
0x15a4   : > { %9825 = vpow2.f32 %v3786_v46  ;;  %v3800_v52 = vsel %vm2529_vm13, %v3795_v39, 0 }
0x15a5   : > { %9280 = vmatpush3.bf16.msra.mxu0 %v3800_v52 }
0x15a6   : > { %9285 = vmatprep.subr.bf16.mxu0 %v10479_v12 }
0x15a7   : > { %v4032_v9 = vpop.permute.xlu1 %4031 }
0x15ae   : > { %v9826_v55 = vpop.eup %9825 }
0x15af   : > { %v3788_v3 = vsel %vm2513_vm12, %v9826_v55, 0.0 }
0x15b0   : > { %3789 = vadd.xlane.f32.xlu0 %v3788_v3 }
0x15c6   : > { %4034 = vrot.lane.b32.xlu0 %v12076_v26, %s10481_s21 }
0x15de   : > { %v3723_v14 = vpop.f32.mrb[32].mxu0 }
0x15df   : > { %v12089_v59 = vadd.f32 %v3723_v14, %v3549_v54  ;;  %v3725_v56 = vpop.f32.mrb[33].mxu0 }
0x15e0   : > { %v12092_v63 = vadd.f32 %v3725_v56, %v3550_v57  ;;  %v3727_v49 = vpop.f32.mrb[34].mxu0  ;;  %v3925_v57 = vsel %vm2466_vm11, %v12076_v26, 0 }
0x15e1   : > { %v3728_v5 = vpop.f32.mrb[35].mxu0 }
0x163d   : > { %v3790_v10 = vpop.xlane.xlu0 %3789 }
0x163e   : > { %9827 = vrcp.f32 %v3790_v10 }
0x1641   : > { %v4035_v20 = vpop.permute.xlu0 %4034 }
0x1642   : > { %v4040_v1 = vsel %vm2466_vm11, %v4035_v20, 0 }
0x1648   : > { %v9828_v54 = vpop.eup %9827 }
0x1649   : > { %v3792_v15 = vmul.f32 %v9828_v54, %v9826_v55 }
0x164b   : > { %v3793_v16 = vpack.c.bf16 %v3792_v15, %v3792_v15 }
0x164d   : > { %9282 = vmatmul.mubr.msk.bf16.vlgmr.msra.gmra.mrb[36].mxu0 %vm2513_vm12, %v3793_v16 }
0x164e   : > { %9286 = vmatpush3.bf16.xpose.msra.mxu0 %v3925_v57  ;;  %9287 = vmatprep.mubr.msk.bf16.mxu0 %vm10480_vm10, %v10479_v12 }
0x164f   : > { %9297 = vmatprep.subr.bf16.mxu0 %v10479_v12 }
0x1655   : > { %9288 = vmatmul.mubr.msk.bf16.vlgmr.msra.gmra.mrb[40].mxu0 %vm2466_vm11, %v12067_v34 }
0x1656   : > { %9298 = vmatpush3.bf16.xpose.msra.mxu0 %v4040_v1  ;;  %9299 = vmatprep.mubr.msk.bf16.mxu0 %vm10480_vm10, %v10479_v12 }
0x1657   : > { %4171 = vmatprep.subr.bf16.mxu0 %v11824_v40 }
0x165d   : > { %9300 = vmatmul.mubr.msk.bf16.vlgmr.msra.gmra.mrb[44].mxu0 %vm2466_vm11, %v4032_v9 }
0x165e   : > { %4172 = vmatpush1.bf16.msra.mxu0 %v11828_v31  ;;  %4203 = vmatprep.mubr.bf16.mxu0 %v10483_v42  ;;  %v3983_v31 = vsel %vm2529_vm13, %v12121_v29, 0 }
0x165f   : > { %4173 = vmatprep.subr.bf16.mxu0 %v11831_v62 }
0x1662   : > { %4174 = vmatpush1.bf16.msra.mxu0 %v11836_v41 }
0x1663   : > { %9309 = vmatprep.subr.bf16.mxu0 %v10479_v12 }
0x1720   : > { %v3836_v48 = vpop.f32.mrb[36].mxu0 }
0x1721   : > { %v3842_v37 = vpack.c.bf16 %v3836_v48, %v3836_v48  ;;  %v9283_v40 = vpop.f32.mrb[37].mxu0 }
0x1722   : > { %v3839_v46 = vpop.f32.mrb[38].mxu0 }
0x1723   : > { %v9284_v39 = vpop.f32.mrb[39].mxu0  ;;  %8668 = vmatmul.mubr.msk.bf16.vlgmr.msra.gmra.mrb[64].mxu1 %vm2466_vm11, %v3842_v37 }
0x1724   : > { %9292 = vmatpush3.bf16.msra.mxu1 %v3983_v31  ;;  %9293 = vmatprep.mubr.msk.bf16.mxu1 %vm10480_vm10, %v10479_v12 }
0x1725   : > { %9303 = vmatprep.subr.bf16.mxu1 %v10479_v12 }
0x1728   : > { %v3961_v62 = vpop.f32.mrb[40].mxu0 }
0x1729   : > { %v9289_v41 = vpop.f32.mrb[41].mxu0  ;;  %v3967_v17 = vsel %vm2513_vm12, %v3961_v62, -inf }
0x172a   : > { %3968 = vmax.xlane.f32.xlu1 %v3967_v17  ;;  %v3964_v52 = vpop.f32.mrb[42].mxu0 }
0x172b   : > { %v9290_v55 = vpop.f32.mrb[43].mxu0 }
0x1730   : > { %v4076_v3 = vpop.f32.mrb[44].mxu0 }
0x1731   : > { %v9301_v14 = vpop.f32.mrb[45].mxu0  ;;  %v4082_v56 = vsel %vm2513_vm12, %v4076_v3, -inf }
0x1732   : > { %4083 = vmax.xlane.f32.xlu0 %v4082_v56  ;;  %v4079_v49 = vpop.f32.mrb[46].mxu0 }
0x1733   : > { %v9302_v5 = vpop.f32.mrb[47].mxu0 }
0x1748   : > { %4095 = vrot.lane.b32.xlu0 %v12121_v29, %s10481_s21 }
0x17b7   : > { %v3969_v10 = vpop.xlane.xlu1 %3968 }
0x17b8   : > { %v3970_v54 = vsub.f32 %v3961_v62, %v3969_v10 }
0x17ba   : > { %v3971_v15 = vmul.f32 1.442695, %v3970_v54 }
0x17bc   : > { %9829 = vpow2.f32 %v3971_v15 }
0x17bf   : > { %v4084_v16 = vpop.xlane.xlu0 %4083 }
0x17c0   : > { %v4085_v57 = vsub.f32 %v4076_v3, %v4084_v16 }
0x17c2   : > { %v4086_v20 = vmul.f32 1.442695, %v4085_v57 }
0x17c3   : > { %v4096_v14 = vpop.permute.xlu0 %4095 }
0x17c4   : > { %9831 = vpow2.f32 %v4086_v20  ;;  %v4101_v49 = vsel %vm2529_vm13, %v4096_v14, 0 }
0x17c6   : > { %v9830_v1 = vpop.eup %9829 }
0x17c7   : > { %v3973_v9 = vsel %vm2513_vm12, %v9830_v1, 0.0 }
0x17c8   : > { %3974 = vadd.xlane.f32.xlu1 %v3973_v9 }
0x17ce   : > { %v9832_v48 = vpop.eup %9831 }
0x17cf   : > { %v4088_v37 = vsel %vm2513_vm12, %v9832_v48, 0.0 }
0x17d0   : > { %4089 = vadd.xlane.f32.xlu1 %v4088_v37 }
0x17e1   : > { %4278 = vrot.lane.b32.xlu1 %v12076_v26, %s10482_s16 }
0x17e5   : > { %4276 = vrot.lane.b32.xlu1 %v12067_v34, %s10482_s16 }
0x17f6   : > { %v3904_v40 = vpop.f32.mrb[64].mxu1 }
0x17f7   : > { %v12140_v46 = vadd.f32 %v3904_v40, %v12089_v59  ;;  %v3906_v39 = vpop.f32.mrb[65].mxu1 }
0x17f8   : > { %v12143_v31 = vadd.f32 %v3906_v39, %v12092_v63  ;;  %v3908_v62 = vpop.f32.mrb[66].mxu1 }
0x17f9   : > { %v3909_v41 = vpop.f32.mrb[67].mxu1 }
0x1855   : > { %v3975_v17 = vpop.xlane.xlu1 %3974 }
0x1856   : > { %9833 = vrcp.f32 %v3975_v17 }
0x185d   : > { %v4090_v52 = vpop.xlane.xlu1 %4089 }
0x185e   : > { %9835 = vrcp.f32 %v4090_v52 }
0x1860   : > { %v9834_v55 = vpop.eup %9833 }
0x1861   : > { %v3977_v3 = vmul.f32 %v9834_v55, %v9830_v1  ;;  %v4279_v57 = vpop.permute.xlu1 %4278 }
0x1863   : > { %v3978_v56 = vpack.c.bf16 %v3977_v3, %v3977_v3 }
0x1865   : > { %9294 = vmatmul.mubr.msk.bf16.vlgmr.msra.gmra.mrb[68].mxu1 %vm2513_vm12, %v3978_v56 }
0x1866   : > { %9304 = vmatpush3.bf16.msra.mxu1 %v4101_v49  ;;  %9305 = vmatprep.mubr.msk.bf16.mxu1 %vm10480_vm10, %v10479_v12 }
0x1867   : > { %4235 = vmatprep.subr.bf16.mxu1 %v11841_v44 }
0x1868   : > { %v9836_v59 = vpop.eup %9835 }
0x1869   : > { %v4092_v63 = vmul.f32 %v9836_v59, %v9832_v48  ;;  %v4277_v48 = vpop.permute.xlu1 %4276 }
0x186b   : > { %v4093_v5 = vpack.c.bf16 %v4092_v63, %v4092_v63 }
0x186d   : > { %9306 = vmatmul.mubr.msk.bf16.vlgmr.msra.gmra.mrb[72].mxu1 %vm2513_vm12, %v4093_v5 }
0x186e   : > { %4236 = vmatpush1.bf16.msra.mxu1 %v11847_v47  ;;  %4267 = vmatprep.mubr.bf16.mxu1 %v10483_v42 }
0x186f   : > { %4237 = vmatprep.subr.bf16.mxu1 %v11850_v33  ;;  %v4284_v33 = vsel %vm2466_vm11, %v4279_v57, 0 }
0x1872   : > { %4238 = vmatpush1.bf16.msra.mxu1 %v11855_v2 }
0x1873   : > { %9315 = vmatprep.subr.bf16.mxu1 %v10479_v12 }
0x1938   : > { %v4019_v10 = vpop.f32.mrb[68].mxu1 }
0x1939   : > { %v4025_v54 = vpack.c.bf16 %v4019_v10, %v4019_v10  ;;  %v9295_v15 = vpop.f32.mrb[69].mxu1 }
0x193a   : > { %v4022_v16 = vpop.f32.mrb[70].mxu1 }
0x193b   : > { %v9296_v44 = vpop.f32.mrb[71].mxu1  ;;  %8682 = vmatmul.mubr.msk.bf16.vlgmr.msra.gmra.mrb[76].mxu1 %vm2466_vm11, %v4025_v54 }
0x193c   : > { %9317 = vmatprep.mubr.msk.bf16.mxu1 %vm10480_vm10, %v10479_v12 }
0x1940   : > { %v4137_v47 = vpop.f32.mrb[72].mxu1 }
0x1941   : > { %v4143_v20 = vpack.c.bf16 %v4137_v47, %v4137_v47  ;;  %v9307_v1 = vpop.f32.mrb[73].mxu1 }
0x1942   : > { %v4140_v9 = vpop.f32.mrb[74].mxu1 }
0x1943   : > { %v9308_v2 = vpop.f32.mrb[75].mxu1  ;;  %8677 = vmatmul.mubr.msk.bf16.vlgmr.msra.gmra.mrb[48].mxu0 %vm2466_vm11, %v4143_v20 }
0x1944   : > { %9310 = vmatpush3.bf16.xpose.msra.mxu0 %v4284_v33  ;;  %9311 = vmatprep.mubr.msk.bf16.mxu0 %vm10480_vm10, %v10479_v12 }
0x1945   : > { %4414 = vmatprep.subr.bf16.mxu0 %v11885_v32 }
0x194b   : > { %9312 = vmatmul.mubr.msk.bf16.vlgmr.msra.gmra.mrb[52].mxu0 %vm2466_vm11, %v4277_v48 }
0x194c   : > { %4415 = vmatpush1.bf16.msra.mxu0 %v11882_v61  ;;  %4446 = vmatprep.mubr.bf16.mxu0 %v10483_v42 }
0x194d   : > { %4416 = vmatprep.subr.bf16.mxu0 %v11888_v13 }
0x1950   : > { %4417 = vmatpush1.bf16.msra.mxu0 %v11893_v43 }
0x1951   : > { %9327 = vmatprep.subr.bf16.mxu0 %v10479_v12 }
0x1a0e   : > { %v4269_v37 = vpop.f32.mrb[76].mxu1 }
0x1a0f   : > { %v4271_v40 = vpop.f32.mrb[77].mxu1 }
0x1a10   : > { %v4273_v39 = vpop.f32.mrb[78].mxu1 }
0x1a11   : > { %v4274_v62 = vpop.f32.mrb[79].mxu1 }
0x1a16   : > { %v4205_v41 = vpop.f32.mrb[48].mxu0 }
0x1a17   : > { %v12170_v17 = vadd.f32 %v4269_v37, %v4205_v41  ;;  %v4207_v32 = vpop.f32.mrb[49].mxu0 }
0x1a18   : > { %v12172_v52 = vadd.f32 %v4271_v40, %v4207_v32  ;;  %v4209_v55 = vpop.f32.mrb[50].mxu0 }
0x1a19   : > { %v4210_v61 = vpop.f32.mrb[51].mxu0  ;;  %v12204_v55 = vpack.c.bf16 %v11742_v11, %v11742_v11 }
0x1a1e   : > { %v4320_v3 = vpop.f32.mrb[52].mxu0 }
0x1a1f   : > { %v9313_v14 = vpop.f32.mrb[53].mxu0  ;;  %v4326_v13 = vsel %vm2513_vm12, %v4320_v3, -inf }
0x1a20   : > { %4327 = vmax.xlane.f32.xlu0 %v4326_v13  ;;  %v4323_v43 = vpop.f32.mrb[54].mxu0 }
0x1a21   : > { %v9314_v56 = vpop.f32.mrb[55].mxu0 }
0x1a36   : > { %4338 = vrot.lane.b32.xlu0 %v12121_v29, %s10482_s16 }
0x1a3a   : > { %4457 = vrot.lane.b32.xlu0 %v12067_v34, %s10484_s1 }
0x1aad   : > { %v4328_v49 = vpop.xlane.xlu0 %4327 }
0x1aae   : > { %v4329_v59 = vsub.f32 %v4320_v3, %v4328_v49 }
0x1ab0   : > { %v4330_v63 = vmul.f32 1.442695, %v4329_v59 }
0x1ab1   : > { %v4339_v5 = vpop.permute.xlu0 %4338 }
0x1ab2   : > { %9837 = vpow2.f32 %v4330_v63  ;;  %v4344_v10 = vsel %vm2529_vm13, %v4339_v5, 0  ;;  %v12214_v63 = vpack.c.bf16 %v11729_v23, %v11729_v23  ;;  %v12231_v23 = vpack.c.bf16 %v11799_v18, %v11799_v18 }
0x1ab3   : > { %9316 = vmatpush3.bf16.msra.mxu1 %v4344_v10 }
0x1ab4   : > { %9321 = vmatprep.subr.bf16.mxu1 %v10479_v12 }
0x1ab5   : > { %v4458_v1 = vpop.permute.xlu0 %4457 }
0x1abc   : > { %v9838_v54 = vpop.eup %9837 }
0x1abd   : > { %v4332_v15 = vsel %vm2513_vm12, %v9838_v54, 0.0 }
0x1abe   : > { %4333 = vadd.xlane.f32.xlu1 %v4332_v15 }
0x1acf   : > { %4459 = vrot.lane.b32.xlu1 %v12076_v26, %s10484_s1 }
0x1b4b   : > { %v4334_v16 = vpop.xlane.xlu1 %4333 }
0x1b4c   : > { %9839 = vrcp.f32 %v4334_v16 }
0x1b4f   : > { %v4460_v57 = vpop.permute.xlu1 %4459 }
0x1b50   : > { %v4465_v20 = vsel %vm2466_vm11, %v4460_v57, 0 }
0x1b56   : > { %v9840_v34 = vpop.eup %9839 }
0x1b57   : > { %v4336_v44 = vmul.f32 %v9840_v34, %v9838_v54 }
0x1b59   : > { %v4337_v47 = vpack.c.bf16 %v4336_v44, %v4336_v44 }
0x1b5b   : > { %9318 = vmatmul.mubr.msk.bf16.vlgmr.msra.gmra.mrb[80].mxu1 %vm2513_vm12, %v4337_v47 }
0x1b5c   : > { %9322 = vmatpush3.bf16.xpose.msra.mxu1 %v4465_v20  ;;  %9323 = vmatprep.mubr.msk.bf16.mxu1 %vm10480_vm10, %v10479_v12 }
0x1b5d   : > { %4595 = vmatprep.subr.bf16.mxu1 %v11917_v53 }
0x1b63   : > { %9324 = vmatmul.mubr.msk.bf16.vlgmr.msra.gmra.mrb[84].mxu1 %vm2466_vm11, %v4458_v1 }
0x1b64   : > { %4596 = vmatpush1.bf16.msra.mxu1 %v11914_v35  ;;  %4627 = vmatprep.mubr.bf16.mxu1 %v10483_v42 }
0x1b65   : > { %4597 = vmatprep.subr.bf16.mxu1 %v11920_v4 }
0x1b68   : > { %4598 = vmatpush1.bf16.msra.mxu1 %v11925_v28 }
0x1b69   : > { %9339 = vmatprep.subr.bf16.mxu1 %v10479_v12 }
0x1c2e   : > { %v4380_v26 = vpop.f32.mrb[80].mxu1 }
0x1c2f   : > { %v4386_v9 = vpack.c.bf16 %v4380_v26, %v4380_v26  ;;  %v9319_v33 = vpop.f32.mrb[81].mxu1 }
0x1c30   : > { %v4383_v2 = vpop.f32.mrb[82].mxu1 }
0x1c31   : > { %v9320_v48 = vpop.f32.mrb[83].mxu1  ;;  %8689 = vmatmul.mubr.msk.bf16.vlgmr.msra.gmra.mrb[56].mxu0 %vm2466_vm11, %v4386_v9 }
0x1c32   : > { %9329 = vmatprep.mubr.msk.bf16.mxu0 %vm10480_vm10, %v10479_v12 }
0x1c36   : > { %v4501_v53 = vpop.f32.mrb[84].mxu1 }
0x1c37   : > { %v9325_v35 = vpop.f32.mrb[85].mxu1  ;;  %v4507_v37 = vsel %vm2513_vm12, %v4501_v53, -inf }
0x1c38   : > { %4508 = vmax.xlane.f32.xlu1 %v4507_v37  ;;  %v4504_v4 = vpop.f32.mrb[86].mxu1 }
0x1c39   : > { %v9326_v40 = vpop.f32.mrb[87].mxu1 }
0x1cc5   : > { %v4509_v28 = vpop.xlane.xlu1 %4508 }
0x1cc6   : > { %v4510_v39 = vsub.f32 %v4501_v53, %v4509_v28 }
0x1cc8   : > { %v4511_v62 = vmul.f32 1.442695, %v4510_v39 }
0x1cca   : > { %9841 = vpow2.f32 %v4511_v62 }
0x1cd4   : > { %v9842_v41 = vpop.eup %9841 }
0x1cd5   : > { %v4513_v32 = vsel %vm2513_vm12, %v9842_v41, 0.0 }
0x1cd6   : > { %4514 = vadd.xlane.f32.xlu0 %v4513_v32 }
0x1cec   : > { %4519 = vrot.lane.b32.xlu0 %v12121_v29, %s10484_s1 }
0x1cf0   : > { %4820 = vrot.lane.b32.xlu0 %v12204_v55, %s10481_s21 }
0x1d04   : > { %v4448_v61 = vpop.f32.mrb[56].mxu0 }
0x1d05   : > { %v4455_v3 = vadd.f32 %v4448_v61, %v12170_v17  ;;  %v4450_v14 = vpop.f32.mrb[57].mxu0 }
0x1d06   : > { %v4456_v13 = vadd.f32 %v4450_v14, %v12172_v52  ;;  %v4452_v43 = vpop.f32.mrb[58].mxu0  ;;  %v4648_v52 = vsel %vm2466_vm11, %v12214_v63, 0 }
0x1d07   : > { %v4453_v56 = vpop.f32.mrb[59].mxu0 }
0x1d63   : > { %v4515_v49 = vpop.xlane.xlu0 %4514 }
0x1d64   : > { %9843 = vrcp.f32 %v4515_v49 }
0x1d67   : > { %v4520_v59 = vpop.permute.xlu0 %4519 }
0x1d68   : > { %v4525_v29 = vsel %vm2529_vm13, %v4520_v59, 0 }
0x1d69   : > { %9328 = vmatpush3.bf16.msra.mxu0 %v4525_v29 }
0x1d6a   : > { %9333 = vmatprep.subr.bf16.mxu0 %v10479_v12 }
0x1d6e   : > { %v9844_v11 = vpop.eup %9843 }
0x1d6f   : > { %v4517_v5 = vmul.f32 %v9844_v11, %v9842_v41  ;;  %v4821_v41 = vpop.permute.xlu0 %4820 }
0x1d71   : > { %v4518_v17 = vpack.c.bf16 %v4517_v5, %v4517_v5 }
0x1d73   : > { %9330 = vmatmul.mubr.msk.bf16.vlgmr.msra.gmra.mrb[60].mxu0 %vm2513_vm12, %v4518_v17 }
0x1d74   : > { %9334 = vmatpush3.bf16.xpose.msra.mxu0 %v4648_v52  ;;  %9335 = vmatprep.mubr.msk.bf16.mxu0 %vm10480_vm10, %v10479_v12 }
0x1d75   : > { %4776 = vmatprep.subr.bf16.mxu0 %v11968_v50 }
0x1d7b   : > { %9336 = vmatmul.mubr.msk.bf16.vlgmr.msra.gmra.mrb[64].mxu0 %vm2466_vm11, %v12204_v55 }
0x1d7c   : > { %4777 = vmatpush1.bf16.msra.mxu0 %v11965_v8  ;;  %4808 = vmatprep.mubr.bf16.mxu0 %v10483_v42  ;;  %v4706_v8 = vsel %vm2529_vm13, %v12231_v23, 0 }
0x1d7d   : > { %4778 = vmatprep.subr.bf16.mxu0 %v11971_v25 }
0x1d80   : > { %4779 = vmatpush1.bf16.msra.mxu0 %v11976_v30 }
0x1d81   : > { %9351 = vmatprep.subr.bf16.mxu0 %v10479_v12 }
0x1e46   : > { %v4561_v10 = vpop.f32.mrb[60].mxu0 }
0x1e47   : > { %v4567_v54 = vpack.c.bf16 %v4561_v10, %v4561_v10  ;;  %v9331_v50 = vpop.f32.mrb[61].mxu0 }
0x1e48   : > { %v4564_v15 = vpop.f32.mrb[62].mxu0 }
0x1e49   : > { %v9332_v16 = vpop.f32.mrb[63].mxu0  ;;  %8696 = vmatmul.mubr.msk.bf16.vlgmr.msra.gmra.mrb[88].mxu1 %vm2466_vm11, %v4567_v54 }
0x1e4a   : > { %9340 = vmatpush3.bf16.msra.mxu1 %v4706_v8  ;;  %9341 = vmatprep.mubr.msk.bf16.mxu1 %vm10480_vm10, %v10479_v12 }
0x1e4b   : > { %9345 = vmatprep.subr.bf16.mxu1 %v10479_v12 }
0x1e4e   : > { %v4684_v25 = vpop.f32.mrb[64].mxu0 }
0x1e4f   : > { %v9337_v30 = vpop.f32.mrb[65].mxu0  ;;  %v4690_v18 = vsel %vm2513_vm12, %v4684_v25, -inf }
0x1e50   : > { %4691 = vmax.xlane.f32.xlu1 %v4690_v18  ;;  %v4687_v34 = vpop.f32.mrb[66].mxu0 }
0x1e51   : > { %v9338_v44 = vpop.f32.mrb[67].mxu0 }
0x1edd   : > { %v4692_v57 = vpop.xlane.xlu1 %4691 }
0x1ede   : > { %v4693_v47 = vsub.f32 %v4684_v25, %v4692_v57 }
0x1ee0   : > { %v4694_v20 = vmul.f32 1.442695, %v4693_v47 }
0x1ee2   : > { %9845 = vpow2.f32 %v4694_v20 }
0x1eec   : > { %v9846_v1 = vpop.eup %9845 }
0x1eed   : > { %v4696_v26 = vsel %vm2513_vm12, %v9846_v1, 0.0 }
0x1eee   : > { %4697 = vadd.xlane.f32.xlu1 %v4696_v26 }
0x1eff   : > { %4823 = vrot.lane.b32.xlu1 %v12214_v63, %s10481_s21 }
0x1f1c   : > { %v4629_v9 = vpop.f32.mrb[88].mxu1 }
0x1f1d   : > { %v4636_v33 = vadd.f32 %v4629_v9, %v4455_v3  ;;  %v4631_v2 = vpop.f32.mrb[89].mxu1 }
0x1f1e   : > { %v4637_v48 = vadd.f32 %v4631_v2, %v4456_v13  ;;  %v4633_v53 = vpop.f32.mrb[90].mxu1 }
0x1f1f   : > { %v4634_v35 = vpop.f32.mrb[91].mxu1 }
0x1f7b   : > { %v4698_v37 = vpop.xlane.xlu1 %4697 }
0x1f7c   : > { %9847 = vrcp.f32 %v4698_v37 }
0x1f7f   : > { %v4824_v28 = vpop.permute.xlu1 %4823 }
0x1f80   : > { %v4829_v62 = vsel %vm2466_vm11, %v4824_v28, 0 }
0x1f86   : > { %v9848_v4 = vpop.eup %9847 }
0x1f87   : > { %v4700_v40 = vmul.f32 %v9848_v4, %v9846_v1 }
0x1f89   : > { %v4701_v39 = vpack.c.bf16 %v4700_v40, %v4700_v40 }
0x1f8b   : > { %9342 = vmatmul.mubr.msk.bf16.vlgmr.msra.gmra.mrb[92].mxu1 %vm2513_vm12, %v4701_v39 }
0x1f8c   : > { %9346 = vmatpush3.bf16.xpose.msra.mxu1 %v4829_v62  ;;  %9347 = vmatprep.mubr.msk.bf16.mxu1 %vm10480_vm10, %v10479_v12 }
0x1f8d   : > { %4960 = vmatprep.subr.bf16.mxu1 %v12004_v21 }
0x1f93   : > { %9348 = vmatmul.mubr.msk.bf16.vlgmr.msra.gmra.mrb[96].mxu1 %vm2466_vm11, %v4821_v41 }
0x1f94   : > { %4961 = vmatpush1.bf16.msra.mxu1 %v12001_v19  ;;  %4992 = vmatprep.mubr.bf16.mxu1 %v10483_v42 }
0x1f95   : > { %4962 = vmatprep.subr.bf16.mxu1 %v12007_v7 }
0x1f98   : > { %4963 = vmatpush1.bf16.msra.mxu1 %v12012_v6 }
0x1f99   : > { %9363 = vmatprep.subr.bf16.mxu1 %v10479_v12 }
0x205e   : > { %v4742_v32 = vpop.f32.mrb[92].mxu1 }
0x205f   : > { %v4748_v61 = vpack.c.bf16 %v4742_v32, %v4742_v32  ;;  %v9343_v3 = vpop.f32.mrb[93].mxu1 }
0x2060   : > { %v4745_v14 = vpop.f32.mrb[94].mxu1 }
0x2061   : > { %v9344_v13 = vpop.f32.mrb[95].mxu1  ;;  %8703 = vmatmul.mubr.msk.bf16.vlgmr.msra.gmra.mrb[68].mxu0 %vm2466_vm11, %v4748_v61 }
0x2062   : > { %9353 = vmatprep.mubr.msk.bf16.mxu0 %vm10480_vm10, %v10479_v12 }
0x2066   : > { %v4865_v21 = vpop.f32.mrb[96].mxu1 }
0x2067   : > { %v9349_v19 = vpop.f32.mrb[97].mxu1  ;;  %v4871_v43 = vsel %vm2513_vm12, %v4865_v21, -inf }
0x2068   : > { %4872 = vmax.xlane.f32.xlu0 %v4871_v43  ;;  %v4868_v7 = vpop.f32.mrb[98].mxu1 }
0x2069   : > { %v9350_v56 = vpop.f32.mrb[99].mxu1 }
0x207e   : > { %4884 = vrot.lane.b32.xlu0 %v12231_v23, %s10481_s21 }
0x2082   : > { %5003 = vrot.lane.b32.xlu0 %v12204_v55, %s10482_s16 }
0x20f5   : > { %v4873_v6 = vpop.xlane.xlu0 %4872 }
0x20f6   : > { %v4874_v49 = vsub.f32 %v4865_v21, %v4873_v6 }
0x20f8   : > { %v4875_v59 = vmul.f32 1.442695, %v4874_v49 }
0x20f9   : > { %v4885_v29 = vpop.permute.xlu0 %4884 }
0x20fa   : > { %9849 = vpow2.f32 %v4875_v59  ;;  %v4890_v11 = vsel %vm2529_vm13, %v4885_v29, 0 }
0x20fb   : > { %9352 = vmatpush3.bf16.msra.mxu0 %v4890_v11 }
0x20fc   : > { %9357 = vmatprep.subr.bf16.mxu0 %v10479_v12 }
0x20fd   : > { %v5004_v57 = vpop.permute.xlu0 %5003 }
0x2104   : > { %v9850_v5 = vpop.eup %9849 }
0x2105   : > { %v4877_v17 = vsel %vm2513_vm12, %v9850_v5, 0.0 }
0x2106   : > { %4878 = vadd.xlane.f32.xlu1 %v4877_v17  ;;  %v5371_v17 = vld [vmem:[%s921_s20] sm:$0x3]  ;;  %s12888_s20 = scalar_lea.vmem [#allocation30], %s11187_s7  ;;  %s10485_s7 = smov [#allocation31]  }
0x2117   : > { %5005 = vrot.lane.b32.xlu1 %v12214_v63, %s10482_s16 }
0x2134   : > { %v4810_v52 = vpop.f32.mrb[68].mxu0 }
0x2135   : > { %v4817_v10 = vadd.f32 %v4810_v52, %v4636_v33  ;;  %v4812_v54 = vpop.f32.mrb[69].mxu0 }
0x2136   : > { %v4818_v50 = vadd.f32 %v4812_v54, %v4637_v48  ;;  %v4814_v15 = vpop.f32.mrb[70].mxu0  ;;  %v5380_v54 = vrot.slane %v5371_v17, %v11711_v45 }
0x2137   : > { %v4815_v16 = vpop.f32.mrb[71].mxu0 }
0x2138   : > { %v5384_v15 = vadd.f32 %v5380_v54, %v12143_v31 }
0x2193   : > { %v4879_v8 = vpop.xlane.xlu1 %4878 }
0x2194   : > { %9851 = vrcp.f32 %v4879_v8 }
0x2197   : > { %v5006_v18 = vpop.permute.xlu1 %5005 }
0x2198   : > { %v5011_v44 = vsel %vm2466_vm11, %v5006_v18, 0 }
0x219e   : > { %v9852_v25 = vpop.eup %9851 }
0x219f   : > { %v4881_v30 = vmul.f32 %v9852_v25, %v9850_v5  ;;  %v9870_v25 = vld [vmem:[#allocation31 + $0x8] sm:$0xff] }
0x21a1   : > { %v4882_v34 = vpack.c.bf16 %v4881_v30, %v4881_v30  ;;  %v5388_v30 = vadd.f32 %v9870_v25, %v5384_v15 }
0x21a3   : > { %9354 = vmatmul.mubr.msk.bf16.vlgmr.msra.gmra.mrb[72].mxu0 %vm2513_vm12, %v4882_v34 }
0x21a4   : > { %9358 = vmatpush3.bf16.xpose.msra.mxu0 %v5011_v44  ;;  %9359 = vmatprep.mubr.msk.bf16.mxu0 %vm10480_vm10, %v10479_v12 }
0x21a5   : > { %5141 = vmatprep.subr.bf16.mxu0 %v12040_v24 }
0x21ab   : > { %9360 = vmatmul.mubr.msk.bf16.vlgmr.msra.gmra.mrb[76].mxu0 %vm2466_vm11, %v5004_v57 }
0x21ac   : > { %5142 = vmatpush1.bf16.msra.mxu0 %v12037_v22  ;;  %5173 = vmatprep.mubr.bf16.mxu0 %v10483_v42 }
0x21ad   : > { %5143 = vmatprep.subr.bf16.mxu0 %v12043_v0 }
0x21b0   : > { %5144 = vmatpush1.bf16.msra.mxu0 %v12048_v58 }
0x21b1   : > { %9375 = vmatprep.subr.bf16.mxu0 %v10479_v12 }
0x2276   : > { %v4926_v47 = vpop.f32.mrb[72].mxu0 }
0x2277   : > { %v4932_v20 = vpack.c.bf16 %v4926_v47, %v4926_v47  ;;  %v9355_v1 = vpop.f32.mrb[73].mxu0 }
0x2278   : > { %v4929_v26 = vpop.f32.mrb[74].mxu0 }
0x2279   : > { %v9356_v9 = vpop.f32.mrb[75].mxu0  ;;  %8710 = vmatmul.mubr.msk.bf16.vlgmr.msra.gmra.mrb[100].mxu1 %vm2466_vm11, %v4932_v20 }
0x227a   : > { %9365 = vmatprep.mubr.msk.bf16.mxu1 %vm10480_vm10, %v10479_v12 }
0x227e   : > { %v5047_v24 = vpop.f32.mrb[76].mxu0 }
0x227f   : > { %v9361_v22 = vpop.f32.mrb[77].mxu0  ;;  %v5053_v33 = vsel %vm2513_vm12, %v5047_v24, -inf }
0x2280   : > { %5054 = vmax.xlane.f32.xlu1 %v5053_v33  ;;  %v5050_v0 = vpop.f32.mrb[78].mxu0 }
0x2281   : > { %v9362_v2 = vpop.f32.mrb[79].mxu0 }
0x2291   : > { %5186 = vrot.lane.b32.xlu1 %v12214_v63, %s10484_s1 }
0x2295   : > { %5184 = vrot.lane.b32.xlu1 %v12204_v55, %s10484_s1 }
0x230d   : > { %v5055_v58 = vpop.xlane.xlu1 %5054 }
0x230e   : > { %v5056_v48 = vsub.f32 %v5047_v24, %v5055_v58 }
0x2310   : > { %v5057_v53 = vmul.f32 1.442695, %v5056_v48 }
0x2311   : > { %v5187_v14 = vpop.permute.xlu1 %5186 }
0x2312   : > { %9853 = vpow2.f32 %v5057_v53  ;;  %v5192_v21 = vsel %vm2466_vm11, %v5187_v14, 0 }
0x2315   : > { %v5185_v19 = vpop.permute.xlu1 %5184 }
0x231c   : > { %v9854_v35 = vpop.eup %9853 }
0x231d   : > { %v5059_v37 = vsel %vm2513_vm12, %v9854_v35, 0.0 }
0x231e   : > { %5060 = vadd.xlane.f32.xlu0 %v5059_v37 }
0x2334   : > { %5065 = vrot.lane.b32.xlu0 %v12231_v23, %s10482_s16 }
0x234c   : > { %v4994_v4 = vpop.f32.mrb[100].mxu1 }
0x234d   : > { %v5001_v40 = vadd.f32 %v4994_v4, %v4817_v10  ;;  %v4996_v28 = vpop.f32.mrb[101].mxu1 }
0x234e   : > { %v5002_v39 = vadd.f32 %v4996_v28, %v4818_v50  ;;  %v4998_v62 = vpop.f32.mrb[102].mxu1 }
0x234f   : > { %v4999_v63 = vpop.f32.mrb[103].mxu1 }
0x23ab   : > { %v5061_v41 = vpop.xlane.xlu0 %5060 }
0x23ac   : > { %9855 = vrcp.f32 %v5061_v41 }
0x23af   : > { %v5066_v55 = vpop.permute.xlu0 %5065 }
0x23b0   : > { %v5071_v32 = vsel %vm2529_vm13, %v5066_v55, 0 }
0x23b1   : > { %9364 = vmatpush3.bf16.msra.mxu1 %v5071_v32  ;;  %v9871_v32 = vld [vmem:[#allocation31 + $0x10] sm:$0xff] }
0x23b2   : > { %9369 = vmatprep.subr.bf16.mxu1 %v10479_v12 }
0x23b6   : > { %v9856_v61 = vpop.eup %9855 }
0x23b7   : > { %v5063_v3 = vmul.f32 %v9856_v61, %v9854_v35 }
0x23b9   : > { %v5064_v13 = vpack.c.bf16 %v5063_v3, %v5063_v3  ;;  %v9872_v3 = vld [vmem:[#allocation31 + $0x18] sm:$0xff] }
0x23bb   : > { %9366 = vmatmul.mubr.msk.bf16.vlgmr.msra.gmra.mrb[104].mxu1 %vm2513_vm12, %v5064_v13 }
0x23bc   : > { %9370 = vmatpush3.bf16.xpose.msra.mxu1 %v5192_v21  ;;  %9371 = vmatprep.mubr.msk.bf16.mxu1 %vm10480_vm10, %v10479_v12 }
0x23bd   : > { %5322 = vmatprep.subr.bf16.mxu1 %v12084_v27 }
0x23c3   : > { %9372 = vmatmul.mubr.msk.bf16.vlgmr.msra.gmra.mrb[108].mxu1 %vm2466_vm11, %v5185_v19 }
0x23c4   : > { %5323 = vmatpush1.bf16.msra.mxu1 %v12081_v60  ;;  %5354 = vmatprep.mubr.bf16.mxu1 %v10483_v42 }
0x23c5   : > { %5324 = vmatprep.subr.bf16.mxu1 %v12087_v36 }
0x23c8   : > { %5325 = vmatpush1.bf16.msra.mxu1 %v12096_v51 }
0x248e   : > { %v5107_v43 = vpop.f32.mrb[104].mxu1 }
0x248f   : > { %v5113_v7 = vpack.c.bf16 %v5107_v43, %v5107_v43  ;;  %v9367_v56 = vpop.f32.mrb[105].mxu1 }
0x2490   : > { %v5110_v6 = vpop.f32.mrb[106].mxu1  ;;  %v5458_v56 = vld [vmem:[%s11199_s0] sm:$0xff] }
0x2491   : > { %v9368_v49 = vpop.f32.mrb[107].mxu1  ;;  %8717 = vmatmul.mubr.msk.bf16.vlgmr.msra.gmra.mrb[80].mxu0 %vm2466_vm11, %v5113_v7  ;;  %v5462_v7 = vld [vmem:[%s11199_s0 + $0x200] sm:$0xff] }
0x2492   : > { %9377 = vmatprep.mubr.msk.bf16.mxu0 %vm10480_vm10, %v10479_v12  ;;  %v5376_v12 = vrot.slane %v5371_v17, %v11706_v38  ;;  %v5474_v6 = vunpack.c.l.s8.bf16 %v5462_v7  ;;  %v5466_v49 = vunpack.c.l.s8.bf16 %v5458_v56 }
0x2494   : > { %v5383_v50 = vadd.f32 %v5376_v12, %v12140_v46  ;;  %8837 = vmatprep.subr.bf16.mxu1 %v5474_v6 }
0x2496   : > { %v5228_v27 = vpop.f32.mrb[108].mxu1 }
0x2497   : > { %v9373_v59 = vpop.f32.mrb[109].mxu1  ;;  %v5234_v60 = vsel %vm2513_vm12, %v5228_v27, -inf }
0x2498   : > { %5235 = vmax.xlane.f32.xlu0 %v5234_v60  ;;  %v5231_v29 = vpop.f32.mrb[110].mxu1  ;;  %v5463_v59 = vld [vmem:[%s11199_s0 + $0x280] sm:$0xff]  ;;  %v5467_v60 = vunpack.c.h.s8.bf16 %v5458_v56 }
0x2499   : > { %v9374_v36 = vpop.f32.mrb[111].mxu1  ;;  %v5476_v29 = vunpack.c.l.s8.bf16 %v5463_v59 }
0x24ae   : > { %5246 = vrot.lane.b32.xlu0 %v12231_v23, %s10484_s1  ;;  %v9869_v23 = vld [vmem:[#allocation31] sm:$0xff] }
0x24af   : > { %v5387_v8 = vadd.f32 %v9869_v23, %v5383_v50  ;;  %v5477_v50 = vunpack.c.h.s8.bf16 %v5463_v59 }
0x24b1   : > { %v5393_v34 = vadd.f32 %v5388_v30, %v5387_v8 }
0x2525   : > { %v5236_v51 = vpop.xlane.xlu0 %5235 }
0x2526   : > { %v5237_v11 = vsub.f32 %v5228_v27, %v5236_v51  ;;  %v5475_v27 = vunpack.c.h.s8.bf16 %v5462_v7 }
0x2528   : > { %v5238_v5 = vmul.f32 1.442695, %v5237_v11 }
0x2529   : > { %v5247_v52 = vpop.permute.xlu0 %5246 }
0x252a   : > { %9857 = vpow2.f32 %v5238_v5  ;;  %v5252_v10 = vsel %vm2529_vm13, %v5247_v52, 0 }
0x252b   : > { %9376 = vmatpush3.bf16.msra.mxu0 %v5252_v10 }
0x2534   : > { %v9858_v16 = vpop.eup %9857 }
0x2535   : > { %v5240_v18 = vsel %vm2513_vm12, %v9858_v16, 0.0 }
0x2536   : > { %5241 = vadd.xlane.f32.xlu1 %v5240_v18 }
0x253a   : > { %5394 = vadd.xlane.f32.xlu1 %v5393_v34  ;;  %v5465_v34 = vld [vmem:[%s11199_s0 + $0x380] sm:$0xff] }
0x2564   : > { %v5175_v44 = vpop.f32.mrb[80].mxu0 }
0x2565   : > { %v5182_v57 = vadd.f32 %v5175_v44, %v5001_v40  ;;  %v5177_v47 = vpop.f32.mrb[81].mxu0  ;;  %v5480_v44 = vunpack.c.l.s8.bf16 %v5465_v34 }
0x2566   : > { %v5183_v20 = vadd.f32 %v5177_v47, %v5002_v39  ;;  %v5179_v1 = vpop.f32.mrb[82].mxu0 }
0x2567   : > { %v5180_v26 = vpop.f32.mrb[83].mxu0 }
0x2568   : > { %v5572_v26 = vld [vmem:[%s11199_s0 + $0x208] sm:$0xff] }
0x2569   : > { %v5585_v6 = vunpack.c.h.s8.bf16 %v5572_v26 }
0x25c3   : > { %v5242_v9 = vpop.xlane.xlu1 %5241 }
0x25c4   : > { %9859 = vrcp.f32 %v5242_v9  ;;  %v5584_v9 = vunpack.c.l.s8.bf16 %v5572_v26 }
0x25c7   : > { %v5395_v48 = vpop.xlane.xlu1 %5394 }
0x25c8   : > { %v5400_v53 = vmul.f32 0.00390625, %v5395_v48  ;;  %v5392_v48 = vld [vmem:[%s939_s27] sm:$0x3]  ;;  %s8072_s27 = sshll.u32 %s10485_s7, 4  ;;  %s8073_s27 = int_to_ptr.vmem [resolvable:$true] %s8072_s27 }
0x25c9   : > { %p10356_p13 = scmp.lt.s32.totalorder %s8073_s27, %s8073_s27 }
0x25ca   : > { %v12318_v63 = vsub.f32 %v5387_v8, %v5400_v53  ;;  %v12320_v41 = vsub.f32 %v5388_v30, %v5400_v53  ;;  %v5460_v8 = vld [vmem:[%s11199_s0 + $0x100] sm:$0xff] }
0x25cb   : > { %v5470_v25 = vunpack.c.l.s8.bf16 %v5460_v8  ;;  %v5471_v18 = vunpack.c.h.s8.bf16 %v5460_v8  ;;  %v5768_v8 = vld [vmem:[%s11199_s0 + $0x210] sm:$0xff] }
0x25cc   : > { %v5406_v21 = vmul.f32 %v12318_v63, %v12318_v63  ;;  %v5407_v19 = vmul.f32 %v12320_v41, %v12320_v41 }
0x25ce   : > { %v9860_v46 = vpop.eup %9859  ;;  %v5410_v43 = vadd.f32 %v5407_v19, %v5406_v21 }
0x25cf   : > { %v5244_v31 = vmul.f32 %v9860_v46, %v9858_v16  ;;  %v5464_v16 = vld [vmem:[%s11199_s0 + $0x300] sm:$0xff] }
0x25d0   : > { %v5478_v23 = vunpack.c.l.s8.bf16 %v5464_v16  ;;  %v5479_v30 = vunpack.c.h.s8.bf16 %v5464_v16 }
0x25d1   : > { %v5245_v24 = vpack.c.bf16 %v5244_v31, %v5244_v31 }
0x25d3   : > { %9378 = vmatmul.mubr.msk.bf16.vlgmr.msra.gmra.mrb[84].mxu0 %vm2513_vm12, %v5245_v24 }
0x25d4   : > { %5710 = vmatprep.mubr.bf16.mxu0 %v10483_v42 }
0x26a6   : > { %v5288_v22 = vpop.f32.mrb[84].mxu0 }
0x26a7   : > { %v5294_v33 = vpack.c.bf16 %v5288_v22, %v5288_v22  ;;  %v9379_v0 = vpop.f32.mrb[85].mxu0 }
0x26a8   : > { %v5291_v2 = vpop.f32.mrb[86].mxu0 }
0x26a9   : > { %v9380_v58 = vpop.f32.mrb[87].mxu0  ;;  %8724 = vmatmul.mubr.msk.bf16.vlgmr.msra.gmra.mrb[112].mxu1 %vm2466_vm11, %v5294_v33 }
0x26aa   : > { %8838 = vmatpush3.bf16.msra.mxu1 %v5466_v49  ;;  %v5391_v58 = vld [vmem:[%s930_s19] sm:$0x3]  ;;  %v5573_v49 = vld [vmem:[%s11199_s0 + $0x288] sm:$0xff]  ;;  %s12889_s19 = sld [smem:[#allocation44_spill]] }
0x26ab   : > { %8839 = vmatprep.subr.bf16.mxu1 %v5475_v27  ;;  %v5430_v53 = vrot.slane %v5391_v58, %v11706_v38  ;;  %v5586_v59 = vunpack.c.l.s8.bf16 %v5573_v49 }
0x26ae   : > { %8840 = vmatpush3.bf16.msra.mxu1 %v5467_v60  ;;  %v5569_v60 = vld [vmem:[%s11199_s0 + $0x88] sm:$0xff] }
0x26af   : > { %8841 = vmatprep.subr.bf16.mxu1 %v5476_v29  ;;  %v5578_v29 = vunpack.c.l.s8.bf16 %v5569_v60 }
0x26b0   : > { %p9527_p11 = scmp.eq.s32.totalorder %s12889_s19, 5 }
0x277c   : > { %v5356_v35 = vpop.f32.mrb[112].mxu1 }
0x277d   : > { %v5363_v37 = vadd.f32 %v5356_v35, %v5182_v57  ;;  %v5358_v4 = vpop.f32.mrb[113].mxu1  ;;  %v5461_v57 = vld [vmem:[%s11199_s0 + $0x180] sm:$0xff]  ;;  %v5434_v35 = vrot.slane %v5391_v58, %v11711_v45 }
0x277e   : > { %v5364_v40 = vadd.f32 %v5358_v4, %v5183_v20  ;;  %v5360_v28 = vpop.f32.mrb[114].mxu1  ;;  %v5472_v47 = vunpack.c.l.s8.bf16 %v5461_v57  ;;  %v5481_v20 = vunpack.c.h.s8.bf16 %v5465_v34  ;;  %v5473_v1 = vunpack.c.h.s8.bf16 %v5461_v57  ;;  %v5769_v57 = vld [vmem:[%s11199_s0 + $0x290] sm:$0xff] }
0x277f   : > { %v5385_v39 = vadd.f32 %v5376_v12, %v5363_v37  ;;  %v5361_v62 = vpop.f32.mrb[115].mxu1  ;;  %v5459_v12 = vld [vmem:[%s11199_s0 + $0x80] sm:$0xff]  ;;  %v5445_v28 = vrot.slane %v5392_v48, %v11706_v38 }
0x2780   : > { %v5386_v55 = vadd.f32 %v5380_v54, %v5364_v40  ;;  %v5468_v54 = vunpack.c.l.s8.bf16 %v5459_v12  ;;  %v5469_v15 = vunpack.c.h.s8.bf16 %v5459_v12  ;;  %v5575_v12 = vld [vmem:[%s11199_s0 + $0x388] sm:$0xff] }
0x2781   : > { %v5389_v61 = vadd.f32 %v9871_v32, %v5385_v39  ;;  %v5449_v39 = vrot.slane %v5392_v48, %v11711_v45 }
0x2782   : > { %v5390_v14 = vadd.f32 %v9872_v3, %v5386_v55  ;;  %8842 = vmatpush3.bf16.msra.mxu1 %v5468_v54 }
0x2783   : > { %8843 = vmatprep.subr.bf16.mxu1 %v5477_v50  ;;  %v5590_v50 = vunpack.c.l.s8.bf16 %v5575_v12 }
0x2784   : > { %v5396_v13 = vadd.f32 %v5390_v14, %v5389_v61 }
0x2786   : > { %5397 = vadd.xlane.f32.xlu1 %v5396_v13  ;;  %8844 = vmatpush3.bf16.msra.mxu1 %v5469_v15  ;;  %v5568_v13 = vld [vmem:[%s11199_s0 + $0x8] sm:$0xff] }
0x2787   : > { %8845 = vmatprep.subr.bf16.mxu1 %v5478_v23  ;;  %v5576_v56 = vunpack.c.l.s8.bf16 %v5568_v13  ;;  %v5577_v27 = vunpack.c.h.s8.bf16 %v5568_v13  ;;  %v5571_v15 = vld [vmem:[%s11199_s0 + $0x188] sm:$0xff]  ;;  %v5591_v23 = vunpack.c.h.s8.bf16 %v5575_v12 }
0x2788   : > { %v5582_v16 = vunpack.c.l.s8.bf16 %v5571_v15 }
0x278a   : > { %5411 = vadd.xlane.f32.xlu1 %v5410_v43  ;;  %8846 = vmatpush3.bf16.msra.mxu1 %v5470_v25  ;;  %v5583_v25 = vunpack.c.h.s8.bf16 %v5571_v15 }
0x278b   : > { %8847 = vmatprep.subr.bf16.mxu1 %v5479_v30  ;;  %v5780_v30 = vunpack.c.l.s8.bf16 %v5768_v8 }
0x278e   : > { %8848 = vmatpush3.bf16.msra.mxu1 %v5471_v18  ;;  %v5764_v18 = vld [vmem:[%s11199_s0 + $0x10] sm:$0xff] }
0x278f   : > { %8849 = vmatprep.subr.bf16.mxu1 %v5480_v44  ;;  %v5772_v34 = vunpack.c.l.s8.bf16 %v5764_v18  ;;  %v5781_v44 = vunpack.c.h.s8.bf16 %v5768_v8 }
0x2792   : > { %8850 = vmatpush3.bf16.msra.mxu1 %v5472_v47  ;;  %v5773_v47 = vunpack.c.h.s8.bf16 %v5764_v18 }
0x2793   : > { %8851 = vmatprep.subr.bf16.mxu1 %v5481_v20  ;;  %v5782_v20 = vunpack.c.l.s8.bf16 %v5769_v57 }
0x2796   : > { %8852 = vmatpush3.bf16.msra.mxu1 %v5473_v1  ;;  %v5765_v1 = vld [vmem:[%s11199_s0 + $0x90] sm:$0xff] }
0x2797   : > { %8859 = vmatprep.subr.bf16.mxu1 %v5584_v9  ;;  %v5774_v26 = vunpack.c.l.s8.bf16 %v5765_v1  ;;  %v5783_v9 = vunpack.c.h.s8.bf16 %v5769_v57 }
0x2813   : > { %v5398_v36 = vpop.xlane.xlu1 %5397 }
0x2814   : > { %v5401_v51 = vmul.f32 0.00390625, %v5398_v36  ;;  %v5587_v36 = vunpack.c.h.s8.bf16 %v5573_v49 }
0x2816   : > { %v5404_v11 = vsub.f32 %v5389_v61, %v5401_v51  ;;  %v5405_v5 = vsub.f32 %v5390_v14, %v5401_v51  ;;  %v5574_v51 = vld [vmem:[%s11199_s0 + $0x308] sm:$0xff] }
0x2817   : > { %v5412_v46 = vpop.xlane.xlu1 %5411 }
0x2818   : > { %v5408_v17 = vmul.f32 %v5404_v11, %v5404_v11  ;;  %v5409_v52 = vmul.f32 %v5405_v5, %v5405_v5  ;;  %v5416_v31 = vmul.f32 0.00390625, %v5412_v46  ;;  %v5770_v46 = vld [vmem:[%s11199_s0 + $0x310] sm:$0xff] }
0x281a   : > { %v5413_v10 = vadd.f32 %v5409_v52, %v5408_v17  ;;  %v5418_v24 = vadd.f32 1e-05, %v5416_v31  ;;  %v5570_v17 = vld [vmem:[%s11199_s0 + $0x108] sm:$0xff]  ;;  %v5775_v31 = vunpack.c.h.s8.bf16 %v5765_v1 }
0x281b   : > { %v5580_v52 = vunpack.c.l.s8.bf16 %v5570_v17  ;;  %v5581_v54 = vunpack.c.h.s8.bf16 %v5570_v17 }
0x281c   : > { %5414 = vadd.xlane.f32.xlu1 %v5413_v10  ;;  %9861 = vrsqrt.f32 %v5418_v24  ;;  %v5589_v10 = vunpack.c.h.s8.bf16 %v5574_v51  ;;  %v5784_v24 = vunpack.c.l.s8.bf16 %v5770_v46 }
0x2826   : > { %v9862_v2 = vpop.eup %9861 }
0x2827   : > { %v5422_v37 = vmul.f32 %v9862_v2, %v12318_v63  ;;  %v5423_v4 = vmul.f32 %v9862_v2, %v12320_v41  ;;  %v5771_v2 = vld [vmem:[%s11199_s0 + $0x390] sm:$0xff] }
0x2828   : > { %v5786_v48 = vunpack.c.l.s8.bf16 %v5771_v2 }
0x2829   : > { %v5437_v62 = vmul.f32 %v5430_v53, %v5422_v37  ;;  %v5438_v55 = vmul.f32 %v5434_v35, %v5423_v4  ;;  %v5787_v37 = vunpack.c.h.s8.bf16 %v5771_v2  ;;  %v5925_v4 = vld [vmem:[%s11199_s0 + $0x218] sm:$0xff] }
0x282b   : > { %v12346_v21 = vadd.f32 %v5445_v28, %v5437_v62  ;;  %v12348_v19 = vadd.f32 %v5449_v39, %v5438_v55  ;;  %v5938_v55 = vunpack.c.h.s8.bf16 %v5925_v4 }
0x28a9   : > { %v5415_v22 = vpop.xlane.xlu1 %5414 }
0x28aa   : > { %v5417_v33 = vmul.f32 0.00390625, %v5415_v22  ;;  %v5766_v22 = vld [vmem:[%s11199_s0 + $0x110] sm:$0xff] }
0x28ab   : > { %v5777_v58 = vunpack.c.h.s8.bf16 %v5766_v22 }
0x28ac   : > { %v5419_v0 = vadd.f32 1e-05, %v5417_v33  ;;  %v5776_v33 = vunpack.c.l.s8.bf16 %v5766_v22 }
0x28ae   : > { %9863 = vrsqrt.f32 %v5419_v0  ;;  %v5785_v0 = vunpack.c.h.s8.bf16 %v5770_v46 }
0x28b8   : > { %v9864_v40 = vpop.eup %9863 }
0x28b9   : > { %v5424_v32 = vmul.f32 %v9864_v40, %v5404_v11  ;;  %v5425_v61 = vmul.f32 %v9864_v40, %v5405_v5  ;;  %v5579_v11 = vunpack.c.h.s8.bf16 %v5569_v60  ;;  %v5588_v5 = vunpack.c.l.s8.bf16 %v5574_v51 }
0x28bb   : > { %v5439_v3 = vmul.f32 %v5430_v53, %v5424_v32  ;;  %v5440_v14 = vmul.f32 %v5434_v35, %v5425_v61  ;;  %v5767_v53 = vld [vmem:[%s11199_s0 + $0x190] sm:$0xff]  ;;  %v5926_v32 = vld [vmem:[%s11199_s0 + $0x298] sm:$0xff] }
0x28bc   : > { %v5778_v35 = vunpack.c.l.s8.bf16 %v5767_v53  ;;  %v5779_v40 = vunpack.c.h.s8.bf16 %v5767_v53 }
0x28bd   : > { %v12350_v63 = vadd.f32 %v5445_v28, %v5439_v3  ;;  %v12352_v41 = vadd.f32 %v5449_v39, %v5440_v14  ;;  %v5937_v28 = vunpack.c.l.s8.bf16 %v5925_v4  ;;  %v5921_v39 = vld [vmem:[%s11199_s0 + $0x18] sm:$0xff]  ;;  %v5939_v3 = vunpack.c.l.s8.bf16 %v5926_v32 }
0x28be   : > { %v5929_v62 = vunpack.c.l.s8.bf16 %v5921_v39  ;;  %v5930_v61 = vunpack.c.h.s8.bf16 %v5921_v39  ;;  %v5922_v14 = vld [vmem:[%s11199_s0 + $0x98] sm:$0xff] }
0x28bf   : > { %v12356_v43 = vpack.c.bf16 %v12350_v63, %v12346_v21  ;;  %v12360_v7 = vpack.c.bf16 %v12352_v41, %v12348_v19  ;;  %v5931_v13 = vunpack.c.l.s8.bf16 %v5922_v14  ;;  %v5932_v49 = vunpack.c.h.s8.bf16 %v5922_v14 }
0x28c1   : > { %5514 = vmatprep.mubr.bf16.mxu1 %v12360_v7 }
0x28c2   : > { %5515 = vmatmul.mubr.bf16.vlgmr.msra.gmra.mrb[116].mxu1 %v12356_v43 }
0x28c3   : > { %8860 = vmatpush3.bf16.msra.mxu1 %v5576_v56  ;;  %5624 = vmatprep.mubr.bf16.mxu1 %v12360_v7  ;;  %v5940_v56 = vunpack.c.h.s8.bf16 %v5926_v32  ;;  %v6081_v32 = vld [vmem:[%s11199_s0 + $0x1a0] sm:$0xff] }
0x28c4   : > { %8861 = vmatprep.subr.bf16.mxu1 %v5585_v6  ;;  %v5927_v6 = vld [vmem:[%s11199_s0 + $0x318] sm:$0xff]  ;;  %v6092_v14 = vunpack.c.l.s8.bf16 %v6081_v32 }
0x28c7   : > { %8862 = vmatpush3.bf16.msra.mxu1 %v5577_v27  ;;  %v5941_v27 = vunpack.c.l.s8.bf16 %v5927_v6 }
0x28c8   : > { %8863 = vmatprep.subr.bf16.mxu1 %v5586_v59  ;;  %v5923_v59 = vld [vmem:[%s11199_s0 + $0x118] sm:$0xff] }
0x28c9   : > { %v5933_v60 = vunpack.c.l.s8.bf16 %v5923_v59  ;;  %v5934_v51 = vunpack.c.h.s8.bf16 %v5923_v59 }
0x28cb   : > { %8864 = vmatpush3.bf16.msra.mxu1 %v5578_v29  ;;  %v5942_v29 = vunpack.c.h.s8.bf16 %v5927_v6 }
0x28cc   : > { %8865 = vmatprep.subr.bf16.mxu1 %v5587_v36  ;;  %v5928_v36 = vld [vmem:[%s11199_s0 + $0x398] sm:$0xff] }
0x28cf   : > { %8866 = vmatpush3.bf16.msra.mxu1 %v5579_v11  ;;  %v5943_v11 = vunpack.c.l.s8.bf16 %v5928_v36 }
0x28d0   : > { %8867 = vmatprep.subr.bf16.mxu1 %v5588_v5  ;;  %v5924_v5 = vld [vmem:[%s11199_s0 + $0x198] sm:$0xff] }
0x28d1   : > { %v5935_v17 = vunpack.c.l.s8.bf16 %v5924_v5  ;;  %v5936_v12 = vunpack.c.h.s8.bf16 %v5924_v5 }
0x28d3   : > { %8868 = vmatpush3.bf16.msra.mxu1 %v5580_v52  ;;  %v5944_v52 = vunpack.c.h.s8.bf16 %v5928_v36  ;;  %v6235_v36 = vld [vmem:[%s11199_s0 + $0x28] sm:$0xff] }
0x28d4   : > { %8869 = vmatprep.subr.bf16.mxu1 %v5589_v10  ;;  %v6082_v10 = vld [vmem:[%s11199_s0 + $0x220] sm:$0xff]  ;;  %v6243_v5 = vunpack.c.l.s8.bf16 %v6235_v36 }
0x28d7   : > { %8870 = vmatpush3.bf16.msra.mxu1 %v5581_v54  ;;  %v6094_v54 = vunpack.c.l.s8.bf16 %v6082_v10 }
0x28d8   : > { %8871 = vmatprep.subr.bf16.mxu1 %v5590_v50  ;;  %v6078_v50 = vld [vmem:[%s11199_s0 + $0x20] sm:$0xff] }
0x28d9   : > { %v6086_v15 = vunpack.c.l.s8.bf16 %v6078_v50 }
0x28db   : > { %8872 = vmatpush3.bf16.msra.mxu1 %v5582_v16  ;;  %v5654_v16 = vld [vmem:[%s11215_s9 + $0x48] sm:$0xff] }
0x28dc   : > { %8873 = vmatprep.subr.bf16.mxu1 %v5591_v23  ;;  %v6095_v23 = vunpack.c.h.s8.bf16 %v6082_v10  ;;  %v5662_v8 = vunpack.c.l.s8.bf16 %v5654_v16 }
0x28de   : > { %5678 = vmatprep.subr.bf16.mxu0 %v5662_v8  ;;  %v6241_v8 = vld [vmem:[%s11199_s0 + $0x328] sm:$0xff] }
0x28df   : > { %8874 = vmatpush3.bf16.msra.mxu1 %v5583_v25  ;;  %v5653_v25 = vld [vmem:[%s11215_s9 + $0x40] sm:$0xff] }
0x28e0   : > { %8881 = vmatprep.subr.bf16.mxu1 %v5780_v30  ;;  %v6083_v30 = vld [vmem:[%s11199_s0 + $0x2a0] sm:$0xff]  ;;  %v5661_v18 = vunpack.c.l.s8.bf16 %v5653_v25 }
0x28e1   : > { %v6096_v57 = vunpack.c.l.s8.bf16 %v6083_v30 }
0x28e2   : > { %5625 = vmatmul.mubr.bf16.vlgmr.msra.gmra.mrb[120].mxu1 %v12356_v43  ;;  %5679 = vmatpush1.bf16.msra.mxu0 %v5661_v18  ;;  %v6237_v18 = vld [vmem:[%s11199_s0 + $0x128] sm:$0xff] }
0x28e3   : > { %8882 = vmatpush3.bf16.msra.mxu1 %v5772_v34  ;;  %5820 = vmatprep.mubr.bf16.mxu1 %v12360_v7  ;;  %v6087_v34 = vunpack.c.h.s8.bf16 %v6078_v50 }
0x28e4   : > { %8883 = vmatprep.subr.bf16.mxu1 %v5781_v44  ;;  %v5664_v44 = vunpack.c.h.s8.bf16 %v5654_v16 }
0x28e6   : > { %5680 = vmatprep.subr.bf16.mxu0 %v5664_v44  ;;  %v6256_v44 = vunpack.c.h.s8.bf16 %v6241_v8 }
0x28e7   : > { %8884 = vmatpush3.bf16.msra.mxu1 %v5773_v47  ;;  %v6079_v47 = vld [vmem:[%s11199_s0 + $0xa0] sm:$0xff] }
0x28e8   : > { %8885 = vmatprep.subr.bf16.mxu1 %v5782_v20  ;;  %v5663_v20 = vunpack.c.h.s8.bf16 %v5653_v25  ;;  %v6088_v1 = vunpack.c.l.s8.bf16 %v6079_v47 }
0x28ea   : > { %5681 = vmatpush1.bf16.msra.mxu0 %v5663_v20 }
0x28eb   : > { %8886 = vmatpush3.bf16.msra.mxu1 %v5774_v26  ;;  %v5656_v26 = vld [vmem:[%s11215_s9 + $0x58] sm:$0xff] }
0x28ec   : > { %8887 = vmatprep.subr.bf16.mxu1 %v5783_v9  ;;  %v6097_v9 = vunpack.c.h.s8.bf16 %v6083_v30  ;;  %v5666_v46 = vunpack.c.l.s8.bf16 %v5656_v26  ;;  %v6255_v30 = vunpack.c.l.s8.bf16 %v6241_v8  ;;  %v6556_v8 = vld [vmem:[%s11199_s0 + $0x3b8] sm:$0xff] }
0x28ee   : > { %5682 = vmatprep.subr.bf16.mxu0 %v5666_v46  ;;  %v6396_v46 = vld [vmem:[%s11199_s0 + $0x230] sm:$0xff] }
0x28ef   : > { %8888 = vmatpush3.bf16.msra.mxu1 %v5775_v31  ;;  %v5655_v31 = vld [vmem:[%s11215_s9 + $0x50] sm:$0xff] }
0x28f0   : > { %8889 = vmatprep.subr.bf16.mxu1 %v5784_v24  ;;  %v6084_v24 = vld [vmem:[%s11199_s0 + $0x320] sm:$0xff]  ;;  %v5665_v22 = vunpack.c.l.s8.bf16 %v5655_v31 }
0x28f1   : > { %v6098_v2 = vunpack.c.l.s8.bf16 %v6084_v24 }
0x28f2   : > { %5683 = vmatpush1.bf16.msra.mxu0 %v5665_v22  ;;  %v6392_v22 = vld [vmem:[%s11199_s0 + $0x30] sm:$0xff] }
0x28f3   : > { %8890 = vmatpush3.bf16.msra.mxu1 %v5776_v33  ;;  %v6089_v33 = vunpack.c.h.s8.bf16 %v6079_v47  ;;  %v6248_v47 = vunpack.c.h.s8.bf16 %v6237_v18 }
0x28f4   : > { %8891 = vmatprep.subr.bf16.mxu1 %v5785_v0  ;;  %v5668_v0 = vunpack.c.h.s8.bf16 %v5656_v26 }
0x28f6   : > { %5684 = vmatprep.subr.bf16.mxu0 %v5668_v0  ;;  %v6409_v0 = vunpack.c.h.s8.bf16 %v6396_v46 }
0x28f7   : > { %8892 = vmatpush3.bf16.msra.mxu1 %v5777_v58  ;;  %v6080_v58 = vld [vmem:[%s11199_s0 + $0x120] sm:$0xff] }
0x28f8   : > { %8893 = vmatprep.subr.bf16.mxu1 %v5786_v48  ;;  %v5667_v48 = vunpack.c.h.s8.bf16 %v5655_v31  ;;  %v6090_v53 = vunpack.c.l.s8.bf16 %v6080_v58 }
0x28fa   : > { %5685 = vmatpush1.bf16.msra.mxu0 %v5667_v48 }
0x28fb   : > { %8894 = vmatpush3.bf16.msra.mxu1 %v5778_v35  ;;  %v5658_v35 = vld [vmem:[%s11215_s9 + $0x68] sm:$0xff] }
0x28fc   : > { %8895 = vmatprep.subr.bf16.mxu1 %v5787_v37  ;;  %v6099_v37 = vunpack.c.h.s8.bf16 %v6084_v24  ;;  %v5670_v4 = vunpack.c.l.s8.bf16 %v5658_v35  ;;  %v6408_v24 = vunpack.c.l.s8.bf16 %v6396_v46  ;;  %v6572_v46 = vunpack.c.h.s8.bf16 %v6556_v8 }
0x28fe   : > { %5686 = vmatprep.subr.bf16.mxu0 %v5670_v4  ;;  %v6398_v4 = vld [vmem:[%s11199_s0 + $0x330] sm:$0xff] }
0x28ff   : > { %8896 = vmatpush3.bf16.msra.mxu1 %v5779_v40  ;;  %v5657_v40 = vld [vmem:[%s11215_s9 + $0x60] sm:$0xff] }
0x2900   : > { %8903 = vmatprep.subr.bf16.mxu1 %v5937_v28  ;;  %v6085_v28 = vld [vmem:[%s11199_s0 + $0x3a0] sm:$0xff]  ;;  %v5669_v39 = vunpack.c.l.s8.bf16 %v5657_v40 }
0x2902   : > { %5821 = vmatmul.mubr.bf16.vlgmr.msra.gmra.mrb[124].mxu1 %v12356_v43  ;;  %5687 = vmatpush1.bf16.msra.mxu0 %v5669_v39  ;;  %v6394_v39 = vld [vmem:[%s11199_s0 + $0x130] sm:$0xff] }
0x2903   : > { %8904 = vmatpush3.bf16.msra.mxu1 %v5929_v62  ;;  %5977 = vmatprep.mubr.bf16.mxu1 %v12360_v7  ;;  %v6091_v62 = vunpack.c.h.s8.bf16 %v6080_v58  ;;  %v6401_v58 = vunpack.c.h.s8.bf16 %v6392_v22 }
0x2904   : > { %8905 = vmatprep.subr.bf16.mxu1 %v5938_v55  ;;  %v6100_v55 = vunpack.c.l.s8.bf16 %v6085_v28 }
0x2907   : > { %8906 = vmatpush3.bf16.msra.mxu1 %v5930_v61  ;;  %v5672_v61 = vunpack.c.h.s8.bf16 %v5658_v35 }
0x2908   : > { %8907 = vmatprep.subr.bf16.mxu1 %v5939_v3  ;;  %v5671_v3 = vunpack.c.h.s8.bf16 %v5657_v40 }
0x2909   : > { %5688 = vmatprep.subr.bf16.mxu0 %v5672_v61  ;;  %v6405_v61 = vunpack.c.h.s8.bf16 %v6394_v39 }
0x290a   : > { %5689 = vmatpush1.bf16.msra.mxu0 %v5671_v3 }
0x290b   : > { %8908 = vmatpush3.bf16.msra.mxu1 %v5931_v13  ;;  %v5660_v13 = vld [vmem:[%s11215_s9 + $0x78] sm:$0xff] }
0x290c   : > { %8909 = vmatprep.subr.bf16.mxu1 %v5940_v56  ;;  %v6101_v56 = vunpack.c.h.s8.bf16 %v6085_v28  ;;  %v5674_v6 = vunpack.c.l.s8.bf16 %v5660_v13  ;;  %v6412_v28 = vunpack.c.l.s8.bf16 %v6398_v4 }
0x290e   : > { %5690 = vmatprep.subr.bf16.mxu0 %v5674_v6  ;;  %v6553_v6 = vld [vmem:[%s11199_s0 + $0x238] sm:$0xff] }
0x290f   : > { %8910 = vmatpush3.bf16.msra.mxu1 %v5932_v49  ;;  %v5659_v49 = vld [vmem:[%s11215_s9 + $0x70] sm:$0xff] }
0x2910   : > { %8911 = vmatprep.subr.bf16.mxu1 %v5941_v27  ;;  %v6239_v27 = vld [vmem:[%s11199_s0 + $0x228] sm:$0xff]  ;;  %v5673_v59 = vunpack.c.l.s8.bf16 %v5659_v49 }
0x2912   : > { %5691 = vmatpush1.bf16.msra.mxu0 %v5673_v59  ;;  %v6549_v59 = vld [vmem:[%s11199_s0 + $0x38] sm:$0xff] }
0x2913   : > { %8912 = vmatpush3.bf16.msra.mxu1 %v5933_v60  ;;  %v6093_v60 = vunpack.c.h.s8.bf16 %v6081_v32  ;;  %v6399_v32 = vld [vmem:[%s11199_s0 + $0x3b0] sm:$0xff] }
0x2914   : > { %8913 = vmatprep.subr.bf16.mxu1 %v5942_v29  ;;  %v6251_v29 = vunpack.c.l.s8.bf16 %v6239_v27  ;;  %v6414_v3 = vunpack.c.l.s8.bf16 %v6399_v32 }
0x2917   : > { %8914 = vmatpush3.bf16.msra.mxu1 %v5934_v51  ;;  %v5676_v51 = vunpack.c.h.s8.bf16 %v5660_v13 }
0x2918   : > { %8915 = vmatprep.subr.bf16.mxu1 %v5943_v11  ;;  %v5675_v11 = vunpack.c.h.s8.bf16 %v5659_v49 }
0x2919   : > { %5692 = vmatprep.subr.bf16.mxu0 %v5676_v51  ;;  %v6558_v51 = vunpack.c.h.s8.bf16 %v6549_v59 }
0x291a   : > { %5693 = vmatpush1.bf16.msra.mxu0 %v5675_v11 }
0x291b   : > { %8916 = vmatpush3.bf16.msra.mxu1 %v5935_v17  ;;  %v12412_v17 = vld [vmem:[%s11215_s9 + $0x8] sm:$0xff] }
0x291c   : > { %8917 = vmatprep.subr.bf16.mxu1 %v5944_v52  ;;  %v6252_v52 = vunpack.c.h.s8.bf16 %v6239_v27  ;;  %v5552_v10 = vunpack.c.l.s8.bf16 %v12412_v17  ;;  %v6565_v27 = vunpack.c.l.s8.bf16 %v6553_v6 }
0x291e   : > { %5721 = vmatprep.subr.bf16.mxu0 %v5552_v10 }
0x291f   : > { %8918 = vmatpush3.bf16.msra.mxu1 %v5936_v12  ;;  %v6240_v12 = vld [vmem:[%s11199_s0 + $0x2a8] sm:$0xff] }
0x2920   : > { %8925 = vmatprep.subr.bf16.mxu1 %v6094_v54  ;;  %v6244_v54 = vunpack.c.h.s8.bf16 %v6235_v36  ;;  %v6253_v50 = vunpack.c.l.s8.bf16 %v6240_v12  ;;  %v6554_v36 = vld [vmem:[%s11199_s0 + $0x2b8] sm:$0xff] }
0x2921   : > { %v6567_v11 = vunpack.c.l.s8.bf16 %v6554_v36  ;;  %v6568_v10 = vunpack.c.h.s8.bf16 %v6554_v36  ;;  %v6709_v36 = vld [vmem:[%s11199_s0 + $0x1c0] sm:$0xff] }
0x2922   : > { %5978 = vmatmul.mubr.bf16.vlgmr.msra.gmra.mrb[128].mxu1 %v12356_v43 }
0x2923   : > { %8926 = vmatpush3.bf16.msra.mxu1 %v6086_v15  ;;  %6134 = vmatprep.mubr.bf16.mxu1 %v12360_v7  ;;  %v6236_v15 = vld [vmem:[%s11199_s0 + $0xa8] sm:$0xff] }
0x2924   : > { %8927 = vmatprep.subr.bf16.mxu1 %v6095_v23  ;;  %v6245_v16 = vunpack.c.l.s8.bf16 %v6236_v15  ;;  %v6254_v23 = vunpack.c.h.s8.bf16 %v6240_v12  ;;  %v6246_v25 = vunpack.c.h.s8.bf16 %v6236_v15  ;;  %v6555_v12 = vld [vmem:[%s11199_s0 + $0x338] sm:$0xff] }
0x2925   : > { %v6551_v15 = vld [vmem:[%s11199_s0 + $0x138] sm:$0xff] }
0x2927   : > { %8928 = vmatpush3.bf16.msra.mxu1 %v6087_v34  ;;  %v6247_v34 = vunpack.c.l.s8.bf16 %v6237_v18  ;;  %v6552_v18 = vld [vmem:[%s11199_s0 + $0x1b8] sm:$0xff] }
0x2928   : > { %8929 = vmatprep.subr.bf16.mxu1 %v6096_v57  ;;  %v6242_v57 = vld [vmem:[%s11199_s0 + $0x3a8] sm:$0xff] }
0x2929   : > { %v6257_v20 = vunpack.c.l.s8.bf16 %v6242_v57 }
0x292b   : > { %8930 = vmatpush3.bf16.msra.mxu1 %v6088_v1  ;;  %v6238_v1 = vld [vmem:[%s11199_s0 + $0x1a8] sm:$0xff] }
0x292c   : > { %8931 = vmatprep.subr.bf16.mxu1 %v6097_v9  ;;  %v6249_v26 = vunpack.c.l.s8.bf16 %v6238_v1  ;;  %v6258_v9 = vunpack.c.h.s8.bf16 %v6242_v57  ;;  %v6250_v31 = vunpack.c.h.s8.bf16 %v6238_v1  ;;  %v8725_v57 = vld [vmem:[%s11206_s11] ss:$0 sm:$0xff]  ;;  %v6563_v1 = vunpack.c.l.s8.bf16 %v6552_v18 }
0x292f   : > { %8932 = vmatpush3.bf16.msra.mxu1 %v6089_v33  ;;  %v6400_v33 = vunpack.c.l.s8.bf16 %v6392_v22  ;;  %v6710_v22 = vld [vmem:[%s11199_s0 + $0x240] sm:$0xff] }
0x2930   : > { %8933 = vmatprep.subr.bf16.mxu1 %v6098_v2  ;;  %v6397_v2 = vld [vmem:[%s11199_s0 + $0x2b0] sm:$0xff] }
0x2931   : > { %v6410_v48 = vunpack.c.l.s8.bf16 %v6397_v2 }
0x2933   : > { %8934 = vmatpush3.bf16.msra.mxu1 %v6090_v53  ;;  %v6393_v53 = vld [vmem:[%s11199_s0 + $0xb0] sm:$0xff] }
0x2934   : > { %8935 = vmatprep.subr.bf16.mxu1 %v6099_v37  ;;  %v6402_v35 = vunpack.c.l.s8.bf16 %v6393_v53  ;;  %v6411_v37 = vunpack.c.h.s8.bf16 %v6397_v2  ;;  %v6403_v40 = vunpack.c.h.s8.bf16 %v6393_v53  ;;  %v6564_v2 = vunpack.c.h.s8.bf16 %v6552_v18 }
0x2935   : > { %v6721_v18 = vunpack.c.h.s8.bf16 %v6709_v36 }
0x2937   : > { %8936 = vmatpush3.bf16.msra.mxu1 %v6091_v62  ;;  %v6404_v62 = vunpack.c.l.s8.bf16 %v6394_v39  ;;  %v6711_v39 = vld [vmem:[%s11199_s0 + $0x2c0] sm:$0xff] }
0x2938   : > { %8937 = vmatprep.subr.bf16.mxu1 %v6100_v55  ;;  %v6413_v55 = vunpack.c.h.s8.bf16 %v6398_v4 }
0x293b   : > { %8938 = vmatpush3.bf16.msra.mxu1 %v6092_v14  ;;  %v6395_v14 = vld [vmem:[%s11199_s0 + $0x1b0] sm:$0xff] }
0x293c   : > { %8939 = vmatprep.subr.bf16.mxu1 %v6101_v56  ;;  %v6406_v13 = vunpack.c.l.s8.bf16 %v6395_v14  ;;  %v6415_v56 = vunpack.c.h.s8.bf16 %v6399_v32  ;;  %v6407_v49 = vunpack.c.h.s8.bf16 %v6395_v14  ;;  %v6707_v32 = vld [vmem:[%s11199_s0 + $0xc0] sm:$0xff] }
0x293d   : > { %v6712_v14 = vld [vmem:[%s11199_s0 + $0x340] sm:$0xff] }
0x293f   : > { %8940 = vmatpush3.bf16.msra.mxu1 %v6093_v60  ;;  %v6557_v60 = vunpack.c.l.s8.bf16 %v6549_v59  ;;  %v6713_v59 = vld [vmem:[%s11199_s0 + $0x3c0] sm:$0xff] }
0x2940   : > { %8947 = vmatprep.subr.bf16.mxu1 %v6251_v29  ;;  %v6566_v29 = vunpack.c.h.s8.bf16 %v6553_v6  ;;  %v6708_v6 = vld [vmem:[%s11199_s0 + $0x140] sm:$0xff] }
0x2942   : > { %6135 = vmatmul.mubr.bf16.vlgmr.msra.gmra.mrb[132].mxu1 %v12356_v43 }
0x2943   : > { %8948 = vmatpush3.bf16.msra.mxu1 %v6243_v5  ;;  %6291 = vmatprep.mubr.bf16.mxu1 %v12360_v7  ;;  %v6550_v5 = vld [vmem:[%s11199_s0 + $0xb8] sm:$0xff] }
0x2944   : > { %8949 = vmatprep.subr.bf16.mxu1 %v6252_v52  ;;  %v6559_v52 = vunpack.c.l.s8.bf16 %v6550_v5 }
0x2947   : > { %8950 = vmatpush3.bf16.msra.mxu1 %v6244_v54  ;;  %v6560_v54 = vunpack.c.h.s8.bf16 %v6550_v5  ;;  %v8727_v5 = vld [vmem:[%s11206_s11 + $0x1] ss:$0 sm:$0xff] }
0x2948   : > { %8951 = vmatprep.subr.bf16.mxu1 %v6253_v50  ;;  %v6569_v50 = vunpack.c.l.s8.bf16 %v6555_v12 }
0x294b   : > { %8952 = vmatpush3.bf16.msra.mxu1 %v6245_v16  ;;  %v6561_v16 = vunpack.c.l.s8.bf16 %v6551_v15 }
0x294c   : > { %8953 = vmatprep.subr.bf16.mxu1 %v6254_v23  ;;  %v6570_v23 = vunpack.c.h.s8.bf16 %v6555_v12  ;;  %v6720_v12 = vunpack.c.l.s8.bf16 %v6709_v36 }
0x294f   : > { %8954 = vmatpush3.bf16.msra.mxu1 %v6246_v25  ;;  %v6562_v25 = vunpack.c.h.s8.bf16 %v6551_v15  ;;  %v6729_v15 = vunpack.c.h.s8.bf16 %v6713_v59 }
0x2950   : > { %8955 = vmatprep.subr.bf16.mxu1 %v6255_v30  ;;  %v6571_v30 = vunpack.c.l.s8.bf16 %v6556_v8  ;;  %v6867_v8 = vld [vmem:[%s11199_s0 + $0x248] sm:$0xff] }
0x2953   : > { %8956 = vmatpush3.bf16.msra.mxu1 %v6247_v34 }
0x2954   : > { %8957 = vmatprep.subr.bf16.mxu1 %v6256_v44 }
0x2957   : > { %8958 = vmatpush3.bf16.msra.mxu1 %v6248_v47 }
0x2958   : > { %8959 = vmatprep.subr.bf16.mxu1 %v6257_v20 }
0x295b   : > { %8960 = vmatpush3.bf16.msra.mxu1 %v6249_v26  ;;  %v8726_v26 = vld [vmem:[%s11209_s28] ss:$0 sm:$0xff] }
0x295c   : > { %8961 = vmatprep.subr.bf16.mxu1 %v6258_v9 }
0x295f   : > { %8962 = vmatpush3.bf16.msra.mxu1 %v6250_v31 }
0x2960   : > { %8969 = vmatprep.subr.bf16.mxu1 %v6408_v24 }
0x2962   : > { %6292 = vmatmul.mubr.bf16.vlgmr.msra.gmra.mrb[136].mxu1 %v12356_v43 }
0x2963   : > { %8970 = vmatpush3.bf16.msra.mxu1 %v6400_v33  ;;  %6448 = vmatprep.mubr.bf16.mxu1 %v12360_v7 }
0x2964   : > { %8971 = vmatprep.subr.bf16.mxu1 %v6409_v0 }
0x2967   : > { %8972 = vmatpush3.bf16.msra.mxu1 %v6401_v58  ;;  %v6722_v58 = vunpack.c.l.s8.bf16 %v6710_v22 }
0x2968   : > { %8973 = vmatprep.subr.bf16.mxu1 %v6410_v48  ;;  %v6706_v48 = vld [vmem:[%s11199_s0 + $0x40] sm:$0xff] }
0x2969   : > { %v6714_v4 = vunpack.c.l.s8.bf16 %v6706_v48 }
0x296b   : > { %8974 = vmatpush3.bf16.msra.mxu1 %v6402_v35 }
0x296c   : > { %8975 = vmatprep.subr.bf16.mxu1 %v6411_v37 }
0x296f   : > { %8976 = vmatpush3.bf16.msra.mxu1 %v6403_v40  ;;  %v6723_v40 = vunpack.c.h.s8.bf16 %v6710_v22  ;;  %v6868_v22 = vld [vmem:[%s11199_s0 + $0x2c8] sm:$0xff] }
0x2970   : > { %8977 = vmatprep.subr.bf16.mxu1 %v6412_v28 }
0x2973   : > { %8978 = vmatpush3.bf16.msra.mxu1 %v6404_v62  ;;  %v6715_v62 = vunpack.c.h.s8.bf16 %v6706_v48  ;;  %v6864_v48 = vld [vmem:[%s11199_s0 + $0xc8] sm:$0xff] }
0x2974   : > { %8979 = vmatprep.subr.bf16.mxu1 %v6413_v55  ;;  %v6724_v55 = vunpack.c.l.s8.bf16 %v6711_v39 }
0x2977   : > { %8980 = vmatpush3.bf16.msra.mxu1 %v6405_v61  ;;  %v6716_v61 = vunpack.c.l.s8.bf16 %v6707_v32 }
0x2978   : > { %8981 = vmatprep.subr.bf16.mxu1 %v6414_v3  ;;  %v6725_v3 = vunpack.c.h.s8.bf16 %v6711_v39  ;;  %v6869_v39 = vld [vmem:[%s11199_s0 + $0x348] sm:$0xff] }
0x297b   : > { %8982 = vmatpush3.bf16.msra.mxu1 %v6406_v13  ;;  %v6717_v13 = vunpack.c.h.s8.bf16 %v6707_v32 }
0x297c   : > { %8983 = vmatprep.subr.bf16.mxu1 %v6415_v56  ;;  %v6726_v56 = vunpack.c.l.s8.bf16 %v6712_v14 }
0x297f   : > { %8984 = vmatpush3.bf16.msra.mxu1 %v6407_v49  ;;  %v6718_v49 = vunpack.c.l.s8.bf16 %v6708_v6 }
0x2980   : > { %8991 = vmatprep.subr.bf16.mxu1 %v6565_v27  ;;  %v6727_v27 = vunpack.c.h.s8.bf16 %v6712_v14 }
0x2982   : > { %6449 = vmatmul.mubr.bf16.vlgmr.msra.gmra.mrb[140].mxu1 %v12356_v43 }
0x2983   : > { %8992 = vmatpush3.bf16.msra.mxu1 %v6557_v60  ;;  %6605 = vmatprep.mubr.bf16.mxu1 %v12360_v7  ;;  %v6719_v60 = vunpack.c.h.s8.bf16 %v6708_v6 }
0x2984   : > { %8993 = vmatprep.subr.bf16.mxu1 %v6566_v29  ;;  %v6728_v29 = vunpack.c.l.s8.bf16 %v6713_v59  ;;  %v6870_v59 = vld [vmem:[%s11199_s0 + $0x3c8] sm:$0xff] }
0x2987   : > { %8994 = vmatpush3.bf16.msra.mxu1 %v6558_v51 }
0x2988   : > { %8995 = vmatprep.subr.bf16.mxu1 %v6567_v11 }
0x298b   : > { %8996 = vmatpush3.bf16.msra.mxu1 %v6559_v52 }
0x298c   : > { %8997 = vmatprep.subr.bf16.mxu1 %v6568_v10 }
0x298f   : > { %8998 = vmatpush3.bf16.msra.mxu1 %v6560_v54  ;;  %v8728_v54 = vld [vmem:[%s11209_s28 + $0x1] ss:$0 sm:$0xff] }
0x2990   : > { %8999 = vmatprep.subr.bf16.mxu1 %v6569_v50 }
0x2993   : > { %9000 = vmatpush3.bf16.msra.mxu1 %v6561_v16 }
0x2994   : > { %9001 = vmatprep.subr.bf16.mxu1 %v6570_v23 }
0x2995   : > { %v8853_v34 = vpop.f32.mrb[116].mxu1 }
0x2996   : > { %v8854_v44 = vpop.f32.mrb[117].mxu1 }
0x2997   : > { %v8855_v47 = vadd.f32 %v8854_v44, %v8853_v34  ;;  %9002 = vmatpush3.bf16.msra.mxu1 %v6562_v25  ;;  %v8856_v20 = vpop.f32.mrb[118].mxu1  ;;  %v6879_v34 = vunpack.c.l.s8.bf16 %v6867_v8  ;;  %v6863_v44 = vld [vmem:[%s11199_s0 + $0x48] sm:$0xff] }
0x2998   : > { %v8857_v9 = vpop.f32.mrb[119].mxu1  ;;  %9003 = vmatprep.subr.bf16.mxu1 %v6571_v30 }
0x2999   : > { %v5530_v31 = vmul.f32 %v8855_v47, %v8725_v57  ;;  %v8858_v24 = vadd.f32 %v8857_v9, %v8856_v20  ;;  %v5543_v47 = vld [vmem:[%s11215_s9] sm:$0xff] }
0x299a   : > { %v5551_v9 = vunpack.c.l.s8.bf16 %v5543_v47 }
0x299b   : > { %v5539_v33 = vadd.f32 %v8726_v26, %v5530_v31  ;;  %v5531_v0 = vmul.f32 %v8858_v24, %v8725_v57  ;;  %9004 = vmatpush3.bf16.msra.mxu1 %v6563_v1  ;;  %v5554_v31 = vunpack.c.h.s8.bf16 %v12412_v17  ;;  %v6880_v24 = vunpack.c.h.s8.bf16 %v6867_v8 }
0x299c   : > { %9005 = vmatprep.subr.bf16.mxu1 %v6572_v46 }
0x299d   : > { %v5540_v53 = vadd.f32 %v8726_v26, %v5531_v0  ;;  %v5541_v35 = vmax.f32 %v5539_v33, 0.0  ;;  %v6871_v26 = vunpack.c.l.s8.bf16 %v6863_v44  ;;  %v5546_v33 = vld [vmem:[%s11215_s9 + $0x18] sm:$0xff]  ;;  %v6872_v0 = vunpack.c.h.s8.bf16 %v6863_v44 }
0x299e   : > { %v5556_v17 = vunpack.c.l.s8.bf16 %v5546_v33 }
0x299f   : > { %v5542_v37 = vmax.f32 %v5540_v53, 0.0  ;;  %9006 = vmatpush3.bf16.msra.mxu1 %v6564_v2  ;;  %v5553_v2 = vunpack.c.h.s8.bf16 %v5543_v47  ;;  %v5545_v53 = vld [vmem:[%s11215_s9 + $0x10] sm:$0xff]  ;;  %v5850_v47 = vld [vmem:[%s11215_s9 + $0x88] sm:$0xff] }
0x29a0   : > { %9013 = vmatprep.subr.bf16.mxu1 %v6722_v58  ;;  %v6881_v58 = vunpack.c.l.s8.bf16 %v6868_v22  ;;  %v5557_v32 = vunpack.c.h.s8.bf16 %v5545_v53 }
0x29a1   : > { %v12447_v28 = vpack.c.bf16 %v5542_v37, %v5541_v35  ;;  %v6873_v35 = vunpack.c.l.s8.bf16 %v6864_v48  ;;  %v5555_v37 = vunpack.c.l.s8.bf16 %v5545_v53  ;;  %v5860_v53 = vunpack.c.h.s8.bf16 %v5850_v47 }
0x29a2   : > { %6606 = vmatmul.mubr.bf16.vlgmr.msra.gmra.mrb[144].mxu1 %v12356_v43 }
0x29a3   : > { %9014 = vmatpush3.bf16.msra.mxu1 %v6714_v4  ;;  %6762 = vmatprep.mubr.bf16.mxu1 %v12360_v7  ;;  %v6882_v4 = vunpack.c.h.s8.bf16 %v6868_v22  ;;  %v5858_v22 = vunpack.c.l.s8.bf16 %v5850_v47  ;;  %v8732_v47 = vld [vmem:[%s11209_s28 + $0x3] ss:$0 sm:$0xff] }
0x29a4   : > { %9015 = vmatprep.subr.bf16.mxu1 %v6723_v40  ;;  %v5558_v40 = vunpack.c.h.s8.bf16 %v5546_v33  ;;  %v5849_v33 = vld [vmem:[%s11215_s9 + $0x80] sm:$0xff] }
0x29a7   : > { %9016 = vmatpush3.bf16.msra.mxu1 %v6715_v62  ;;  %v5548_v62 = vld [vmem:[%s11215_s9 + $0x28] sm:$0xff] }
0x29a8   : > { %9017 = vmatprep.subr.bf16.mxu1 %v6724_v55  ;;  %v6874_v55 = vunpack.c.h.s8.bf16 %v6864_v48  ;;  %v5560_v14 = vunpack.c.l.s8.bf16 %v5548_v62  ;;  %v5857_v48 = vunpack.c.l.s8.bf16 %v5849_v33 }
0x29ab   : > { %9018 = vmatpush3.bf16.msra.mxu1 %v6716_v61  ;;  %v6883_v61 = vunpack.c.l.s8.bf16 %v6869_v39 }
0x29ac   : > { %9019 = vmatprep.subr.bf16.mxu1 %v6725_v3  ;;  %v6865_v3 = vld [vmem:[%s11199_s0 + $0x148] sm:$0xff] }
0x29af   : > { %9020 = vmatpush3.bf16.msra.mxu1 %v6717_v13  ;;  %v5547_v13 = vld [vmem:[%s11215_s9 + $0x20] sm:$0xff] }
0x29b0   : > { %9021 = vmatprep.subr.bf16.mxu1 %v6726_v56  ;;  %v6875_v56 = vunpack.c.l.s8.bf16 %v6865_v3  ;;  %v5559_v6 = vunpack.c.l.s8.bf16 %v5547_v13  ;;  %v5561_v36 = vunpack.c.h.s8.bf16 %v5547_v13 }
0x29b3   : > { %9022 = vmatpush3.bf16.msra.mxu1 %v6718_v49  ;;  %v6884_v49 = vunpack.c.h.s8.bf16 %v6869_v39  ;;  %v5859_v39 = vunpack.c.h.s8.bf16 %v5849_v33 }
0x29b4   : > { %9023 = vmatprep.subr.bf16.mxu1 %v6727_v27  ;;  %v5562_v27 = vunpack.c.h.s8.bf16 %v5548_v62 }
0x29b5   : > { %v8875_v51 = vpop.f32.mrb[120].mxu1 }
0x29b6   : > { %v8876_v11 = vpop.f32.mrb[121].mxu1 }
0x29b7   : > { %v8877_v52 = vadd.f32 %v8876_v11, %v8875_v51  ;;  %v8878_v10 = vpop.f32.mrb[122].mxu1  ;;  %9024 = vmatpush3.bf16.msra.mxu1 %v6719_v60  ;;  %v5550_v60 = vld [vmem:[%s11215_s9 + $0x38] sm:$0xff]  ;;  %v6885_v51 = vunpack.c.l.s8.bf16 %v6870_v59  ;;  %v6866_v11 = vld [vmem:[%s11199_s0 + $0x1c8] sm:$0xff] }
0x29b8   : > { %v8879_v50 = vpop.f32.mrb[123].mxu1  ;;  %9025 = vmatprep.subr.bf16.mxu1 %v6728_v29  ;;  %v6876_v29 = vunpack.c.h.s8.bf16 %v6865_v3  ;;  %v5566_v44 = vunpack.c.h.s8.bf16 %v5550_v60 }
0x29b9   : > { %v5640_v16 = vmul.f32 %v8877_v52, %v8727_v5  ;;  %v8880_v23 = vadd.f32 %v8879_v50, %v8878_v10  ;;  %v5564_v52 = vunpack.c.l.s8.bf16 %v5550_v60  ;;  %v5549_v10 = vld [vmem:[%s11215_s9 + $0x30] sm:$0xff] }
0x29ba   : > { %v7022_v60 = vld [vmem:[%s11199_s0 + $0x150] sm:$0xff] }
0x29bb   : > { %v5649_v25 = vadd.f32 %v8728_v54, %v5640_v16  ;;  %v5641_v30 = vmul.f32 %v8880_v23, %v8727_v5  ;;  %9026 = vmatpush3.bf16.msra.mxu1 %v6720_v12  ;;  %v6877_v16 = vunpack.c.l.s8.bf16 %v6866_v11  ;;  %v8730_v23 = vld [vmem:[%s11209_s28 + $0x2] ss:$0 sm:$0xff] }
0x29bc   : > { %9027 = vmatprep.subr.bf16.mxu1 %v6729_v15 }
0x29bd   : > { %v5650_v57 = vadd.f32 %v8728_v54, %v5641_v30  ;;  %v5651_v20 = vmax.f32 %v5649_v25, 0.0  ;;  %v8729_v54 = vld [vmem:[%s11206_s11 + $0x2] ss:$0 sm:$0xff]  ;;  %v5563_v25 = vunpack.c.l.s8.bf16 %v5549_v10  ;;  %v6886_v30 = vunpack.c.h.s8.bf16 %v6870_v59 }
0x29bf   : > { %v5652_v1 = vmax.f32 %v5650_v57, 0.0  ;;  %9028 = vmatpush3.bf16.msra.mxu1 %v6721_v18  ;;  %v7024_v57 = vld [vmem:[%s11199_s0 + $0x250] sm:$0xff] }
0x29c0   : > { %9035 = vmatprep.subr.bf16.mxu1 %v6879_v34 }
0x29c1   : > { %v5677_v46 = vpack.c.bf16 %v5652_v1, %v5651_v20 }
0x29c2   : > { %6763 = vmatmul.mubr.bf16.vlgmr.msra.gmra.mrb[148].mxu1 %v12356_v43 }
0x29c3   : > { %5711 = vmatmul.mubr.bf16.vlgmr.msra.gmra.mrb[88].mxu0 %v5677_v46  ;;  %9036 = vmatpush3.bf16.msra.mxu1 %v6871_v26  ;;  %v6878_v26 = vunpack.c.h.s8.bf16 %v6866_v11  ;;  %v7036_v46 = vunpack.c.l.s8.bf16 %v7024_v57 }
0x29c4   : > { %5722 = vmatpush1.bf16.msra.mxu0 %v5551_v9  ;;  %6919 = vmatprep.mubr.bf16.mxu1 %v12360_v7  ;;  %v5565_v9 = vunpack.c.h.s8.bf16 %v5549_v10  ;;  %v7027_v10 = vld [vmem:[%s11199_s0 + $0x3d0] sm:$0xff] }
0x29c5   : > { %5723 = vmatprep.subr.bf16.mxu0 %v5554_v31  ;;  %9037 = vmatprep.subr.bf16.mxu1 %v6880_v24  ;;  %v7020_v31 = vld [vmem:[%s11199_s0 + $0x50] sm:$0xff] }
0x29c6   : > { %5753 = vmatprep.mubr.bf16.mxu0 %v10483_v42 }
0x29c7   : > { %9038 = vmatpush3.bf16.msra.mxu1 %v6872_v0 }
0x29c8   : > { %5724 = vmatpush1.bf16.msra.mxu0 %v5553_v2  ;;  %9039 = vmatprep.subr.bf16.mxu1 %v6881_v58  ;;  %v7028_v58 = vunpack.c.l.s8.bf16 %v7020_v31 }
0x29c9   : > { %5725 = vmatprep.subr.bf16.mxu0 %v5556_v17 }
0x29cb   : > { %9040 = vmatpush3.bf16.msra.mxu1 %v6873_v35  ;;  %v7037_v35 = vunpack.c.h.s8.bf16 %v7024_v57 }
0x29cc   : > { %5726 = vmatpush1.bf16.msra.mxu0 %v5555_v37  ;;  %9041 = vmatprep.subr.bf16.mxu1 %v6882_v4  ;;  %v7025_v37 = vld [vmem:[%s11199_s0 + $0x2d0] sm:$0xff]  ;;  %v5852_v4 = vld [vmem:[%s11215_s9 + $0x98] sm:$0xff] }
0x29cd   : > { %5727 = vmatprep.subr.bf16.mxu0 %v5558_v40  ;;  %v7029_v40 = vunpack.c.h.s8.bf16 %v7020_v31  ;;  %v7038_v62 = vunpack.c.l.s8.bf16 %v7025_v37  ;;  %v5864_v13 = vunpack.c.h.s8.bf16 %v5852_v4 }
0x29cf   : > { %9042 = vmatpush3.bf16.msra.mxu1 %v6874_v55  ;;  %v7021_v55 = vld [vmem:[%s11199_s0 + $0xd0] sm:$0xff] }
0x29d0   : > { %5728 = vmatpush1.bf16.msra.mxu0 %v5557_v32  ;;  %9043 = vmatprep.subr.bf16.mxu1 %v6883_v61  ;;  %v5862_v32 = vunpack.c.l.s8.bf16 %v5852_v4  ;;  %v5851_v61 = vld [vmem:[%s11215_s9 + $0x90] sm:$0xff]  ;;  %v7030_v3 = vunpack.c.l.s8.bf16 %v7021_v55  ;;  %v6006_v4 = vld [vmem:[%s11215_s9 + $0xc0] sm:$0xff] }
0x29d1   : > { %5729 = vmatprep.subr.bf16.mxu0 %v5560_v14  ;;  %v7039_v14 = vunpack.c.h.s8.bf16 %v7025_v37 }
0x29d3   : > { %9044 = vmatpush3.bf16.msra.mxu1 %v6875_v56  ;;  %v7026_v56 = vld [vmem:[%s11199_s0 + $0x350] sm:$0xff] }
0x29d4   : > { %5730 = vmatpush1.bf16.msra.mxu0 %v5559_v6  ;;  %9045 = vmatprep.subr.bf16.mxu1 %v6884_v49  ;;  %v5854_v6 = vld [vmem:[%s11215_s9 + $0xa8] sm:$0xff]  ;;  %v7031_v49 = vunpack.c.h.s8.bf16 %v7021_v55  ;;  %v7040_v59 = vunpack.c.l.s8.bf16 %v7026_v56  ;;  %v6014_v55 = vunpack.c.l.s8.bf16 %v6006_v4 }
0x29d5   : > { %v8897_v5 = vpop.f32.mrb[124].mxu1  ;;  %5731 = vmatprep.subr.bf16.mxu0 %v5562_v27  ;;  %v5863_v27 = vunpack.c.h.s8.bf16 %v5851_v61 }
0x29d6   : > { %v8898_v12 = vpop.f32.mrb[125].mxu1 }
0x29d7   : > { %v8899_v50 = vadd.f32 %v8898_v12, %v8897_v5  ;;  %v8900_v15 = vpop.f32.mrb[126].mxu1  ;;  %9046 = vmatpush3.bf16.msra.mxu1 %v6876_v29  ;;  %v5866_v29 = vunpack.c.l.s8.bf16 %v5854_v6  ;;  %v7041_v5 = vunpack.c.h.s8.bf16 %v7026_v56  ;;  %v5856_v12 = vld [vmem:[%s11215_s9 + $0xb8] sm:$0xff]  ;;  %v6016_v56 = vunpack.c.h.s8.bf16 %v6006_v4 }
0x29d8   : > { %5732 = vmatpush1.bf16.msra.mxu0 %v5561_v36  ;;  %v8901_v8 = vpop.f32.mrb[127].mxu1  ;;  %9047 = vmatprep.subr.bf16.mxu1 %v6885_v51  ;;  %v5853_v36 = vld [vmem:[%s11215_s9 + $0xa0] sm:$0xff]  ;;  %v7032_v51 = vunpack.c.l.s8.bf16 %v7022_v60  ;;  %v5872_v31 = vunpack.c.h.s8.bf16 %v5856_v12 }
0x29d9   : > { %v5836_v18 = vmul.f32 %v8899_v50, %v8729_v54  ;;  %v8902_v34 = vadd.f32 %v8901_v8, %v8900_v15  ;;  %5733 = vmatprep.subr.bf16.mxu0 %v5564_v52  ;;  %v5865_v11 = vunpack.c.l.s8.bf16 %v5853_v36  ;;  %v5868_v52 = vunpack.c.h.s8.bf16 %v5854_v6 }
0x29da   : > { %v5867_v50 = vunpack.c.h.s8.bf16 %v5853_v36  ;;  %v7042_v15 = vunpack.c.l.s8.bf16 %v7027_v10  ;;  %v5870_v8 = vunpack.c.l.s8.bf16 %v5856_v12  ;;  %v7179_v12 = vld [vmem:[%s11199_s0 + $0x158] sm:$0xff] }
0x29db   : > { %v5845_v20 = vadd.f32 %v8730_v23, %v5836_v18  ;;  %v5837_v1 = vmul.f32 %v8902_v34, %v8729_v54  ;;  %9048 = vmatpush3.bf16.msra.mxu1 %v6877_v16  ;;  %v7033_v54 = vunpack.c.h.s8.bf16 %v7022_v60  ;;  %v7023_v16 = vld [vmem:[%s11199_s0 + $0x1d0] sm:$0xff] }
0x29dc   : > { %5734 = vmatpush1.bf16.msra.mxu0 %v5563_v25  ;;  %9049 = vmatprep.subr.bf16.mxu1 %v6886_v30  ;;  %v5855_v25 = vld [vmem:[%s11215_s9 + $0xb0] sm:$0xff]  ;;  %v7034_v57 = vunpack.c.l.s8.bf16 %v7023_v16 }
0x29dd   : > { %v5846_v24 = vadd.f32 %v8730_v23, %v5837_v1  ;;  %5735 = vmatprep.subr.bf16.mxu0 %v5566_v44  ;;  %v5847_v0 = vmax.f32 %v5845_v20, 0.0  ;;  %v8731_v18 = vld [vmem:[%s11206_s11 + $0x3] ss:$0 sm:$0xff]  ;;  %v5869_v1 = vunpack.c.l.s8.bf16 %v5855_v25 }
0x29df   : > { %v5848_v2 = vmax.f32 %v5846_v24, 0.0  ;;  %9050 = vmatpush3.bf16.msra.mxu1 %v6878_v26  ;;  %v7043_v26 = vunpack.c.h.s8.bf16 %v7027_v10  ;;  %v7181_v24 = vld [vmem:[%s11199_s0 + $0x258] sm:$0xff] }
0x29e0   : > { %5736 = vmatpush1.bf16.msra.mxu0 %v5565_v9  ;;  %9057 = vmatprep.subr.bf16.mxu1 %v7036_v46 }
0x29e1   : > { %v12484_v17 = vpack.c.bf16 %v5848_v2, %v5847_v0  ;;  %5874 = vmatprep.subr.bf16.mxu0 %v5858_v22  ;;  %v6007_v22 = vld [vmem:[%s11215_s9 + $0xc8] sm:$0xff]  ;;  %v7035_v2 = vunpack.c.h.s8.bf16 %v7023_v16 }
0x29e2   : > { %6920 = vmatmul.mubr.bf16.vlgmr.msra.gmra.mrb[152].mxu1 %v12356_v43  ;;  %v6015_v37 = vunpack.c.l.s8.bf16 %v6007_v22 }
0x29e3   : > { %5754 = vmatmul.mubr.bf16.vlgmr.msra.gmra.mrb[88].mxu0 %v12447_v28  ;;  %9058 = vmatpush3.bf16.msra.mxu1 %v7028_v58  ;;  %v5861_v28 = vunpack.c.l.s8.bf16 %v5851_v61  ;;  %v5871_v58 = vunpack.c.h.s8.bf16 %v5855_v25  ;;  %v6017_v61 = vunpack.c.h.s8.bf16 %v6007_v22  ;;  %v7184_v25 = vld [vmem:[%s11199_s0 + $0x3d8] sm:$0xff]  ;;  %v8734_v22 = vld [vmem:[%s11209_s28 + $0x4] ss:$0 sm:$0xff] }
0x29e4   : > { %5875 = vmatpush1.bf16.msra.mxu0 %v5857_v48  ;;  %7076 = vmatprep.mubr.bf16.mxu1 %v12360_v7  ;;  %v7193_v48 = vunpack.c.l.s8.bf16 %v7181_v24 }
0x29e5   : > { %5876 = vmatprep.subr.bf16.mxu0 %v5860_v53  ;;  %9059 = vmatprep.subr.bf16.mxu1 %v7037_v35  ;;  %v7177_v53 = vld [vmem:[%s11199_s0 + $0x58] sm:$0xff] }
0x29e6   : > { %5906 = vmatprep.mubr.bf16.mxu0 %v10483_v42 }
0x29e7   : > { %9060 = vmatpush3.bf16.msra.mxu1 %v7029_v40 }
0x29e8   : > { %5877 = vmatpush1.bf16.msra.mxu0 %v5859_v39  ;;  %9061 = vmatprep.subr.bf16.mxu1 %v7038_v62  ;;  %v7185_v62 = vunpack.c.l.s8.bf16 %v7177_v53 }
0x29e9   : > { %5878 = vmatprep.subr.bf16.mxu0 %v5862_v32 }
0x29eb   : > { %9062 = vmatpush3.bf16.msra.mxu1 %v7030_v3  ;;  %v7194_v3 = vunpack.c.h.s8.bf16 %v7181_v24 }
0x29ec   : > { %5879 = vmatpush1.bf16.msra.mxu0 %v5861_v28  ;;  %9063 = vmatprep.subr.bf16.mxu1 %v7039_v14  ;;  %v7182_v28 = vld [vmem:[%s11199_s0 + $0x2d8] sm:$0xff] }
0x29ed   : > { %5880 = vmatprep.subr.bf16.mxu0 %v5864_v13  ;;  %v6009_v14 = vld [vmem:[%s11215_s9 + $0xd8] sm:$0xff]  ;;  %v7186_v13 = vunpack.c.h.s8.bf16 %v7177_v53  ;;  %v7195_v6 = vunpack.c.l.s8.bf16 %v7182_v28 }
0x29ee   : > { %v6021_v36 = vunpack.c.h.s8.bf16 %v6009_v14 }
0x29ef   : > { %9064 = vmatpush3.bf16.msra.mxu1 %v7031_v49  ;;  %v7178_v49 = vld [vmem:[%s11199_s0 + $0xd8] sm:$0xff] }
0x29f0   : > { %5881 = vmatpush1.bf16.msra.mxu0 %v5863_v27  ;;  %9065 = vmatprep.subr.bf16.mxu1 %v7040_v59  ;;  %v6019_v27 = vunpack.c.l.s8.bf16 %v6009_v14  ;;  %v6008_v59 = vld [vmem:[%s11215_s9 + $0xd0] sm:$0xff]  ;;  %v7187_v60 = vunpack.c.l.s8.bf16 %v7178_v49  ;;  %v6163_v14 = vld [vmem:[%s11215_s9 + $0x100] sm:$0xff] }
0x29f1   : > { %5882 = vmatprep.subr.bf16.mxu0 %v5866_v29  ;;  %v7196_v29 = vunpack.c.h.s8.bf16 %v7182_v28 }
0x29f3   : > { %9066 = vmatpush3.bf16.msra.mxu1 %v7032_v51  ;;  %v7183_v51 = vld [vmem:[%s11199_s0 + $0x358] sm:$0xff] }
0x29f4   : > { %5883 = vmatpush1.bf16.msra.mxu0 %v5865_v11  ;;  %9067 = vmatprep.subr.bf16.mxu1 %v7041_v5  ;;  %v6011_v11 = vld [vmem:[%s11215_s9 + $0xe8] sm:$0xff]  ;;  %v7188_v5 = vunpack.c.h.s8.bf16 %v7178_v49  ;;  %v7197_v10 = vunpack.c.l.s8.bf16 %v7183_v51  ;;  %v6171_v49 = vunpack.c.l.s8.bf16 %v6163_v14 }
0x29f5   : > { %v8919_v23 = vpop.f32.mrb[128].mxu1  ;;  %5884 = vmatprep.subr.bf16.mxu0 %v5868_v52  ;;  %v6020_v52 = vunpack.c.h.s8.bf16 %v6008_v59 }
0x29f6   : > { %v8920_v30 = vpop.f32.mrb[129].mxu1 }
0x29f7   : > { %v8921_v34 = vadd.f32 %v8920_v30, %v8919_v23  ;;  %v8922_v44 = vpop.f32.mrb[130].mxu1  ;;  %9068 = vmatpush3.bf16.msra.mxu1 %v7033_v54  ;;  %v6023_v54 = vunpack.c.l.s8.bf16 %v6011_v11  ;;  %v7198_v23 = vunpack.c.h.s8.bf16 %v7183_v51  ;;  %v6013_v30 = vld [vmem:[%s11215_s9 + $0xf8] sm:$0xff]  ;;  %v6173_v51 = vunpack.c.h.s8.bf16 %v6163_v14 }
0x29f8   : > { %5885 = vmatpush1.bf16.msra.mxu0 %v5867_v50  ;;  %v8923_v20 = vpop.f32.mrb[131].mxu1  ;;  %9069 = vmatprep.subr.bf16.mxu1 %v7042_v15  ;;  %v6010_v50 = vld [vmem:[%s11215_s9 + $0xe0] sm:$0xff]  ;;  %v7189_v15 = vunpack.c.l.s8.bf16 %v7179_v12  ;;  %v6029_v53 = vunpack.c.h.s8.bf16 %v6013_v30 }
0x29f9   : > { %v5993_v9 = vmul.f32 %v8921_v34, %v8731_v18  ;;  %v8924_v46 = vadd.f32 %v8923_v20, %v8922_v44  ;;  %5886 = vmatprep.subr.bf16.mxu0 %v5870_v8  ;;  %v6022_v16 = vunpack.c.l.s8.bf16 %v6010_v50  ;;  %v6025_v8 = vunpack.c.h.s8.bf16 %v6011_v11 }
0x29fa   : > { %v6024_v34 = vunpack.c.h.s8.bf16 %v6010_v50  ;;  %v7199_v44 = vunpack.c.l.s8.bf16 %v7184_v25  ;;  %v6027_v20 = vunpack.c.l.s8.bf16 %v6013_v30  ;;  %v7336_v30 = vld [vmem:[%s11199_s0 + $0x160] sm:$0xff] }
0x29fb   : > { %v6002_v33 = vadd.f32 %v8732_v47, %v5993_v9  ;;  %v5994_v0 = vmul.f32 %v8924_v46, %v8731_v18  ;;  %9070 = vmatpush3.bf16.msra.mxu1 %v7034_v57  ;;  %v7190_v18 = vunpack.c.h.s8.bf16 %v7179_v12  ;;  %v7180_v57 = vld [vmem:[%s11199_s0 + $0x1d8] sm:$0xff]  ;;  %v8733_v9 = vld [vmem:[%s11206_s11 + $0x4] ss:$0 sm:$0xff] }
0x29fc   : > { %5887 = vmatpush1.bf16.msra.mxu0 %v5869_v1  ;;  %9071 = vmatprep.subr.bf16.mxu1 %v7043_v26  ;;  %v6012_v1 = vld [vmem:[%s11215_s9 + $0xf0] sm:$0xff]  ;;  %v7191_v24 = vunpack.c.l.s8.bf16 %v7180_v57 }
0x29fd   : > { %v6003_v35 = vadd.f32 %v8732_v47, %v5994_v0  ;;  %5888 = vmatprep.subr.bf16.mxu0 %v5872_v31  ;;  %v6004_v40 = vmax.f32 %v6002_v33, 0.0  ;;  %v6026_v0 = vunpack.c.l.s8.bf16 %v6012_v1 }
0x29ff   : > { %v6005_v39 = vmax.f32 %v6003_v35, 0.0  ;;  %9072 = vmatpush3.bf16.msra.mxu1 %v7035_v2  ;;  %v7200_v2 = vunpack.c.h.s8.bf16 %v7184_v25  ;;  %v7338_v35 = vld [vmem:[%s11199_s0 + $0x260] sm:$0xff] }
0x2a00   : > { %5889 = vmatpush1.bf16.msra.mxu0 %v5871_v58  ;;  %9079 = vmatprep.subr.bf16.mxu1 %v7193_v48 }
0x2a01   : > { %v12508_v32 = vpack.c.bf16 %v6005_v39, %v6004_v40  ;;  %6031 = vmatprep.subr.bf16.mxu0 %v6015_v37  ;;  %v6164_v37 = vld [vmem:[%s11215_s9 + $0x108] sm:$0xff]  ;;  %v7192_v39 = vunpack.c.h.s8.bf16 %v7180_v57 }
0x2a02   : > { %7077 = vmatmul.mubr.bf16.vlgmr.msra.gmra.mrb[156].mxu1 %v12356_v43  ;;  %v6172_v28 = vunpack.c.l.s8.bf16 %v6164_v37 }
0x2a03   : > { %5907 = vmatmul.mubr.bf16.vlgmr.msra.gmra.mrb[88].mxu0 %v12484_v17  ;;  %9080 = vmatpush3.bf16.msra.mxu1 %v7185_v62  ;;  %v6018_v17 = vunpack.c.l.s8.bf16 %v6008_v59  ;;  %v6028_v62 = vunpack.c.h.s8.bf16 %v6012_v1  ;;  %v6174_v59 = vunpack.c.h.s8.bf16 %v6164_v37  ;;  %v7341_v1 = vld [vmem:[%s11199_s0 + $0x3e0] sm:$0xff] }
0x2a04   : > { %6032 = vmatpush1.bf16.msra.mxu0 %v6014_v55  ;;  %7233 = vmatprep.mubr.bf16.mxu1 %v12360_v7  ;;  %v7350_v55 = vunpack.c.l.s8.bf16 %v7338_v35  ;;  %v8736_v37 = vld [vmem:[%s11209_s28 + $0x5] ss:$0 sm:$0xff] }
0x2a05   : > { %6033 = vmatprep.subr.bf16.mxu0 %v6017_v61  ;;  %9081 = vmatprep.subr.bf16.mxu1 %v7194_v3  ;;  %v7334_v61 = vld [vmem:[%s11199_s0 + $0x60] sm:$0xff] }
0x2a06   : > { %6063 = vmatprep.mubr.bf16.mxu0 %v10483_v42 }
0x2a07   : > { %9082 = vmatpush3.bf16.msra.mxu1 %v7186_v13 }
0x2a08   : > { %6034 = vmatpush1.bf16.msra.mxu0 %v6016_v56  ;;  %9083 = vmatprep.subr.bf16.mxu1 %v7195_v6  ;;  %v7342_v6 = vunpack.c.l.s8.bf16 %v7334_v61 }
0x2a09   : > { %6035 = vmatprep.subr.bf16.mxu0 %v6019_v27 }
0x2a0b   : > { %9084 = vmatpush3.bf16.msra.mxu1 %v7187_v60  ;;  %v7351_v60 = vunpack.c.h.s8.bf16 %v7338_v35 }
0x2a0c   : > { %6036 = vmatpush1.bf16.msra.mxu0 %v6018_v17  ;;  %9085 = vmatprep.subr.bf16.mxu1 %v7196_v29  ;;  %v7339_v17 = vld [vmem:[%s11199_s0 + $0x2e0] sm:$0xff]  ;;  %v6166_v29 = vld [vmem:[%s11215_s9 + $0x118] sm:$0xff] }
0x2a0d   : > { %6037 = vmatprep.subr.bf16.mxu0 %v6021_v36  ;;  %v7343_v36 = vunpack.c.h.s8.bf16 %v7334_v61  ;;  %v7352_v11 = vunpack.c.l.s8.bf16 %v7339_v17  ;;  %v6178_v50 = vunpack.c.h.s8.bf16 %v6166_v29 }
0x2a0f   : > { %9086 = vmatpush3.bf16.msra.mxu1 %v7188_v5  ;;  %v7335_v5 = vld [vmem:[%s11199_s0 + $0xe0] sm:$0xff] }
0x2a10   : > { %6038 = vmatpush1.bf16.msra.mxu0 %v6020_v52  ;;  %9087 = vmatprep.subr.bf16.mxu1 %v7197_v10  ;;  %v6176_v52 = vunpack.c.l.s8.bf16 %v6166_v29  ;;  %v6165_v10 = vld [vmem:[%s11215_s9 + $0x110] sm:$0xff]  ;;  %v7344_v12 = vunpack.c.l.s8.bf16 %v7335_v5  ;;  %v6320_v29 = vld [vmem:[%s11215_s9 + $0x140] sm:$0xff] }
0x2a11   : > { %6039 = vmatprep.subr.bf16.mxu0 %v6023_v54  ;;  %v7353_v54 = vunpack.c.h.s8.bf16 %v7339_v17 }
0x2a13   : > { %9088 = vmatpush3.bf16.msra.mxu1 %v7189_v15  ;;  %v7340_v15 = vld [vmem:[%s11199_s0 + $0x360] sm:$0xff] }
0x2a14   : > { %6040 = vmatpush1.bf16.msra.mxu0 %v6022_v16  ;;  %9089 = vmatprep.subr.bf16.mxu1 %v7198_v23  ;;  %v6168_v16 = vld [vmem:[%s11215_s9 + $0x128] sm:$0xff]  ;;  %v7345_v23 = vunpack.c.h.s8.bf16 %v7335_v5  ;;  %v7354_v25 = vunpack.c.l.s8.bf16 %v7340_v15  ;;  %v6328_v5 = vunpack.c.l.s8.bf16 %v6320_v29 }
0x2a15   : > { %v8941_v47 = vpop.f32.mrb[132].mxu1  ;;  %6041 = vmatprep.subr.bf16.mxu0 %v6025_v8  ;;  %v6177_v8 = vunpack.c.h.s8.bf16 %v6165_v10 }
0x2a16   : > { %v8942_v26 = vpop.f32.mrb[133].mxu1 }
0x2a17   : > { %v8943_v46 = vadd.f32 %v8942_v26, %v8941_v47  ;;  %v8944_v31 = vpop.f32.mrb[134].mxu1  ;;  %9090 = vmatpush3.bf16.msra.mxu1 %v7190_v18  ;;  %v6180_v18 = vunpack.c.l.s8.bf16 %v6168_v16  ;;  %v7355_v47 = vunpack.c.h.s8.bf16 %v7340_v15  ;;  %v6170_v26 = vld [vmem:[%s11215_s9 + $0x138] sm:$0xff]  ;;  %v6330_v15 = vunpack.c.h.s8.bf16 %v6320_v29 }
0x2a18   : > { %6042 = vmatpush1.bf16.msra.mxu0 %v6024_v34  ;;  %v8945_v33 = vpop.f32.mrb[135].mxu1  ;;  %9091 = vmatprep.subr.bf16.mxu1 %v7199_v44  ;;  %v6167_v34 = vld [vmem:[%s11215_s9 + $0x120] sm:$0xff]  ;;  %v7346_v44 = vunpack.c.l.s8.bf16 %v7336_v30  ;;  %v6186_v61 = vunpack.c.h.s8.bf16 %v6170_v26 }
0x2a19   : > { %v6150_v58 = vmul.f32 %v8943_v46, %v8733_v9  ;;  %v8946_v48 = vadd.f32 %v8945_v33, %v8944_v31  ;;  %6043 = vmatprep.subr.bf16.mxu0 %v6027_v20  ;;  %v6179_v57 = vunpack.c.l.s8.bf16 %v6167_v34  ;;  %v6182_v20 = vunpack.c.h.s8.bf16 %v6168_v16 }
0x2a1a   : > { %v6181_v46 = vunpack.c.h.s8.bf16 %v6167_v34  ;;  %v7356_v31 = vunpack.c.l.s8.bf16 %v7341_v1  ;;  %v6184_v33 = vunpack.c.l.s8.bf16 %v6170_v26  ;;  %v7493_v26 = vld [vmem:[%s11199_s0 + $0x168] sm:$0xff] }
0x2a1b   : > { %v6159_v4 = vadd.f32 %v8734_v22, %v6150_v58  ;;  %v6151_v40 = vmul.f32 %v8946_v48, %v8733_v9  ;;  %9092 = vmatpush3.bf16.msra.mxu1 %v7191_v24  ;;  %v7347_v9 = vunpack.c.h.s8.bf16 %v7336_v30  ;;  %v7337_v24 = vld [vmem:[%s11199_s0 + $0x1e0] sm:$0xff] }
0x2a1c   : > { %6044 = vmatpush1.bf16.msra.mxu0 %v6026_v0  ;;  %9093 = vmatprep.subr.bf16.mxu1 %v7200_v2  ;;  %v6169_v0 = vld [vmem:[%s11215_s9 + $0x130] sm:$0xff]  ;;  %v7348_v35 = vunpack.c.l.s8.bf16 %v7337_v24 }
0x2a1d   : > { %v6160_v3 = vadd.f32 %v8734_v22, %v6151_v40  ;;  %6045 = vmatprep.subr.bf16.mxu0 %v6029_v53  ;;  %v6161_v13 = vmax.f32 %v6159_v4, 0.0  ;;  %v8735_v58 = vld [vmem:[%s11206_s11 + $0x5] ss:$0 sm:$0xff]  ;;  %v6183_v40 = vunpack.c.l.s8.bf16 %v6169_v0 }
0x2a1f   : > { %v6162_v56 = vmax.f32 %v6160_v3, 0.0  ;;  %9094 = vmatpush3.bf16.msra.mxu1 %v7192_v39  ;;  %v7357_v39 = vunpack.c.h.s8.bf16 %v7341_v1  ;;  %v7495_v3 = vld [vmem:[%s11199_s0 + $0x268] sm:$0xff] }
0x2a20   : > { %6046 = vmatpush1.bf16.msra.mxu0 %v6028_v62  ;;  %9101 = vmatprep.subr.bf16.mxu1 %v7350_v55 }
0x2a21   : > { %v12532_v27 = vpack.c.bf16 %v6162_v56, %v6161_v13  ;;  %6188 = vmatprep.subr.bf16.mxu0 %v6172_v28  ;;  %v6321_v28 = vld [vmem:[%s11215_s9 + $0x148] sm:$0xff]  ;;  %v7349_v56 = vunpack.c.h.s8.bf16 %v7337_v24 }
0x2a22   : > { %7234 = vmatmul.mubr.bf16.vlgmr.msra.gmra.mrb[160].mxu1 %v12356_v43  ;;  %v6329_v17 = vunpack.c.l.s8.bf16 %v6321_v28 }
0x2a23   : > { %6064 = vmatmul.mubr.bf16.vlgmr.msra.gmra.mrb[88].mxu0 %v12508_v32  ;;  %9102 = vmatpush3.bf16.msra.mxu1 %v7342_v6  ;;  %v6175_v32 = vunpack.c.l.s8.bf16 %v6165_v10  ;;  %v6185_v6 = vunpack.c.h.s8.bf16 %v6169_v0  ;;  %v6331_v10 = vunpack.c.h.s8.bf16 %v6321_v28  ;;  %v7498_v0 = vld [vmem:[%s11199_s0 + $0x3e8] sm:$0xff]  ;;  %v8738_v28 = vld [vmem:[%s11209_s28 + $0x6] ss:$0 sm:$0xff] }
0x2a24   : > { %6189 = vmatpush1.bf16.msra.mxu0 %v6171_v49  ;;  %7390 = vmatprep.mubr.bf16.mxu1 %v12360_v7  ;;  %v7507_v49 = vunpack.c.l.s8.bf16 %v7495_v3 }
0x2a25   : > { %6190 = vmatprep.subr.bf16.mxu0 %v6174_v59  ;;  %9103 = vmatprep.subr.bf16.mxu1 %v7351_v60  ;;  %v7491_v59 = vld [vmem:[%s11199_s0 + $0x68] sm:$0xff] }
0x2a26   : > { %6220 = vmatprep.mubr.bf16.mxu0 %v10483_v42 }
0x2a27   : > { %9104 = vmatpush3.bf16.msra.mxu1 %v7343_v36 }
0x2a28   : > { %6191 = vmatpush1.bf16.msra.mxu0 %v6173_v51  ;;  %9105 = vmatprep.subr.bf16.mxu1 %v7352_v11  ;;  %v7499_v11 = vunpack.c.l.s8.bf16 %v7491_v59 }
0x2a29   : > { %6192 = vmatprep.subr.bf16.mxu0 %v6176_v52 }
0x2a2b   : > { %9106 = vmatpush3.bf16.msra.mxu1 %v7344_v12  ;;  %v7508_v12 = vunpack.c.h.s8.bf16 %v7495_v3 }
0x2a2c   : > { %6193 = vmatpush1.bf16.msra.mxu0 %v6175_v32  ;;  %9107 = vmatprep.subr.bf16.mxu1 %v7353_v54  ;;  %v7496_v32 = vld [vmem:[%s11199_s0 + $0x2e8] sm:$0xff]  ;;  %v6323_v54 = vld [vmem:[%s11215_s9 + $0x158] sm:$0xff] }
0x2a2d   : > { %6194 = vmatprep.subr.bf16.mxu0 %v6178_v50  ;;  %v7500_v50 = vunpack.c.h.s8.bf16 %v7491_v59  ;;  %v7509_v16 = vunpack.c.l.s8.bf16 %v7496_v32  ;;  %v6335_v34 = vunpack.c.h.s8.bf16 %v6323_v54 }
0x2a2f   : > { %9108 = vmatpush3.bf16.msra.mxu1 %v7345_v23  ;;  %v7492_v23 = vld [vmem:[%s11199_s0 + $0xe8] sm:$0xff] }
0x2a30   : > { %6195 = vmatpush1.bf16.msra.mxu0 %v6177_v8  ;;  %9109 = vmatprep.subr.bf16.mxu1 %v7354_v25  ;;  %v6333_v8 = vunpack.c.l.s8.bf16 %v6323_v54  ;;  %v6322_v25 = vld [vmem:[%s11215_s9 + $0x150] sm:$0xff]  ;;  %v7501_v30 = vunpack.c.l.s8.bf16 %v7492_v23  ;;  %v6477_v54 = vld [vmem:[%s11215_s9 + $0x180] sm:$0xff] }
0x2a31   : > { %6196 = vmatprep.subr.bf16.mxu0 %v6180_v18  ;;  %v7510_v18 = vunpack.c.h.s8.bf16 %v7496_v32 }
0x2a33   : > { %9110 = vmatpush3.bf16.msra.mxu1 %v7346_v44  ;;  %v7497_v44 = vld [vmem:[%s11199_s0 + $0x368] sm:$0xff] }
0x2a34   : > { %6197 = vmatpush1.bf16.msra.mxu0 %v6179_v57  ;;  %9111 = vmatprep.subr.bf16.mxu1 %v7355_v47  ;;  %v6325_v57 = vld [vmem:[%s11215_s9 + $0x168] sm:$0xff]  ;;  %v7502_v47 = vunpack.c.h.s8.bf16 %v7492_v23  ;;  %v7511_v1 = vunpack.c.l.s8.bf16 %v7497_v44  ;;  %v6485_v23 = vunpack.c.l.s8.bf16 %v6477_v54 }
0x2a35   : > { %v8963_v22 = vpop.f32.mrb[136].mxu1  ;;  %6198 = vmatprep.subr.bf16.mxu0 %v6182_v20  ;;  %v6334_v20 = vunpack.c.h.s8.bf16 %v6322_v25 }
0x2a36   : > { %v8964_v2 = vpop.f32.mrb[137].mxu1 }
0x2a37   : > { %v8965_v48 = vadd.f32 %v8964_v2, %v8963_v22  ;;  %v8966_v53 = vpop.f32.mrb[138].mxu1  ;;  %9112 = vmatpush3.bf16.msra.mxu1 %v7347_v9  ;;  %v6337_v9 = vunpack.c.l.s8.bf16 %v6325_v57  ;;  %v7512_v22 = vunpack.c.h.s8.bf16 %v7497_v44  ;;  %v6327_v2 = vld [vmem:[%s11215_s9 + $0x178] sm:$0xff]  ;;  %v6487_v44 = vunpack.c.h.s8.bf16 %v6477_v54 }
0x2a38   : > { %6199 = vmatpush1.bf16.msra.mxu0 %v6181_v46  ;;  %v8967_v4 = vpop.f32.mrb[139].mxu1  ;;  %9113 = vmatprep.subr.bf16.mxu1 %v7356_v31  ;;  %v6324_v46 = vld [vmem:[%s11215_s9 + $0x160] sm:$0xff]  ;;  %v7503_v31 = vunpack.c.l.s8.bf16 %v7493_v26  ;;  %v6343_v59 = vunpack.c.h.s8.bf16 %v6327_v2 }
0x2a39   : > { %v6307_v62 = vmul.f32 %v8965_v48, %v8735_v58  ;;  %v8968_v55 = vadd.f32 %v8967_v4, %v8966_v53  ;;  %6200 = vmatprep.subr.bf16.mxu0 %v6184_v33  ;;  %v6336_v24 = vunpack.c.l.s8.bf16 %v6324_v46  ;;  %v6339_v33 = vunpack.c.h.s8.bf16 %v6325_v57 }
0x2a3a   : > { %v6338_v48 = vunpack.c.h.s8.bf16 %v6324_v46  ;;  %v7513_v53 = vunpack.c.l.s8.bf16 %v7498_v0  ;;  %v6341_v4 = vunpack.c.l.s8.bf16 %v6327_v2  ;;  %v7650_v2 = vld [vmem:[%s11199_s0 + $0x170] sm:$0xff] }
0x2a3b   : > { %v6316_v14 = vadd.f32 %v8736_v37, %v6307_v62  ;;  %v6308_v13 = vmul.f32 %v8968_v55, %v8735_v58  ;;  %9114 = vmatpush3.bf16.msra.mxu1 %v7348_v35  ;;  %v7504_v58 = vunpack.c.h.s8.bf16 %v7493_v26  ;;  %v7494_v35 = vld [vmem:[%s11199_s0 + $0x1e8] sm:$0xff]  ;;  %v8737_v62 = vld [vmem:[%s11206_s11 + $0x6] ss:$0 sm:$0xff] }
0x2a3c   : > { %6201 = vmatpush1.bf16.msra.mxu0 %v6183_v40  ;;  %9115 = vmatprep.subr.bf16.mxu1 %v7357_v39  ;;  %v6326_v40 = vld [vmem:[%s11215_s9 + $0x170] sm:$0xff]  ;;  %v7505_v3 = vunpack.c.l.s8.bf16 %v7494_v35 }
0x2a3d   : > { %v6317_v60 = vadd.f32 %v8736_v37, %v6308_v13  ;;  %6202 = vmatprep.subr.bf16.mxu0 %v6186_v61  ;;  %v6318_v36 = vmax.f32 %v6316_v14, 0.0  ;;  %v6340_v13 = vunpack.c.l.s8.bf16 %v6326_v40 }
0x2a3f   : > { %v6319_v51 = vmax.f32 %v6317_v60, 0.0  ;;  %9116 = vmatpush3.bf16.msra.mxu1 %v7349_v56  ;;  %v7514_v56 = vunpack.c.h.s8.bf16 %v7498_v0  ;;  %v7652_v60 = vld [vmem:[%s11199_s0 + $0x270] sm:$0xff] }
0x2a40   : > { %6203 = vmatpush1.bf16.msra.mxu0 %v6185_v6  ;;  %9123 = vmatprep.subr.bf16.mxu1 %v7507_v49 }
0x2a41   : > { %v12556_v52 = vpack.c.bf16 %v6319_v51, %v6318_v36  ;;  %6345 = vmatprep.subr.bf16.mxu0 %v6329_v17  ;;  %v6478_v17 = vld [vmem:[%s11215_s9 + $0x188] sm:$0xff]  ;;  %v7506_v51 = vunpack.c.h.s8.bf16 %v7494_v35 }
0x2a42   : > { %7391 = vmatmul.mubr.bf16.vlgmr.msra.gmra.mrb[164].mxu1 %v12356_v43  ;;  %v6486_v32 = vunpack.c.l.s8.bf16 %v6478_v17 }
0x2a43   : > { %6221 = vmatmul.mubr.bf16.vlgmr.msra.gmra.mrb[88].mxu0 %v12532_v27  ;;  %9124 = vmatpush3.bf16.msra.mxu1 %v7499_v11  ;;  %v6332_v27 = vunpack.c.l.s8.bf16 %v6322_v25  ;;  %v6342_v11 = vunpack.c.h.s8.bf16 %v6326_v40  ;;  %v6488_v25 = vunpack.c.h.s8.bf16 %v6478_v17  ;;  %v7655_v40 = vld [vmem:[%s11199_s0 + $0x3f0] sm:$0xff] }
0x2a44   : > { %6346 = vmatpush1.bf16.msra.mxu0 %v6328_v5  ;;  %7547 = vmatprep.mubr.bf16.mxu1 %v12360_v7  ;;  %v7664_v5 = vunpack.c.l.s8.bf16 %v7652_v60  ;;  %v8740_v17 = vld [vmem:[%s11209_s28 + $0x7] ss:$0 sm:$0xff] }
0x2a45   : > { %6347 = vmatprep.subr.bf16.mxu0 %v6331_v10  ;;  %9125 = vmatprep.subr.bf16.mxu1 %v7508_v12  ;;  %v7648_v10 = vld [vmem:[%s11199_s0 + $0x70] sm:$0xff] }
0x2a46   : > { %6377 = vmatprep.mubr.bf16.mxu0 %v10483_v42 }
0x2a47   : > { %9126 = vmatpush3.bf16.msra.mxu1 %v7500_v50 }
0x2a48   : > { %6348 = vmatpush1.bf16.msra.mxu0 %v6330_v15  ;;  %9127 = vmatprep.subr.bf16.mxu1 %v7509_v16  ;;  %v7656_v16 = vunpack.c.l.s8.bf16 %v7648_v10 }
0x2a49   : > { %6349 = vmatprep.subr.bf16.mxu0 %v6333_v8 }
0x2a4b   : > { %9128 = vmatpush3.bf16.msra.mxu1 %v7501_v30  ;;  %v7665_v30 = vunpack.c.h.s8.bf16 %v7652_v60 }
0x2a4c   : > { %6350 = vmatpush1.bf16.msra.mxu0 %v6332_v27  ;;  %9129 = vmatprep.subr.bf16.mxu1 %v7510_v18  ;;  %v7653_v27 = vld [vmem:[%s11199_s0 + $0x2f0] sm:$0xff]  ;;  %v6480_v18 = vld [vmem:[%s11215_s9 + $0x198] sm:$0xff] }
0x2a4d   : > { %6351 = vmatprep.subr.bf16.mxu0 %v6335_v34  ;;  %v7657_v34 = vunpack.c.h.s8.bf16 %v7648_v10  ;;  %v7666_v57 = vunpack.c.l.s8.bf16 %v7653_v27  ;;  %v6492_v46 = vunpack.c.h.s8.bf16 %v6480_v18 }
0x2a4f   : > { %9130 = vmatpush3.bf16.msra.mxu1 %v7502_v47  ;;  %v7649_v47 = vld [vmem:[%s11199_s0 + $0xf0] sm:$0xff] }
0x2a50   : > { %6352 = vmatpush1.bf16.msra.mxu0 %v6334_v20  ;;  %9131 = vmatprep.subr.bf16.mxu1 %v7511_v1  ;;  %v6490_v20 = vunpack.c.l.s8.bf16 %v6480_v18  ;;  %v6479_v1 = vld [vmem:[%s11215_s9 + $0x190] sm:$0xff]  ;;  %v7658_v26 = vunpack.c.l.s8.bf16 %v7649_v47  ;;  %v6634_v18 = vld [vmem:[%s11215_s9 + $0x1c0] sm:$0xff] }
0x2a51   : > { %6353 = vmatprep.subr.bf16.mxu0 %v6337_v9  ;;  %v7667_v9 = vunpack.c.h.s8.bf16 %v7653_v27 }
0x2a53   : > { %9132 = vmatpush3.bf16.msra.mxu1 %v7503_v31  ;;  %v7654_v31 = vld [vmem:[%s11199_s0 + $0x370] sm:$0xff] }
0x2a54   : > { %6354 = vmatpush1.bf16.msra.mxu0 %v6336_v24  ;;  %9133 = vmatprep.subr.bf16.mxu1 %v7512_v22  ;;  %v6482_v24 = vld [vmem:[%s11215_s9 + $0x1a8] sm:$0xff]  ;;  %v7659_v22 = vunpack.c.h.s8.bf16 %v7649_v47  ;;  %v7668_v0 = vunpack.c.l.s8.bf16 %v7654_v31  ;;  %v6642_v47 = vunpack.c.l.s8.bf16 %v6634_v18 }
0x2a55   : > { %v8985_v37 = vpop.f32.mrb[140].mxu1  ;;  %6355 = vmatprep.subr.bf16.mxu0 %v6339_v33  ;;  %v6491_v33 = vunpack.c.h.s8.bf16 %v6479_v1 }
0x2a56   : > { %v8986_v39 = vpop.f32.mrb[141].mxu1 }
0x2a57   : > { %v8987_v55 = vadd.f32 %v8986_v39, %v8985_v37  ;;  %v8988_v61 = vpop.f32.mrb[142].mxu1  ;;  %9134 = vmatpush3.bf16.msra.mxu1 %v7504_v58  ;;  %v6494_v58 = vunpack.c.l.s8.bf16 %v6482_v24  ;;  %v7669_v37 = vunpack.c.h.s8.bf16 %v7654_v31  ;;  %v6484_v39 = vld [vmem:[%s11215_s9 + $0x1b8] sm:$0xff]  ;;  %v6644_v31 = vunpack.c.h.s8.bf16 %v6634_v18 }
0x2a58   : > { %6356 = vmatpush1.bf16.msra.mxu0 %v6338_v48  ;;  %v8989_v14 = vpop.f32.mrb[143].mxu1  ;;  %9135 = vmatprep.subr.bf16.mxu1 %v7513_v53  ;;  %v6481_v48 = vld [vmem:[%s11215_s9 + $0x1a0] sm:$0xff]  ;;  %v7660_v53 = vunpack.c.l.s8.bf16 %v7650_v2  ;;  %v6500_v10 = vunpack.c.h.s8.bf16 %v6484_v39 }
0x2a59   : > { %v6464_v6 = vmul.f32 %v8987_v55, %v8737_v62  ;;  %v8990_v49 = vadd.f32 %v8989_v14, %v8988_v61  ;;  %6357 = vmatprep.subr.bf16.mxu0 %v6341_v4  ;;  %v6493_v35 = vunpack.c.l.s8.bf16 %v6481_v48  ;;  %v6496_v4 = vunpack.c.h.s8.bf16 %v6482_v24 }
0x2a5a   : > { %v6495_v55 = vunpack.c.h.s8.bf16 %v6481_v48  ;;  %v7670_v61 = vunpack.c.l.s8.bf16 %v7655_v40  ;;  %v6498_v14 = vunpack.c.l.s8.bf16 %v6484_v39  ;;  %v7811_v48 = vld [vmem:[%s11199_s0 + $0x378] sm:$0xff] }
0x2a5b   : > { %v6473_v29 = vadd.f32 %v8738_v28, %v6464_v6  ;;  %v6465_v36 = vmul.f32 %v8990_v49, %v8737_v62  ;;  %9136 = vmatpush3.bf16.msra.mxu1 %v7505_v3  ;;  %v7661_v62 = vunpack.c.h.s8.bf16 %v7650_v2  ;;  %v7651_v3 = vld [vmem:[%s11199_s0 + $0x1f0] sm:$0xff] }
0x2a5c   : > { %6358 = vmatpush1.bf16.msra.mxu0 %v6340_v13  ;;  %9137 = vmatprep.subr.bf16.mxu1 %v7514_v56  ;;  %v6483_v13 = vld [vmem:[%s11215_s9 + $0x1b0] sm:$0xff]  ;;  %v7662_v60 = vunpack.c.l.s8.bf16 %v7651_v3 }
0x2a5d   : > { %v6474_v12 = vadd.f32 %v8738_v28, %v6465_v36  ;;  %6359 = vmatprep.subr.bf16.mxu0 %v6343_v59  ;;  %v6475_v50 = vmax.f32 %v6473_v29, 0.0  ;;  %v8739_v6 = vld [vmem:[%s11206_s11 + $0x7] ss:$0 sm:$0xff]  ;;  %v6497_v36 = vunpack.c.l.s8.bf16 %v6483_v13 }
0x2a5f   : > { %v6476_v15 = vmax.f32 %v6474_v12, 0.0  ;;  %9138 = vmatpush3.bf16.msra.mxu1 %v7506_v51  ;;  %v7671_v51 = vunpack.c.h.s8.bf16 %v7655_v40  ;;  %v7809_v12 = vld [vmem:[%s11199_s0 + $0x278] sm:$0xff] }
0x2a60   : > { %6360 = vmatpush1.bf16.msra.mxu0 %v6342_v11  ;;  %9145 = vmatprep.subr.bf16.mxu1 %v7664_v5  ;;  %v7807_v40 = vld [vmem:[%s11199_s0 + $0x178] sm:$0xff] }
0x2a61   : > { %v12580_v8 = vpack.c.bf16 %v6476_v15, %v6475_v50  ;;  %6502 = vmatprep.subr.bf16.mxu0 %v6486_v32  ;;  %v6635_v32 = vld [vmem:[%s11215_s9 + $0x1c8] sm:$0xff]  ;;  %v7663_v15 = vunpack.c.h.s8.bf16 %v7651_v3  ;;  %v7826_v3 = vunpack.c.h.s8.bf16 %v7811_v48 }
0x2a62   : > { %7548 = vmatmul.mubr.bf16.vlgmr.msra.gmra.mrb[168].mxu1 %v12356_v43  ;;  %v6643_v27 = vunpack.c.l.s8.bf16 %v6635_v32 }
0x2a63   : > { %6378 = vmatmul.mubr.bf16.vlgmr.msra.gmra.mrb[88].mxu0 %v12556_v52  ;;  %9146 = vmatpush3.bf16.msra.mxu1 %v7656_v16  ;;  %v6489_v52 = vunpack.c.l.s8.bf16 %v6479_v1  ;;  %v6499_v16 = vunpack.c.h.s8.bf16 %v6483_v13  ;;  %v6645_v1 = vunpack.c.h.s8.bf16 %v6635_v32  ;;  %v6641_v13 = vld [vmem:[%s11215_s9 + $0x1f8] sm:$0xff] }
0x2a64   : > { %6503 = vmatpush1.bf16.msra.mxu0 %v6485_v23  ;;  %7704 = vmatprep.mubr.bf16.mxu1 %v12360_v7  ;;  %v7821_v23 = vunpack.c.l.s8.bf16 %v7809_v12 }
0x2a65   : > { %6504 = vmatprep.subr.bf16.mxu0 %v6488_v25  ;;  %9147 = vmatprep.subr.bf16.mxu1 %v7665_v30  ;;  %v7805_v25 = vld [vmem:[%s11199_s0 + $0x78] sm:$0xff] }
0x2a66   : > { %6534 = vmatprep.mubr.bf16.mxu0 %v10483_v42 }
0x2a67   : > { %9148 = vmatpush3.bf16.msra.mxu1 %v7657_v34 }
0x2a68   : > { %6505 = vmatpush1.bf16.msra.mxu0 %v6487_v44  ;;  %9149 = vmatprep.subr.bf16.mxu1 %v7666_v57  ;;  %v7813_v57 = vunpack.c.l.s8.bf16 %v7805_v25 }
0x2a69   : > { %6506 = vmatprep.subr.bf16.mxu0 %v6490_v20 }
0x2a6b   : > { %9150 = vmatpush3.bf16.msra.mxu1 %v7658_v26  ;;  %v7822_v26 = vunpack.c.h.s8.bf16 %v7809_v12  ;;  %v8742_v12 = vld [vmem:[%s11209_s28 + $0x8] ss:$0 sm:$0xff] }
0x2a6c   : > { %6507 = vmatpush1.bf16.msra.mxu0 %v6489_v52  ;;  %9151 = vmatprep.subr.bf16.mxu1 %v7667_v9  ;;  %v7810_v52 = vld [vmem:[%s11199_s0 + $0x2f8] sm:$0xff] }
0x2a6d   : > { %6508 = vmatprep.subr.bf16.mxu0 %v6492_v46  ;;  %v6637_v9 = vld [vmem:[%s11215_s9 + $0x1d8] sm:$0xff]  ;;  %v7814_v46 = vunpack.c.h.s8.bf16 %v7805_v25  ;;  %v7823_v24 = vunpack.c.l.s8.bf16 %v7810_v52  ;;  %v6792_v25 = vld [vmem:[%s11215_s9 + $0x208] sm:$0xff] }
0x2a6f   : > { %9152 = vmatpush3.bf16.msra.mxu1 %v7659_v22  ;;  %v7806_v22 = vld [vmem:[%s11199_s0 + $0xf8] sm:$0xff] }
0x2a70   : > { %6509 = vmatpush1.bf16.msra.mxu0 %v6491_v33  ;;  %9153 = vmatprep.subr.bf16.mxu1 %v7668_v0  ;;  %v6647_v33 = vunpack.c.l.s8.bf16 %v6637_v9  ;;  %v6636_v0 = vld [vmem:[%s11215_s9 + $0x1d0] sm:$0xff]  ;;  %v7815_v2 = vunpack.c.l.s8.bf16 %v7806_v22 }
0x2a71   : > { %6510 = vmatprep.subr.bf16.mxu0 %v6494_v58  ;;  %v7824_v58 = vunpack.c.h.s8.bf16 %v7810_v52 }
0x2a73   : > { %9154 = vmatpush3.bf16.msra.mxu1 %v7660_v53  ;;  %v6639_v53 = vld [vmem:[%s11215_s9 + $0x1e8] sm:$0xff] }
0x2a74   : > { %6511 = vmatpush1.bf16.msra.mxu0 %v6493_v35  ;;  %9155 = vmatprep.subr.bf16.mxu1 %v7669_v37  ;;  %v7816_v35 = vunpack.c.h.s8.bf16 %v7806_v22  ;;  %v6648_v37 = vunpack.c.h.s8.bf16 %v6636_v0  ;;  %v6651_v39 = vunpack.c.l.s8.bf16 %v6639_v53 }
0x2a75   : > { %v9007_v28 = vpop.f32.mrb[144].mxu1  ;;  %6512 = vmatprep.subr.bf16.mxu0 %v6496_v4  ;;  %v7825_v4 = vunpack.c.l.s8.bf16 %v7811_v48 }
0x2a76   : > { %v9008_v56 = vpop.f32.mrb[145].mxu1 }
0x2a77   : > { %v9009_v49 = vadd.f32 %v9008_v56, %v9007_v28  ;;  %v9010_v59 = vpop.f32.mrb[146].mxu1  ;;  %9156 = vmatpush3.bf16.msra.mxu1 %v7661_v62  ;;  %v6638_v62 = vld [vmem:[%s11215_s9 + $0x1e0] sm:$0xff]  ;;  %v6653_v28 = vunpack.c.h.s8.bf16 %v6639_v53  ;;  %v7818_v56 = vunpack.c.h.s8.bf16 %v7807_v40  ;;  %v6798_v53 = vld [vmem:[%s11215_s9 + $0x238] sm:$0xff] }
0x2a78   : > { %6513 = vmatpush1.bf16.msra.mxu0 %v6495_v55  ;;  %v9011_v29 = vpop.f32.mrb[147].mxu1  ;;  %9157 = vmatprep.subr.bf16.mxu1 %v7670_v61  ;;  %v7817_v55 = vunpack.c.l.s8.bf16 %v7807_v40  ;;  %v6650_v61 = vunpack.c.l.s8.bf16 %v6638_v62  ;;  %v6797_v40 = vld [vmem:[%s11215_s9 + $0x230] sm:$0xff] }
0x2a79   : > { %v6621_v11 = vmul.f32 %v9009_v49, %v8739_v6  ;;  %v9012_v5 = vadd.f32 %v9011_v29, %v9010_v59  ;;  %6514 = vmatprep.subr.bf16.mxu0 %v6498_v14  ;;  %v7812_v14 = vld [vmem:[%s11199_s0 + $0x3f8] sm:$0xff]  ;;  %v6640_v29 = vld [vmem:[%s11215_s9 + $0x1f0] sm:$0xff] }
0x2a7a   : > { %v7827_v49 = vunpack.c.l.s8.bf16 %v7812_v14  ;;  %v7808_v59 = vld [vmem:[%s11199_s0 + $0x1f8] sm:$0xff]  ;;  %s10349_s0 = scalar_lea.vmem %s8073_s27, 512 }
0x2a7b   : > { %v6630_v54 = vadd.f32 %v8740_v17, %v6621_v11  ;;  %v6622_v50 = vmul.f32 %v9012_v5, %v8739_v6  ;;  %9158 = vmatpush3.bf16.msra.mxu1 %v7662_v60  ;;  %v6652_v6 = vunpack.c.h.s8.bf16 %v6638_v62  ;;  %v7820_v18 = vunpack.c.h.s8.bf16 %v7808_v59  ;;  %v8743_v62 = vld [vmem:[%s11206_s11 + $0x9] ss:$0 sm:$0xff]  ;;  %p10350_p3 = scmp.ne.s32.totalorder %s8073_s27, %s10349_s0  ;;  %p10357_p12 = scmp.lt.s32.totalorder %s10349_s0, %s10349_s0 }
0x2a7c   : > { %6515 = vmatpush1.bf16.msra.mxu0 %v6497_v36  ;;  %9159 = vmatprep.subr.bf16.mxu1 %v7671_v51  ;;  %v8741_v51 = vld [vmem:[%s11206_s11 + $0x8] ss:$0 sm:$0xff] }
0x2a7d   : > { %v6631_v30 = vadd.f32 %v8740_v17, %v6622_v50  ;;  %6516 = vmatprep.subr.bf16.mxu0 %v6500_v10  ;;  %v6632_v34 = vmax.f32 %v6630_v54, 0.0  ;;  %v6655_v17 = vunpack.c.l.s8.bf16 %v6641_v13  ;;  %v7819_v10 = vunpack.c.l.s8.bf16 %v7808_v59  ;;  %p10351_p7 = pnand %p10350_p3, %p9527_p11  ;;  %p10358_p5 = por %p10357_p12, %p10356_p13 }
0x2a7e   : > { %v6654_v54 = vunpack.c.l.s8.bf16 %v6640_v29  ;;  %v7828_v50 = vunpack.c.h.s8.bf16 %v7812_v14  ;;  %v6811_v14 = vunpack.c.l.s8.bf16 %v6797_v40 }
0x2a7f   : > { %v6633_v44 = vmax.f32 %v6631_v30, 0.0  ;;  %9160 = vmatpush3.bf16.msra.mxu1 %v7663_v15  ;;  %p10352_p1 = pneg %p10351_p7 }
0x2a80   : > { %6517 = vmatpush1.bf16.msra.mxu0 %v6499_v16  ;;  %9167 = vmatprep.subr.bf16.mxu1 %v7821_v23  ;;  %v6657_v23 = vunpack.c.h.s8.bf16 %v6641_v13 }
0x2a81   : > { %v12604_v20 = vpack.c.bf16 %v6633_v44, %v6632_v34  ;;  %6659 = vmatprep.subr.bf16.mxu0 %v6643_v27  ;;  %v6656_v34 = vunpack.c.h.s8.bf16 %v6640_v29  ;;  %p10359_p4 = pnand %p10358_p5, %p10352_p1 }
0x2a82   : > { %7705 = vmatmul.mubr.bf16.vlgmr.msra.gmra.mrb[172].mxu1 %v12356_v43 }
0x2a83   : > { %6535 = vmatmul.mubr.bf16.vlgmr.msra.gmra.mrb[88].mxu0 %v12580_v8  ;;  %9168 = vmatpush3.bf16.msra.mxu1 %v7813_v57  ;;  %v6646_v8 = vunpack.c.l.s8.bf16 %v6636_v0  ;;  %v6800_v57 = vunpack.c.l.s8.bf16 %v6792_v25 }
0x2a84   : > { %6660 = vmatpush1.bf16.msra.mxu0 %v6642_v47  ;;  %7861 = vmatprep.mubr.bf16.mxu1 %v12360_v7  ;;  %v6649_v7 = vunpack.c.h.s8.bf16 %v6637_v9  ;;  %v6791_v47 = vld [vmem:[%s11215_s9 + $0x200] sm:$0xff] }
0x2a85   : > { %6661 = vmatprep.subr.bf16.mxu0 %v6645_v1  ;;  %9169 = vmatprep.subr.bf16.mxu1 %v7822_v26  ;;  %v6799_v52 = vunpack.c.l.s8.bf16 %v6791_v47 }
0x2a86   : > { %6691 = vmatprep.mubr.bf16.mxu0 %v10483_v42 }
0x2a87   : > { %9170 = vmatpush3.bf16.msra.mxu1 %v7814_v46  ;;  %v6802_v46 = vunpack.c.h.s8.bf16 %v6792_v25 }
0x2a88   : > { %6662 = vmatpush1.bf16.msra.mxu0 %v6644_v31  ;;  %9171 = vmatprep.subr.bf16.mxu1 %v7823_v24  ;;  %v6794_v31 = vld [vmem:[%s11215_s9 + $0x218] sm:$0xff]  ;;  %v6801_v24 = vunpack.c.h.s8.bf16 %v6791_v47 }
0x2a89   : > { %6663 = vmatprep.subr.bf16.mxu0 %v6647_v33  ;;  %v6804_v22 = vunpack.c.l.s8.bf16 %v6794_v31  ;;  %v6793_v33 = vld [vmem:[%s11215_s9 + $0x210] sm:$0xff]  ;;  %v6955_v47 = vld [vmem:[%s11215_s9 + $0x278] sm:$0xff] }
0x2a8a   : > { %v6803_v0 = vunpack.c.l.s8.bf16 %v6793_v33 }
0x2a8b   : > { %9172 = vmatpush3.bf16.msra.mxu1 %v7815_v2  ;;  %v6806_v2 = vunpack.c.h.s8.bf16 %v6794_v31  ;;  %v8745_v31 = vld [vmem:[%s11206_s11 + $0xa] ss:$0 sm:$0xff] }
0x2a8c   : > { %6664 = vmatpush1.bf16.msra.mxu0 %v6646_v8  ;;  %9173 = vmatprep.subr.bf16.mxu1 %v7824_v58  ;;  %v6796_v8 = vld [vmem:[%s11215_s9 + $0x228] sm:$0xff]  ;;  %v6795_v58 = vld [vmem:[%s11215_s9 + $0x220] sm:$0xff] }
0x2a8d   : > { %6665 = vmatprep.subr.bf16.mxu0 %v6649_v7  ;;  %v6807_v7 = vunpack.c.l.s8.bf16 %v6795_v58  ;;  %v6810_v48 = vunpack.c.h.s8.bf16 %v6796_v8 }
0x2a8f   : > { %9174 = vmatpush3.bf16.msra.mxu1 %v7816_v35  ;;  %v6809_v35 = vunpack.c.h.s8.bf16 %v6795_v58  ;;  %v7106_v58 = vld [vmem:[%s11215_s9 + $0x288] sm:$0xff] }
0x2a90   : > { %6666 = vmatpush1.bf16.msra.mxu0 %v6648_v37  ;;  %9175 = vmatprep.subr.bf16.mxu1 %v7825_v4  ;;  %v6812_v4 = vunpack.c.l.s8.bf16 %v6798_v53 }
0x2a91   : > { %6667 = vmatprep.subr.bf16.mxu0 %v6651_v39 }
0x2a93   : > { %9176 = vmatpush3.bf16.msra.mxu1 %v7817_v55 }
0x2a94   : > { %6668 = vmatpush1.bf16.msra.mxu0 %v6650_v61  ;;  %9177 = vmatprep.subr.bf16.mxu1 %v7826_v3  ;;  %v8744_v3 = vld [vmem:[%s11209_s28 + $0x9] ss:$0 sm:$0xff] }
0x2a95   : > { %v9029_v60 = vpop.f32.mrb[148].mxu1  ;;  %6669 = vmatprep.subr.bf16.mxu0 %v6653_v28 }
0x2a96   : > { %v9030_v36 = vpop.f32.mrb[149].mxu1 }
0x2a97   : > { %v9031_v11 = vadd.f32 %v9030_v36, %v9029_v60  ;;  %v9032_v5 = vpop.f32.mrb[150].mxu1  ;;  %9178 = vmatpush3.bf16.msra.mxu1 %v7818_v56 }
0x2a98   : > { %6670 = vmatpush1.bf16.msra.mxu0 %v6652_v6  ;;  %v9033_v32 = vpop.f32.mrb[151].mxu1  ;;  %9179 = vmatprep.subr.bf16.mxu1 %v7827_v49  ;;  %v6814_v6 = vunpack.c.h.s8.bf16 %v6798_v53  ;;  %v6949_v49 = vld [vmem:[%s11215_s9 + $0x248] sm:$0xff] }
0x2a99   : > { %v6778_v15 = vmul.f32 %v9031_v11, %v8741_v51  ;;  %v9034_v16 = vadd.f32 %v9033_v32, %v9032_v5  ;;  %6671 = vmatprep.subr.bf16.mxu0 %v6655_v17  ;;  %v6813_v17 = vunpack.c.h.s8.bf16 %v6797_v40  ;;  %v6957_v36 = vunpack.c.l.s8.bf16 %v6949_v49 }
0x2a9a   : > { %v6959_v32 = vunpack.c.h.s8.bf16 %v6949_v49  ;;  %v7110_v49 = vld [vmem:[%s11215_s9 + $0x2a8] sm:$0xff] }
0x2a9b   : > { %v6787_v30 = vadd.f32 %v8742_v12, %v6778_v15  ;;  %v6779_v27 = vmul.f32 %v9034_v16, %v8741_v51  ;;  %9180 = vmatpush3.bf16.msra.mxu1 %v7819_v10  ;;  %v6948_v51 = vld [vmem:[%s11215_s9 + $0x240] sm:$0xff]  ;;  %v6950_v16 = vld [vmem:[%s11215_s9 + $0x250] sm:$0xff] }
0x2a9c   : > { %6672 = vmatpush1.bf16.msra.mxu0 %v6654_v54  ;;  %9181 = vmatprep.subr.bf16.mxu1 %v7828_v50  ;;  %v6956_v10 = vunpack.c.l.s8.bf16 %v6948_v51  ;;  %v6951_v54 = vld [vmem:[%s11215_s9 + $0x258] sm:$0xff]  ;;  %v6958_v50 = vunpack.c.h.s8.bf16 %v6948_v51 }
0x2a9d   : > { %v6788_v44 = vadd.f32 %v8742_v12, %v6779_v27  ;;  %6673 = vmatprep.subr.bf16.mxu0 %v6657_v23  ;;  %v6789_v1 = vmax.f32 %v6787_v30, 0.0  ;;  %v6961_v15 = vunpack.c.l.s8.bf16 %v6951_v54  ;;  %v6960_v23 = vunpack.c.l.s8.bf16 %v6950_v16  ;;  %v6953_v30 = vld [vmem:[%s11215_s9 + $0x268] sm:$0xff]  ;;  %v7112_v51 = vld [vmem:[%s11215_s9 + $0x2b8] sm:$0xff] }
0x2a9e   : > { %v6963_v25 = vunpack.c.h.s8.bf16 %v6951_v54  ;;  %v6962_v27 = vunpack.c.h.s8.bf16 %v6950_v16  ;;  %v8747_v54 = vld [vmem:[%s11206_s11 + $0xb] ss:$0 sm:$0xff] }
0x2a9f   : > { %v6790_v26 = vmax.f32 %v6788_v44, 0.0  ;;  %9182 = vmatpush3.bf16.msra.mxu1 %v7820_v18  ;;  %v6965_v18 = vunpack.c.l.s8.bf16 %v6953_v30  ;;  %v8748_v16 = vld [vmem:[%s11209_s28 + $0xb] ss:$0 sm:$0xff] }
0x2aa0   : > { %6674 = vmatpush1.bf16.msra.mxu0 %v6656_v34  ;;  %v6952_v34 = vld [vmem:[%s11215_s9 + $0x260] sm:$0xff] }
0x2aa1   : > { %v6815_v9 = vpack.c.bf16 %v6790_v26, %v6789_v1  ;;  %6816 = vmatprep.subr.bf16.mxu0 %v6800_v57  ;;  %v6964_v44 = vunpack.c.l.s8.bf16 %v6952_v34  ;;  %v6967_v57 = vunpack.c.h.s8.bf16 %v6953_v30  ;;  %v6966_v1 = vunpack.c.h.s8.bf16 %v6952_v34  ;;  %v7263_v34 = vld [vmem:[%s11215_s9 + $0x2c8] sm:$0xff] }
0x2aa2   : > { %7862 = vmatmul.mubr.bf16.vlgmr.msra.gmra.mrb[176].mxu1 %v12356_v43  ;;  %v6805_v43 = vunpack.c.h.s8.bf16 %v6793_v33  ;;  %v8746_v33 = vld [vmem:[%s11209_s28 + $0xa] ss:$0 sm:$0xff] }
0x2aa3   : > { %6692 = vmatmul.mubr.bf16.vlgmr.msra.gmra.mrb[88].mxu0 %v12604_v20  ;;  %v6808_v20 = vunpack.c.l.s8.bf16 %v6796_v8 }
0x2aa4   : > { %6817 = vmatpush1.bf16.msra.mxu0 %v6799_v52  ;;  %6848 = vmatprep.mubr.bf16.mxu0 %v10483_v42  ;;  %v6969_v52 = vunpack.c.l.s8.bf16 %v6955_v47 }
0x2aa5   : > { %6818 = vmatprep.subr.bf16.mxu0 %v6802_v46 }
0x2aa8   : > { %6819 = vmatpush1.bf16.msra.mxu0 %v6801_v24 }
0x2aa9   : > { %6820 = vmatprep.subr.bf16.mxu0 %v6804_v22 }
0x2aac   : > { %6821 = vmatpush1.bf16.msra.mxu0 %v6803_v0 }
0x2aad   : > { %6822 = vmatprep.subr.bf16.mxu0 %v6806_v2 }
0x2ab0   : > { %6823 = vmatpush1.bf16.msra.mxu0 %v6805_v43 }
0x2ab1   : > { %6824 = vmatprep.subr.bf16.mxu0 %v6808_v20  ;;  %v6971_v20 = vunpack.c.h.s8.bf16 %v6955_v47 }
0x2ab4   : > { %6825 = vmatpush1.bf16.msra.mxu0 %v6807_v7 }
0x2ab5   : > { %v9051_v37 = vpop.f32.mrb[152].mxu1  ;;  %6826 = vmatprep.subr.bf16.mxu0 %v6810_v48 }
0x2ab6   : > { %v9052_v39 = vpop.f32.mrb[153].mxu1 }
0x2ab7   : > { %v9053_v55 = vadd.f32 %v9052_v39, %v9051_v37  ;;  %v9054_v61 = vpop.f32.mrb[154].mxu1  ;;  %v7114_v37 = vunpack.c.l.s8.bf16 %v7106_v58 }
0x2ab8   : > { %6827 = vmatpush1.bf16.msra.mxu0 %v6809_v35  ;;  %v9055_v28 = vpop.f32.mrb[155].mxu1 }
0x2ab9   : > { %v6935_v13 = vmul.f32 %v9053_v55, %v8743_v62  ;;  %v9056_v56 = vadd.f32 %v9055_v28, %v9054_v61  ;;  %6828 = vmatprep.subr.bf16.mxu0 %v6812_v4  ;;  %v7105_v4 = vld [vmem:[%s11215_s9 + $0x280] sm:$0xff]  ;;  %v7116_v61 = vunpack.c.h.s8.bf16 %v7106_v58  ;;  %v7267_v58 = vld [vmem:[%s11215_s9 + $0x2e8] sm:$0xff] }
0x2aba   : > { %v7115_v28 = vunpack.c.h.s8.bf16 %v7105_v4 }
0x2abb   : > { %v6944_v59 = vadd.f32 %v8744_v3, %v6935_v13  ;;  %v6936_v60 = vmul.f32 %v9056_v56, %v8743_v62  ;;  %v7113_v62 = vunpack.c.l.s8.bf16 %v7105_v4  ;;  %v7107_v13 = vld [vmem:[%s11215_s9 + $0x290] sm:$0xff]  ;;  %v7269_v4 = vld [vmem:[%s11215_s9 + $0x2f8] sm:$0xff] }
0x2abc   : > { %6829 = vmatpush1.bf16.msra.mxu0 %v6811_v14  ;;  %v7117_v56 = vunpack.c.l.s8.bf16 %v7107_v13 }
0x2abd   : > { %v6945_v29 = vadd.f32 %v8744_v3, %v6936_v60  ;;  %6830 = vmatprep.subr.bf16.mxu0 %v6814_v6  ;;  %v6946_v11 = vmax.f32 %v6944_v59, 0.0  ;;  %v7108_v3 = vld [vmem:[%s11215_s9 + $0x298] sm:$0xff]  ;;  %v7119_v59 = vunpack.c.h.s8.bf16 %v7107_v13  ;;  %v7122_v60 = vunpack.c.l.s8.bf16 %v7110_v49 }
0x2abe   : > { %v7118_v14 = vunpack.c.l.s8.bf16 %v7108_v3  ;;  %v7120_v6 = vunpack.c.h.s8.bf16 %v7108_v3  ;;  %v8749_v3 = vld [vmem:[%s11206_s11 + $0xc] ss:$0 sm:$0xff] }
0x2abf   : > { %v6947_v5 = vmax.f32 %v6945_v29, 0.0  ;;  %v8750_v13 = vld [vmem:[%s11209_s28 + $0xc] ss:$0 sm:$0xff] }
0x2ac0   : > { %6831 = vmatpush1.bf16.msra.mxu0 %v6813_v17  ;;  %v7109_v17 = vld [vmem:[%s11215_s9 + $0x2a0] sm:$0xff] }
0x2ac1   : > { %v6972_v12 = vpack.c.bf16 %v6947_v5, %v6946_v11  ;;  %6973 = vmatprep.subr.bf16.mxu0 %v6957_v36  ;;  %v7121_v29 = vunpack.c.l.s8.bf16 %v7109_v17  ;;  %v7124_v36 = vunpack.c.h.s8.bf16 %v7110_v49  ;;  %v7123_v11 = vunpack.c.h.s8.bf16 %v7109_v17  ;;  %v7420_v17 = vld [vmem:[%s11215_s9 + $0x308] sm:$0xff] }
0x2ac3   : > { %6849 = vmatmul.mubr.bf16.vlgmr.msra.gmra.mrb[88].mxu0 %v6815_v9  ;;  %v6954_v9 = vld [vmem:[%s11215_s9 + $0x270] sm:$0xff] }
0x2ac4   : > { %6974 = vmatpush1.bf16.msra.mxu0 %v6956_v10  ;;  %7005 = vmatprep.mubr.bf16.mxu0 %v10483_v42  ;;  %v6968_v2 = vunpack.c.l.s8.bf16 %v6954_v9  ;;  %v6970_v53 = vunpack.c.h.s8.bf16 %v6954_v9  ;;  %v7126_v10 = vunpack.c.l.s8.bf16 %v7112_v51 }
0x2ac5   : > { %6975 = vmatprep.subr.bf16.mxu0 %v6959_v32 }
0x2ac8   : > { %6976 = vmatpush1.bf16.msra.mxu0 %v6958_v50 }
0x2ac9   : > { %6977 = vmatprep.subr.bf16.mxu0 %v6961_v15 }
0x2acc   : > { %6978 = vmatpush1.bf16.msra.mxu0 %v6960_v23 }
0x2acd   : > { %6979 = vmatprep.subr.bf16.mxu0 %v6963_v25 }
0x2ad0   : > { %6980 = vmatpush1.bf16.msra.mxu0 %v6962_v27 }
0x2ad1   : > { %6981 = vmatprep.subr.bf16.mxu0 %v6965_v18  ;;  %v7128_v18 = vunpack.c.h.s8.bf16 %v7112_v51 }
0x2ad4   : > { %6982 = vmatpush1.bf16.msra.mxu0 %v6964_v44 }
0x2ad5   : > { %v9073_v26 = vpop.f32.mrb[156].mxu1  ;;  %6983 = vmatprep.subr.bf16.mxu0 %v6967_v57 }
0x2ad6   : > { %v9074_v46 = vpop.f32.mrb[157].mxu1 }
0x2ad7   : > { %v9075_v24 = vadd.f32 %v9074_v46, %v9073_v26  ;;  %v9076_v22 = vpop.f32.mrb[158].mxu1  ;;  %v7271_v26 = vunpack.c.l.s8.bf16 %v7263_v34 }
0x2ad8   : > { %6984 = vmatpush1.bf16.msra.mxu0 %v6966_v1  ;;  %v9077_v0 = vpop.f32.mrb[159].mxu1 }
0x2ad9   : > { %v7092_v8 = vmul.f32 %v9075_v24, %v8745_v31  ;;  %v9078_v43 = vadd.f32 %v9077_v0, %v9076_v22  ;;  %6985 = vmatprep.subr.bf16.mxu0 %v6969_v52  ;;  %v7262_v52 = vld [vmem:[%s11215_s9 + $0x2c0] sm:$0xff]  ;;  %v7273_v22 = vunpack.c.h.s8.bf16 %v7263_v34  ;;  %v7424_v34 = vld [vmem:[%s11215_s9 + $0x328] sm:$0xff] }
0x2ada   : > { %v7272_v0 = vunpack.c.h.s8.bf16 %v7262_v52 }
0x2adb   : > { %v7101_v7 = vadd.f32 %v8746_v33, %v7092_v8  ;;  %v7093_v48 = vmul.f32 %v9078_v43, %v8745_v31  ;;  %v7270_v31 = vunpack.c.l.s8.bf16 %v7262_v52  ;;  %v7264_v8 = vld [vmem:[%s11215_s9 + $0x2d0] sm:$0xff]  ;;  %v7426_v52 = vld [vmem:[%s11215_s9 + $0x338] sm:$0xff] }
0x2adc   : > { %6986 = vmatpush1.bf16.msra.mxu0 %v6968_v2  ;;  %v7274_v43 = vunpack.c.l.s8.bf16 %v7264_v8 }
0x2add   : > { %v7102_v35 = vadd.f32 %v8746_v33, %v7093_v48  ;;  %6987 = vmatprep.subr.bf16.mxu0 %v6971_v20  ;;  %v7103_v40 = vmax.f32 %v7101_v7, 0.0  ;;  %v7265_v33 = vld [vmem:[%s11215_s9 + $0x2d8] sm:$0xff]  ;;  %v7276_v7 = vunpack.c.h.s8.bf16 %v7264_v8  ;;  %v7279_v48 = vunpack.c.l.s8.bf16 %v7267_v58 }
0x2ade   : > { %v7275_v2 = vunpack.c.l.s8.bf16 %v7265_v33  ;;  %v7277_v20 = vunpack.c.h.s8.bf16 %v7265_v33  ;;  %v8751_v33 = vld [vmem:[%s11206_s11 + $0xd] ss:$0 sm:$0xff] }
0x2adf   : > { %v7104_v39 = vmax.f32 %v7102_v35, 0.0  ;;  %v8752_v8 = vld [vmem:[%s11209_s28 + $0xd] ss:$0 sm:$0xff] }
0x2ae0   : > { %6988 = vmatpush1.bf16.msra.mxu0 %v6970_v53  ;;  %v7266_v53 = vld [vmem:[%s11215_s9 + $0x2e0] sm:$0xff] }
0x2ae1   : > { %v7129_v55 = vpack.c.bf16 %v7104_v39, %v7103_v40  ;;  %7130 = vmatprep.subr.bf16.mxu0 %v7114_v37  ;;  %v7278_v35 = vunpack.c.l.s8.bf16 %v7266_v53  ;;  %v7281_v37 = vunpack.c.h.s8.bf16 %v7267_v58  ;;  %v7280_v40 = vunpack.c.h.s8.bf16 %v7266_v53  ;;  %v7577_v53 = vld [vmem:[%s11215_s9 + $0x348] sm:$0xff] }
0x2ae3   : > { %7006 = vmatmul.mubr.bf16.vlgmr.msra.gmra.mrb[88].mxu0 %v6972_v12  ;;  %v7111_v12 = vld [vmem:[%s11215_s9 + $0x2b0] sm:$0xff] }
0x2ae4   : > { %7131 = vmatpush1.bf16.msra.mxu0 %v7113_v62  ;;  %7162 = vmatprep.mubr.bf16.mxu0 %v10483_v42  ;;  %v7125_v25 = vunpack.c.l.s8.bf16 %v7111_v12  ;;  %v7127_v47 = vunpack.c.h.s8.bf16 %v7111_v12  ;;  %v7283_v62 = vunpack.c.l.s8.bf16 %v7269_v4 }
0x2ae5   : > { %7132 = vmatprep.subr.bf16.mxu0 %v7116_v61 }
0x2ae8   : > { %7133 = vmatpush1.bf16.msra.mxu0 %v7115_v28 }
0x2ae9   : > { %7134 = vmatprep.subr.bf16.mxu0 %v7118_v14 }
0x2aec   : > { %7135 = vmatpush1.bf16.msra.mxu0 %v7117_v56 }
0x2aed   : > { %7136 = vmatprep.subr.bf16.mxu0 %v7120_v6 }
0x2af0   : > { %7137 = vmatpush1.bf16.msra.mxu0 %v7119_v59 }
0x2af1   : > { %7138 = vmatprep.subr.bf16.mxu0 %v7122_v60  ;;  %v7285_v60 = vunpack.c.h.s8.bf16 %v7269_v4 }
0x2af4   : > { %7139 = vmatpush1.bf16.msra.mxu0 %v7121_v29 }
0x2af5   : > { %v9095_v5 = vpop.f32.mrb[160].mxu1  ;;  %7140 = vmatprep.subr.bf16.mxu0 %v7124_v36 }
0x2af6   : > { %v9096_v32 = vpop.f32.mrb[161].mxu1 }
0x2af7   : > { %v9097_v50 = vadd.f32 %v9096_v32, %v9095_v5  ;;  %v9098_v15 = vpop.f32.mrb[162].mxu1  ;;  %v7428_v5 = vunpack.c.l.s8.bf16 %v7420_v17 }
0x2af8   : > { %7141 = vmatpush1.bf16.msra.mxu0 %v7123_v11  ;;  %v9099_v23 = vpop.f32.mrb[163].mxu1 }
0x2af9   : > { %v7249_v30 = vmul.f32 %v9097_v50, %v8747_v54  ;;  %v9100_v27 = vadd.f32 %v9099_v23, %v9098_v15  ;;  %7142 = vmatprep.subr.bf16.mxu0 %v7126_v10  ;;  %v7419_v10 = vld [vmem:[%s11215_s9 + $0x300] sm:$0xff]  ;;  %v7430_v15 = vunpack.c.h.s8.bf16 %v7420_v17  ;;  %v7581_v17 = vld [vmem:[%s11215_s9 + $0x368] sm:$0xff] }
0x2afa   : > { %v7429_v23 = vunpack.c.h.s8.bf16 %v7419_v10 }
0x2afb   : > { %v7258_v44 = vadd.f32 %v8748_v16, %v7249_v30  ;;  %v7250_v57 = vmul.f32 %v9100_v27, %v8747_v54  ;;  %v7427_v54 = vunpack.c.l.s8.bf16 %v7419_v10  ;;  %v7421_v30 = vld [vmem:[%s11215_s9 + $0x310] sm:$0xff]  ;;  %v7583_v10 = vld [vmem:[%s11215_s9 + $0x378] sm:$0xff] }
0x2afc   : > { %7143 = vmatpush1.bf16.msra.mxu0 %v7125_v25  ;;  %v7431_v27 = vunpack.c.l.s8.bf16 %v7421_v30 }
0x2afd   : > { %v7259_v1 = vadd.f32 %v8748_v16, %v7250_v57  ;;  %7144 = vmatprep.subr.bf16.mxu0 %v7128_v18  ;;  %v7260_v9 = vmax.f32 %v7258_v44, 0.0  ;;  %v7422_v16 = vld [vmem:[%s11215_s9 + $0x318] sm:$0xff]  ;;  %v7433_v44 = vunpack.c.h.s8.bf16 %v7421_v30  ;;  %v7436_v57 = vunpack.c.l.s8.bf16 %v7424_v34 }
0x2afe   : > { %v7432_v25 = vunpack.c.l.s8.bf16 %v7422_v16  ;;  %v7434_v18 = vunpack.c.h.s8.bf16 %v7422_v16  ;;  %v8753_v16 = vld [vmem:[%s11206_s11 + $0xe] ss:$0 sm:$0xff] }
0x2aff   : > { %v7261_v46 = vmax.f32 %v7259_v1, 0.0  ;;  %v8754_v30 = vld [vmem:[%s11209_s28 + $0xe] ss:$0 sm:$0xff] }
0x2b00   : > { %7145 = vmatpush1.bf16.msra.mxu0 %v7127_v47  ;;  %v7423_v47 = vld [vmem:[%s11215_s9 + $0x320] sm:$0xff] }
0x2b01   : > { %v7286_v24 = vpack.c.bf16 %v7261_v46, %v7260_v9  ;;  %7287 = vmatprep.subr.bf16.mxu0 %v7271_v26  ;;  %v7435_v1 = vunpack.c.l.s8.bf16 %v7423_v47  ;;  %v7438_v26 = vunpack.c.h.s8.bf16 %v7424_v34  ;;  %v7437_v9 = vunpack.c.h.s8.bf16 %v7423_v47  ;;  %v7734_v47 = vld [vmem:[%s11215_s9 + $0x388] sm:$0xff] }
0x2b03   : > { %7163 = vmatmul.mubr.bf16.vlgmr.msra.gmra.mrb[88].mxu0 %v7129_v55  ;;  %v7268_v55 = vld [vmem:[%s11215_s9 + $0x2f0] sm:$0xff] }
0x2b04   : > { %7288 = vmatpush1.bf16.msra.mxu0 %v7270_v31  ;;  %7319 = vmatprep.mubr.bf16.mxu0 %v10483_v42  ;;  %v7282_v6 = vunpack.c.l.s8.bf16 %v7268_v55  ;;  %v7284_v51 = vunpack.c.h.s8.bf16 %v7268_v55  ;;  %v7440_v31 = vunpack.c.l.s8.bf16 %v7426_v52 }
0x2b05   : > { %7289 = vmatprep.subr.bf16.mxu0 %v7273_v22 }
0x2b08   : > { %7290 = vmatpush1.bf16.msra.mxu0 %v7272_v0 }
0x2b09   : > { %7291 = vmatprep.subr.bf16.mxu0 %v7275_v2 }
0x2b0c   : > { %7292 = vmatpush1.bf16.msra.mxu0 %v7274_v43 }
0x2b0d   : > { %7293 = vmatprep.subr.bf16.mxu0 %v7277_v20 }
0x2b10   : > { %7294 = vmatpush1.bf16.msra.mxu0 %v7276_v7 }
0x2b11   : > { %7295 = vmatprep.subr.bf16.mxu0 %v7279_v48  ;;  %v7442_v48 = vunpack.c.h.s8.bf16 %v7426_v52 }
0x2b14   : > { %7296 = vmatpush1.bf16.msra.mxu0 %v7278_v35 }
0x2b15   : > { %v9117_v39 = vpop.f32.mrb[164].mxu1  ;;  %7297 = vmatprep.subr.bf16.mxu0 %v7281_v37 }
0x2b16   : > { %v9118_v61 = vpop.f32.mrb[165].mxu1 }
0x2b17   : > { %v9119_v28 = vadd.f32 %v9118_v61, %v9117_v39  ;;  %v9120_v14 = vpop.f32.mrb[166].mxu1  ;;  %v7585_v39 = vunpack.c.l.s8.bf16 %v7577_v53 }
0x2b18   : > { %7298 = vmatpush1.bf16.msra.mxu0 %v7280_v40  ;;  %v9121_v56 = vpop.f32.mrb[167].mxu1 }
0x2b19   : > { %v7406_v49 = vmul.f32 %v9119_v28, %v8749_v3  ;;  %v9122_v59 = vadd.f32 %v9121_v56, %v9120_v14  ;;  %7299 = vmatprep.subr.bf16.mxu0 %v7283_v62  ;;  %v7576_v62 = vld [vmem:[%s11215_s9 + $0x340] sm:$0xff]  ;;  %v7587_v14 = vunpack.c.h.s8.bf16 %v7577_v53  ;;  %v7738_v53 = vld [vmem:[%s11215_s9 + $0x3a8] sm:$0xff] }
0x2b1a   : > { %v7586_v56 = vunpack.c.h.s8.bf16 %v7576_v62 }
0x2b1b   : > { %v7415_v29 = vadd.f32 %v8750_v13, %v7406_v49  ;;  %v7407_v36 = vmul.f32 %v9122_v59, %v8749_v3  ;;  %v7584_v3 = vunpack.c.l.s8.bf16 %v7576_v62  ;;  %v7578_v49 = vld [vmem:[%s11215_s9 + $0x350] sm:$0xff]  ;;  %v7740_v62 = vld [vmem:[%s11215_s9 + $0x3b8] sm:$0xff] }
0x2b1c   : > { %7300 = vmatpush1.bf16.msra.mxu0 %v7282_v6  ;;  %v7588_v59 = vunpack.c.l.s8.bf16 %v7578_v49 }
0x2b1d   : > { %v7416_v11 = vadd.f32 %v8750_v13, %v7407_v36  ;;  %7301 = vmatprep.subr.bf16.mxu0 %v7285_v60  ;;  %v7417_v12 = vmax.f32 %v7415_v29, 0.0  ;;  %v7579_v13 = vld [vmem:[%s11215_s9 + $0x358] sm:$0xff]  ;;  %v7590_v29 = vunpack.c.h.s8.bf16 %v7578_v49  ;;  %v7593_v36 = vunpack.c.l.s8.bf16 %v7581_v17 }
0x2b1e   : > { %v7589_v6 = vunpack.c.l.s8.bf16 %v7579_v13  ;;  %v7591_v60 = vunpack.c.h.s8.bf16 %v7579_v13  ;;  %v8755_v13 = vld [vmem:[%s11206_s11 + $0xf] ss:$0 sm:$0xff] }
0x2b1f   : > { %v7418_v32 = vmax.f32 %v7416_v11, 0.0  ;;  %v8756_v49 = vld [vmem:[%s11209_s28 + $0xf] ss:$0 sm:$0xff] }
0x2b20   : > { %7302 = vmatpush1.bf16.msra.mxu0 %v7284_v51  ;;  %v7580_v51 = vld [vmem:[%s11215_s9 + $0x360] sm:$0xff] }
0x2b21   : > { %v7443_v50 = vpack.c.bf16 %v7418_v32, %v7417_v12  ;;  %7444 = vmatprep.subr.bf16.mxu0 %v7428_v5  ;;  %v7592_v11 = vunpack.c.l.s8.bf16 %v7580_v51  ;;  %v7595_v5 = vunpack.c.h.s8.bf16 %v7581_v17  ;;  %v7594_v12 = vunpack.c.h.s8.bf16 %v7580_v51  ;;  %v7891_v51 = vld [vmem:[%s11215_s9 + $0x3c8] sm:$0xff] }
0x2b23   : > { %7320 = vmatmul.mubr.bf16.vlgmr.msra.gmra.mrb[88].mxu0 %v7286_v24  ;;  %v7425_v24 = vld [vmem:[%s11215_s9 + $0x330] sm:$0xff] }
0x2b24   : > { %7445 = vmatpush1.bf16.msra.mxu0 %v7427_v54  ;;  %7476 = vmatprep.mubr.bf16.mxu0 %v10483_v42  ;;  %v7439_v20 = vunpack.c.l.s8.bf16 %v7425_v24  ;;  %v7441_v4 = vunpack.c.h.s8.bf16 %v7425_v24  ;;  %v7597_v54 = vunpack.c.l.s8.bf16 %v7583_v10 }
0x2b25   : > { %7446 = vmatprep.subr.bf16.mxu0 %v7430_v15 }
0x2b28   : > { %7447 = vmatpush1.bf16.msra.mxu0 %v7429_v23 }
0x2b29   : > { %7448 = vmatprep.subr.bf16.mxu0 %v7432_v25 }
0x2b2c   : > { %7449 = vmatpush1.bf16.msra.mxu0 %v7431_v27 }
0x2b2d   : > { %7450 = vmatprep.subr.bf16.mxu0 %v7434_v18 }
0x2b30   : > { %7451 = vmatpush1.bf16.msra.mxu0 %v7433_v44 }
0x2b31   : > { %7452 = vmatprep.subr.bf16.mxu0 %v7436_v57  ;;  %v7599_v57 = vunpack.c.h.s8.bf16 %v7583_v10 }
0x2b34   : > { %7453 = vmatpush1.bf16.msra.mxu0 %v7435_v1 }
0x2b35   : > { %v9139_v46 = vpop.f32.mrb[168].mxu1  ;;  %7454 = vmatprep.subr.bf16.mxu0 %v7438_v26 }
0x2b36   : > { %v9140_v22 = vpop.f32.mrb[169].mxu1 }
0x2b37   : > { %v9141_v0 = vadd.f32 %v9140_v22, %v9139_v46  ;;  %v9142_v2 = vpop.f32.mrb[170].mxu1  ;;  %v7742_v46 = vunpack.c.l.s8.bf16 %v7734_v47 }
0x2b38   : > { %7455 = vmatpush1.bf16.msra.mxu0 %v7437_v9  ;;  %v9143_v43 = vpop.f32.mrb[171].mxu1 }
0x2b39   : > { %v7563_v58 = vmul.f32 %v9141_v0, %v8751_v33  ;;  %v9144_v7 = vadd.f32 %v9143_v43, %v9142_v2  ;;  %7456 = vmatprep.subr.bf16.mxu0 %v7440_v31  ;;  %v7733_v31 = vld [vmem:[%s11215_s9 + $0x380] sm:$0xff]  ;;  %v7744_v2 = vunpack.c.h.s8.bf16 %v7734_v47  ;;  %v7895_v47 = vld [vmem:[%s11215_s9 + $0x3e8] sm:$0xff] }
0x2b3a   : > { %v7743_v43 = vunpack.c.h.s8.bf16 %v7733_v31 }
0x2b3b   : > { %v7572_v35 = vadd.f32 %v8752_v8, %v7563_v58  ;;  %v7564_v37 = vmul.f32 %v9144_v7, %v8751_v33  ;;  %v7741_v33 = vunpack.c.l.s8.bf16 %v7733_v31  ;;  %v7735_v58 = vld [vmem:[%s11215_s9 + $0x390] sm:$0xff] }
0x2b3c   : > { %7457 = vmatpush1.bf16.msra.mxu0 %v7439_v20  ;;  %v7745_v7 = vunpack.c.l.s8.bf16 %v7735_v58 }
0x2b3d   : > { %v7573_v40 = vadd.f32 %v8752_v8, %v7564_v37  ;;  %7458 = vmatprep.subr.bf16.mxu0 %v7442_v48  ;;  %v7574_v55 = vmax.f32 %v7572_v35, 0.0  ;;  %v7736_v8 = vld [vmem:[%s11215_s9 + $0x398] sm:$0xff]  ;;  %v7747_v35 = vunpack.c.h.s8.bf16 %v7735_v58  ;;  %v7750_v37 = vunpack.c.l.s8.bf16 %v7738_v53 }
0x2b3e   : > { %v7746_v20 = vunpack.c.l.s8.bf16 %v7736_v8  ;;  %v7748_v48 = vunpack.c.h.s8.bf16 %v7736_v8  ;;  %v7962_v8 = vld [vmem:[%s12887_s2] sm:$0x3] }
0x2b3f   : > { %v7575_v61 = vmax.f32 %v7573_v40, 0.0  ;;  %v7971_v58 = vrot.slane %v7962_v8, %v11711_v45 }
0x2b40   : > { %7459 = vmatpush1.bf16.msra.mxu0 %v7441_v4  ;;  %v7737_v4 = vld [vmem:[%s11215_s9 + $0x3a0] sm:$0xff] }
0x2b41   : > { %v7600_v28 = vpack.c.bf16 %v7575_v61, %v7574_v55  ;;  %7601 = vmatprep.subr.bf16.mxu0 %v7585_v39  ;;  %v7749_v40 = vunpack.c.l.s8.bf16 %v7737_v4  ;;  %v7752_v39 = vunpack.c.h.s8.bf16 %v7738_v53  ;;  %v7751_v55 = vunpack.c.h.s8.bf16 %v7737_v4 }
0x2b43   : > { %7477 = vmatmul.mubr.bf16.vlgmr.msra.gmra.mrb[88].mxu0 %v7443_v50  ;;  %v7582_v50 = vld [vmem:[%s11215_s9 + $0x370] sm:$0xff] }
0x2b44   : > { %7602 = vmatpush1.bf16.msra.mxu0 %v7584_v3  ;;  %7633 = vmatprep.mubr.bf16.mxu0 %v10483_v42  ;;  %v7596_v18 = vunpack.c.l.s8.bf16 %v7582_v50  ;;  %v7598_v52 = vunpack.c.h.s8.bf16 %v7582_v50  ;;  %v7754_v3 = vunpack.c.l.s8.bf16 %v7740_v62 }
0x2b45   : > { %7603 = vmatprep.subr.bf16.mxu0 %v7587_v14 }
0x2b48   : > { %7604 = vmatpush1.bf16.msra.mxu0 %v7586_v56 }
0x2b49   : > { %7605 = vmatprep.subr.bf16.mxu0 %v7589_v6 }
0x2b4c   : > { %7606 = vmatpush1.bf16.msra.mxu0 %v7588_v59 }
0x2b4d   : > { %7607 = vmatprep.subr.bf16.mxu0 %v7591_v60 }
0x2b50   : > { %7608 = vmatpush1.bf16.msra.mxu0 %v7590_v29 }
0x2b51   : > { %7609 = vmatprep.subr.bf16.mxu0 %v7593_v36  ;;  %v7756_v36 = vunpack.c.h.s8.bf16 %v7740_v62 }
0x2b54   : > { %7610 = vmatpush1.bf16.msra.mxu0 %v7592_v11 }
0x2b55   : > { %v9161_v32 = vpop.f32.mrb[172].mxu1  ;;  %7611 = vmatprep.subr.bf16.mxu0 %v7595_v5 }
0x2b56   : > { %v9162_v15 = vpop.f32.mrb[173].mxu1 }
0x2b57   : > { %v9163_v23 = vadd.f32 %v9162_v15, %v9161_v32  ;;  %v9164_v25 = vpop.f32.mrb[174].mxu1  ;;  %v7899_v32 = vunpack.c.l.s8.bf16 %v7891_v51 }
0x2b58   : > { %7612 = vmatpush1.bf16.msra.mxu0 %v7594_v12  ;;  %v9165_v27 = vpop.f32.mrb[175].mxu1 }
0x2b59   : > { %v7720_v34 = vmul.f32 %v9163_v23, %v8753_v16  ;;  %v9166_v44 = vadd.f32 %v9165_v27, %v9164_v25  ;;  %7613 = vmatprep.subr.bf16.mxu0 %v7597_v54  ;;  %v7890_v54 = vld [vmem:[%s11215_s9 + $0x3c0] sm:$0xff]  ;;  %v7901_v25 = vunpack.c.h.s8.bf16 %v7891_v51 }
0x2b5a   : > { %v7900_v27 = vunpack.c.h.s8.bf16 %v7890_v54 }
0x2b5b   : > { %v7729_v1 = vadd.f32 %v8754_v30, %v7720_v34  ;;  %v7721_v26 = vmul.f32 %v9166_v44, %v8753_v16  ;;  %v7898_v16 = vunpack.c.l.s8.bf16 %v7890_v54  ;;  %v7892_v34 = vld [vmem:[%s11215_s9 + $0x3d0] sm:$0xff] }
0x2b5c   : > { %7614 = vmatpush1.bf16.msra.mxu0 %v7596_v18  ;;  %v7902_v44 = vunpack.c.l.s8.bf16 %v7892_v34 }
0x2b5d   : > { %v7730_v9 = vadd.f32 %v8754_v30, %v7721_v26  ;;  %7615 = vmatprep.subr.bf16.mxu0 %v7599_v57  ;;  %v7731_v24 = vmax.f32 %v7729_v1, 0.0  ;;  %v7893_v30 = vld [vmem:[%s11215_s9 + $0x3d8] sm:$0xff]  ;;  %v7904_v1 = vunpack.c.h.s8.bf16 %v7892_v34  ;;  %v7907_v26 = vunpack.c.l.s8.bf16 %v7895_v47 }
0x2b5e   : > { %v7903_v18 = vunpack.c.l.s8.bf16 %v7893_v30  ;;  %v7905_v57 = vunpack.c.h.s8.bf16 %v7893_v30 }
0x2b5f   : > { %v7732_v22 = vmax.f32 %v7730_v9, 0.0 }
0x2b60   : > { %7616 = vmatpush1.bf16.msra.mxu0 %v7598_v52  ;;  %v7894_v52 = vld [vmem:[%s11215_s9 + $0x3e0] sm:$0xff] }
0x2b61   : > { %v7757_v0 = vpack.c.bf16 %v7732_v22, %v7731_v24  ;;  %7758 = vmatprep.subr.bf16.mxu0 %v7742_v46  ;;  %v7906_v9 = vunpack.c.l.s8.bf16 %v7894_v52  ;;  %v7909_v46 = vunpack.c.h.s8.bf16 %v7895_v47  ;;  %v7908_v31 = vunpack.c.h.s8.bf16 %v7894_v52  ;;  %v7896_v22 = vld [vmem:[%s11215_s9 + $0x3f0] sm:$0xff] }
0x2b63   : > { %7634 = vmatmul.mubr.bf16.vlgmr.msra.gmra.mrb[88].mxu0 %v7600_v28  ;;  %v7739_v28 = vld [vmem:[%s11215_s9 + $0x3b0] sm:$0xff] }
0x2b64   : > { %7759 = vmatpush1.bf16.msra.mxu0 %v7741_v33  ;;  %7790 = vmatprep.mubr.bf16.mxu0 %v10483_v42  ;;  %v7753_v60 = vunpack.c.l.s8.bf16 %v7739_v28  ;;  %v7755_v10 = vunpack.c.h.s8.bf16 %v7739_v28  ;;  %v7910_v33 = vunpack.c.l.s8.bf16 %v7896_v22 }
0x2b65   : > { %7760 = vmatprep.subr.bf16.mxu0 %v7744_v2  ;;  %v7912_v2 = vunpack.c.h.s8.bf16 %v7896_v22 }
0x2b68   : > { %7761 = vmatpush1.bf16.msra.mxu0 %v7743_v43  ;;  %v7978_v43 = vld [vmem:[%s993_s24] sm:$0x3] }
0x2b69   : > { %7762 = vmatprep.subr.bf16.mxu0 %v7746_v20  ;;  %v7967_v20 = vrot.slane %v7962_v8, %v11706_v38  ;;  %v7987_v53 = vrot.slane %v7978_v43, %v11711_v45 }
0x2b6c   : > { %7763 = vmatpush1.bf16.msra.mxu0 %v7745_v7  ;;  %v7983_v7 = vrot.slane %v7978_v43, %v11706_v38 }
0x2b6d   : > { %7764 = vmatprep.subr.bf16.mxu0 %v7748_v48 }
0x2b70   : > { %7765 = vmatpush1.bf16.msra.mxu0 %v7747_v35 }
0x2b71   : > { %7766 = vmatprep.subr.bf16.mxu0 %v7750_v37 }
0x2b74   : > { %7767 = vmatpush1.bf16.msra.mxu0 %v7749_v40 }
0x2b75   : > { %v9183_v61 = vpop.f32.mrb[176].mxu1  ;;  %7768 = vmatprep.subr.bf16.mxu0 %v7752_v39 }
0x2b76   : > { %v9184_v14 = vpop.f32.mrb[177].mxu1 }
0x2b77   : > { %v9185_v56 = vadd.f32 %v9184_v14, %v9183_v61  ;;  %v9186_v6 = vpop.f32.mrb[178].mxu1 }
0x2b78   : > { %7769 = vmatpush1.bf16.msra.mxu0 %v7751_v55  ;;  %v9187_v59 = vpop.f32.mrb[179].mxu1 }
0x2b79   : > { %v7877_v17 = vmul.f32 %v9185_v56, %v8755_v13  ;;  %v9188_v29 = vadd.f32 %v9187_v59, %v9186_v6  ;;  %7770 = vmatprep.subr.bf16.mxu0 %v7754_v3 }
0x2b7b   : > { %v7886_v11 = vadd.f32 %v8756_v49, %v7877_v17  ;;  %v7878_v5 = vmul.f32 %v9188_v29, %v8755_v13 }
0x2b7c   : > { %7771 = vmatpush1.bf16.msra.mxu0 %v7753_v60 }
0x2b7d   : > { %v7887_v12 = vadd.f32 %v8756_v49, %v7878_v5  ;;  %7772 = vmatprep.subr.bf16.mxu0 %v7756_v36  ;;  %v7888_v50 = vmax.f32 %v7886_v11, 0.0 }
0x2b7f   : > { %v7889_v15 = vmax.f32 %v7887_v12, 0.0 }
0x2b80   : > { %7773 = vmatpush1.bf16.msra.mxu0 %v7755_v10 }
0x2b81   : > { %v7914_v23 = vpack.c.bf16 %v7889_v15, %v7888_v50  ;;  %7915 = vmatprep.subr.bf16.mxu0 %v7899_v32 }
0x2b83   : > { %7791 = vmatmul.mubr.bf16.vlgmr.msra.gmra.mrb[88].mxu0 %v7757_v0 }
0x2b84   : > { %7916 = vmatpush1.bf16.msra.mxu0 %v7898_v16  ;;  %7947 = vmatprep.mubr.bf16.mxu0 %v10483_v42  ;;  %v7897_v42 = vld [vmem:[%s11215_s9 + $0x3f8] sm:$0xff] }
0x2b85   : > { %7917 = vmatprep.subr.bf16.mxu0 %v7901_v25  ;;  %v7911_v24 = vunpack.c.l.s8.bf16 %v7897_v42  ;;  %v7913_v0 = vunpack.c.h.s8.bf16 %v7897_v42 }
0x2b88   : > { %7918 = vmatpush1.bf16.msra.mxu0 %v7900_v27  ;;  %v7998_v27 = vld [vmem:[%s1002_s25] sm:$0x3] }
0x2b89   : > { %7919 = vmatprep.subr.bf16.mxu0 %v7903_v18  ;;  %v7999_v18 = vld [vmem:[%s12888_s20] sm:$0x3]  ;;  %v8036_v34 = vrot.slane %v7998_v27, %v11706_v38 }
0x2b8a   : > { %v8051_v47 = vrot.slane %v7999_v18, %v11706_v38 }
0x2b8c   : > { %7920 = vmatpush1.bf16.msra.mxu0 %v7902_v44  ;;  %v8040_v44 = vrot.slane %v7998_v27, %v11711_v45 }
0x2b8d   : > { %7921 = vmatprep.subr.bf16.mxu0 %v7905_v57 }
0x2b90   : > { %7922 = vmatpush1.bf16.msra.mxu0 %v7904_v1  ;;  %v8055_v1 = vrot.slane %v7999_v18, %v11711_v45 }
0x2b91   : > { %7923 = vmatprep.subr.bf16.mxu0 %v7907_v26 }
0x2b94   : > { %7924 = vmatpush1.bf16.msra.mxu0 %v7906_v9 }
0x2b95   : > { %7925 = vmatprep.subr.bf16.mxu0 %v7909_v46 }
0x2b98   : > { %7926 = vmatpush1.bf16.msra.mxu0 %v7908_v31 }
0x2b99   : > { %7927 = vmatprep.subr.bf16.mxu0 %v7911_v24 }
0x2b9c   : > { %7928 = vmatpush1.bf16.msra.mxu0 %v7910_v33 }
0x2b9d   : > { %7929 = vmatprep.subr.bf16.mxu0 %v7913_v0 }
0x2ba0   : > { %7930 = vmatpush1.bf16.msra.mxu0 %v7912_v2 }
0x2ba3   : > { %7948 = vmatmul.mubr.bf16.vlgmr.msra.gmra.mrb[88].mxu0 %v7914_v23 }
0x2c76   : > { %v7949_v48 = vpop.f32.mrb[88].mxu0 }
0x2c77   : > { %v7974_v35 = vmul.f32 %v7967_v20, %v7949_v48  ;;  %v7951_v37 = vpop.f32.mrb[89].mxu0 }
0x2c78   : > { %v7975_v4 = vmul.f32 %v7971_v58, %v7951_v37  ;;  %v7953_v40 = vpop.f32.mrb[90].mxu0 }
0x2c79   : > { %v7990_v39 = vadd.f32 %v7983_v7, %v7974_v35  ;;  %v7976_v62 = vmul.f32 %v7967_v20, %v7953_v40  ;;  %v7955_v55 = vpop.f32.mrb[91].mxu0 }
0x2c7a   : > { %v7991_v61 = vadd.f32 %v7987_v53, %v7975_v4  ;;  %v7977_v3 = vmul.f32 %v7971_v58, %v7955_v55 }
0x2c7b   : > { %v7992_v28 = vadd.f32 %v7983_v7, %v7976_v62  ;;  %v7994_v14 = vadd.f32 %v7990_v39, %v12346_v21 }
0x2c7c   : > { %v7993_v13 = vadd.f32 %v7987_v53, %v7977_v3  ;;  %v7995_v56 = vadd.f32 %v7991_v61, %v12348_v19 }
0x2c7d   : > { %v7996_v6 = vadd.f32 %v7992_v28, %v12350_v63 }
0x2c7e   : > { %v8000_v49 = vadd.f32 %v7995_v56, %v7994_v14  ;;  %v7997_v59 = vadd.f32 %v7993_v13, %v12352_v41 }
0x2c80   : > { %8001 = vadd.xlane.f32.xlu0 %v8000_v49  ;;  %v8003_v60 = vadd.f32 %v7997_v59, %v7996_v6 }
0x2c82   : > { %8004 = vadd.xlane.f32.xlu1 %v8003_v60 }
0x2d0d   : > { %v8002_v17 = vpop.xlane.xlu0 %8001 }
0x2d0e   : > { %v8006_v29 = vmul.f32 0.00390625, %v8002_v17 }
0x2d0f   : > { %v8005_v36 = vpop.xlane.xlu1 %8004 }
0x2d10   : > { %v8008_v51 = vsub.f32 %v7994_v14, %v8006_v29  ;;  %v8009_v11 = vsub.f32 %v7995_v56, %v8006_v29  ;;  %v8007_v5 = vmul.f32 0.00390625, %v8005_v36 }
0x2d12   : > { %v8010_v10 = vsub.f32 %v7996_v6, %v8007_v5  ;;  %v8011_v12 = vsub.f32 %v7997_v59, %v8007_v5  ;;  %v8012_v21 = vmul.f32 %v8008_v51, %v8008_v51  ;;  %v8013_v32 = vmul.f32 %v8009_v11, %v8009_v11 }
0x2d14   : > { %v8016_v19 = vadd.f32 %v8013_v32, %v8012_v21  ;;  %v8014_v63 = vmul.f32 %v8010_v10, %v8010_v10  ;;  %v8015_v54 = vmul.f32 %v8011_v12, %v8011_v12 }
0x2d16   : > { %8017 = vadd.xlane.f32.xlu1 %v8016_v19  ;;  %v8019_v41 = vadd.f32 %v8015_v54, %v8014_v63 }
0x2d1a   : > { %8020 = vadd.xlane.f32.xlu1 %v8019_v41 }
0x2da3   : > { %v8018_v50 = vpop.xlane.xlu1 %8017 }
0x2da4   : > { %v8022_v15 = vmul.f32 0.00390625, %v8018_v50 }
0x2da6   : > { %v8024_v16 = vadd.f32 1e-05, %v8022_v15 }
0x2da7   : > { %v8021_v23 = vpop.xlane.xlu1 %8020 }
0x2da8   : > { %9865 = vrsqrt.f32 %v8024_v16  ;;  %v8023_v25 = vmul.f32 0.00390625, %v8021_v23 }
0x2daa   : > { %v8025_v30 = vadd.f32 1e-05, %v8023_v25 }
0x2dac   : > { %9867 = vrsqrt.f32 %v8025_v30 }
0x2db2   : > { %v9866_v57 = vpop.eup %9865 }
0x2db3   : > { %v8028_v26 = vmul.f32 %v9866_v57, %v8008_v51  ;;  %v8029_v52 = vmul.f32 %v9866_v57, %v8009_v11 }
0x2db5   : > { %v8043_v9 = vmul.f32 %v8036_v34, %v8028_v26  ;;  %v8044_v46 = vmul.f32 %v8040_v44, %v8029_v52 }
0x2db6   : > { %v9868_v42 = vpop.eup %9867 }
0x2db7   : > { %v8058_v31 = vadd.f32 %v8051_v47, %v8043_v9  ;;  %v8059_v24 = vadd.f32 %v8055_v1, %v8044_v46  ;;  %v8030_v22 = vmul.f32 %v9868_v42, %v8010_v10  ;;  %v8031_v33 = vmul.f32 %v9868_v42, %v8011_v12 }
0x2db9   : > { %8062 = vst [vmem:[#allocation31] sm:$0xff] %v8058_v31  ;;  %8063 = vst [vmem:[#allocation31 + $0x8] sm:$0xff] %v8059_v24  ;;  %v8045_v0 = vmul.f32 %v8036_v34, %v8030_v22  ;;  %v8046_v2 = vmul.f32 %v8040_v44, %v8031_v33 }
0x2dbb   : > { %v8060_v38 = vadd.f32 %v8051_v47, %v8045_v0  ;;  %v8061_v45 = vadd.f32 %v8055_v1, %v8046_v2 }
0x2dbd   : > { %8064 = vst [vmem:[#allocation31 + $0x10] sm:$0xff] %v8060_v38  ;;  %8065 = vst [vmem:[#allocation31 + $0x18] sm:$0xff] %v8061_v45 }
0x2dbe   : > { %10362 = shalt.err (!%p10359_p4)
}
0x2dbf   : > { %s12890_s9 = sld [smem:[#allocation60_spill]] }
0x2dc5   : > { %s10363_s24 = scalar_lea.hbm %s12890_s9, 512 }
0x2dc6   : > { %p10364_p8 = scmp.ne.s32.totalorder %s12890_s9, %s10363_s24  ;;  %p10369_p10 = scmp.lt.u32.totalorder %s10363_s24, %s12890_s9 }
0x2dc8   : > { %p10365_p9 = pnand %p10364_p8, %p9527_p11 }
0x2dca   : > { %p10366_p2 = pneg %p10365_p9 }
0x2dcc   : > { %p10371_p0 = pnand %p10369_p10, %p10366_p2 }
0x2dce   : > { %10374 = shalt.err (!%p10371_p0)
}
0x2dcf   : > { %s10486_s30 = smov 256   ;;  %s10487_s3 = smov 16  }
0x2dd0   : > { %9508 = dma.vmem_to_hbm [thread:$0]  (%p9527_p11), %s8073_s27, 512, %s12890_s9, [#allocation6], %s10486_s30, %s10486_s30, %s10487_s3  }
0x2dd1   : > { %10428 = dma.done.wait (%p9527_p11), [#allocation6], 512  }
0x2dd2   : > { %10430 = vsyncadd (%p9527_p11), [#allocation6], 4294966784 }
0x2dd3 PF: > { %s12891_s21 = sld [smem:[#allocation45_spill]]  ;;  %s12892_s0 = sld [smem:[#allocation42_spill]] }
0x2dd4   : > { %s12893_s30 = sld [smem:[#allocation43_spill]]  ;;  %s12894_s20 = sld [smem:[#allocation46_spill]] }
0x2dd9   : > { %p50_p6 = scmp.ge.s32.totalorder %s12891_s21, 8  }
0x2ddb   :  { %52 = sbr.rel (!%p50_p6) target bundleno = 31 (0x1f), region = 305 }
0x2de2   :  { %8088 = vsyncpa [#allocation5], 1 }
0x2de3   :  { %8090 = vsyncpa [#allocation5 + $0x1], 1 }
0x2de4   :  { %8091 = vsyncpa [#allocation8], 1 }
0x2de5   :  { %8092 = vsyncpa [#allocation11], 1 }
0x2de6   :  { %8094 = vsyncpa [#allocation11 + $0x1], 1 }
0x2de7   :  { %8095 = vsyncpa [#allocation14], 1 }
0x2de8   :  { %8097 = vsyncpa [#allocation14 + $0x1], 1 }
0x2de9   :  { %8098 = vsyncpa [#allocation17], 1 }
0x2dea   :  { %8100 = vsyncpa [#allocation17 + $0x1], 1 }
0x2deb   :  { %8101 = vsyncpa [#allocation20], 1 }
0x2dec   :  { %8103 = vsyncpa [#allocation20 + $0x1], 1 }
0x2ded   :  { %8104 = vsyncpa [#allocation23], 1 }
0x2dee   :  { %8106 = vsyncpa [#allocation23 + $0x1], 1 }
0x2def   :  { %8107 = vsyncpa [#allocation26], 1 }
0x2df0   :  { %8109 = vsyncpa [#allocation26 + $0x1], 1 }
0x2df1   :  { %8110 = vsyncpa [#allocation29], 1 }
0x2df2   :  { %8112 = vsyncpa [#allocation29 + $0x1], 1 }
0x2df3   :  { %8113 = vsyncpa [#allocation6], 1 }
0x2df4   :  { %8115 = vsyncpa [#allocation6 + $0x1], 1 }

</bundles_post_ra>
